<compile_context>
chip_gen: v6e
topology: v6e:2x2x1
jax: 0.10.0
libtpu: 0.0.40
codegen_flags: <defaults>
</compile_context>

<pallas_src>
import functools
import math

import jax
import jax.numpy as jnp
from jax.experimental import pallas as pl
from jax.experimental.pallas import tpu as pltpu


# --------------------------------------------------------------------------
# In-kernel helpers
# --------------------------------------------------------------------------
def _dyt(x, alpha_ref, gamma_ref, beta_ref):
    """gamma * tanh(alpha * x) + beta, all f32 elementwise."""
    return gamma_ref[...] * jnp.tanh(alpha_ref[...] * x) + beta_ref[...]


def _attention_block(q, k, v, *, nhead, valid_s):
    """Multi-head attention on one query tile.

    q: (TS, D) f32 (scale already folded into the Q projection weights).
    k, v: (S, D) (any float dtype; cast to bf16 for the MXU).
    valid_s: None, or the number of valid (unpadded) keys to attend to.
    """
    f32, bf16 = jnp.float32, jnp.bfloat16
    TS, D = q.shape
    S = k.shape[0]
    hd = D // nhead

    # Heads via reshape (hd lane-aligned) -> no per-head slice copies.
    qh = q.astype(bf16).reshape(TS, nhead, hd)
    kh = k.astype(bf16).reshape(S, nhead, hd)
    vh = v.astype(bf16).reshape(S, nhead, hd)

    s = jnp.einsum("qhd,khd->hqk", qh, kh, preferred_element_type=f32)
    if valid_s is not None:
        key_ok = jax.lax.broadcasted_iota(jnp.int32, (1, 1, S), 2) < valid_s
        s = jnp.where(key_ok, s, -1e30)

    s = s - jnp.max(s, axis=-1, keepdims=True)
    p = jnp.exp(s)
    p = p * pl.reciprocal(jnp.sum(p, axis=-1, keepdims=True), approx=True)

    o = jnp.einsum("hqk,khd->qhd", p.astype(bf16), vh,
                   preferred_element_type=f32)
    return o.reshape(TS, D)


def _ffn_chunked(x2b, w1_ref, bf1_ref, w2_ref, *, ffn_chunk):
    """ReLU FFN evaluated in hidden-dim chunks; returns f32 (TS, D).
    The w2 bias is added once by the caller."""
    f32, bf16 = jnp.float32, jnp.bfloat16
    TS = x2b.shape[0]
    D = w2_ref.shape[1]
    F = w1_ref.shape[1]
    n_chunks = F // ffn_chunk

    if n_chunks == 1:
        h = jnp.maximum(
            jnp.dot(x2b, w1_ref[...], preferred_element_type=f32)
            + bf1_ref[...], 0.0)
        return jnp.dot(h.astype(bf16), w2_ref[...], preferred_element_type=f32)

    def body(c, acc):
        f0 = pl.multiple_of(c * ffn_chunk, ffn_chunk)
        h = (jnp.dot(x2b, w1_ref[:, pl.ds(f0, ffn_chunk)],
                     preferred_element_type=f32)
             + bf1_ref[:, pl.ds(f0, ffn_chunk)])
        h = jnp.maximum(h, 0.0)
        return acc + jnp.dot(h.astype(bf16), w2_ref[pl.ds(f0, ffn_chunk), :],
                             preferred_element_type=f32)

    return jax.lax.fori_loop(0, n_chunks, body, jnp.zeros((TS, D), f32),
                             unroll=n_chunks <= 4)


# --------------------------------------------------------------------------
# Kernels
# --------------------------------------------------------------------------
def _encoder_single_tile_kernel(
    src_ref,
    a1_ref, g1_ref, be1_ref,
    wqkv_ref, bqkv_ref, wo_ref, bo_ref,
    a2_ref, g2_ref, be2_ref,
    w1_ref, bf1_ref, w2_ref, bf2_ref,
    out_ref,
    *, nhead, ffn_chunk,
):
    """Whole sequence in one tile: single fused QKV matmul, no duplicate DMA."""
    f32, bf16 = jnp.float32, jnp.bfloat16
    _, D = src_ref.shape

    x = src_ref[...].astype(f32)
    x2b = _dyt(x, a1_ref, g1_ref, be1_ref).astype(bf16)

    qkv = (jnp.dot(x2b, wqkv_ref[...], preferred_element_type=f32)
           + bqkv_ref[...])                                        # (S, 3D)
    q, k, v = qkv[:, :D], qkv[:, D:2 * D], qkv[:, 2 * D:]

    attn = _attention_block(q, k, v, nhead=nhead, valid_s=None)
    attn = (jnp.dot(attn.astype(bf16), wo_ref[...], preferred_element_type=f32)
            + bo_ref[...])

    x = x + attn                                                   # residual 1
    x2b = _dyt(x, a2_ref, g2_ref, be2_ref).astype(bf16)
    ff = _ffn_chunked(x2b, w1_ref, bf1_ref, w2_ref, ffn_chunk=ffn_chunk)
    out_ref[...] = (x + ff + bf2_ref[...]).astype(out_ref.dtype)   # residual 2


def _encoder_tiled_kernel(
    src_q_ref, src_kv_ref,
    a1_ref, g1_ref, be1_ref,
    wqkv_ref, bqkv_ref, wo_ref, bo_ref,
    a2_ref, g2_ref, be2_ref,
    w1_ref, bf1_ref, w2_ref, bf2_ref,
    out_ref,
    k_scr, v_scr,
    *, nhead, ffn_chunk, valid_s,
):
    """Query-tiled path: K/V projected once per batch row and cached in VMEM."""
    f32, bf16 = jnp.float32, jnp.bfloat16
    _, D = src_q_ref.shape

    # K/V projection (and its DyT) only at the first query tile of this row;
    # the s grid axis is "arbitrary" so the scratch carries across tiles.
    @pl.when(pl.program_id(1) == 0)
    def _():
        x_kv = src_kv_ref[...].astype(f32)
        x2_kv_b = _dyt(x_kv, a1_ref, g1_ref, be1_ref).astype(bf16)
        kv = (jnp.dot(x2_kv_b, wqkv_ref[:, D:], preferred_element_type=f32)
              + bqkv_ref[:, D:])                                   # (S, 2D)
        k_scr[...] = kv[:, :D].astype(bf16)
        v_scr[...] = kv[:, D:].astype(bf16)

    x_q = src_q_ref[...].astype(f32)
    x2_q_b = _dyt(x_q, a1_ref, g1_ref, be1_ref).astype(bf16)
    q = (jnp.dot(x2_q_b, wqkv_ref[:, :D], preferred_element_type=f32)
         + bqkv_ref[:, :D])                                        # (TS, D)

    attn = _attention_block(q, k_scr[...], v_scr[...], nhead=nhead,
                            valid_s=valid_s)
    attn = (jnp.dot(attn.astype(bf16), wo_ref[...], preferred_element_type=f32)
            + bo_ref[...])

    x = x_q + attn
    x2b = _dyt(x, a2_ref, g2_ref, be2_ref).astype(bf16)
    ff = _ffn_chunked(x2b, w1_ref, bf1_ref, w2_ref, ffn_chunk=ffn_chunk)
    out_ref[...] = (x + ff + bf2_ref[...]).astype(out_ref.dtype)


# --------------------------------------------------------------------------
# Host wrapper
# --------------------------------------------------------------------------
def _vmem_limit_bytes():
    """Per-chip VMEM budget: ~cap - 12 MiB headroom, capped at 100 MiB
    (v5e/v6e -> ~100 MiB; v7x -> ~52 MiB). None -> compiler default."""
    try:
        info = pltpu.get_tpu_info()
        cap = int(getattr(info, "vmem_capacity_bytes", 0))
    except Exception:
        return None
    if cap <= 0:
        return None
    return max(32 * 1024 * 1024, min(cap - 12 * 1024 * 1024, 100 * 1024 * 1024))


def encoder_layer_pallas(src, params, *, nhead, block_s=None, ffn_chunk=256,
                         single_buffer_weights=True, interpret=False):
    B, S, D = src.shape
    F = params["w1"].shape[1]
    assert D % nhead == 0, "d_model must be divisible by nhead"

    if ffn_chunk is None or ffn_chunk >= F or F % ffn_chunk != 0:
        ffn_chunk = F

    # block_s: whole sequence when it comfortably fits (best on v5e, no KV
    # recompute at all); otherwise 256-row query tiles to fill the 256-wide
    # MXU on v6e / v7x.  Callers can override.
    if block_s is None:
        block_s = S if S <= 1024 else 256
    block_s = min(block_s, S)

    tiled = block_s < S
    if tiled:
        assert block_s % 8 == 0, "block_s must be a multiple of 8"
        S_pad = ((S + block_s - 1) // block_s) * block_s
        n_s = S_pad // block_s
    else:
        S_pad, n_s = S, 1

    x_in = src
    if S_pad != S:
        # Pad the sequence; padded keys are masked in-kernel, padded query
        # rows are sliced off below.
        x_in = jnp.pad(src, ((0, 0), (0, S_pad - S), (0, 0)))

    grid_rank = 2 if tiled else 1

    def const_spec(shape):
        zeros = (0,) * len(shape)
        idx = (lambda b, s: zeros) if grid_rank == 2 else (lambda b: zeros)
        if single_buffer_weights:
            # Constant index map -> the block never changes; single-buffering
            # halves resident weight VMEM (matters for large D / F on v7x).
            return pl.BlockSpec(shape, idx, pipeline_mode=pl.Buffered(1))
        return pl.BlockSpec(shape, idx)

    weight_order = [
        ("a1", (1, D)), ("g1", (1, D)), ("be1", (1, D)),
        ("wqkv", (D, 3 * D)), ("bqkv", (1, 3 * D)),
        ("wo", (D, D)), ("bo", (1, D)),
        ("a2", (1, D)), ("g2", (1, D)), ("be2", (1, D)),
        ("w1", (D, F)), ("bf1", (1, F)),
        ("w2", (F, D)), ("bf2", (1, D)),
    ]
    weight_args = [params[name] for name, _ in weight_order]
    weight_specs = [const_spec(shape) for _, shape in weight_order]

    if tiled:
        kernel = functools.partial(
            _encoder_tiled_kernel, nhead=nhead, ffn_chunk=ffn_chunk,
            valid_s=(S if S_pad != S else None))
        grid = (B, n_s)
        in_specs = ([pl.BlockSpec((None, block_s, D), lambda b, s: (b, s, 0)),
                     pl.BlockSpec((None, S_pad, D), lambda b, s: (b, 0, 0))]
                    + weight_specs)
        out_specs = pl.BlockSpec((None, block_s, D), lambda b, s: (b, s, 0))
        scratch = [pltpu.VMEM((S_pad, D), jnp.bfloat16),   # cached K
                   pltpu.VMEM((S_pad, D), jnp.bfloat16)]   # cached V
        dims = ("parallel", "arbitrary")   # scratch carries KV across s
        args = (x_in, x_in, *weight_args)
    else:
        kernel = functools.partial(
            _encoder_single_tile_kernel, nhead=nhead, ffn_chunk=ffn_chunk)
        grid = (B,)
        in_specs = ([pl.BlockSpec((None, S_pad, D), lambda b: (b, 0, 0))]
                    + weight_specs)
        out_specs = pl.BlockSpec((None, S_pad, D), lambda b: (b, 0, 0))
        scratch = []
        dims = ("parallel",)               # batch sharded across TCs on v7x
        args = (x_in, *weight_args)

    cp_kwargs = dict(dimension_semantics=dims)
    vmem_limit = _vmem_limit_bytes()
    if vmem_limit is not None:
        cp_kwargs["vmem_limit_bytes"] = vmem_limit

    out = pl.pallas_call(
        kernel,
        out_shape=jax.ShapeDtypeStruct((B, S_pad, D), src.dtype),
        grid_spec=pltpu.PrefetchScalarGridSpec(
            num_scalar_prefetch=0,
            grid=grid,
            in_specs=in_specs,
            out_specs=out_specs,
            scratch_shapes=scratch),
        compiler_params=pltpu.CompilerParams(**cp_kwargs),
        interpret=interpret,
    )(*args)

    return out[:, :S] if S_pad != S else out


# --------------------------------------------------------------------------
# Pure-JAX reference (mirrors the PyTorch eval() forward; scale 1/sqrt(hd) is
# already folded into the fused Q weights/bias by make_params)
# --------------------------------------------------------------------------
def encoder_layer_ref(src, params, *, nhead):
    f32, bf16 = jnp.float32, jnp.bfloat16
    B, S, D = src.shape
    hd = D // nhead

    x = src.astype(f32)
    x2 = params["g1"] * jnp.tanh(params["a1"] * x) + params["be1"]
    qkv = (jnp.dot(x2.astype(bf16), params["wqkv"], preferred_element_type=f32)
           + params["bqkv"])
    q, k, v = qkv[..., :D], qkv[..., D:2 * D], qkv[..., 2 * D:]

    def heads(t):  # (B,S,D) -> (B,H,S,hd) bf16
        return t.reshape(B, S, nhead, hd).transpose(0, 2, 1, 3).astype(bf16)

    qh, kh, vh = heads(q), heads(k), heads(v)
    s = jnp.einsum("bhqd,bhkd->bhqk", qh, kh, preferred_element_type=f32)
    p = jax.nn.softmax(s, axis=-1)
    o = jnp.einsum("bhqk,bhkd->bhqd", p.astype(bf16), vh,
                   preferred_element_type=f32)
    attn = o.transpose(0, 2, 1, 3).reshape(B, S, D)
    attn = (jnp.dot(attn.astype(bf16), params["wo"], preferred_element_type=f32)
            + params["bo"])

    x = x + attn
    x2 = params["g2"] * jnp.tanh(params["a2"] * x) + params["be2"]
    h1 = jnp.maximum(
        jnp.dot(x2.astype(bf16), params["w1"], preferred_element_type=f32)
        + params["bf1"], 0.0)
    ff = (jnp.dot(h1.astype(bf16), params["w2"], preferred_element_type=f32)
          + params["bf2"])
    return x + ff


def make_params(key, d_model, nhead, dim_feedforward, init_alpha=0.5):
    ks = jax.random.split(key, 12)
    f32, bf16 = jnp.float32, jnp.bfloat16
    w = 0.05
    wq = w * jax.random.normal(ks[0], (d_model, d_model), f32)
    wk = w * jax.random.normal(ks[1], (d_model, d_model), f32)
    wv = w * jax.random.normal(ks[2], (d_model, d_model), f32)
    bq = w * jax.random.normal(ks[3], (1, d_model), f32)
    bk = w * jax.random.normal(ks[4], (1, d_model), f32)
    bv = w * jax.random.normal(ks[5], (1, d_model), f32)
    wo = w * jax.random.normal(ks[6], (d_model, d_model), f32)
    bo = w * jax.random.normal(ks[7], (1, d_model), f32)
    w1 = w * jax.random.normal(ks[8], (d_model, dim_feedforward), f32)
    bf1 = w * jax.random.normal(ks[9], (1, dim_feedforward), f32)
    w2 = w * jax.random.normal(ks[10], (dim_feedforward, d_model), f32)
    bf2 = w * jax.random.normal(ks[11], (1, d_model), f32)

    # Fold 1/sqrt(head_dim) into the Q projection host-side (free in-kernel).
    scale = 1.0 / math.sqrt(d_model // nhead)
    wq = wq * scale
    bq = bq * scale

    return {
        # DyT (attention branch): alpha=init_alpha, gamma=1, beta=0
        "a1": jnp.full((1, d_model), init_alpha, f32),
        "g1": jnp.ones((1, d_model), f32),
        "be1": jnp.zeros((1, d_model), f32),
        # Fused (scaled-Q)|K|V projection; bf16 weights, f32 biases.
        "wqkv": jnp.concatenate([wq, wk, wv], axis=1).astype(bf16),
        "bqkv": jnp.concatenate([bq, bk, bv], axis=1),
        "wo": wo.astype(bf16), "bo": bo,
        # DyT (ffn branch)
        "a2": jnp.full((1, d_model), init_alpha, f32),
        "g2": jnp.ones((1, d_model), f32),
        "be2": jnp.zeros((1, d_model), f32),
        # FFN
        "w1": w1.astype(bf16), "bf1": bf1,
        "w2": w2.astype(bf16), "bf2": bf2,
    }


if __name__ == "__main__":
    # Small but TPU-friendly shapes: D and head_dim lane-aligned (x128),
    # sequence a multiple of 8.
    B, S, D, NHEAD, FF = 2, 128, 256, 2, 512

    key = jax.random.PRNGKey(0)
    k_x, k_p = jax.random.split(key)
    src = jax.random.normal(k_x, (B, S, D), jnp.float32)
    params = make_params(k_p, D, NHEAD, FF)

    ref = encoder_layer_ref(src, params, nhead=NHEAD)

    def run(block_s=None, sbw=True):
        return jax.block_until_ready(
            encoder_layer_pallas(src, params, nhead=NHEAD, block_s=block_s,
                                 single_buffer_weights=sbw))

    # Single full-sequence tile per batch row (fused QKV, no duplicate src
    # DMA).  If this JAX build rejects pipeline_mode=pl.Buffered(1) on the
    # weight BlockSpecs, fall back to default (double) weight buffering.
    try:
        out = run()
        sbw = True
    except Exception:
        out = run(sbw=False)
        sbw = False
    assert out.shape == (B, S, D)
    assert jnp.allclose(out, ref, atol=2e-2, rtol=2e-2), "mismatch (single tile)"

    # Query-tiled path with cached K/V projection (grid = (B, S // 64)).
    # (64 is only for test coverage at this tiny S; defaults pick >= 256.)
    out_tiled = run(block_s=64, sbw=sbw)
    assert jnp.allclose(out_tiled, ref, atol=2e-2, rtol=2e-2), "mismatch (tiled)"

    # Non-divisible S: padded to a multiple of block_s with key masking
    # (block_s=80 pads 128 -> 160), exercising the padded/masked path.
    out_pad = run(block_s=80, sbw=sbw)
    assert jnp.allclose(out_pad, ref, atol=2e-2, rtol=2e-2), "mismatch (padded)"

    print("KERNEL_OK")
</pallas_src>

<mosaic_0001>
module attributes {stable_mosaic.version = 11 : i64} {
  func.func @_encoder_single_tile_kernel(%arg0: i32, %arg1: memref<1x128x256xf32, #tpu.memory_space<vmem>>, %arg2: memref<1x256xf32, #tpu.memory_space<vmem>>, %arg3: memref<1x256xf32, #tpu.memory_space<vmem>>, %arg4: memref<1x256xf32, #tpu.memory_space<vmem>>, %arg5: memref<256x768xbf16, #tpu.memory_space<vmem>>, %arg6: memref<1x768xf32, #tpu.memory_space<vmem>>, %arg7: memref<256x256xbf16, #tpu.memory_space<vmem>>, %arg8: memref<1x256xf32, #tpu.memory_space<vmem>>, %arg9: memref<1x256xf32, #tpu.memory_space<vmem>>, %arg10: memref<1x256xf32, #tpu.memory_space<vmem>>, %arg11: memref<1x256xf32, #tpu.memory_space<vmem>>, %arg12: memref<256x512xbf16, #tpu.memory_space<vmem>>, %arg13: memref<1x512xf32, #tpu.memory_space<vmem>>, %arg14: memref<512x256xbf16, #tpu.memory_space<vmem>>, %arg15: memref<1x256xf32, #tpu.memory_space<vmem>>, %arg16: memref<1x128x256xf32, #tpu.memory_space<vmem>>) attributes {dimension_semantics = [#tpu.dimension_semantics<parallel>], iteration_bounds = array<i64: 2>, scalar_prefetch = 0 : i64, scratch_operands = 0 : i64, tpu.core_type = #tpu.core_type<tc>, window_params = [{transform_indices = @transform_0, window_bounds = array<i64: 1, 128, 256>}, {pipeline_mode = #tpu.pipeline_mode<synchronous>, transform_indices = @transform_1, window_bounds = array<i64: 1, 256>}, {pipeline_mode = #tpu.pipeline_mode<synchronous>, transform_indices = @transform_2, window_bounds = array<i64: 1, 256>}, {pipeline_mode = #tpu.pipeline_mode<synchronous>, transform_indices = @transform_3, window_bounds = array<i64: 1, 256>}, {pipeline_mode = #tpu.pipeline_mode<synchronous>, transform_indices = @transform_4, window_bounds = array<i64: 256, 768>}, {pipeline_mode = #tpu.pipeline_mode<synchronous>, transform_indices = @transform_5, window_bounds = array<i64: 1, 768>}, {pipeline_mode = #tpu.pipeline_mode<synchronous>, transform_indices = @transform_6, window_bounds = array<i64: 256, 256>}, {pipeline_mode = #tpu.pipeline_mode<synchronous>, transform_indices = @transform_7, window_bounds = array<i64: 1, 256>}, {pipeline_mode = #tpu.pipeline_mode<synchronous>, transform_indices = @transform_8, window_bounds = array<i64: 1, 256>}, {pipeline_mode = #tpu.pipeline_mode<synchronous>, transform_indices = @transform_9, window_bounds = array<i64: 1, 256>}, {pipeline_mode = #tpu.pipeline_mode<synchronous>, transform_indices = @transform_10, window_bounds = array<i64: 1, 256>}, {pipeline_mode = #tpu.pipeline_mode<synchronous>, transform_indices = @transform_11, window_bounds = array<i64: 256, 512>}, {pipeline_mode = #tpu.pipeline_mode<synchronous>, transform_indices = @transform_12, window_bounds = array<i64: 1, 512>}, {pipeline_mode = #tpu.pipeline_mode<synchronous>, transform_indices = @transform_13, window_bounds = array<i64: 512, 256>}, {pipeline_mode = #tpu.pipeline_mode<synchronous>, transform_indices = @transform_14, window_bounds = array<i64: 1, 256>}, {transform_indices = @transform_15, window_bounds = array<i64: 1, 128, 256>}]} {
    %c0 = arith.constant 0 : index
    %c0_0 = arith.constant 0 : index
    %c0_1 = arith.constant 0 : index
    %0 = vector.load %arg1[%c0, %c0_0, %c0_1] : memref<1x128x256xf32, #tpu.memory_space<vmem>>, vector<1x128x256xf32>
    %1 = vector.shape_cast %0 : vector<1x128x256xf32> to vector<128x256xf32>
    %c0_2 = arith.constant 0 : index
    %c0_3 = arith.constant 0 : index
    %2 = vector.load %arg3[%c0_2, %c0_3] : memref<1x256xf32, #tpu.memory_space<vmem>>, vector<1x256xf32>
    %c0_4 = arith.constant 0 : index
    %c0_5 = arith.constant 0 : index
    %3 = vector.load %arg2[%c0_4, %c0_5] : memref<1x256xf32, #tpu.memory_space<vmem>>, vector<1x256xf32>
    %4 = vector.broadcast %3 : vector<1x256xf32> to vector<128x256xf32>
    %5 = arith.mulf %4, %1 : vector<128x256xf32>
    %6 = math.tanh %5 : vector<128x256xf32>
    %7 = vector.broadcast %2 : vector<1x256xf32> to vector<128x256xf32>
    %8 = arith.mulf %7, %6 : vector<128x256xf32>
    %c0_6 = arith.constant 0 : index
    %c0_7 = arith.constant 0 : index
    %9 = vector.load %arg4[%c0_6, %c0_7] : memref<1x256xf32, #tpu.memory_space<vmem>>, vector<1x256xf32>
    %10 = vector.broadcast %9 : vector<1x256xf32> to vector<128x256xf32>
    %11 = arith.addf %8, %10 : vector<128x256xf32>
    %12 = arith.truncf %11 : vector<128x256xf32> to vector<128x256xbf16>
    %c0_8 = arith.constant 0 : index
    %c0_9 = arith.constant 0 : index
    %13 = vector.load %arg5[%c0_8, %c0_9] : memref<256x768xbf16, #tpu.memory_space<vmem>>, vector<256x768xbf16>
    %cst = arith.constant dense<0.000000e+00> : vector<128x768xf32>
    %14 = tpu.matmul %12, %13, %cst {dimension_numbers = #tpu.dot_dimension_numbers<[1], [0], [0], [1], [0, 0, 1, 1], [], []>} : vector<128x256xbf16>, vector<256x768xbf16>, vector<128x768xf32> -> vector<128x768xf32>
    %c0_10 = arith.constant 0 : index
    %c0_11 = arith.constant 0 : index
    %15 = vector.load %arg6[%c0_10, %c0_11] : memref<1x768xf32, #tpu.memory_space<vmem>>, vector<1x768xf32>
    %16 = vector.broadcast %15 : vector<1x768xf32> to vector<128x768xf32>
    %17 = arith.addf %14, %16 : vector<128x768xf32>
    %18 = vector.extract_strided_slice %17 {offsets = [0, 0], sizes = [128, 256], strides = [1, 1]} : vector<128x768xf32> to vector<128x256xf32>
    %19 = vector.extract_strided_slice %17 {offsets = [0, 256], sizes = [128, 256], strides = [1, 1]} : vector<128x768xf32> to vector<128x256xf32>
    %20 = vector.extract_strided_slice %17 {offsets = [0, 512], sizes = [128, 256], strides = [1, 1]} : vector<128x768xf32> to vector<128x256xf32>
    %21 = arith.truncf %18 : vector<128x256xf32> to vector<128x256xbf16>
    %22 = vector.shape_cast %21 : vector<128x256xbf16> to vector<128x2x128xbf16>
    %23 = arith.truncf %19 : vector<128x256xf32> to vector<128x256xbf16>
    %24 = vector.shape_cast %23 : vector<128x256xbf16> to vector<128x2x128xbf16>
    %25 = arith.truncf %20 : vector<128x256xf32> to vector<128x256xbf16>
    %26 = vector.shape_cast %25 : vector<128x256xbf16> to vector<128x2x128xbf16>
    "tpu.trace_start"() <{level = 10 : i32, message = "qhd,khd->hqk"}> : () -> ()
    %cst_12 = arith.constant dense<0.000000e+00> : vector<2x128x128xf32>
    %27 = tpu.matmul %22, %24, %cst_12 {dimension_numbers = #tpu.dot_dimension_numbers<[2], [2], [0], [0], [0, 1, 0, 0, 1, 0], [1], [1]>} : vector<128x2x128xbf16>, vector<128x2x128xbf16>, vector<2x128x128xf32> -> vector<2x128x128xf32>
    "tpu.trace_stop"() : () -> ()
    %cst_13 = arith.constant dense<0xFF800000> : vector<2x128xf32>
    %28 = vector.multi_reduction <maximumf>, %27, %cst_13 [2] : vector<2x128x128xf32> to vector<2x128xf32>
    %29 = vector.shape_cast %28 : vector<2x128xf32> to vector<2x128x1xf32>
    %30 = vector.broadcast %29 : vector<2x128x1xf32> to vector<2x128x128xf32>
    %31 = arith.subf %27, %30 : vector<2x128x128xf32>
    %32 = math.exp %31 : vector<2x128x128xf32>
    %cst_14 = arith.constant dense<0.000000e+00> : vector<2x128xf32>
    %33 = vector.multi_reduction <add>, %32, %cst_14 [2] : vector<2x128x128xf32> to vector<2x128xf32>
    %34 = vector.shape_cast %33 : vector<2x128xf32> to vector<2x128x1xf32>
    %35 = tpu.reciprocal %34 {approx = true} : vector<2x128x1xf32> -> vector<2x128x1xf32>
    %36 = vector.broadcast %35 : vector<2x128x1xf32> to vector<2x128x128xf32>
    %37 = arith.mulf %32, %36 : vector<2x128x128xf32>
    %38 = arith.truncf %37 : vector<2x128x128xf32> to vector<2x128x128xbf16>
    "tpu.trace_start"() <{level = 10 : i32, message = "hqk,khd->qhd"}> : () -> ()
    %cst_15 = arith.constant dense<0.000000e+00> : vector<2x128x128xf32>
    %39 = tpu.matmul %26, %38, %cst_15 {dimension_numbers = #tpu.dot_dimension_numbers<[0], [2], [2], [1], [0, 1, 0, 2, 1, 1], [1], [0]>} : vector<128x2x128xbf16>, vector<2x128x128xbf16>, vector<2x128x128xf32> -> vector<2x128x128xf32>
    %40 = tpu.transpose %39, [2, 0, 1] : vector<2x128x128xf32> -> vector<128x2x128xf32>
    "tpu.trace_stop"() : () -> ()
    %41 = vector.shape_cast %40 : vector<128x2x128xf32> to vector<128x256xf32>
    %42 = arith.truncf %41 : vector<128x256xf32> to vector<128x256xbf16>
    %c0_16 = arith.constant 0 : index
    %c0_17 = arith.constant 0 : index
    %43 = vector.load %arg7[%c0_16, %c0_17] : memref<256x256xbf16, #tpu.memory_space<vmem>>, vector<256x256xbf16>
    %cst_18 = arith.constant dense<0.000000e+00> : vector<128x256xf32>
    %44 = tpu.matmul %42, %43, %cst_18 {dimension_numbers = #tpu.dot_dimension_numbers<[1], [0], [0], [1], [0, 0, 1, 1], [], []>} : vector<128x256xbf16>, vector<256x256xbf16>, vector<128x256xf32> -> vector<128x256xf32>
    %c0_19 = arith.constant 0 : index
    %c0_20 = arith.constant 0 : index
    %45 = vector.load %arg8[%c0_19, %c0_20] : memref<1x256xf32, #tpu.memory_space<vmem>>, vector<1x256xf32>
    %46 = vector.broadcast %45 : vector<1x256xf32> to vector<128x256xf32>
    %47 = arith.addf %44, %46 : vector<128x256xf32>
    %48 = arith.addf %1, %47 : vector<128x256xf32>
    %c0_21 = arith.constant 0 : index
    %c0_22 = arith.constant 0 : index
    %49 = vector.load %arg10[%c0_21, %c0_22] : memref<1x256xf32, #tpu.memory_space<vmem>>, vector<1x256xf32>
    %c0_23 = arith.constant 0 : index
    %c0_24 = arith.constant 0 : index
    %50 = vector.load %arg9[%c0_23, %c0_24] : memref<1x256xf32, #tpu.memory_space<vmem>>, vector<1x256xf32>
    %51 = vector.broadcast %50 : vector<1x256xf32> to vector<128x256xf32>
    %52 = arith.mulf %51, %48 : vector<128x256xf32>
    %53 = math.tanh %52 : vector<128x256xf32>
    %54 = vector.broadcast %49 : vector<1x256xf32> to vector<128x256xf32>
    %55 = arith.mulf %54, %53 : vector<128x256xf32>
    %c0_25 = arith.constant 0 : index
    %c0_26 = arith.constant 0 : index
    %56 = vector.load %arg11[%c0_25, %c0_26] : memref<1x256xf32, #tpu.memory_space<vmem>>, vector<1x256xf32>
    %57 = vector.broadcast %56 : vector<1x256xf32> to vector<128x256xf32>
    %58 = arith.addf %55, %57 : vector<128x256xf32>
    %59 = arith.truncf %58 : vector<128x256xf32> to vector<128x256xbf16>
    %cst_27 = arith.constant 0.000000e+00 : f32
    %60 = vector.broadcast %cst_27 : f32 to vector<128x256xf32>
    %c0_i32 = arith.constant 0 : i32
    %c256_i32 = arith.constant 256 : i32
    %61 = arith.muli %c0_i32, %c256_i32 : i32
    %62 = tpu.assume_multiple %61, 256 : i32
    %c0_28 = arith.constant 0 : index
    %63 = arith.index_cast %62 : i32 to index
    %64 = vector.load %arg12[%c0_28, %63] : memref<256x512xbf16, #tpu.memory_space<vmem>>, vector<256x256xbf16>
    %cst_29 = arith.constant dense<0.000000e+00> : vector<128x256xf32>
    %65 = tpu.matmul %59, %64, %cst_29 {dimension_numbers = #tpu.dot_dimension_numbers<[1], [0], [0], [1], [0, 0, 1, 1], [], []>} : vector<128x256xbf16>, vector<256x256xbf16>, vector<128x256xf32> -> vector<128x256xf32>
    %c0_30 = arith.constant 0 : index
    %66 = arith.index_cast %62 : i32 to index
    %67 = vector.load %arg13[%c0_30, %66] : memref<1x512xf32, #tpu.memory_space<vmem>>, vector<1x256xf32>
    %68 = vector.broadcast %67 : vector<1x256xf32> to vector<128x256xf32>
    %69 = arith.addf %65, %68 : vector<128x256xf32>
    %cst_31 = arith.constant 0.000000e+00 : f32
    %70 = vector.broadcast %cst_31 : f32 to vector<128x256xf32>
    %71 = arith.maximumf %69, %70 : vector<128x256xf32>
    %72 = arith.truncf %71 : vector<128x256xf32> to vector<128x256xbf16>
    %73 = arith.index_cast %62 : i32 to index
    %c0_32 = arith.constant 0 : index
    %74 = vector.load %arg14[%73, %c0_32] : memref<512x256xbf16, #tpu.memory_space<vmem>>, vector<256x256xbf16>
    %cst_33 = arith.constant dense<0.000000e+00> : vector<128x256xf32>
    %75 = tpu.matmul %72, %74, %cst_33 {dimension_numbers = #tpu.dot_dimension_numbers<[1], [0], [0], [1], [0, 0, 1, 1], [], []>} : vector<128x256xbf16>, vector<256x256xbf16>, vector<128x256xf32> -> vector<128x256xf32>
    %76 = arith.addf %60, %75 : vector<128x256xf32>
    %c1_i32 = arith.constant 1 : i32
    %c256_i32_34 = arith.constant 256 : i32
    %77 = arith.muli %c1_i32, %c256_i32_34 : i32
    %78 = tpu.assume_multiple %77, 256 : i32
    %c0_35 = arith.constant 0 : index
    %79 = arith.index_cast %78 : i32 to index
    %80 = vector.load %arg12[%c0_35, %79] : memref<256x512xbf16, #tpu.memory_space<vmem>>, vector<256x256xbf16>
    %cst_36 = arith.constant dense<0.000000e+00> : vector<128x256xf32>
    %81 = tpu.matmul %59, %80, %cst_36 {dimension_numbers = #tpu.dot_dimension_numbers<[1], [0], [0], [1], [0, 0, 1, 1], [], []>} : vector<128x256xbf16>, vector<256x256xbf16>, vector<128x256xf32> -> vector<128x256xf32>
    %c0_37 = arith.constant 0 : index
    %82 = arith.index_cast %78 : i32 to index
    %83 = vector.load %arg13[%c0_37, %82] : memref<1x512xf32, #tpu.memory_space<vmem>>, vector<1x256xf32>
    %84 = vector.broadcast %83 : vector<1x256xf32> to vector<128x256xf32>
    %85 = arith.addf %81, %84 : vector<128x256xf32>
    %cst_38 = arith.constant 0.000000e+00 : f32
    %86 = vector.broadcast %cst_38 : f32 to vector<128x256xf32>
    %87 = arith.maximumf %85, %86 : vector<128x256xf32>
    %88 = arith.truncf %87 : vector<128x256xf32> to vector<128x256xbf16>
    %89 = arith.index_cast %78 : i32 to index
    %c0_39 = arith.constant 0 : index
    %90 = vector.load %arg14[%89, %c0_39] : memref<512x256xbf16, #tpu.memory_space<vmem>>, vector<256x256xbf16>
    %cst_40 = arith.constant dense<0.000000e+00> : vector<128x256xf32>
    %91 = tpu.matmul %88, %90, %cst_40 {dimension_numbers = #tpu.dot_dimension_numbers<[1], [0], [0], [1], [0, 0, 1, 1], [], []>} : vector<128x256xbf16>, vector<256x256xbf16>, vector<128x256xf32> -> vector<128x256xf32>
    %92 = arith.addf %76, %91 : vector<128x256xf32>
    %c2_i32 = arith.constant 2 : i32
    %93 = arith.addf %48, %92 : vector<128x256xf32>
    %c0_41 = arith.constant 0 : index
    %c0_42 = arith.constant 0 : index
    %94 = vector.load %arg15[%c0_41, %c0_42] : memref<1x256xf32, #tpu.memory_space<vmem>>, vector<1x256xf32>
    %95 = vector.broadcast %94 : vector<1x256xf32> to vector<128x256xf32>
    %96 = arith.addf %93, %95 : vector<128x256xf32>
    %c0_43 = arith.constant 0 : index
    %c0_44 = arith.constant 0 : index
    %c0_45 = arith.constant 0 : index
    %97 = vector.load %arg16[%c0_43, %c0_44, %c0_45] : memref<1x128x256xf32, #tpu.memory_space<vmem>>, vector<1x128x256xf32>
    %98 = vector.shape_cast %97 : vector<1x128x256xf32> to vector<128x256xf32>
    %99 = vector.shape_cast %96 : vector<128x256xf32> to vector<1x128x256xf32>
    tpu.vector_store %arg16[%c0_43, %c0_44, %c0_45], %99 {strides = array<i32>} : memref<1x128x256xf32, #tpu.memory_space<vmem>>, vector<1x128x256xf32>,
    return
  }
  func.func @transform_0(%arg0: i32) -> (i32, i32, i32) {
    %c0_i32 = arith.constant 0 : i32
    %c0_i32_0 = arith.constant 0 : i32
    %c0_i32_1 = arith.constant 0 : i32
    return %arg0, %c0_i32, %c0_i32_0 : i32, i32, i32
  }
  func.func @transform_1(%arg0: i32) -> (i32, i32) {
    %c0_i32 = arith.constant 0 : i32
    %c0_i32_0 = arith.constant 0 : i32
    %c0_i32_1 = arith.constant 0 : i32
    return %c0_i32, %c0_i32_0 : i32, i32
  }
  func.func @transform_2(%arg0: i32) -> (i32, i32) {
    %c0_i32 = arith.constant 0 : i32
    %c0_i32_0 = arith.constant 0 : i32
    %c0_i32_1 = arith.constant 0 : i32
    return %c0_i32, %c0_i32_0 : i32, i32
  }
  func.func @transform_3(%arg0: i32) -> (i32, i32) {
    %c0_i32 = arith.constant 0 : i32
    %c0_i32_0 = arith.constant 0 : i32
    %c0_i32_1 = arith.constant 0 : i32
    return %c0_i32, %c0_i32_0 : i32, i32
  }
  func.func @transform_4(%arg0: i32) -> (i32, i32) {
    %c0_i32 = arith.constant 0 : i32
    %c0_i32_0 = arith.constant 0 : i32
    %c0_i32_1 = arith.constant 0 : i32
    return %c0_i32, %c0_i32_0 : i32, i32
  }
  func.func @transform_5(%arg0: i32) -> (i32, i32) {
    %c0_i32 = arith.constant 0 : i32
    %c0_i32_0 = arith.constant 0 : i32
    %c0_i32_1 = arith.constant 0 : i32
    return %c0_i32, %c0_i32_0 : i32, i32
  }
  func.func @transform_6(%arg0: i32) -> (i32, i32) {
    %c0_i32 = arith.constant 0 : i32
    %c0_i32_0 = arith.constant 0 : i32
    %c0_i32_1 = arith.constant 0 : i32
    return %c0_i32, %c0_i32_0 : i32, i32
  }
  func.func @transform_7(%arg0: i32) -> (i32, i32) {
    %c0_i32 = arith.constant 0 : i32
    %c0_i32_0 = arith.constant 0 : i32
    %c0_i32_1 = arith.constant 0 : i32
    return %c0_i32, %c0_i32_0 : i32, i32
  }
  func.func @transform_8(%arg0: i32) -> (i32, i32) {
    %c0_i32 = arith.constant 0 : i32
    %c0_i32_0 = arith.constant 0 : i32
    %c0_i32_1 = arith.constant 0 : i32
    return %c0_i32, %c0_i32_0 : i32, i32
  }
  func.func @transform_9(%arg0: i32) -> (i32, i32) {
    %c0_i32 = arith.constant 0 : i32
    %c0_i32_0 = arith.constant 0 : i32
    %c0_i32_1 = arith.constant 0 : i32
    return %c0_i32, %c0_i32_0 : i32, i32
  }
  func.func @transform_10(%arg0: i32) -> (i32, i32) {
    %c0_i32 = arith.constant 0 : i32
    %c0_i32_0 = arith.constant 0 : i32
    %c0_i32_1 = arith.constant 0 : i32
    return %c0_i32, %c0_i32_0 : i32, i32
  }
  func.func @transform_11(%arg0: i32) -> (i32, i32) {
    %c0_i32 = arith.constant 0 : i32
    %c0_i32_0 = arith.constant 0 : i32
    %c0_i32_1 = arith.constant 0 : i32
    return %c0_i32, %c0_i32_0 : i32, i32
  }
  func.func @transform_12(%arg0: i32) -> (i32, i32) {
    %c0_i32 = arith.constant 0 : i32
    %c0_i32_0 = arith.constant 0 : i32
    %c0_i32_1 = arith.constant 0 : i32
    return %c0_i32, %c0_i32_0 : i32, i32
  }
  func.func @transform_13(%arg0: i32) -> (i32, i32) {
    %c0_i32 = arith.constant 0 : i32
    %c0_i32_0 = arith.constant 0 : i32
    %c0_i32_1 = arith.constant 0 : i32
    return %c0_i32, %c0_i32_0 : i32, i32
  }
  func.func @transform_14(%arg0: i32) -> (i32, i32) {
    %c0_i32 = arith.constant 0 : i32
    %c0_i32_0 = arith.constant 0 : i32
    %c0_i32_1 = arith.constant 0 : i32
    return %c0_i32, %c0_i32_0 : i32, i32
  }
  func.func @transform_15(%arg0: i32) -> (i32, i32, i32) {
    %c0_i32 = arith.constant 0 : i32
    %c0_i32_0 = arith.constant 0 : i32
    %c0_i32_1 = arith.constant 0 : i32
    return %arg0, %c0_i32, %c0_i32_0 : i32, i32, i32
  }
}

module attributes {stable_mosaic.version = 11 : i64} {
  func.func @_encoder_single_tile_kernel(%arg0: i32, %arg1: memref<1x128x256xf32, #tpu.memory_space<vmem>>, %arg2: memref<1x256xf32, #tpu.memory_space<vmem>>, %arg3: memref<1x256xf32, #tpu.memory_space<vmem>>, %arg4: memref<1x256xf32, #tpu.memory_space<vmem>>, %arg5: memref<256x768xbf16, #tpu.memory_space<vmem>>, %arg6: memref<1x768xf32, #tpu.memory_space<vmem>>, %arg7: memref<256x256xbf16, #tpu.memory_space<vmem>>, %arg8: memref<1x256xf32, #tpu.memory_space<vmem>>, %arg9: memref<1x256xf32, #tpu.memory_space<vmem>>, %arg10: memref<1x256xf32, #tpu.memory_space<vmem>>, %arg11: memref<1x256xf32, #tpu.memory_space<vmem>>, %arg12: memref<256x512xbf16, #tpu.memory_space<vmem>>, %arg13: memref<1x512xf32, #tpu.memory_space<vmem>>, %arg14: memref<512x256xbf16, #tpu.memory_space<vmem>>, %arg15: memref<1x256xf32, #tpu.memory_space<vmem>>, %arg16: memref<1x128x256xf32, #tpu.memory_space<vmem>>) attributes {dimension_semantics = [#tpu.dimension_semantics<parallel>], iteration_bounds = array<i64: 2>, scalar_prefetch = 0 : i64, scratch_operands = 0 : i64, tpu.core_type = #tpu.core_type<tc>, window_params = [{transform_indices = @transform_0, window_bounds = array<i64: 1, 128, 256>}, {pipeline_mode = #tpu.pipeline_mode<synchronous>, transform_indices = @transform_1, window_bounds = array<i64: 1, 256>}, {pipeline_mode = #tpu.pipeline_mode<synchronous>, transform_indices = @transform_2, window_bounds = array<i64: 1, 256>}, {pipeline_mode = #tpu.pipeline_mode<synchronous>, transform_indices = @transform_3, window_bounds = array<i64: 1, 256>}, {pipeline_mode = #tpu.pipeline_mode<synchronous>, transform_indices = @transform_4, window_bounds = array<i64: 256, 768>}, {pipeline_mode = #tpu.pipeline_mode<synchronous>, transform_indices = @transform_5, window_bounds = array<i64: 1, 768>}, {pipeline_mode = #tpu.pipeline_mode<synchronous>, transform_indices = @transform_6, window_bounds = array<i64: 256, 256>}, {pipeline_mode = #tpu.pipeline_mode<synchronous>, transform_indices = @transform_7, window_bounds = array<i64: 1, 256>}, {pipeline_mode = #tpu.pipeline_mode<synchronous>, transform_indices = @transform_8, window_bounds = array<i64: 1, 256>}, {pipeline_mode = #tpu.pipeline_mode<synchronous>, transform_indices = @transform_9, window_bounds = array<i64: 1, 256>}, {pipeline_mode = #tpu.pipeline_mode<synchronous>, transform_indices = @transform_10, window_bounds = array<i64: 1, 256>}, {pipeline_mode = #tpu.pipeline_mode<synchronous>, transform_indices = @transform_11, window_bounds = array<i64: 256, 512>}, {pipeline_mode = #tpu.pipeline_mode<synchronous>, transform_indices = @transform_12, window_bounds = array<i64: 1, 512>}, {pipeline_mode = #tpu.pipeline_mode<synchronous>, transform_indices = @transform_13, window_bounds = array<i64: 512, 256>}, {pipeline_mode = #tpu.pipeline_mode<synchronous>, transform_indices = @transform_14, window_bounds = array<i64: 1, 256>}, {transform_indices = @transform_15, window_bounds = array<i64: 1, 128, 256>}]} {
    %c0 = arith.constant 0 : index
    %c0_0 = arith.constant 0 : index
    %c0_1 = arith.constant 0 : index
    %0 = vector.load %arg1[%c0, %c0_0, %c0_1] : memref<1x128x256xf32, #tpu.memory_space<vmem>>, vector<1x128x256xf32>
    %1 = vector.shape_cast %0 : vector<1x128x256xf32> to vector<128x256xf32>
    %c0_2 = arith.constant 0 : index
    %c0_3 = arith.constant 0 : index
    %2 = vector.load %arg3[%c0_2, %c0_3] : memref<1x256xf32, #tpu.memory_space<vmem>>, vector<1x256xf32>
    %c0_4 = arith.constant 0 : index
    %c0_5 = arith.constant 0 : index
    %3 = vector.load %arg2[%c0_4, %c0_5] : memref<1x256xf32, #tpu.memory_space<vmem>>, vector<1x256xf32>
    %4 = vector.broadcast %3 : vector<1x256xf32> to vector<128x256xf32>
    %5 = arith.mulf %4, %1 : vector<128x256xf32>
    %6 = math.tanh %5 : vector<128x256xf32>
    %7 = vector.broadcast %2 : vector<1x256xf32> to vector<128x256xf32>
    %8 = arith.mulf %7, %6 : vector<128x256xf32>
    %c0_6 = arith.constant 0 : index
    %c0_7 = arith.constant 0 : index
    %9 = vector.load %arg4[%c0_6, %c0_7] : memref<1x256xf32, #tpu.memory_space<vmem>>, vector<1x256xf32>
    %10 = vector.broadcast %9 : vector<1x256xf32> to vector<128x256xf32>
    %11 = arith.addf %8, %10 : vector<128x256xf32>
    %12 = arith.truncf %11 : vector<128x256xf32> to vector<128x256xbf16>
    %c0_8 = arith.constant 0 : index
    %c0_9 = arith.constant 0 : index
    %13 = vector.load %arg5[%c0_8, %c0_9] : memref<256x768xbf16, #tpu.memory_space<vmem>>, vector<256x768xbf16>
    %cst = arith.constant dense<0.000000e+00> : vector<128x768xf32>
    %14 = tpu.matmul %12, %13, %cst {dimension_numbers = #tpu.dot_dimension_numbers<[1], [0], [0], [1], [0, 0, 1, 1], [], []>} : vector<128x256xbf16>, vector<256x768xbf16>, vector<128x768xf32> -> vector<128x768xf32>
    %c0_10 = arith.constant 0 : index
    %c0_11 = arith.constant 0 : index
    %15 = vector.load %arg6[%c0_10, %c0_11] : memref<1x768xf32, #tpu.memory_space<vmem>>, vector<1x768xf32>
    %16 = vector.broadcast %15 : vector<1x768xf32> to vector<128x768xf32>
    %17 = arith.addf %14, %16 : vector<128x768xf32>
    %18 = vector.extract_strided_slice %17 {offsets = [0, 0], sizes = [128, 256], strides = [1, 1]} : vector<128x768xf32> to vector<128x256xf32>
    %19 = vector.extract_strided_slice %17 {offsets = [0, 256], sizes = [128, 256], strides = [1, 1]} : vector<128x768xf32> to vector<128x256xf32>
    %20 = vector.extract_strided_slice %17 {offsets = [0, 512], sizes = [128, 256], strides = [1, 1]} : vector<128x768xf32> to vector<128x256xf32>
    %21 = arith.truncf %18 : vector<128x256xf32> to vector<128x256xbf16>
    %22 = vector.shape_cast %21 : vector<128x256xbf16> to vector<128x2x128xbf16>
    %23 = arith.truncf %19 : vector<128x256xf32> to vector<128x256xbf16>
    %24 = vector.shape_cast %23 : vector<128x256xbf16> to vector<128x2x128xbf16>
    %25 = arith.truncf %20 : vector<128x256xf32> to vector<128x256xbf16>
    %26 = vector.shape_cast %25 : vector<128x256xbf16> to vector<128x2x128xbf16>
    "tpu.trace_start"() <{level = 10 : i32, message = "qhd,khd->hqk"}> : () -> ()
    %cst_12 = arith.constant dense<0.000000e+00> : vector<2x128x128xf32>
    %27 = tpu.matmul %22, %24, %cst_12 {dimension_numbers = #tpu.dot_dimension_numbers<[2], [2], [0], [0], [0, 1, 0, 0, 1, 0], [1], [1]>} : vector<128x2x128xbf16>, vector<128x2x128xbf16>, vector<2x128x128xf32> -> vector<2x128x128xf32>
    "tpu.trace_stop"() : () -> ()
    %cst_13 = arith.constant dense<0xFF800000> : vector<2x128xf32>
    %28 = vector.multi_reduction <maximumf>, %27, %cst_13 [2] : vector<2x128x128xf32> to vector<2x128xf32>
    %29 = vector.shape_cast %28 : vector<2x128xf32> to vector<2x128x1xf32>
    %30 = vector.broadcast %29 : vector<2x128x1xf32> to vector<2x128x128xf32>
    %31 = arith.subf %27, %30 : vector<2x128x128xf32>
    %32 = math.exp %31 : vector<2x128x128xf32>
    %cst_14 = arith.constant dense<0.000000e+00> : vector<2x128xf32>
    %33 = vector.multi_reduction <add>, %32, %cst_14 [2] : vector<2x128x128xf32> to vector<2x128xf32>
    %34 = vector.shape_cast %33 : vector<2x128xf32> to vector<2x128x1xf32>
    %35 = tpu.reciprocal %34 {approx = true} : vector<2x128x1xf32> -> vector<2x128x1xf32>
    %36 = vector.broadcast %35 : vector<2x128x1xf32> to vector<2x128x128xf32>
    %37 = arith.mulf %32, %36 : vector<2x128x128xf32>
    %38 = arith.truncf %37 : vector<2x128x128xf32> to vector<2x128x128xbf16>
    "tpu.trace_start"() <{level = 10 : i32, message = "hqk,khd->qhd"}> : () -> ()
    %cst_15 = arith.constant dense<0.000000e+00> : vector<2x128x128xf32>
    %39 = tpu.matmul %26, %38, %cst_15 {dimension_numbers = #tpu.dot_dimension_numbers<[0], [2], [2], [1], [0, 1, 0, 2, 1, 1], [1], [0]>} : vector<128x2x128xbf16>, vector<2x128x128xbf16>, vector<2x128x128xf32> -> vector<2x128x128xf32>
    %40 = tpu.transpose %39, [2, 0, 1] : vector<2x128x128xf32> -> vector<128x2x128xf32>
    "tpu.trace_stop"() : () -> ()
    %41 = vector.shape_cast %40 : vector<128x2x128xf32> to vector<128x256xf32>
    %42 = arith.truncf %41 : vector<128x256xf32> to vector<128x256xbf16>
    %c0_16 = arith.constant 0 : index
    %c0_17 = arith.constant 0 : index
    %43 = vector.load %arg7[%c0_16, %c0_17] : memref<256x256xbf16, #tpu.memory_space<vmem>>, vector<256x256xbf16>
    %cst_18 = arith.constant dense<0.000000e+00> : vector<128x256xf32>
    %44 = tpu.matmul %42, %43, %cst_18 {dimension_numbers = #tpu.dot_dimension_numbers<[1], [0], [0], [1], [0, 0, 1, 1], [], []>} : vector<128x256xbf16>, vector<256x256xbf16>, vector<128x256xf32> -> vector<128x256xf32>
    %c0_19 = arith.constant 0 : index
    %c0_20 = arith.constant 0 : index
    %45 = vector.load %arg8[%c0_19, %c0_20] : memref<1x256xf32, #tpu.memory_space<vmem>>, vector<1x256xf32>
    %46 = vector.broadcast %45 : vector<1x256xf32> to vector<128x256xf32>
    %47 = arith.addf %44, %46 : vector<128x256xf32>
    %48 = arith.addf %1, %47 : vector<128x256xf32>
    %c0_21 = arith.constant 0 : index
    %c0_22 = arith.constant 0 : index
    %49 = vector.load %arg10[%c0_21, %c0_22] : memref<1x256xf32, #tpu.memory_space<vmem>>, vector<1x256xf32>
    %c0_23 = arith.constant 0 : index
    %c0_24 = arith.constant 0 : index
    %50 = vector.load %arg9[%c0_23, %c0_24] : memref<1x256xf32, #tpu.memory_space<vmem>>, vector<1x256xf32>
    %51 = vector.broadcast %50 : vector<1x256xf32> to vector<128x256xf32>
    %52 = arith.mulf %51, %48 : vector<128x256xf32>
    %53 = math.tanh %52 : vector<128x256xf32>
    %54 = vector.broadcast %49 : vector<1x256xf32> to vector<128x256xf32>
    %55 = arith.mulf %54, %53 : vector<128x256xf32>
    %c0_25 = arith.constant 0 : index
    %c0_26 = arith.constant 0 : index
    %56 = vector.load %arg11[%c0_25, %c0_26] : memref<1x256xf32, #tpu.memory_space<vmem>>, vector<1x256xf32>
    %57 = vector.broadcast %56 : vector<1x256xf32> to vector<128x256xf32>
    %58 = arith.addf %55, %57 : vector<128x256xf32>
    %59 = arith.truncf %58 : vector<128x256xf32> to vector<128x256xbf16>
    %cst_27 = arith.constant 0.000000e+00 : f32
    %60 = vector.broadcast %cst_27 : f32 to vector<128x256xf32>
    %c0_i32 = arith.constant 0 : i32
    %c256_i32 = arith.constant 256 : i32
    %61 = arith.muli %c0_i32, %c256_i32 : i32
    %62 = tpu.assume_multiple %61, 256 : i32
    %c0_28 = arith.constant 0 : index
    %63 = arith.index_cast %62 : i32 to index
    %64 = vector.load %arg12[%c0_28, %63] : memref<256x512xbf16, #tpu.memory_space<vmem>>, vector<256x256xbf16>
    %cst_29 = arith.constant dense<0.000000e+00> : vector<128x256xf32>
    %65 = tpu.matmul %59, %64, %cst_29 {dimension_numbers = #tpu.dot_dimension_numbers<[1], [0], [0], [1], [0, 0, 1, 1], [], []>} : vector<128x256xbf16>, vector<256x256xbf16>, vector<128x256xf32> -> vector<128x256xf32>
    %c0_30 = arith.constant 0 : index
    %66 = arith.index_cast %62 : i32 to index
    %67 = vector.load %arg13[%c0_30, %66] : memref<1x512xf32, #tpu.memory_space<vmem>>, vector<1x256xf32>
    %68 = vector.broadcast %67 : vector<1x256xf32> to vector<128x256xf32>
    %69 = arith.addf %65, %68 : vector<128x256xf32>
    %cst_31 = arith.constant 0.000000e+00 : f32
    %70 = vector.broadcast %cst_31 : f32 to vector<128x256xf32>
    %71 = arith.maximumf %69, %70 : vector<128x256xf32>
    %72 = arith.truncf %71 : vector<128x256xf32> to vector<128x256xbf16>
    %73 = arith.index_cast %62 : i32 to index
    %c0_32 = arith.constant 0 : index
    %74 = vector.load %arg14[%73, %c0_32] : memref<512x256xbf16, #tpu.memory_space<vmem>>, vector<256x256xbf16>
    %cst_33 = arith.constant dense<0.000000e+00> : vector<128x256xf32>
    %75 = tpu.matmul %72, %74, %cst_33 {dimension_numbers = #tpu.dot_dimension_numbers<[1], [0], [0], [1], [0, 0, 1, 1], [], []>} : vector<128x256xbf16>, vector<256x256xbf16>, vector<128x256xf32> -> vector<128x256xf32>
    %76 = arith.addf %60, %75 : vector<128x256xf32>
    %c1_i32 = arith.constant 1 : i32
    %c256_i32_34 = arith.constant 256 : i32
    %77 = arith.muli %c1_i32, %c256_i32_34 : i32
    %78 = tpu.assume_multiple %77, 256 : i32
    %c0_35 = arith.constant 0 : index
    %79 = arith.index_cast %78 : i32 to index
    %80 = vector.load %arg12[%c0_35, %79] : memref<256x512xbf16, #tpu.memory_space<vmem>>, vector<256x256xbf16>
    %cst_36 = arith.constant dense<0.000000e+00> : vector<128x256xf32>
    %81 = tpu.matmul %59, %80, %cst_36 {dimension_numbers = #tpu.dot_dimension_numbers<[1], [0], [0], [1], [0, 0, 1, 1], [], []>} : vector<128x256xbf16>, vector<256x256xbf16>, vector<128x256xf32> -> vector<128x256xf32>
    %c0_37 = arith.constant 0 : index
    %82 = arith.index_cast %78 : i32 to index
    %83 = vector.load %arg13[%c0_37, %82] : memref<1x512xf32, #tpu.memory_space<vmem>>, vector<1x256xf32>
    %84 = vector.broadcast %83 : vector<1x256xf32> to vector<128x256xf32>
    %85 = arith.addf %81, %84 : vector<128x256xf32>
    %cst_38 = arith.constant 0.000000e+00 : f32
    %86 = vector.broadcast %cst_38 : f32 to vector<128x256xf32>
    %87 = arith.maximumf %85, %86 : vector<128x256xf32>
    %88 = arith.truncf %87 : vector<128x256xf32> to vector<128x256xbf16>
    %89 = arith.index_cast %78 : i32 to index
    %c0_39 = arith.constant 0 : index
    %90 = vector.load %arg14[%89, %c0_39] : memref<512x256xbf16, #tpu.memory_space<vmem>>, vector<256x256xbf16>
    %cst_40 = arith.constant dense<0.000000e+00> : vector<128x256xf32>
    %91 = tpu.matmul %88, %90, %cst_40 {dimension_numbers = #tpu.dot_dimension_numbers<[1], [0], [0], [1], [0, 0, 1, 1], [], []>} : vector<128x256xbf16>, vector<256x256xbf16>, vector<128x256xf32> -> vector<128x256xf32>
    %92 = arith.addf %76, %91 : vector<128x256xf32>
    %c2_i32 = arith.constant 2 : i32
    %93 = arith.addf %48, %92 : vector<128x256xf32>
    %c0_41 = arith.constant 0 : index
    %c0_42 = arith.constant 0 : index
    %94 = vector.load %arg15[%c0_41, %c0_42] : memref<1x256xf32, #tpu.memory_space<vmem>>, vector<1x256xf32>
    %95 = vector.broadcast %94 : vector<1x256xf32> to vector<128x256xf32>
    %96 = arith.addf %93, %95 : vector<128x256xf32>
    %c0_43 = arith.constant 0 : index
    %c0_44 = arith.constant 0 : index
    %c0_45 = arith.constant 0 : index
    %97 = vector.load %arg16[%c0_43, %c0_44, %c0_45] : memref<1x128x256xf32, #tpu.memory_space<vmem>>, vector<1x128x256xf32>
    %98 = vector.shape_cast %97 : vector<1x128x256xf32> to vector<128x256xf32>
    %99 = vector.shape_cast %96 : vector<128x256xf32> to vector<1x128x256xf32>
    tpu.vector_store %arg16[%c0_43, %c0_44, %c0_45], %99 {strides = array<i32>} : memref<1x128x256xf32, #tpu.memory_space<vmem>>, vector<1x128x256xf32>,
    return
  }
  func.func @transform_0(%arg0: i32) -> (i32, i32, i32) {
    %c0_i32 = arith.constant 0 : i32
    %c0_i32_0 = arith.constant 0 : i32
    %c0_i32_1 = arith.constant 0 : i32
    return %arg0, %c0_i32, %c0_i32_0 : i32, i32, i32
  }
  func.func @transform_1(%arg0: i32) -> (i32, i32) {
    %c0_i32 = arith.constant 0 : i32
    %c0_i32_0 = arith.constant 0 : i32
    %c0_i32_1 = arith.constant 0 : i32
    return %c0_i32, %c0_i32_0 : i32, i32
  }
  func.func @transform_2(%arg0: i32) -> (i32, i32) {
    %c0_i32 = arith.constant 0 : i32
    %c0_i32_0 = arith.constant 0 : i32
    %c0_i32_1 = arith.constant 0 : i32
    return %c0_i32, %c0_i32_0 : i32, i32
  }
  func.func @transform_3(%arg0: i32) -> (i32, i32) {
    %c0_i32 = arith.constant 0 : i32
    %c0_i32_0 = arith.constant 0 : i32
    %c0_i32_1 = arith.constant 0 : i32
    return %c0_i32, %c0_i32_0 : i32, i32
  }
  func.func @transform_4(%arg0: i32) -> (i32, i32) {
    %c0_i32 = arith.constant 0 : i32
    %c0_i32_0 = arith.constant 0 : i32
    %c0_i32_1 = arith.constant 0 : i32
    return %c0_i32, %c0_i32_0 : i32, i32
  }
  func.func @transform_5(%arg0: i32) -> (i32, i32) {
    %c0_i32 = arith.constant 0 : i32
    %c0_i32_0 = arith.constant 0 : i32
    %c0_i32_1 = arith.constant 0 : i32
    return %c0_i32, %c0_i32_0 : i32, i32
  }
  func.func @transform_6(%arg0: i32) -> (i32, i32) {
    %c0_i32 = arith.constant 0 : i32
    %c0_i32_0 = arith.constant 0 : i32
    %c0_i32_1 = arith.constant 0 : i32
    return %c0_i32, %c0_i32_0 : i32, i32
  }
  func.func @transform_7(%arg0: i32) -> (i32, i32) {
    %c0_i32 = arith.constant 0 : i32
    %c0_i32_0 = arith.constant 0 : i32
    %c0_i32_1 = arith.constant 0 : i32
    return %c0_i32, %c0_i32_0 : i32, i32
  }
  func.func @transform_8(%arg0: i32) -> (i32, i32) {
    %c0_i32 = arith.constant 0 : i32
    %c0_i32_0 = arith.constant 0 : i32
    %c0_i32_1 = arith.constant 0 : i32
    return %c0_i32, %c0_i32_0 : i32, i32
  }
  func.func @transform_9(%arg0: i32) -> (i32, i32) {
    %c0_i32 = arith.constant 0 : i32
    %c0_i32_0 = arith.constant 0 : i32
    %c0_i32_1 = arith.constant 0 : i32
    return %c0_i32, %c0_i32_0 : i32, i32
  }
  func.func @transform_10(%arg0: i32) -> (i32, i32) {
    %c0_i32 = arith.constant 0 : i32
    %c0_i32_0 = arith.constant 0 : i32
    %c0_i32_1 = arith.constant 0 : i32
    return %c0_i32, %c0_i32_0 : i32, i32
  }
  func.func @transform_11(%arg0: i32) -> (i32, i32) {
    %c0_i32 = arith.constant 0 : i32
    %c0_i32_0 = arith.constant 0 : i32
    %c0_i32_1 = arith.constant 0 : i32
    return %c0_i32, %c0_i32_0 : i32, i32
  }
  func.func @transform_12(%arg0: i32) -> (i32, i32) {
    %c0_i32 = arith.constant 0 : i32
    %c0_i32_0 = arith.constant 0 : i32
    %c0_i32_1 = arith.constant 0 : i32
    return %c0_i32, %c0_i32_0 : i32, i32
  }
  func.func @transform_13(%arg0: i32) -> (i32, i32) {
    %c0_i32 = arith.constant 0 : i32
    %c0_i32_0 = arith.constant 0 : i32
    %c0_i32_1 = arith.constant 0 : i32
    return %c0_i32, %c0_i32_0 : i32, i32
  }
  func.func @transform_14(%arg0: i32) -> (i32, i32) {
    %c0_i32 = arith.constant 0 : i32
    %c0_i32_0 = arith.constant 0 : i32
    %c0_i32_1 = arith.constant 0 : i32
    return %c0_i32, %c0_i32_0 : i32, i32
  }
  func.func @transform_15(%arg0: i32) -> (i32, i32, i32) {
    %c0_i32 = arith.constant 0 : i32
    %c0_i32_0 = arith.constant 0 : i32
    %c0_i32_1 = arith.constant 0 : i32
    return %arg0, %c0_i32, %c0_i32_0 : i32, i32, i32
  }
}

</mosaic_0001>

<bundles_post_ra>
// kernel: tpu_custom_call.1
= control target key start
LH: loop header
LB: loop body
LE: loop exit
PB: predicated region body
PF: predicated region fallthrough
CT: control target
= control target key end

     0   :  { %s10399_s0 = inlined_call_operand.hbm [shape: f32[2,128,256], index: 0, kind: input, shape index: {}]   ;;  %s10400_s1 = inlined_call_operand.hbm [shape: f32[1,256], index: 1, kind: input, shape index: {}]   ;;  %s10401_s2 = inlined_call_operand.hbm [shape: f32[1,256], index: 2, kind: input, shape index: {}]   ;;  %s10402_s3 = inlined_call_operand.hbm [shape: f32[1,256], index: 3, kind: input, shape index: {}]   ;;  %s10403_s4 = inlined_call_operand.hbm [shape: bf16[256,768], index: 4, kind: input, shape index: {}]   ;;  %s10404_s5 = inlined_call_operand.vmem [shape: f32[1,768], index: 5, kind: input, shape index: {}]   ;;  %s10405_s6 = inlined_call_operand.hbm [shape: bf16[256,256], index: 6, kind: input, shape index: {}]   ;;  %s10406_s7 = inlined_call_operand.vmem [shape: f32[1,256], index: 7, kind: input, shape index: {}]   ;;  %s10407_s8 = inlined_call_operand.vmem [shape: f32[1,256], index: 8, kind: input, shape index: {}]   ;;  %s10408_s9 = inlined_call_operand.vmem [shape: f32[1,256], index: 9, kind: input, shape index: {}]   ;;  %s10409_s10 = inlined_call_operand.vmem [shape: f32[1,256], index: 10, kind: input, shape index: {}]   ;;  %s10410_s11 = inlined_call_operand.hbm [shape: bf16[256,512], index: 11, kind: input, shape index: {}]   ;;  %s10411_s12 = inlined_call_operand.vmem [shape: f32[1,512], index: 12, kind: input, shape index: {}]   ;;  %s10412_s13 = inlined_call_operand.hbm [shape: bf16[512,256], index: 13, kind: input, shape index: {}]   ;;  %s10413_s14 = inlined_call_operand.vmem [shape: f32[1,256], index: 14, kind: input, shape index: {}]   ;;  %s10414_s15 = inlined_call_operand.hbm [shape: f32[2,128,256], index: 15, kind: output, shape index: {}]  }
   0x1   :  { %10465 = sst [smem:[#allocation52_spill]] %s10400_s1 }
   0x2   :  { %10466 = sst [smem:[#allocation53_spill]] %s10401_s2 }
   0x3   :  { %10467 = sst [smem:[#allocation54_spill]] %s10402_s3 }
   0x4   :  { %10468 = sst [smem:[#allocation55_spill]] %s10403_s4 }
   0x5   :  { %10469 = sst [smem:[#allocation56_spill]] %s10405_s6 }
   0x6   :  { %10470 = sst [smem:[#allocation57_spill]] %s10410_s11 }
   0x7   :  { %10471 = sst [smem:[#allocation58_spill]] %s10412_s13 }
   0x8   :  { %10472 = sst [smem:[#allocation59_spill]] %s10413_s14 }
   0x9   :  { %10473 = sst [smem:[#allocation60_spill]] %s10414_s15 }
   0xa   :  { %20 = vsyncpa [#allocation3], 0 }
   0xb   :  { %22 = vsyncpa [#allocation3 + $0x1], 0 }
   0xc   :  { %23 = vsyncpa [#allocation6], 0 }
   0xd   :  { %24 = vsyncpa [#allocation9], 0 }
   0xe   :  { %25 = vsyncpa [#allocation12], 0 }
   0xf   :  { %26 = vsyncpa [#allocation15], 0 }
  0x10   :  { %27 = vsyncpa [#allocation4], 0 }
  0x11   :  { %29 = vsyncpa [#allocation4 + $0x1], 0  ;;  %s8385_s18 = smov 0   ;;  %s8387_s19 = smov 0  }
  0x12   :  { %s8389_s20 = smov 0   ;;  %s8391_s21 = smov 0  }
  0x13 LB: > { %s8285_s22 = smov [#allocation5]   ;;  %s8406_s24 = sadd.s32 4294967295, %s8283_s21   ;;  %s8283_s21 = sphi %s8391_s21, %s10588_s21   ;;  %s8279_s20 = sphi %s8389_s20, %s10587_s20   ;;  %s8275_s19 = sphi %s8387_s19, %s10586_s19   ;;  %s8271_s18 = sphi %s8385_s18, %s10585_s18  }
  0x14   : > { %s399_s23 = sshll.u32 %s8285_s22, 4  ;;  %p6650_p0 = scmp.ge.s32.totalorder %s8283_s21, 1  ;;  %s400_s23 = int_to_ptr.vmem [resolvable:$true] %s399_s23 }
  0x15   : > { %p10415_p1 = scmp.eq.s32.totalorder %s8406_s24, 0  ;;  %p386_p2 = scmp.lt.s32.totalorder %s8283_s21, 3 }
  0x16   : > { %s8286_s26 = smov [#allocation8]   ;;  %s8287_s28 = smov [#allocation11]  }
  0x17   : > { %p8411_p3 = pnand %p6650_p0, %p386_p2  ;;  %s421_s27 = sshll.u32 %s8286_s26, 4  ;;  %s422_s27 = int_to_ptr.vmem [resolvable:$true] %s421_s27 }
  0x18   : > { %s447_s29 = sshll.u32 %s8287_s28, 4  ;;  %s8004_s17 = scalar_lea.vmem %s400_s23, 32  ;;  %s8424_s29 = int_to_ptr.vmem [resolvable:$true] %s447_s29 }
  0x19   : > { %s10474_s25 = scalar_select %p8411_p3, 1, 0 }
  0x1a   : > { %p7224_p5 = pneg %p8411_p3  ;;  %p8005_p8 = scmp.ne.s32.totalorder %s400_s23, %s8004_s17 }
  0x1b   : > { %p8012_p11 = scmp.lt.s32.totalorder %s400_s23, %s400_s23  ;;  %p8013_p12 = scmp.lt.s32.totalorder %s8004_s17, %s8004_s17 }
  0x1c   : > { %p8420_p6 = pnand %p7224_p5, %p10415_p1 }
  0x1d   : > { %p8014_p13 = por %p8013_p12, %p8012_p11 }
  0x1e   : > { %p8428_p7 = pneg %p8420_p6 }
  0x20   : > { %p8007_p9 = pnand %p8005_p8, %p8428_p7 }
  0x22   : > { %p8008_p10 = pneg %p8007_p9 }
  0x24   : > { %p8015_p0 = pnand %p8014_p13, %p8008_p10 }
  0x26   : > { %8018 = shalt.err (!%p8015_p0)
}
  0x27   : > { %s10477_s1 = sld [smem:[#allocation52_spill]]  ;;  %s8030_s28 = scalar_lea.vmem %s422_s27, 32 }
  0x28   : > { %p8031_p2 = scmp.ne.s32.totalorder %s422_s27, %s8030_s28  ;;  %p8038_p1 = scmp.lt.s32.totalorder %s422_s27, %s422_s27 }
  0x29   : > { %p8039_p8 = scmp.lt.s32.totalorder %s8030_s28, %s8030_s28 }
  0x2a   : > { %p8033_p5 = pnand %p8031_p2, %p8428_p7 }
  0x2b   : > { %p8040_p9 = por %p8039_p8, %p8038_p1 }
  0x2c   : > { %p8034_p4 = pneg %p8033_p5 }
  0x2d   : > { %7227 = dma.hbm_to_vmem [thread:$0]  (!%p8420_p6), %s10477_s1, 32, %s400_s23, [#allocation6]  }
  0x2e   : > { %p8041_p3 = pnand %p8040_p9, %p8034_p4 }
  0x30   : > { %8044 = shalt.err (!%p8041_p3)
}
  0x31   : > { %s10478_s3 = sld [smem:[#allocation54_spill]]  ;;  %s8056_s23 = scalar_lea.vmem %s8424_s29, 4096 }
  0x32   : > { %p8057_p10 = scmp.ne.s32.totalorder %s8424_s29, %s8056_s23  ;;  %p8064_p13 = scmp.lt.s32.totalorder %s8424_s29, %s8424_s29 }
  0x33   : > { %p8065_p1 = scmp.lt.s32.totalorder %s8056_s23, %s8056_s23 }
  0x34   : > { %p8059_p11 = pnand %p8057_p10, %p8428_p7 }
  0x35   : > { %p8066_p4 = por %p8065_p1, %p8064_p13 }
  0x36   : > { %p8060_p12 = pneg %p8059_p11 }
  0x37   : > { %7233 = dma.hbm_to_vmem [thread:$0]  (!%p8420_p6), %s10478_s3, 32, %s422_s27, [#allocation9]  }
  0x38   : > { %p8067_p3 = pnand %p8066_p4, %p8060_p12 }
  0x3a   : > { %8070 = shalt.err (!%p8067_p3)
}
  0x3b   : > { %s10418_s22 = smov 128   ;;  %s8289_s15 = smov 8  }
  0x3c   : > { %s10479_s6 = sld [smem:[#allocation56_spill]]  ;;  %s8290_s28 = smov [#allocation7]  }
  0x3d   : > { %s410_s17 = sshll.u32 %s8290_s28, 4  ;;  %s8291_s23 = smov [#allocation10]   ;;  %s411_s17 = int_to_ptr.vmem [resolvable:$true] %s410_s17 }
  0x3e   : > { %s431_s1 = sshll.u32 %s8291_s23, 4  ;;  %s8082_s3 = scalar_lea.vmem %s411_s17, 32  ;;  %s432_s1 = int_to_ptr.vmem [resolvable:$true] %s431_s1 }
  0x3f   : > { %p8083_p0 = scmp.ne.s32.totalorder %s411_s17, %s8082_s3  ;;  %p8090_p8 = scmp.lt.s32.totalorder %s411_s17, %s411_s17 }
  0x40   : > { %p8091_p9 = scmp.lt.s32.totalorder %s8082_s3, %s8082_s3 }
  0x41   : > { %p8085_p2 = pnand %p8083_p0, %p8428_p7 }
  0x42   : > { %7239 = dma.hbm_to_vmem [thread:$0]  (!%p8420_p6), %s10479_s6, 4096, %s8424_s29, [#allocation12], %s10418_s22, %s10418_s22, %s8289_s15  }
  0x43   : > { %p8086_p5 = pneg %p8085_p2  ;;  %p8092_p10 = por %p8091_p9, %p8090_p8 }
  0x45   : > { %p8093_p11 = pnand %p8092_p10, %p8086_p5 }
  0x47   : > { %8096 = shalt.err (!%p8093_p11)
}
  0x48   : > { %s10480_s2 = sld [smem:[#allocation53_spill]]  ;;  %s8108_s29 = scalar_lea.vmem %s432_s1, 12288 }
  0x49   : > { %p8109_p12 = scmp.ne.s32.totalorder %s432_s1, %s8108_s29  ;;  %p8116_p4 = scmp.lt.s32.totalorder %s432_s1, %s432_s1 }
  0x4a   : > { %p8117_p3 = scmp.lt.s32.totalorder %s8108_s29, %s8108_s29 }
  0x4b   : > { %p8111_p13 = pnand %p8109_p12, %p8428_p7 }
  0x4c   : > { %p8118_p0 = por %p8117_p3, %p8116_p4 }
  0x4d   : > { %p8112_p1 = pneg %p8111_p13 }
  0x4e   : > { %7230 = dma.hbm_to_vmem [thread:$0]  (!%p8420_p6), %s10480_s2, 32, %s411_s17, [#allocation6]  }
  0x4f   : > { %p8119_p2 = pnand %p8118_p0, %p8112_p1 }
  0x51   : > { %8122 = shalt.err (!%p8119_p2)
}
  0x52   : > { %s8292_s3 = smov 384   ;;  %s8293_s26 = smov 24  }
  0x53   : > { %s10481_s4 = sld [smem:[#allocation55_spill]]  ;;  %s8294_s17 = smov [#allocation13]  }
  0x54   : > { %s472_s23 = sshll.u32 %s8294_s17, 4  ;;  %s473_s23 = int_to_ptr.vmem [resolvable:$true] %s472_s23 }
  0x55   : > { %s8134_s27 = scalar_lea.vmem %s473_s23, 8192  ;;  %p8142_p10 = scmp.lt.s32.totalorder %s473_s23, %s473_s23 }
  0x56   : > { %p8135_p5 = scmp.ne.s32.totalorder %s473_s23, %s8134_s27  ;;  %p8143_p11 = scmp.lt.s32.totalorder %s8134_s27, %s8134_s27 }
  0x58   : > { %p8137_p8 = pnand %p8135_p5, %p8428_p7  ;;  %p8144_p12 = por %p8143_p11, %p8142_p10 }
  0x59   : > { %7236 = dma.hbm_to_vmem [thread:$0]  (!%p8420_p6), %s10481_s4, 12288, %s432_s1, [#allocation9], %s8292_s3, %s8292_s3, %s8293_s26  }
  0x5a   : > { %p8138_p9 = pneg %p8137_p8 }
  0x5c   : > { %p8145_p13 = pnand %p8144_p12, %p8138_p9 }
  0x5e   : > { %8148 = shalt.err (!%p8145_p13)
}
  0x5f   : > { %s10419_s29 = smov 256   ;;  %s10420_s22 = smov 16  }
  0x60   : > { %s10482_s11 = sld [smem:[#allocation57_spill]]  ;;  %s8297_s26 = smov [#allocation14]  }
  0x61   : > { %s488_s28 = sshll.u32 %s8297_s26, 4  ;;  %s489_s28 = int_to_ptr.vmem [resolvable:$true] %s488_s28 }
  0x62   : > { %s8160_s14 = scalar_lea.vmem %s489_s28, 8192  ;;  %p8168_p0 = scmp.lt.s32.totalorder %s489_s28, %s489_s28 }
  0x63   : > { %p8161_p1 = scmp.ne.s32.totalorder %s489_s28, %s8160_s14  ;;  %p8169_p2 = scmp.lt.s32.totalorder %s8160_s14, %s8160_s14 }
  0x65   : > { %p8163_p4 = pnand %p8161_p1, %p8428_p7  ;;  %p8170_p5 = por %p8169_p2, %p8168_p0 }
  0x66   : > { %7242 = dma.hbm_to_vmem [thread:$0]  (!%p8420_p6), %s10482_s11, 8192, %s473_s23, [#allocation12], %s10419_s29, %s10419_s29, %s10420_s22  }
  0x67   : > { %p8164_p3 = pneg %p8163_p4 }
  0x69   : > { %p8171_p8 = pnand %p8170_p5, %p8164_p3 }
  0x6b   : > { %8174 = shalt.err (!%p8171_p8)
}
  0x6c   : > { %s10483_s17 = smov 128   ;;  %s10484_s13 = sld [smem:[#allocation58_spill]] }
  0x6d   : > { %s6649_s30 = sadd.s32 4294967294, %s8283_s21   ;;  %s8497_s16 = sadd.s32 1, %s8283_s21  }
  0x6e   : > { %s42_s1 = sadd.s32 1, %s8279_s20  ;;  %s39_s3 = ssub.s32 %s8283_s21, %s8497_s16 }
  0x6f   : > { %p49_p7 = scmp.ne.s32.totalorder %s8279_s20, %s8275_s19  ;;  %p40_p9 = scmp.eq.s32.totalorder %s39_s3, 0 }
  0x70   : > { %p50_p10 = scmp.eq.s32.totalorder %s8283_s21, 0  ;;  %p55_p11 = scmp.ne.s32.totalorder %s8275_s19, %s8271_s18 }
  0x71   : > { %p373_p12 = scmp.eq.s32.totalorder %s8406_s24, 1  ;;  %p10485_p1 = scmp.eq.s32.totalorder %s8406_s24, 0 }
  0x72   : > { %7245 = dma.hbm_to_vmem [thread:$0]  (!%p8420_p6), %s10484_s13, 8192, %s489_s28, [#allocation15], %s10483_s17, %s10483_s17, %s8289_s15  }
  0x73   : > { %s8509_s26 = scalar_select %p40_p9, %s8279_s20, %s42_s1  }
  0x74   : > { %p51_p13 = por %p50_p10, %p49_p7  ;;  %p8513_p4 = por %p10485_p1, %p55_p11 }
  0x75   : > { %p8517_p6 = por %p373_p12, %p49_p7  ;;  %p379_p3 = scmp.eq.s32.totalorder %s6649_s30, 1 }
  0x76   : > { %s10486_s14 = scalar_select %p8513_p4, 1, 0 }
  0x77   : > { %s10487_s15 = scalar_select %p8517_p6, 1, 0 }
  0x78   : > { %p7261_p0 = scmp.lt.s32.totalorder %s8283_s21, 2  ;;  %s505_s28 = sand.u32 1, %s8279_s20  }
  0x79   : > { %p8523_p2 = por %p379_p3, %p55_p11  ;;  %s6659_s27 = sshll.u32 %s505_s28, 8 }
  0x7a   : > { %s6966_s23 = sshll.u32 %s8283_s21, 12  ;;  %s509_s22 = scalar_lea.vmem [#allocation2], %s6659_s27 }
  0x7b   : > { %s10488_s17 = scalar_select %p8523_p2, 1, 0 }
  0x7c   : > { %s8531_s29 = scalar_lea.hbm %s10399_s0, %s6966_s23  ;;  %s516_s2 = sshll.u32 %s509_s22, 4  ;;  %s8537_s2 = int_to_ptr.vmem [resolvable:$true] %s516_s2 }
  0x7d   : > { %p8533_p5 = pnand %p7261_p0, %p51_p13  ;;  %s8539_s4 = scalar_lea.sflag [#allocation3], %s505_s28 }
  0x7e   : > { %s8175_s6 = scalar_lea.hbm %s8531_s29, 4096  ;;  %s8180_s27 = scalar_lea.hbm %s10399_s0, 8192 }
  0x7f   : > { %p8176_p8 = scmp.ne.s32.totalorder %s8531_s29, %s8175_s6  ;;  %p8177_p7 = pneg %p8533_p5 }
  0x80   : > { %p8181_p11 = scmp.lt.s32.totalorder %s8531_s29, %s10399_s0  ;;  %p8182_p12 = scmp.lt.s32.totalorder %s8180_s27, %s8175_s6 }
  0x81   : > { %p8178_p9 = pnand %p8177_p7, %p8176_p8 }
  0x82   : > { %p8183_p13 = por %p8182_p12, %p8181_p11 }
  0x83   : > { %p8179_p10 = pneg %p8178_p9 }
  0x85   : > { %p8184_p1 = pnand %p8183_p13, %p8179_p10 }
  0x87   : > { %8187 = shalt.err (!%p8184_p1)
}
  0x88   : > { %s8188_s28 = scalar_lea.vmem %s8537_s2, 4096  ;;  %s8298_s11 = smov [#allocation2]  }
  0x89   : > { %p8189_p3 = scmp.ne.s32.totalorder %s8537_s2, %s8188_s28  ;;  %s8193_s13 = sshll.u32 %s8298_s11, 4  ;;  %s8194_s13 = int_to_ptr.vmem [resolvable:$false] %s8193_s13 }
  0x8a   : > { %s8195_s23 = scalar_lea.vmem %s8194_s13, 8192  ;;  %p8196_p9 = scmp.lt.s32.totalorder %s8537_s2, %s8194_s13 }
  0x8b   : > { %p8191_p0 = pnand %p8189_p3, %p8177_p7  ;;  %p8197_p2 = scmp.lt.s32.totalorder %s8195_s23, %s8188_s28 }
  0x8d   : > { %p8192_p8 = pneg %p8191_p0  ;;  %p8198_p6 = por %p8197_p2, %p8196_p9 }
  0x8f   : > { %p8199_p4 = pnand %p8198_p6, %p8192_p8 }
  0x91   : > { %8202 = shalt.err (!%p8199_p4)
}
  0x92   : > { %s10490_s6 = smov 16   ;;  %s10491_s1 = smov 256  }
  0x93   : > { %7249 = dma.hbm_to_vmem [thread:$0]  (!%p8533_p5), %s8531_s29, 4096, %s8537_s2, %s8539_s4, %s10491_s1, %s10491_s1, %s10490_s6  }
  0x94   : > { %p10492_p7 = scmp.ne.s32.totalorder %s10474_s25, 0 }
  0x96   : > { %528 = sbr.rel (%p10492_p7) target bundleno = 2399 (0x95f), region = 80 }
  0x9b   : > { %s8566_s11 = sand.u32 1, %s8275_s19   ;;  %p10493_p4 = scmp.ne.s32.totalorder %s10486_s14, 0 }
  0x9c   : > { %s6663_s13 = sshll.u32 %s8566_s11, 8  ;;  %s531_s27 = scalar_lea.sflag [#allocation3], %s8566_s11 }
  0x9d   : > { %s8572_s30 = scalar_lea.vmem [#allocation2], %s6663_s13 }
  0x9e   : > { %8246 = dma.done.wait (%p10493_p4), %s531_s27, 4096  }
  0x9f   : > { %8248 = vsyncadd (%p10493_p4), %s531_s27, 4294963200  ;;  %p10494_p6 = scmp.eq.s32.totalorder %s8406_s24, 0 }
  0xa1   : > { %8250 = dma.done.wait (%p10494_p6), [#allocation6], 64   ;;  %p10495_p2 = pmov %p10494_p6 }
  0xa3   : > { %8252 = vsyncadd (%p10495_p2), [#allocation6], 4294967232  ;;  %p10496_p5 = pmov %p10495_p2 }
  0xa4   : > { %p10497_p10 = pmov %p10495_p2 }
  0xa5   : > { %8254 = dma.done.wait (%p10496_p5), [#allocation9], 12320  }
  0xa6   : > { %8256 = vsyncadd (%p10497_p10), [#allocation9], 4294954976  ;;  %p10498_p11 = pmov %p10495_p2 }
  0xa7   : > { %p10499_p12 = pmov %p10495_p2 }
  0xa8   : > { %8258 = dma.done.wait (%p10498_p11), [#allocation12], 12288  }
  0xa9   : > { %8260 = vsyncadd (%p10499_p12), [#allocation12], 4294955008  ;;  %p10500_p13 = pmov %p10495_p2 }
  0xaa   : > { %p10501_p1 = pmov %p10495_p2 }
  0xab   : > { %8262 = dma.done.wait (%p10500_p13), [#allocation15], 8192  }
  0xac   : > { %8264 = vsyncadd (%p10501_p1), [#allocation15], 4294959104  ;;  %v7320_v0 = vld [vmem:[#allocation10 + $0x15c] ss:$24 sps:$4 sm:$0xff]   ;;  %v7322_v1 = vld [vmem:[#allocation10 + $0x158] ss:$24 sps:$4 sm:$0xff]   ;;  %v645_v8 = vlaneseq }
  0xad   : > { %1543 = vmatprep.subr.bf16.mxu1 %v7320_v0  ;;  %v7323_v2 = vld [vmem:[#allocation10 + $0x12c] ss:$24 sps:$4 sm:$0xff]   ;;  %v7325_v3 = vld [vmem:[#allocation10 + $0x128] ss:$24 sps:$4 sm:$0xff]   ;;  %v7326_v4 = vld [vmem:[#allocation10 + $0xfc] ss:$24 sps:$4 sm:$0xff]  }
  0xae   : > { %1544 = vmatpush1.bf16.msra.mxu1 %v7322_v1  ;;  %v7328_v5 = vld [vmem:[#allocation10 + $0xf8] ss:$24 sps:$4 sm:$0xff]   ;;  %v7329_v6 = vld [vmem:[#allocation10 + $0xcc] ss:$24 sps:$4 sm:$0xff]   ;;  %v7331_v7 = vld [vmem:[#allocation10 + $0xc8] ss:$24 sps:$4 sm:$0xff]  }
  0xaf   : > { %1545 = vmatprep.subr.bf16.mxu1 %v7323_v2  ;;  %v7332_v9 = vld [vmem:[#allocation10 + $0x9c] ss:$24 sps:$4 sm:$0xff]   ;;  %v7334_v10 = vld [vmem:[#allocation10 + $0x98] ss:$24 sps:$4 sm:$0xff]   ;;  %v8594_v11 = vshrl.u32 %v645_v8, 7  ;;  %v611_v16 = vld [vmem:[%s8572_s30 + $0x8] sm:$0xff] }
  0xb0   : > { %v7335_v12 = vld [vmem:[#allocation10 + $0x6c] ss:$24 sps:$4 sm:$0xff]   ;;  %v7337_v13 = vld [vmem:[#allocation10 + $0x68] ss:$24 sps:$4 sm:$0xff]   ;;  %v7338_v15 = vld [vmem:[#allocation10 + $0x3c] ss:$24 sps:$4 sm:$0xff]  }
  0xb1   : > { %10502 = vst [vmem:[#allocation23_spill] sm:$0xff] %v8594_v11  ;;  %v8597_v14 = vsub.s32 1, %v8594_v11  ;;  %v613_v17 = vld [vmem:[%s8572_s30 + $0x18] sm:$0xff]  ;;  %v643_v18 = vld [vmem:[#allocation5] sm:$0x3]  ;;  %v8605_v22 = vsub.s32 0, %v8594_v11 }
  0xb2   : > { %1546 = vmatpush1.bf16.msra.mxu1 %v7325_v3  ;;  %v7340_v19 = vld [vmem:[#allocation10 + $0x38] ss:$24 sps:$4 sm:$0xff]   ;;  %v7341_v21 = vld [vmem:[#allocation10 + $0xc] ss:$24 sps:$4 sm:$0xff]   ;;  %v7343_v25 = vld [vmem:[#allocation10 + $0x8] ss:$24 sps:$4 sm:$0xff]  }
  0xb3   : > { %1547 = vmatprep.subr.bf16.mxu1 %v7326_v4  ;;  %10503 = vst [vmem:[#allocation24_spill] sm:$0xff] %v8597_v14  ;;  %v8602_v20 = vrot.slane %v643_v18, %v8597_v14  ;;  %10504 = vst [vmem:[#allocation25_spill] sm:$0xff] %v8605_v22  ;;  %v7344_v26 = vld [vmem:[#allocation10 + $0x2dc] ss:$24 sps:$4 sm:$0xff]   ;;  %v8610_v27 = vrot.slane %v643_v18, %v8605_v22  ;;  %v612_v29 = vld [vmem:[%s8572_s30 + $0x10] sm:$0xff]  ;;  %s10551_s22 = sld [smem:[#allocation59_spill]] }
  0xb4   : > { %v610_v28 = vld [vmem:[%s8572_s30] sm:$0xff]  ;;  %v615_v31 = vld [vmem:[%s8572_s30 + $0x28] sm:$0xff]  ;;  %v617_v35 = vld [vmem:[%s8572_s30 + $0x38] sm:$0xff]  ;;  %s10254_s3 = scalar_lea.vmem [#allocation16], %s6663_s13  ;;  %s6967_s13 = sshll.u32 %s8406_s24, 12 }
  0xb5   : > { %v656_v23 = vmul.f32 %v8602_v20, %v611_v16  ;;  %v658_v24 = vmul.f32 %v8602_v20, %v613_v17  ;;  %v7346_v30 = vld [vmem:[#allocation10 + $0x2d8] ss:$24 sps:$4 sm:$0xff]   ;;  %v7347_v32 = vld [vmem:[#allocation10 + $0x2ac] ss:$24 sps:$4 sm:$0xff]   ;;  %v8615_v33 = vld [vmem:[#allocation7] sm:$0x3]  ;;  %v655_v34 = vmul.f32 %v8610_v27, %v610_v28  ;;  %v657_v37 = vmul.f32 %v8610_v27, %v612_v29 }
  0xb6   : > { %1548 = vmatpush1.bf16.msra.mxu1 %v7328_v5  ;;  %v7349_v36 = vld [vmem:[#allocation10 + $0x2a8] ss:$24 sps:$4 sm:$0xff]   ;;  %v7368_v38 = vld [vmem:[#allocation10 + $0x154] ss:$24 sps:$4 sm:$0xff]   ;;  %v660_v40 = vmul.f32 %v8602_v20, %v615_v31  ;;  %v8621_v42 = vld [vmem:[#allocation8] sm:$0x3]  ;;  %v662_v43 = vmul.f32 %v8602_v20, %v617_v35  ;;  %v8627_v48 = vrot.slane %v8615_v33, %v8597_v14 }
  0xb7   : > { %1549 = vmatprep.subr.bf16.mxu1 %v7329_v6  ;;  %7704 = vtanh.f32 %v656_v23  ;;  %v7350_v39 = vld [vmem:[#allocation10 + $0x27c] ss:$24 sps:$4 sm:$0xff]   ;;  %v7370_v41 = vld [vmem:[#allocation10 + $0x150] ss:$24 sps:$4 sm:$0xff]   ;;  %1430 = vmatprep.subr.bf16.mxu0 %v7368_v38  ;;  %v7373_v46 = vld [vmem:[#allocation10 + $0x120] ss:$24 sps:$4 sm:$0xff]   ;;  %v8632_v52 = vrot.slane %v8621_v42, %v8597_v14 }
  0xb8   : > { %7706 = vtanh.f32 %v658_v24  ;;  %v7371_v44 = vld [vmem:[#allocation10 + $0x124] ss:$24 sps:$4 sm:$0xff]   ;;  %1431 = vmatpush1.bf16.msra.mxu0 %v7370_v41  ;;  %v7352_v47 = vld [vmem:[#allocation10 + $0x278] ss:$24 sps:$4 sm:$0xff]   ;;  %v7374_v49 = vld [vmem:[#allocation10 + $0xf4] ss:$24 sps:$4 sm:$0xff]  }
  0xb9   : > { %7708 = vtanh.f32 %v655_v34  ;;  %v614_v45 = vld [vmem:[%s8572_s30 + $0x20] sm:$0xff]  ;;  %1432 = vmatprep.subr.bf16.mxu0 %v7371_v44  ;;  %v616_v50 = vld [vmem:[%s8572_s30 + $0x30] sm:$0xff]  ;;  %v619_v53 = vld [vmem:[%s8572_s30 + $0x48] sm:$0xff]  ;;  %s6508_s28 = sshll.u32 %s10254_s3, 4  ;;  %s10581_s1 = sld [smem:[#allocation60_spill]]  ;;  %s10353_s28 = int_to_ptr.vmem [resolvable:$true] %s6508_s28 }
  0xba   : > { %1550 = vmatpush1.bf16.msra.mxu1 %v7331_v7  ;;  %7710 = vtanh.f32 %v657_v37  ;;  %v7353_v51 = vld [vmem:[#allocation10 + $0x24c] ss:$24 sps:$4 sm:$0xff]   ;;  %v659_v55 = vmul.f32 %v8610_v27, %v614_v45  ;;  %v621_v56 = vld [vmem:[%s8572_s30 + $0x58] sm:$0xff]  ;;  %v661_v60 = vmul.f32 %v8610_v27, %v616_v50  ;;  %v7355_v62 = vld [vmem:[#allocation10 + $0x248] ss:$24 sps:$4 sm:$0xff]   ;;  %v664_v0 = vmul.f32 %v8602_v20, %v619_v53  ;;  %s6495_s24 = scalar_lea.sflag [#allocation4], %s8566_s11 }
  0xbb   : > { %1551 = vmatprep.subr.bf16.mxu1 %v7332_v9  ;;  %7712 = vtanh.f32 %v660_v40  ;;  %v7376_v57 = vld [vmem:[#allocation10 + $0xf0] ss:$24 sps:$4 sm:$0xff]   ;;  %v7377_v61 = vld [vmem:[#allocation10 + $0xc4] ss:$24 sps:$4 sm:$0xff]   ;;  %v666_v3 = vmul.f32 %v8602_v20, %v621_v56  ;;  %v7379_v9 = vld [vmem:[#allocation10 + $0xc0] ss:$24 sps:$4 sm:$0xff]   ;;  %v8671_v45 = vrot.slane %v8621_v42, %v8605_v22 }
  0xbc   : > { %7714 = vtanh.f32 %v662_v43  ;;  %1433 = vmatpush1.bf16.msra.mxu0 %v7373_v46  ;;  %v7356_v1 = vld [vmem:[#allocation10 + $0x21c] ss:$24 sps:$4 sm:$0xff]   ;;  %v620_v6 = vld [vmem:[%s8572_s30 + $0x50] sm:$0xff]  ;;  %v623_v7 = vld [vmem:[%s8572_s30 + $0x68] sm:$0xff]  ;;  %p10582_p0 = scmp.ne.s32.totalorder %s10487_s15, 0  ;;  %s8302_s2 = smov [#allocation16]  }
  0xbd   : > { %1434 = vmatprep.subr.bf16.mxu0 %v7374_v49  ;;  %v618_v4 = vld [vmem:[%s8572_s30 + $0x40] sm:$0xff]  ;;  %7716 = vtanh.f32 %v659_v55  ;;  %v625_v16 = vld [vmem:[%s8572_s30 + $0x78] sm:$0xff]  ;;  %v665_v17 = vmul.f32 %v8610_v27, %v620_v6  ;;  %v639_v18 = vld [vmem:[%s8572_s30 + $0xe8] sm:$0xff]  ;;  %v668_v23 = vmul.f32 %v8602_v20, %v623_v7  ;;  %s8207_s4 = sshll.u32 %s8302_s2, 4  ;;  %s8208_s4 = int_to_ptr.vmem [resolvable:$false] %s8207_s4 }
  0xbe   : > { %1552 = vmatpush1.bf16.msra.mxu1 %v7334_v10  ;;  %v7358_v8 = vld [vmem:[#allocation10 + $0x218] ss:$24 sps:$4 sm:$0xff]   ;;  %7718 = vtanh.f32 %v661_v60  ;;  %v670_v28 = vmul.f32 %v8602_v20, %v625_v16  ;;  %v7383_v29 = vld [vmem:[#allocation10 + $0x64] ss:$24 sps:$4 sm:$0xff]   ;;  %v7361_v31 = vld [vmem:[#allocation10 + $0x1e8] ss:$24 sps:$4 sm:$0xff]   ;;  %v684_v34 = vmul.f32 %v8602_v20, %v639_v18  ;;  %p8210_p7 = scmp.lt.s32.totalorder %s10353_s28, %s8208_s4 }
  0xbf   : > { %1553 = vmatprep.subr.bf16.mxu1 %v7335_v12  ;;  %7720 = vtanh.f32 %v664_v0  ;;  %v7380_v12 = vld [vmem:[#allocation10 + $0x94] ss:$24 sps:$4 sm:$0xff]   ;;  %v7382_v24 = vld [vmem:[#allocation10 + $0x90] ss:$24 sps:$4 sm:$0xff]   ;;  %v7385_v40 = vld [vmem:[#allocation10 + $0x60] ss:$24 sps:$4 sm:$0xff]   ;;  %s10351_s27 = scalar_lea.hbm %s10581_s1, %s6967_s13 }
  0xc0   : > { %1435 = vmatpush1.bf16.msra.mxu0 %v7376_v57  ;;  %7722 = vtanh.f32 %v666_v3  ;;  %v624_v37 = vld [vmem:[%s8572_s30 + $0x70] sm:$0xff]  ;;  %v629_v46 = vld [vmem:[%s8572_s30 + $0x98] sm:$0xff]  ;;  %v7389_v42 = vld [vmem:[#allocation10 + $0x4] ss:$24 sps:$4 sm:$0xff]   ;;  %s8209_s25 = scalar_lea.vmem %s8208_s4, 8192 }
  0xc1   : > { %1436 = vmatprep.subr.bf16.mxu0 %v7377_v61  ;;  %v7364_v38 = vld [vmem:[#allocation10 + $0x1b8] ss:$24 sps:$4 sm:$0xff]   ;;  %v7365_v41 = vld [vmem:[#allocation10 + $0x18c] ss:$24 sps:$4 sm:$0xff]   ;;  %v7367_v57 = vld [vmem:[#allocation10 + $0x188] ss:$24 sps:$4 sm:$0xff]  }
  0xc2   : > { %1554 = vmatpush1.bf16.msra.mxu1 %v7337_v13  ;;  %v7359_v13 = vld [vmem:[#allocation10 + $0x1ec] ss:$24 sps:$4 sm:$0xff]   ;;  %v633_v6 = vld [vmem:[%s8572_s30 + $0xb8] sm:$0xff] }
  0xc3   : > { %1555 = vmatprep.subr.bf16.mxu1 %v7338_v15  ;;  %v663_v15 = vmul.f32 %v8610_v27, %v618_v4  ;;  %v628_v55 = vld [vmem:[%s8572_s30 + $0x90] sm:$0xff]  ;;  %v631_v3 = vld [vmem:[%s8572_s30 + $0xa8] sm:$0xff] }
  0xc4   : > { %v7705_v54 = vpop.eup %7704  ;;  %1437 = vmatpush1.bf16.msra.mxu0 %v7379_v9  ;;  %v7391_v4 = vld [vmem:[#allocation10] ss:$24 sps:$4 sm:$0xff]   ;;  %v7392_v7 = vld [vmem:[#allocation10 + $0x2d4] ss:$24 sps:$4 sm:$0xff]   ;;  %v673_v9 = vmul.f32 %v8610_v27, %v628_v55 }
  0xc5   : > { %v7707_v58 = vpop.eup %7706  ;;  %v731_v59 = vmul.f32 %v7705_v54, %v8627_v48  ;;  %1438 = vmatprep.subr.bf16.mxu0 %v7380_v12  ;;  %7724 = vtanh.f32 %v663_v15  ;;  %v626_v54 = vld [vmem:[%s8572_s30 + $0x80] sm:$0xff] }
  0xc6   : > { %1556 = vmatpush1.bf16.msra.mxu1 %v7340_v19  ;;  %v733_v63 = vmul.f32 %v7707_v58, %v8627_v48  ;;  %v641_v19 = vld [vmem:[%s8572_s30 + $0xf8] sm:$0xff]  ;;  %7726 = vtanh.f32 %v665_v17  ;;  %v669_v58 = vmul.f32 %v8610_v27, %v624_v37 }
  0xc7   : > { %1557 = vmatprep.subr.bf16.mxu1 %v7341_v21  ;;  %v775_v2 = vadd.f32 %v8632_v52, %v731_v59  ;;  %v7709_v21 = vpop.eup %7708  ;;  %7728 = vtanh.f32 %v668_v23  ;;  %v676_v23 = vmul.f32 %v8602_v20, %v631_v3  ;;  %v7397_v37 = vld [vmem:[#allocation10 + $0x2a0] ss:$24 sps:$4 sm:$0xff]  }
  0xc8   : > { %v777_v5 = vadd.f32 %v8632_v52, %v733_v63  ;;  %1439 = vmatpush1.bf16.msra.mxu0 %v7382_v24  ;;  %7730 = vtanh.f32 %v670_v28  ;;  %v7395_v24 = vld [vmem:[#allocation10 + $0x2a4] ss:$24 sps:$4 sm:$0xff]   ;;  %v678_v28 = vmul.f32 %v8602_v20, %v633_v6  ;;  %v7403_v6 = vld [vmem:[#allocation10 + $0x240] ss:$24 sps:$4 sm:$0xff]  }
  0xc9   : > { %1440 = vmatprep.subr.bf16.mxu0 %v7383_v29  ;;  %7732 = vtanh.f32 %v684_v34 }
  0xca   : > { %1558 = vmatpush1.bf16.msra.mxu1 %v7343_v25  ;;  %v8647_v10 = vpack.c.bf16 %v777_v5, %v775_v2  ;;  %v7711_v25 = vpop.eup %7710  ;;  %v674_v2 = vmul.f32 %v8602_v20, %v629_v46 }
  0xcb   : > { %1559 = vmatprep.subr.bf16.mxu1 %v7344_v26  ;;  %v8659_v26 = vrot.slane %v8615_v33, %v8605_v22  ;;  %v686_v33 = vmul.f32 %v8602_v20, %v641_v19  ;;  %v7394_v19 = vld [vmem:[#allocation10 + $0x2d0] ss:$24 sps:$4 sm:$0xff]  }
  0xcc   : > { %1575 = vmatprep.mubr.bf16.mxu1 %v8647_v10  ;;  %1462 = vmatprep.mubr.bf16.mxu0 %v8647_v10 }
  0xcd   : > { %v730_v43 = vmul.f32 %v7709_v21, %v8659_v26  ;;  %v732_v44 = vmul.f32 %v7711_v25, %v8659_v26  ;;  %7734 = vtanh.f32 %v686_v33  ;;  %1441 = vmatpush1.bf16.msra.mxu0 %v7385_v40  ;;  %v7398_v40 = vld [vmem:[#allocation10 + $0x274] ss:$24 sps:$4 sm:$0xff]  }
  0xce   : > { %1560 = vmatpush2.bf16.msra.mxu1 %v7346_v30  ;;  %v7713_v30 = vpop.eup %7712 }
  0xcf   : > { %1561 = vmatprep.subr.bf16.mxu1 %v7347_v32  ;;  %v7362_v32 = vld [vmem:[#allocation10 + $0x1bc] ss:$24 sps:$4 sm:$0xff]   ;;  %v7715_v35 = vpop.eup %7714  ;;  %v735_v49 = vmul.f32 %v7713_v30, %v8627_v48  ;;  %v774_v60 = vadd.f32 %v8671_v45, %v730_v43  ;;  %v776_v61 = vadd.f32 %v8671_v45, %v732_v44 }
  0xd0   : > { %v737_v50 = vmul.f32 %v7715_v35, %v8627_v48  ;;  %v7717_v56 = vpop.eup %7716 }
  0xd1   : > { %v7719_v59 = vpop.eup %7718  ;;  %v779_v0 = vadd.f32 %v8632_v52, %v735_v49  ;;  %v8690_v12 = vpack.c.bf16 %v776_v61, %v774_v60  ;;  %v637_v49 = vld [vmem:[%s8572_s30 + $0xd8] sm:$0xff] }
  0xd2   : > { %1562 = vmatpush2.bf16.msra.mxu1 %v7349_v36  ;;  %v622_v36 = vld [vmem:[%s8572_s30 + $0x60] sm:$0xff]  ;;  %v7721_v63 = vpop.eup %7720  ;;  %v736_v15 = vmul.f32 %v7719_v59, %v8659_v26 }
  0xd3   : > { %1563 = vmatprep.subr.bf16.mxu1 %v7350_v39  ;;  %v627_v39 = vld [vmem:[%s8572_s30 + $0x88] sm:$0xff]  ;;  %v667_v53 = vmul.f32 %v8610_v27, %v622_v36  ;;  %v7723_v5 = vpop.eup %7722  ;;  %v739_v17 = vmul.f32 %v7721_v63, %v8627_v48  ;;  %v630_v36 = vld [vmem:[%s8572_s30 + $0xa0] sm:$0xff] }
  0xd4   : > { %v741_v18 = vmul.f32 %v7723_v5, %v8627_v48  ;;  %v7725_v21 = vpop.eup %7724  ;;  %v682_v5 = vmul.f32 %v8602_v20, %v637_v49 }
  0xd5   : > { %7736 = vtanh.f32 %v667_v53  ;;  %v7727_v25 = vpop.eup %7726  ;;  %v783_v34 = vadd.f32 %v8632_v52, %v739_v17  ;;  %v738_v46 = vmul.f32 %v7725_v21, %v8659_v26 }
  0xd6   : > { %1564 = vmatpush2.bf16.msra.mxu1 %v7352_v47  ;;  %v7386_v47 = vld [vmem:[#allocation10 + $0x34] ss:$24 sps:$4 sm:$0xff]   ;;  %7738 = vtanh.f32 %v669_v58  ;;  %v7729_v29 = vpop.eup %7728  ;;  %v785_v35 = vadd.f32 %v8632_v52, %v741_v18  ;;  %v7401_v58 = vld [vmem:[#allocation10 + $0x244] ss:$24 sps:$4 sm:$0xff]  }
  0xd7   : > { %1565 = vmatprep.subr.bf16.mxu1 %v7353_v51  ;;  %v7388_v51 = vld [vmem:[#allocation10 + $0x30] ss:$24 sps:$4 sm:$0xff]   ;;  %1442 = vmatprep.subr.bf16.mxu0 %v7386_v47  ;;  %v740_v47 = vmul.f32 %v7727_v25, %v8659_v26  ;;  %v743_v53 = vmul.f32 %v7729_v29, %v8627_v48  ;;  %v782_v63 = vadd.f32 %v8671_v45, %v738_v46 }
  0xd8   : > { %1443 = vmatpush1.bf16.msra.mxu0 %v7388_v51  ;;  %v8716_v51 = vpack.c.bf16 %v785_v35, %v783_v34 }
  0xd9   : > { %1444 = vmatprep.subr.bf16.mxu0 %v7389_v42  ;;  %v7400_v42 = vld [vmem:[#allocation10 + $0x270] ss:$24 sps:$4 sm:$0xff]   ;;  %v787_v3 = vadd.f32 %v8632_v52, %v743_v53 }
  0xda   : > { %1566 = vmatpush2.bf16.msra.mxu1 %v7355_v62  ;;  %v672_v62 = vmul.f32 %v8602_v20, %v627_v39  ;;  %v635_v39 = vld [vmem:[%s8572_s30 + $0xc8] sm:$0xff] }
  0xdb   : > { %1567 = vmatprep.subr.bf16.mxu1 %v7356_v1  ;;  %v781_v1 = vadd.f32 %v8632_v52, %v737_v50  ;;  %v680_v61 = vmul.f32 %v8602_v20, %v635_v39  ;;  %v7410_v39 = vld [vmem:[#allocation10 + $0x1b4] ss:$24 sps:$4 sm:$0xff]   ;;  %v7412_v53 = vld [vmem:[#allocation10 + $0x1b0] ss:$24 sps:$4 sm:$0xff]  }
  0xdc   : > { %7740 = vtanh.f32 %v672_v62  ;;  %1445 = vmatpush1.bf16.msra.mxu0 %v7391_v4 }
  0xdd   : > { %v8694_v16 = vpack.c.bf16 %v781_v1, %v779_v0  ;;  %7742 = vtanh.f32 %v674_v2  ;;  %1446 = vmatprep.subr.bf16.mxu0 %v7392_v7  ;;  %v784_v0 = vadd.f32 %v8671_v45, %v740_v47 }
  0xde   : > { %1568 = vmatpush2.bf16.msra.mxu1 %v7358_v8  ;;  %v671_v8 = vmul.f32 %v8610_v27, %v626_v54 }
  0xdf   : > { %1569 = vmatprep.subr.bf16.mxu1 %v7359_v13  ;;  %v734_v13 = vmul.f32 %v7717_v56, %v8659_v26  ;;  %v675_v56 = vmul.f32 %v8610_v27, %v630_v36 }
  0xe0   : > { %7744 = vtanh.f32 %v671_v8  ;;  %1447 = vmatpush2.bf16.msra.mxu0 %v7394_v19  ;;  %v634_v8 = vld [vmem:[%s8572_s30 + $0xc0] sm:$0xff] }
  0xe1   : > { %v778_v30 = vadd.f32 %v8671_v45, %v734_v13  ;;  %7746 = vtanh.f32 %v673_v9  ;;  %1448 = vmatprep.subr.bf16.mxu0 %v7395_v24  ;;  %v7404_v9 = vld [vmem:[#allocation10 + $0x214] ss:$24 sps:$4 sm:$0xff]   ;;  %v7406_v24 = vld [vmem:[#allocation10 + $0x210] ss:$24 sps:$4 sm:$0xff]  }
  0xe2   : > { %1570 = vmatpush2.bf16.msra.mxu1 %v7361_v31  ;;  %v780_v31 = vadd.f32 %v8671_v45, %v736_v15  ;;  %7748 = vtanh.f32 %v676_v23  ;;  %v636_v13 = vld [vmem:[%s8572_s30 + $0xd0] sm:$0xff]  ;;  %v8736_v15 = vpack.c.bf16 %v784_v0, %v782_v63  ;;  %v7415_v63 = vld [vmem:[#allocation10 + $0x180] ss:$24 sps:$4 sm:$0xff]  }
  0xe3   : > { %1571 = vmatprep.subr.bf16.mxu1 %v7362_v32  ;;  %v7731_v32 = vpop.eup %7730  ;;  %7750 = vtanh.f32 %v678_v28  ;;  %v7407_v28 = vld [vmem:[#allocation10 + $0x1e4] ss:$24 sps:$4 sm:$0xff]   ;;  %v681_v35 = vmul.f32 %v8610_v27, %v636_v13 }
  0xe4   : > { %v7733_v33 = vpop.eup %7732  ;;  %v8710_v44 = vpack.c.bf16 %v780_v31, %v778_v30  ;;  %v745_v54 = vmul.f32 %v7731_v32, %v8627_v48  ;;  %1449 = vmatpush2.bf16.msra.mxu0 %v7397_v37  ;;  %7752 = vtanh.f32 %v675_v56  ;;  %v679_v30 = vmul.f32 %v8610_v27, %v634_v8 }
  0xe5   : > { %v759_v43 = vmul.f32 %v7733_v33, %v8627_v48  ;;  %1450 = vmatprep.subr.bf16.mxu0 %v7398_v40  ;;  %v7409_v33 = vld [vmem:[#allocation10 + $0x1e0] ss:$24 sps:$4 sm:$0xff]   ;;  %v640_v40 = vld [vmem:[%s8572_s30 + $0xf0] sm:$0xff] }
  0xe6   : > { %1572 = vmatpush2.bf16.msra.mxu1 %v7364_v38  ;;  %v632_v38 = vld [vmem:[%s8572_s30 + $0xb0] sm:$0xff]  ;;  %v789_v4 = vadd.f32 %v8632_v52, %v745_v54  ;;  %v7413_v54 = vld [vmem:[#allocation10 + $0x184] ss:$24 sps:$4 sm:$0xff]  }
  0xe7   : > { %1573 = vmatprep.subr.bf16.mxu1 %v7365_v41  ;;  %v7735_v41 = vpop.eup %7734  ;;  %v803_v55 = vadd.f32 %v8632_v52, %v759_v43  ;;  %v677_v60 = vmul.f32 %v8610_v27, %v632_v38  ;;  %v638_v38 = vld [vmem:[%s8572_s30 + $0xe0] sm:$0xff] }
  0xe8   : > { %v761_v50 = vmul.f32 %v7735_v41, %v8627_v48  ;;  %v7737_v59 = vpop.eup %7736  ;;  %1451 = vmatpush2.bf16.msra.mxu0 %v7400_v42  ;;  %v8740_v21 = vpack.c.bf16 %v789_v4, %v787_v3  ;;  %v683_v42 = vmul.f32 %v8610_v27, %v638_v38 }
  0xe9   : > { %v7739_v62 = vpop.eup %7738  ;;  %7754 = vtanh.f32 %v677_v60  ;;  %v742_v17 = vmul.f32 %v7737_v59, %v8659_v26  ;;  %1452 = vmatprep.subr.bf16.mxu0 %v7401_v58  ;;  %v685_v59 = vmul.f32 %v8610_v27, %v640_v40 }
  0xea   : > { %1574 = vmatpush2.bf16.msra.mxu1 %v7367_v57  ;;  %v805_v57 = vadd.f32 %v8632_v52, %v761_v50  ;;  %v7741_v2 = vpop.eup %7740  ;;  %v744_v18 = vmul.f32 %v7739_v62, %v8659_v26  ;;  %7756 = vtanh.f32 %v680_v61 }
  0xeb   : > { %v7743_v7 = vpop.eup %7742  ;;  %v747_v20 = vmul.f32 %v7741_v2, %v8627_v48  ;;  %7758 = vtanh.f32 %v682_v5  ;;  %v786_v32 = vadd.f32 %v8671_v45, %v742_v17 }
  0xec   : > { %v8728_v1 = vpack.c.bf16 %v805_v57, %v803_v55  ;;  %v749_v23 = vmul.f32 %v7743_v7, %v8627_v48  ;;  %1453 = vmatpush2.bf16.msra.mxu0 %v7403_v6  ;;  %v788_v34 = vadd.f32 %v8671_v45, %v744_v18  ;;  %7760 = vtanh.f32 %v679_v30 }
  0xed   : > { %1576 = vmatmul.mubr.bf16.vlgmr.msra.gmra.mxu1 %v8690_v12  ;;  %v7745_v19 = vpop.eup %7744  ;;  %1454 = vmatprep.subr.bf16.mxu0 %v7404_v9  ;;  %v791_v36 = vadd.f32 %v8632_v52, %v747_v20  ;;  %7762 = vtanh.f32 %v681_v35 }
  0xee   : > { %1585 = vmatprep.mubr.bf16.mxu1 %v8694_v16  ;;  %v7747_v25 = vpop.eup %7746  ;;  %v793_v37 = vadd.f32 %v8632_v52, %v749_v23  ;;  %v8754_v41 = vpack.c.bf16 %v788_v34, %v786_v32  ;;  %v746_v43 = vmul.f32 %v7745_v19, %v8659_v26  ;;  %7764 = vtanh.f32 %v683_v42 }
  0xef   : > { %v7749_v29 = vpop.eup %7748  ;;  %v748_v46 = vmul.f32 %v7747_v25, %v8659_v26  ;;  %7766 = vtanh.f32 %v685_v59 }
  0xf0   : > { %v7751_v31 = vpop.eup %7750  ;;  %1455 = vmatpush2.bf16.msra.mxu0 %v7406_v24  ;;  %v8758_v47 = vpack.c.bf16 %v793_v37, %v791_v36  ;;  %v751_v49 = vmul.f32 %v7749_v29, %v8627_v48  ;;  %v790_v57 = vadd.f32 %v8671_v45, %v746_v43  ;;  %v934_v36 = vsub.s32 3, %v8594_v11 }
  0xf1   : > { %1456 = vmatprep.subr.bf16.mxu0 %v7407_v28  ;;  %v753_v50 = vmul.f32 %v7751_v31, %v8627_v48  ;;  %v7753_v55 = vpop.eup %7752  ;;  %v792_v58 = vadd.f32 %v8671_v45, %v748_v46 }
  0xf2   : > { %v795_v61 = vadd.f32 %v8632_v52, %v751_v49  ;;  %v750_v3 = vmul.f32 %v7753_v55, %v8659_v26 }
  0xf3   : > { %v797_v62 = vadd.f32 %v8632_v52, %v753_v50  ;;  %v8770_v2 = vpack.c.bf16 %v792_v58, %v790_v57 }
  0xf4   : > { %1457 = vmatpush2.bf16.msra.mxu0 %v7409_v33  ;;  %v794_v8 = vadd.f32 %v8671_v45, %v750_v3 }
  0xf5   : > { %1586 = vmatmul.mubr.bf16.gmra.mxu1 %v8710_v44  ;;  %1458 = vmatprep.subr.bf16.mxu0 %v7410_v39  ;;  %v8774_v27 = vpack.c.bf16 %v797_v62, %v795_v61 }
  0xf6   : > { %1595 = vmatprep.mubr.bf16.mxu1 %v8716_v51  ;;  %v7755_v56 = vpop.eup %7754 }
  0xf7   : > { %v7757_v60 = vpop.eup %7756  ;;  %v752_v4 = vmul.f32 %v7755_v56, %v8659_v26 }
  0xf8   : > { %v7759_v0 = vpop.eup %7758  ;;  %1459 = vmatpush2.bf16.msra.mxu0 %v7412_v53  ;;  %v755_v5 = vmul.f32 %v7757_v60, %v8627_v48 }
  0xf9   : > { %1460 = vmatprep.subr.bf16.mxu0 %v7413_v54  ;;  %v757_v6 = vmul.f32 %v7759_v0, %v8627_v48  ;;  %v7761_v7 = vpop.eup %7760  ;;  %v796_v9 = vadd.f32 %v8671_v45, %v752_v4 }
  0xfa   : > { %v7763_v13 = vpop.eup %7762  ;;  %v799_v17 = vadd.f32 %v8632_v52, %v755_v5  ;;  %v754_v19 = vmul.f32 %v7761_v7, %v8659_v26 }
  0xfb   : > { %v801_v18 = vadd.f32 %v8632_v52, %v757_v6  ;;  %v8786_v48 = vpack.c.bf16 %v796_v9, %v794_v8  ;;  %v756_v20 = vmul.f32 %v7763_v13, %v8659_v26  ;;  %v7765_v24 = vpop.eup %7764 }
  0xfc   : > { %1461 = vmatpush2.bf16.msra.mxu0 %v7415_v63  ;;  %v798_v25 = vadd.f32 %v8671_v45, %v754_v19  ;;  %v7767_v52 = vpop.eup %7766  ;;  %v758_v30 = vmul.f32 %v7765_v24, %v8659_v26 }
  0xfd   : > { %1596 = vmatmul.mubr.bf16.gmra.mxu1 %v8736_v15  ;;  %v8790_v23 = vpack.c.bf16 %v801_v18, %v799_v17  ;;  %v800_v28 = vadd.f32 %v8671_v45, %v756_v20  ;;  %v760_v31 = vmul.f32 %v7767_v52, %v8659_v26  ;;  %v930_v26 = vsub.s32 2, %v8594_v11 }
  0xfe   : > { %1605 = vmatprep.mubr.bf16.mxu1 %v8740_v21  ;;  %v802_v32 = vadd.f32 %v8671_v45, %v758_v30 }
  0xff   : > { %1463 = vmatmul.mubr.bf16.vlgmr.msra.gmra.mxu0 %v8690_v12  ;;  %v8798_v29 = vpack.c.bf16 %v800_v28, %v798_v25  ;;  %v804_v34 = vadd.f32 %v8671_v45, %v760_v31  ;;  %v8825_v45 = vld [vmem:[%s10404_s5] sm:$0x3f] }
 0x100   : > { %1472 = vmatprep.mubr.bf16.mxu0 %v8694_v16  ;;  %v8829_v33 = vrot.slane %v8825_v45, %v930_v26  ;;  %v8832_v39 = vrot.slane %v8825_v45, %v934_v36  ;;  %v8852_v26 = vrot.slane %v8825_v45, %v8605_v22 }
 0x101   : > { %v8808_v35 = vpack.c.bf16 %v804_v34, %v802_v32 }
 0x105   : > { %1606 = vmatmul.mubr.bf16.gmra.mxu1 %v8754_v41 }
 0x106   : > { %1615 = vmatprep.mubr.bf16.mxu1 %v8758_v47 }
 0x107   : > { %1473 = vmatmul.mubr.bf16.gmra.mxu0 %v8710_v44 }
 0x108   : > { %1482 = vmatprep.mubr.bf16.mxu0 %v8716_v51 }
 0x10d   : > { %1616 = vmatmul.mubr.bf16.gmra.mxu1 %v8770_v2 }
 0x10e   : > { %1625 = vmatprep.mubr.bf16.mxu1 %v8774_v27 }
 0x10f   : > { %1483 = vmatmul.mubr.bf16.gmra.mxu0 %v8736_v15 }
 0x110   : > { %1492 = vmatprep.mubr.bf16.mxu0 %v8740_v21 }
 0x115   : > { %1626 = vmatmul.mubr.bf16.gmra.mxu1 %v8786_v48 }
 0x116   : > { %1635 = vmatprep.mubr.bf16.mxu1 %v8790_v23 }
 0x117   : > { %1493 = vmatmul.mubr.bf16.gmra.mxu0 %v8754_v41 }
 0x118   : > { %1502 = vmatprep.mubr.bf16.mxu0 %v8758_v47 }
 0x11d   : > { %1636 = vmatmul.mubr.bf16.gmra.mxu1 %v8798_v29 }
 0x11e   : > { %1645 = vmatprep.mubr.bf16.mxu1 %v8728_v1 }
 0x11f   : > { %1503 = vmatmul.mubr.bf16.gmra.mxu0 %v8770_v2 }
 0x120   : > { %1512 = vmatprep.mubr.bf16.mxu0 %v8774_v27 }
 0x125   : > { %1646 = vmatmul.mubr.bf16.gmra.mxu1 %v8808_v35 }
 0x127   : > { %1513 = vmatmul.mubr.bf16.gmra.mxu0 %v8786_v48 }
 0x128   : > { %1522 = vmatprep.mubr.bf16.mxu0 %v8790_v23 }
 0x12f   : > { %1523 = vmatmul.mubr.bf16.gmra.mxu0 %v8798_v29 }
 0x130   : > { %1532 = vmatprep.mubr.bf16.mxu0 %v8728_v1 }
 0x137   : > { %1533 = vmatmul.mubr.bf16.gmra.mxu0 %v8808_v35 }
 0x138   : > { %1688 = vmatprep.mubr.bf16.mxu0 %v8647_v10 }
 0x1ad   : > { %v1577_v37 = vpop.f32.mrf.mxu1 }
 0x1ae   : > { %v1578_v10 = vadd.f32 %v1577_v37, %v8829_v33 }
 0x1af   : > { %v1579_v38 = vpop.f32.mrf.mxu1 }
 0x1b0   : > { %v1580_v49 = vadd.f32 %v1579_v38, %v8832_v39 }
 0x1b1   : > { %v1581_v40 = vpop.f32.mrf.mxu1 }
 0x1b2   : > { %v1582_v43 = vadd.f32 %v1581_v40, %v8829_v33 }
 0x1b3   : > { %v1583_v46 = vpop.f32.mrf.mxu1 }
 0x1b4   : > { %v1584_v50 = vadd.f32 %v1583_v46, %v8832_v39  ;;  %v1785_v53 = vpack.c.bf16 %v1582_v43, %v1578_v10 }
 0x1b5   : > { %v1587_v54 = vpop.f32.mrf.mxu1 }
 0x1b6   : > { %1817 = vxpose.xlu0.c.b16.start [1/8] %v1785_v53, 128  ;;  %v1786_v55 = vpack.c.bf16 %v1584_v50, %v1580_v49  ;;  %v1588_v57 = vadd.f32 %v1587_v54, %v8829_v33 }
 0x1b7   : > { %v1589_v42 = vpop.f32.mrf.mxu1 }
 0x1b8   : > { %1833 = vxpose.xlu1.c.b16.start [1/8] %v1786_v55, 128  ;;  %v1590_v60 = vadd.f32 %v1589_v42, %v8832_v39 }
 0x1b9   : > { %v1591_v56 = vpop.f32.mrf.mxu1 }
 0x1ba   : > { %v1592_v58 = vadd.f32 %v1591_v56, %v8829_v33 }
 0x1bb   : > { %v1593_v59 = vpop.f32.mrf.mxu1 }
 0x1bc   : > { %v1594_v61 = vadd.f32 %v1593_v59, %v8832_v39  ;;  %v1787_v62 = vpack.c.bf16 %v1592_v58, %v1588_v57 }
 0x1bd   : > { %v1597_v63 = vpop.f32.mrf.mxu1 }
 0x1be   : > { %1818 = vxpose.xlu0.c.b16.cont [2/8] %v1787_v62, 128  ;;  %v1788_v0 = vpack.c.bf16 %v1594_v61, %v1590_v60  ;;  %v1598_v5 = vadd.f32 %v1597_v63, %v8829_v33 }
 0x1bf   : > { %v1599_v3 = vpop.f32.mrf.mxu1  ;;  %v1464_v37 = vpop.f32.mrf.mxu0 }
 0x1c0   : > { %1834 = vxpose.xlu1.c.b16.cont [2/8] %v1788_v0, 128  ;;  %v1600_v8 = vadd.f32 %v1599_v3, %v8832_v39  ;;  %v1465_v46 = vadd.f32 %v1464_v37, %v8852_v26 }
 0x1c1   : > { %v1601_v4 = vpop.f32.mrf.mxu1  ;;  %v8854_v40 = vpop.f32.mrf.mxu0 }
 0x1c2   : > { %v1602_v6 = vadd.f32 %v1601_v4, %v8829_v33 }
 0x1c3   : > { %v1603_v7 = vpop.f32.mrf.mxu1  ;;  %v1468_v50 = vpop.f32.mrf.mxu0 }
 0x1c4   : > { %v1604_v9 = vadd.f32 %v1603_v7, %v8832_v39  ;;  %v1789_v13 = vpack.c.bf16 %v1602_v6, %v1598_v5  ;;  %v1469_v42 = vadd.f32 %v1468_v50, %v8852_v26 }
 0x1c5   : > { %v1607_v17 = vpop.f32.mrf.mxu1 }
 0x1c6   : > { %1819 = vxpose.xlu0.c.b16.cont [3/8] %v1789_v13, 128  ;;  %v1790_v18 = vpack.c.bf16 %v1604_v9, %v1600_v8  ;;  %v1608_v24 = vadd.f32 %v1607_v17, %v8829_v33  ;;  %v1769_v58 = vpack.c.bf16 %v1469_v42, %v1465_v46 }
 0x1c7   : > { %v1609_v19 = vpop.f32.mrf.mxu1 }
 0x1c8   : > { %1835 = vxpose.xlu1.c.b16.cont [3/8] %v1790_v18, 128  ;;  %v1610_v52 = vadd.f32 %v1609_v19, %v8832_v39  ;;  %7048 = vmatprep.mubr.bf16.mxu1 %v1769_v58 }
 0x1c9   : > { %v1611_v20 = vpop.f32.mrf.mxu1 }
 0x1ca   : > { %v1612_v25 = vadd.f32 %v1611_v20, %v8829_v33 }
 0x1cb   : > { %v1613_v28 = vpop.f32.mrf.mxu1 }
 0x1cc   : > { %v1614_v30 = vadd.f32 %v1613_v28, %v8832_v39  ;;  %v1791_v31 = vpack.c.bf16 %v1612_v25, %v1608_v24 }
 0x1cd   : > { %v1617_v32 = vpop.f32.mrf.mxu1 }
 0x1ce   : > { %1820 = vxpose.xlu0.c.b16.cont [4/8] %v1791_v31, 128  ;;  %v1792_v34 = vpack.c.bf16 %v1614_v30, %v1610_v52  ;;  %v1618_v10 = vadd.f32 %v1617_v32, %v8829_v33 }
 0x1cf   : > { %v1619_v36 = vpop.f32.mrf.mxu1 }
 0x1d0   : > { %1836 = vxpose.xlu1.c.b16.cont [4/8] %v1792_v34, 128  ;;  %v1620_v53 = vadd.f32 %v1619_v36, %v8832_v39 }
 0x1d1   : > { %v1621_v38 = vpop.f32.mrf.mxu1 }
 0x1d2   : > { %v1622_v43 = vadd.f32 %v1621_v38, %v8829_v33 }
 0x1d3   : > { %v1623_v49 = vpop.f32.mrf.mxu1 }
 0x1d4   : > { %v1624_v54 = vadd.f32 %v1623_v49, %v8832_v39  ;;  %v1793_v55 = vpack.c.bf16 %v1622_v43, %v1618_v10  ;;  %v8874_v10 = vpop.f32.mrf.mxu0 }
 0x1d5   : > { %v1627_v56 = vpop.f32.mrf.mxu1 }
 0x1d6   : > { %1821 = vxpose.xlu0.c.b16.cont [5/8] %v1793_v55, 128  ;;  %v1794_v57 = vpack.c.bf16 %v1624_v54, %v1620_v53  ;;  %v1628_v61 = vadd.f32 %v1627_v56, %v8829_v33  ;;  %v1474_v43 = vpop.f32.mrf.mxu0 }
 0x1d7   : > { %v1629_v59 = vpop.f32.mrf.mxu1 }
 0x1d8   : > { %1837 = vxpose.xlu1.c.b16.cont [5/8] %v1794_v57, 128  ;;  %v1630_v0 = vadd.f32 %v1629_v59, %v8832_v39  ;;  %v8876_v46 = vpop.f32.mrf.mxu0 }
 0x1d9   : > { %v1631_v60 = vpop.f32.mrf.mxu1 }
 0x1da   : > { %v1632_v62 = vadd.f32 %v1631_v60, %v8829_v33  ;;  %v1478_v49 = vpop.f32.mrf.mxu0 }
 0x1db   : > { %v1633_v63 = vpop.f32.mrf.mxu1 }
 0x1dc   : > { %v1634_v3 = vadd.f32 %v1633_v63, %v8832_v39  ;;  %v1795_v4 = vpack.c.bf16 %v1632_v62, %v1628_v61  ;;  %v8878_v50 = vpop.f32.mrf.mxu0 }
 0x1dd   : > { %v1637_v5 = vpop.f32.mrf.mxu1 }
 0x1de   : > { %1822 = vxpose.xlu0.c.b16.cont [6/8] %v1795_v4, 128  ;;  %v1796_v6 = vpack.c.bf16 %v1634_v3, %v1630_v0  ;;  %v1638_v9 = vadd.f32 %v1637_v5, %v8829_v33  ;;  %v1484_v53 = vpop.f32.mrf.mxu0 }
 0x1df   : > { %v1639_v7 = vpop.f32.mrf.mxu1 }
 0x1e0   : > { %1838 = vxpose.xlu1.c.b16.cont [6/8] %v1796_v6, 128  ;;  %v1640_v18 = vadd.f32 %v1639_v7, %v8832_v39  ;;  %v8880_v54 = vpop.f32.mrf.mxu0 }
 0x1e1   : > { %v1641_v8 = vpop.f32.mrf.mxu1 }
 0x1e2   : > { %v1642_v13 = vadd.f32 %v1641_v8, %v8829_v33 }
 0x1e3   : > { %v1643_v17 = vpop.f32.mrf.mxu1 }
 0x1e4   : > { %v1644_v19 = vadd.f32 %v1643_v17, %v8832_v39  ;;  %v1797_v20 = vpack.c.bf16 %v1642_v13, %v1638_v9 }
 0x1e5   : > { %v1647_v24 = vpop.f32.mrf.mxu1 }
 0x1e6   : > { %1823 = vxpose.xlu0.c.b16.cont [7/8] %v1797_v20, 128  ;;  %v1798_v25 = vpack.c.bf16 %v1644_v19, %v1640_v18  ;;  %v1648_v30 = vadd.f32 %v1647_v24, %v8829_v33 }
 0x1e7   : > { %v1649_v28 = vpop.f32.mrf.mxu1 }
 0x1e8   : > { %1839 = vxpose.xlu1.c.b16.cont [7/8] %v1798_v25, 128  ;;  %v1650_v34 = vadd.f32 %v1649_v28, %v8832_v39 }
 0x1e9   : > { %v1651_v52 = vpop.f32.mrf.mxu1 }
 0x1ea   : > { %v1652_v31 = vadd.f32 %v1651_v52, %v8829_v33  ;;  %v1488_v33 = vpop.f32.mrf.mxu0 }
 0x1eb   : > { %v1653_v32 = vpop.f32.mrf.mxu1 }
 0x1ec   : > { %v1654_v36 = vadd.f32 %v1653_v32, %v8832_v39  ;;  %v1799_v37 = vpack.c.bf16 %v1652_v31, %v1648_v30  ;;  %v8882_v42 = vpop.f32.mrf.mxu0  ;;  %v1475_v31 = vadd.f32 %v1474_v43, %v8852_v26  ;;  %v1479_v32 = vadd.f32 %v1478_v49, %v8852_v26 }
 0x1ee   : > { %1824 = vxpose.xlu0.c.b16.end [8/8] %v1799_v37, 128  ;;  %v1800_v38 = vpack.c.bf16 %v1654_v36, %v1650_v34  ;;  %v1494_v56 = vpop.f32.mrf.mxu0  ;;  %v1485_v34 = vadd.f32 %v1484_v53, %v8852_v26  ;;  %v1489_v36 = vadd.f32 %v1488_v33, %v8852_v26 }
 0x1ef   : > { %v1495_v43 = vadd.f32 %v1494_v56, %v8852_v26 }
 0x1f0   : > { %1840 = vxpose.xlu1.c.b16.end [8/8] %v1800_v38, 128  ;;  %v8884_v58 = vpop.f32.mrf.mxu0 }
 0x1f2   : > { %v1498_v61 = vpop.f32.mrf.mxu0 }
 0x1f3   : > { %v1499_v49 = vadd.f32 %v1498_v61, %v8852_v26 }
 0x1f4   : > { %v8888_v63 = vpop.f32.mrf.mxu0 }
 0x1f6   : > { %v1504_v4 = vpop.f32.mrf.mxu0 }
 0x1f7   : > { %v1505_v53 = vadd.f32 %v1504_v4, %v8852_v26 }
 0x1f8   : > { %v8894_v7 = vpop.f32.mrf.mxu0 }
 0x1fa   : > { %v1508_v9 = vpop.f32.mrf.mxu0 }
 0x1fb   : > { %v1509_v33 = vadd.f32 %v1508_v9, %v8852_v26 }
 0x1fc   : > { %v8896_v17 = vpop.f32.mrf.mxu0 }
 0x1fe   : > { %v1514_v19 = vpop.f32.mrf.mxu0 }
 0x200   : > { %v8898_v20 = vpop.f32.mrf.mxu0 }
 0x202   : > { %v1518_v25 = vpop.f32.mrf.mxu0 }
 0x203   : > { %v1519_v56 = vadd.f32 %v1518_v25, %v8852_v26 }
 0x204   : > { %v8900_v52 = vpop.f32.mrf.mxu0 }
 0x206   : > { %v1524_v30 = vpop.f32.mrf.mxu0 }
 0x207   : > { %v1525_v61 = vadd.f32 %v1524_v30, %v8852_v26 }
 0x208   : > { %v8906_v38 = vpop.f32.mrf.mxu0 }
 0x234   : > { %v1825_v55 = vpop.trf.xlu0 }
 0x236   : > { %v8886_v60 = vpop.trf.xlu1 }
 0x238   : > { %v1826_v39 = vpop.trf.xlu0 }
 0x23a   : > { %v8890_v3 = vpop.trf.xlu1 }
 0x23c   : > { %v1827_v57 = vpop.trf.xlu0 }
 0x23e   : > { %v8892_v6 = vpop.trf.xlu1 }
 0x240   : > { %v1828_v59 = vpop.trf.xlu0 }
 0x242   : > { %v1844_v13 = vpop.trf.xlu1 }
 0x244   : > { %v1829_v62 = vpop.trf.xlu0 }
 0x246   : > { %v1845_v18 = vpop.trf.xlu1 }
 0x248   : > { %v1830_v0 = vpop.trf.xlu0 }
 0x24a   : > { %v1846_v24 = vpop.trf.xlu1 }
 0x24c   : > { %v1831_v5 = vpop.trf.xlu0 }
 0x24e   : > { %v1847_v28 = vpop.trf.xlu1 }
 0x250   : > { %v1832_v8 = vpop.trf.xlu0 }
 0x251   : > { %7032 = vmatprep.subr.bf16.mxu1 %v1832_v8 }
 0x252   : > { %7033 = vmatpush3.bf16.msra.mxu1 %v1832_v8  ;;  %v1848_v37 = vpop.trf.xlu1  ;;  %v1515_v8 = vadd.f32 %v1514_v19, %v8852_v26 }
 0x253   : > { %7034 = vmatprep.subr.bf16.mxu1 %v1831_v5 }
 0x256   : > { %7035 = vmatpush3.bf16.msra.mxu1 %v1831_v5 }
 0x257   : > { %7036 = vmatprep.subr.bf16.mxu1 %v1830_v0 }
 0x25a   : > { %7037 = vmatpush3.bf16.msra.mxu1 %v1830_v0  ;;  %v1777_v0 = vpack.c.bf16 %v1509_v33, %v1505_v53  ;;  %v7416_v33 = vld [vmem:[#allocation10 + $0x160] ss:$24 sps:$4 sm:$0xff]  }
 0x25b   : > { %7038 = vmatprep.subr.bf16.mxu1 %v1829_v62 }
 0x25e   : > { %7039 = vmatpush3.bf16.msra.mxu1 %v1829_v62  ;;  %v1775_v62 = vpack.c.bf16 %v1499_v49, %v1495_v43 }
 0x25f   : > { %7040 = vmatprep.subr.bf16.mxu1 %v1828_v59 }
 0x262   : > { %7041 = vmatpush3.bf16.msra.mxu1 %v1828_v59  ;;  %v1773_v59 = vpack.c.bf16 %v1489_v36, %v1485_v34 }
 0x263   : > { %7042 = vmatprep.subr.bf16.mxu1 %v1827_v57 }
 0x266   : > { %7043 = vmatpush3.bf16.msra.mxu1 %v1827_v57  ;;  %v1771_v57 = vpack.c.bf16 %v1479_v32, %v1475_v31  ;;  %v927_v31 = vrot.slane %v8825_v45, %v8597_v14 }
 0x267   : > { %7044 = vmatprep.subr.bf16.mxu1 %v1826_v39 }
 0x268   : > { %v1467_v30 = vadd.f32 %v8854_v40, %v927_v31  ;;  %v1481_v36 = vadd.f32 %v8878_v50, %v927_v31  ;;  %v1491_v40 = vadd.f32 %v8882_v42, %v927_v31  ;;  %v1511_v50 = vadd.f32 %v8896_v17, %v927_v31  ;;  %v7418_v17 = vld [vmem:[#allocation10 + $0x164] ss:$24 sps:$4 sm:$0xff]  }
 0x269   : > { %v1521_v42 = vadd.f32 %v8900_v52, %v927_v31  ;;  %1656 = vmatprep.subr.bf16.mxu0 %v7418_v17  ;;  %v7424_v52 = vld [vmem:[#allocation10 + $0x104] ss:$24 sps:$4 sm:$0xff]  }
 0x26a   : > { %7045 = vmatpush3.bf16.msra.mxu1 %v1826_v39  ;;  %v1528_v39 = vpop.f32.mrf.mxu0  ;;  %1657 = vmatpush1.bf16.msra.mxu0 %v7416_v33 }
 0x26b   : > { %7046 = vmatprep.subr.bf16.mxu1 %v1825_v55  ;;  %v1529_v4 = vadd.f32 %v1528_v39, %v8852_v26 }
 0x26d   : > { %v1781_v32 = vpack.c.bf16 %v1529_v4, %v1525_v61  ;;  %v7431_v61 = vld [vmem:[#allocation10 + $0x70] ss:$24 sps:$4 sm:$0xff]   ;;  %v7436_v4 = vld [vmem:[#allocation10 + $0x44] ss:$24 sps:$4 sm:$0xff]  }
 0x26e   : > { %7047 = vmatpush3.bf16.msra.mxu1 %v1825_v55  ;;  %v1530_v55 = vpop.f32.mrf.mxu0 }
 0x26f   : > { %7064 = vmatprep.subr.bf16.mxu1 %v1848_v37  ;;  %v1531_v39 = vadd.f32 %v1530_v55, %v927_v31  ;;  %v7427_v55 = vld [vmem:[#allocation10 + $0xd4] ss:$24 sps:$4 sm:$0xff]  }
 0x270   : > { %v1534_v5 = vpop.f32.mrf.mxu0 }
 0x271   : > { %7049 = vmatmul.mubr.bf16.vlgmr.msra.gmra.mxu1 %v1771_v57  ;;  %v1535_v19 = vadd.f32 %v1534_v5, %v8852_v26  ;;  %v7430_v5 = vld [vmem:[#allocation10 + $0xa4] ss:$24 sps:$4 sm:$0xff]  }
 0x272   : > { %7065 = vmatpush3.bf16.msra.mxu1 %v1848_v37  ;;  %7052 = vmatprep.mubr.bf16.mxu1 %v1773_v59  ;;  %v1536_v9 = vpop.f32.mrf.mxu0  ;;  %v1497_v37 = vadd.f32 %v8884_v58, %v927_v31 }
 0x273   : > { %7066 = vmatprep.subr.bf16.mxu1 %v1847_v28 }
 0x276   : > { %7067 = vmatpush3.bf16.msra.mxu1 %v1847_v28  ;;  %v1779_v28 = vpack.c.bf16 %v1519_v56, %v1515_v8  ;;  %v7428_v8 = vld [vmem:[#allocation10 + $0xa0] ss:$24 sps:$4 sm:$0xff]   ;;  %v7433_v56 = vld [vmem:[#allocation10 + $0x74] ss:$24 sps:$4 sm:$0xff]  }
 0x277   : > { %7068 = vmatprep.subr.bf16.mxu1 %v1846_v24 }
 0x279   : > { %7053 = vmatmul.mubr.bf16.gmra.mxu1 %v1775_v62  ;;  %v7421_v62 = vld [vmem:[#allocation10 + $0x134] ss:$24 sps:$4 sm:$0xff]  }
 0x27a   : > { %7069 = vmatpush3.bf16.msra.mxu1 %v1846_v24  ;;  %7056 = vmatprep.mubr.bf16.mxu1 %v1777_v0  ;;  %v1538_v24 = vpop.f32.mrf.mxu0  ;;  %v7425_v0 = vld [vmem:[#allocation10 + $0xd0] ss:$24 sps:$4 sm:$0xff]  }
 0x27b   : > { %7070 = vmatprep.subr.bf16.mxu1 %v1845_v18  ;;  %v1539_v25 = vadd.f32 %v1538_v24, %v8852_v26  ;;  %v1487_v26 = vadd.f32 %v8880_v54, %v927_v31  ;;  %v1517_v54 = vadd.f32 %v8898_v20, %v927_v31  ;;  %v7419_v20 = vld [vmem:[#allocation10 + $0x130] ss:$24 sps:$4 sm:$0xff]   ;;  %1658 = vmatprep.subr.bf16.mxu0 %v7421_v62  ;;  %v7440_v24 = vld [vmem:[#allocation10 + $0x2e0] ss:$24 sps:$4 sm:$0xff]  }
 0x27c   : > { %v1540_v58 = vpop.f32.mrf.mxu0  ;;  %1659 = vmatpush1.bf16.msra.mxu0 %v7419_v20 }
 0x27d   : > { %v1783_v34 = vpack.c.bf16 %v1539_v25, %v1535_v19  ;;  %v1780_v43 = vpack.c.bf16 %v1521_v42, %v1517_v54  ;;  %1660 = vmatprep.subr.bf16.mxu0 %v7424_v52  ;;  %v7445_v19 = vld [vmem:[#allocation10 + $0x2b4] ss:$24 sps:$4 sm:$0xff]   ;;  %v7443_v25 = vld [vmem:[#allocation10 + $0x2b0] ss:$24 sps:$4 sm:$0xff]  }
 0x27e   : > { %7071 = vmatpush3.bf16.msra.mxu1 %v1845_v18  ;;  %v1471_v18 = vadd.f32 %v8874_v10, %v927_v31 }
 0x27f   : > { %7072 = vmatprep.subr.bf16.mxu1 %v1844_v13 }
 0x280   : > { %v1770_v45 = vpack.c.bf16 %v1471_v18, %v1467_v30  ;;  %v7448_v30 = vld [vmem:[#allocation10 + $0x284] ss:$24 sps:$4 sm:$0xff]   ;;  %v7446_v18 = vld [vmem:[#allocation10 + $0x280] ss:$24 sps:$4 sm:$0xff]  }
 0x281   : > { %7057 = vmatmul.mubr.bf16.gmra.mxu1 %v1779_v28  ;;  %v7439_v28 = vld [vmem:[#allocation10 + $0x14] ss:$24 sps:$4 sm:$0xff]  }
 0x282   : > { %7073 = vmatpush3.bf16.msra.mxu1 %v1844_v13  ;;  %7060 = vmatprep.mubr.bf16.mxu1 %v1781_v32  ;;  %v1477_v13 = vadd.f32 %v8876_v46, %v927_v31  ;;  %v1507_v46 = vadd.f32 %v8894_v7, %v927_v31  ;;  %v1541_v7 = vadd.f32 %v1540_v58, %v927_v31  ;;  %v7442_v32 = vld [vmem:[#allocation10 + $0x2e4] ss:$24 sps:$4 sm:$0xff]  }
 0x283   : > { %7074 = vmatprep.subr.bf16.mxu1 %v8892_v6 }
 0x284   : > { %v1772_v10 = vpack.c.bf16 %v1481_v36, %v1477_v13  ;;  %v1778_v59 = vpack.c.bf16 %v1511_v50, %v1507_v46  ;;  %v7454_v13 = vld [vmem:[#allocation10 + $0x224] ss:$24 sps:$4 sm:$0xff]   ;;  %v7452_v36 = vld [vmem:[#allocation10 + $0x220] ss:$24 sps:$4 sm:$0xff]  }
 0x286   : > { %7075 = vmatpush3.bf16.msra.mxu1 %v8892_v6  ;;  %v1774_v6 = vpack.c.bf16 %v1491_v40, %v1487_v26  ;;  %v7457_v26 = vld [vmem:[#allocation10 + $0x1f4] ss:$24 sps:$4 sm:$0xff]   ;;  %v7455_v40 = vld [vmem:[#allocation10 + $0x1f0] ss:$24 sps:$4 sm:$0xff]  }
 0x287   : > { %7076 = vmatprep.subr.bf16.mxu1 %v8890_v3 }
 0x289   : > { %7061 = vmatmul.mubr.bf16.gmra.mxu1 %v1783_v34  ;;  %v7451_v34 = vld [vmem:[#allocation10 + $0x254] ss:$24 sps:$4 sm:$0xff]  }
 0x28a   : > { %7077 = vmatpush3.bf16.msra.mxu1 %v8890_v3  ;;  %7080 = vmatprep.mubr.bf16.mxu1 %v1770_v45  ;;  %v1501_v3 = vadd.f32 %v8888_v63, %v927_v31  ;;  %v1537_v63 = vadd.f32 %v1536_v9, %v927_v31  ;;  %v7434_v9 = vld [vmem:[#allocation10 + $0x40] ss:$24 sps:$4 sm:$0xff]   ;;  %v7449_v45 = vld [vmem:[#allocation10 + $0x250] ss:$24 sps:$4 sm:$0xff]  }
 0x28b   : > { %7078 = vmatprep.subr.bf16.mxu1 %v8886_v60 }
 0x28c   : > { %v1776_v57 = vpack.c.bf16 %v1501_v3, %v1497_v37  ;;  %v1784_v53 = vpack.c.bf16 %v1541_v7, %v1537_v63  ;;  %v7463_v37 = vld [vmem:[#allocation10 + $0x194] ss:$24 sps:$4 sm:$0xff]   ;;  %v7461_v3 = vld [vmem:[#allocation10 + $0x190] ss:$24 sps:$4 sm:$0xff]  }
 0x28e   : > { %7079 = vmatpush3.bf16.msra.mxu1 %v8886_v60  ;;  %v1527_v60 = vadd.f32 %v8906_v38, %v927_v31  ;;  %v7422_v38 = vld [vmem:[#allocation10 + $0x100] ss:$24 sps:$4 sm:$0xff]   ;;  %v7437_v31 = vld [vmem:[#allocation10 + $0x10] ss:$24 sps:$4 sm:$0xff]  }
 0x28f   : > { %1661 = vmatpush1.bf16.msra.mxu0 %v7422_v38 }
 0x290   : > { %v1782_v49 = vpack.c.bf16 %v1531_v39, %v1527_v60  ;;  %1662 = vmatprep.subr.bf16.mxu0 %v7427_v55 }
 0x291   : > { %7081 = vmatmul.mubr.bf16.vlgmr.msra.gmra.mxu1 %v1772_v10  ;;  %v7460_v10 = vld [vmem:[#allocation10 + $0x1c4] ss:$24 sps:$4 sm:$0xff]  }
 0x292   : > { %7084 = vmatprep.mubr.bf16.mxu1 %v1774_v6  ;;  %v7458_v6 = vld [vmem:[#allocation10 + $0x1c0] ss:$24 sps:$4 sm:$0xff]  }
 0x293   : > { %1663 = vmatpush1.bf16.msra.mxu0 %v7425_v0 }
 0x294   : > { %1664 = vmatprep.subr.bf16.mxu0 %v7430_v5 }
 0x297   : > { %1665 = vmatpush1.bf16.msra.mxu0 %v7428_v8 }
 0x298   : > { %1666 = vmatprep.subr.bf16.mxu0 %v7433_v56 }
 0x299   : > { %7085 = vmatmul.mubr.bf16.gmra.mxu1 %v1776_v57 }
 0x29a   : > { %7088 = vmatprep.mubr.bf16.mxu1 %v1778_v59 }
 0x29b   : > { %1667 = vmatpush1.bf16.msra.mxu0 %v7431_v61 }
 0x29c   : > { %1668 = vmatprep.subr.bf16.mxu0 %v7436_v4 }
 0x29f   : > { %1669 = vmatpush1.bf16.msra.mxu0 %v7434_v9 }
 0x2a0   : > { %1670 = vmatprep.subr.bf16.mxu0 %v7439_v28 }
 0x2a1   : > { %7089 = vmatmul.mubr.bf16.gmra.mxu1 %v1780_v43 }
 0x2a2   : > { %7092 = vmatprep.mubr.bf16.mxu1 %v1782_v49 }
 0x2a3   : > { %1671 = vmatpush1.bf16.msra.mxu0 %v7437_v31 }
 0x2a4   : > { %1672 = vmatprep.subr.bf16.mxu0 %v7442_v32 }
 0x2a7   : > { %1673 = vmatpush2.bf16.msra.mxu0 %v7440_v24 }
 0x2a8   : > { %1674 = vmatprep.subr.bf16.mxu0 %v7445_v19 }
 0x2a9   : > { %7093 = vmatmul.mubr.bf16.gmra.mxu1 %v1784_v53 }
 0x2ab   : > { %1675 = vmatpush2.bf16.msra.mxu0 %v7443_v25 }
 0x2ac   : > { %1676 = vmatprep.subr.bf16.mxu0 %v7448_v30 }
 0x2af   : > { %1677 = vmatpush2.bf16.msra.mxu0 %v7446_v18 }
 0x2b0   : > { %1678 = vmatprep.subr.bf16.mxu0 %v7451_v34 }
 0x2b3   : > { %1679 = vmatpush2.bf16.msra.mxu0 %v7449_v45 }
 0x2b4   : > { %1680 = vmatprep.subr.bf16.mxu0 %v7454_v13 }
 0x2b7   : > { %1681 = vmatpush2.bf16.msra.mxu0 %v7452_v36 }
 0x2b8   : > { %1682 = vmatprep.subr.bf16.mxu0 %v7457_v26 }
 0x2bb   : > { %1683 = vmatpush2.bf16.msra.mxu0 %v7455_v40 }
 0x2bc   : > { %1684 = vmatprep.subr.bf16.mxu0 %v7460_v10 }
 0x2bf   : > { %1685 = vmatpush2.bf16.msra.mxu0 %v7458_v6 }
 0x2c0   : > { %1686 = vmatprep.subr.bf16.mxu0 %v7463_v37 }
 0x2c3   : > { %1687 = vmatpush2.bf16.msra.mxu0 %v7461_v3 }
 0x2c6   : > { %1689 = vmatmul.mubr.bf16.vlgmr.msra.gmra.mxu0 %v8690_v12 }
 0x2c7   : > { %1698 = vmatprep.mubr.bf16.mxu0 %v8694_v16 }
 0x2ce   : > { %1699 = vmatmul.mubr.bf16.gmra.mxu0 %v8710_v44 }
 0x2cf   : > { %1708 = vmatprep.mubr.bf16.mxu0 %v8716_v51 }
 0x2d6   : > { %1709 = vmatmul.mubr.bf16.gmra.mxu0 %v8736_v15 }
 0x2d7   : > { %1718 = vmatprep.mubr.bf16.mxu0 %v8740_v21 }
 0x2de   : > { %1719 = vmatmul.mubr.bf16.gmra.mxu0 %v8754_v41 }
 0x2df   : > { %1728 = vmatprep.mubr.bf16.mxu0 %v8758_v47 }
 0x2e6   : > { %1729 = vmatmul.mubr.bf16.gmra.mxu0 %v8770_v2 }
 0x2e7   : > { %1738 = vmatprep.mubr.bf16.mxu0 %v8774_v27 }
 0x2ee   : > { %1739 = vmatmul.mubr.bf16.gmra.mxu0 %v8786_v48 }
 0x2ef   : > { %1748 = vmatprep.mubr.bf16.mxu0 %v8790_v23 }
 0x2f6   : > { %1749 = vmatmul.mubr.bf16.gmra.mxu0 %v8798_v29 }
 0x2f7   : > { %1758 = vmatprep.mubr.bf16.mxu0 %v8728_v1 }
 0x2fe   : > { %1759 = vmatmul.mubr.bf16.gmra.mxu0 %v8808_v35 }
 0x331   : > { %v8941_v46 = vpop.f32.mrf.mxu1 }
 0x333   : > { %v8944_v50 = vpop.f32.mrf.mxu1 }
 0x335   : > { %v8947_v57 = vpop.f32.mrf.mxu1 }
 0x337   : > { %v8949_v59 = vpop.f32.mrf.mxu1 }
 0x339   : > { %v8951_v54 = vpop.f32.mrf.mxu1 }
 0x33b   : > { %v8954_v42 = vpop.f32.mrf.mxu1 }
 0x33d   : > { %v8957_v12 = vpop.f32.mrf.mxu1 }
 0x33f   : > { %v8959_v16 = vpop.f32.mrf.mxu1 }
 0x341   : > { %v8961_v44 = vpop.f32.mrf.mxu1 }
 0x343   : > { %v8964_v51 = vpop.f32.mrf.mxu1 }
 0x345   : > { %v8967_v60 = vpop.f32.mrf.mxu1 }
 0x347   : > { %v8969_v39 = vpop.f32.mrf.mxu1 }
 0x349   : > { %v8971_v15 = vpop.f32.mrf.mxu1 }
 0x34a   : > { %2071 = vmax.xlane.f32.xlu0 %v8971_v15 }
 0x34b   : > { %v8975_v21 = vpop.f32.mrf.mxu1 }
 0x34d   : > { %v8978_v43 = vpop.f32.mrf.mxu1 }
 0x34e   : > { %2073 = vmax.xlane.f32.xlu1 %v8978_v43 }
 0x34f   : > { %v8981_v41 = vpop.f32.mrf.mxu1 }
 0x351   : > { %v8983_v47 = vpop.f32.mrf.mxu1 }
 0x353   : > { %v8986_v49 = vpop.f32.mrf.mxu1 }
 0x355   : > { %v8989_v58 = vpop.f32.mrf.mxu1 }
 0x357   : > { %v8991_v2 = vpop.f32.mrf.mxu1 }
 0x359   : > { %v8993_v63 = vpop.f32.mrf.mxu1 }
 0x35b   : > { %v8996_v27 = vpop.f32.mrf.mxu1 }
 0x35d   : > { %v8999_v7 = vpop.f32.mrf.mxu1 }
 0x35f   : > { %v9001_v53 = vpop.f32.mrf.mxu1 }
 0x361   : > { %v9003_v48 = vpop.f32.mrf.mxu1 }
 0x363   : > { %v9006_v23 = vpop.f32.mrf.mxu1 }
 0x365   : > { %v9008_v17 = vpop.f32.mrf.mxu1 }
 0x367   : > { %v9010_v33 = vpop.f32.mrf.mxu1 }
 0x369   : > { %v9012_v62 = vpop.f32.mrf.mxu1 }
 0x36a   : > { %2103 = vmax.xlane.f32.xlu0 %v9012_v62 }
 0x36b   : > { %v9015_v29 = vpop.f32.mrf.mxu1 }
 0x36d   : > { %v9017_v1 = vpop.f32.mrf.mxu1 }
 0x36e   : > { %2067 = vmax.xlane.f32.xlu0 %v8975_v21  ;;  %2105 = vmax.xlane.f32.xlu1 %v9017_v1 }
 0x36f   : > { %v9023_v35 = vpop.f32.mrf.mxu1 }
 0x372   : > { %2099 = vmax.xlane.f32.xlu0 %v9015_v29  ;;  %2069 = vmax.xlane.f32.xlu1 %v8981_v41 }
 0x376   : > { %2063 = vmax.xlane.f32.xlu0 %v8961_v44  ;;  %2101 = vmax.xlane.f32.xlu1 %v9023_v35 }
 0x37a   : > { %2095 = vmax.xlane.f32.xlu0 %v9003_v48  ;;  %2065 = vmax.xlane.f32.xlu1 %v8967_v60 }
 0x37e   : > { %2059 = vmax.xlane.f32.xlu0 %v8964_v51  ;;  %2097 = vmax.xlane.f32.xlu1 %v9008_v17 }
 0x382   : > { %2091 = vmax.xlane.f32.xlu0 %v9006_v23  ;;  %2061 = vmax.xlane.f32.xlu1 %v8969_v39 }
 0x386   : > { %2055 = vmax.xlane.f32.xlu0 %v8951_v54  ;;  %2093 = vmax.xlane.f32.xlu1 %v9010_v33 }
 0x38a   : > { %2087 = vmax.xlane.f32.xlu0 %v8993_v63  ;;  %2057 = vmax.xlane.f32.xlu1 %v8957_v12 }
 0x38e   : > { %2051 = vmax.xlane.f32.xlu0 %v8954_v42  ;;  %2089 = vmax.xlane.f32.xlu1 %v8999_v7 }
 0x392   : > { %2083 = vmax.xlane.f32.xlu0 %v8996_v27  ;;  %2053 = vmax.xlane.f32.xlu1 %v8959_v16 }
 0x396   : > { %2047 = vmax.xlane.f32.xlu0 %v8941_v46  ;;  %2085 = vmax.xlane.f32.xlu1 %v9001_v53 }
 0x39a   : > { %2079 = vmax.xlane.f32.xlu0 %v8983_v47  ;;  %2049 = vmax.xlane.f32.xlu1 %v8947_v57 }
 0x39e   : > { %2043 = vmax.xlane.f32.xlu0 %v8944_v50  ;;  %2081 = vmax.xlane.f32.xlu1 %v8989_v58 }
 0x3a2   : > { %2075 = vmax.xlane.f32.xlu0 %v8986_v49  ;;  %2045 = vmax.xlane.f32.xlu1 %v8949_v59 }
 0x3a6   : > { %2077 = vmax.xlane.f32.xlu1 %v8991_v2 }
 0x3d3   : > { %v2072_v20 = vpop.xlane.xlu0 %2071 }
 0x3d4   : > { %v2121_v4 = vsub.f32 %v8971_v15, %v2072_v20 }
 0x3d6   : > { %v2167_v24 = vmul.f32 1.442695, %v2121_v4 }
 0x3d7   : > { %v2074_v52 = vpop.xlane.xlu1 %2073 }
 0x3d8   : > { %v2122_v30 = vsub.f32 %v8978_v43, %v2074_v52 }
 0x3da   : > { %v2169_v26 = vmul.f32 1.442695, %v2122_v30 }
 0x3f3   : > { %v2104_v38 = vpop.xlane.xlu0 %2103 }
 0x3f4   : > { %v2137_v37 = vsub.f32 %v9012_v62, %v2104_v38 }
 0x3f6   : > { %v2199_v43 = vmul.f32 1.442695, %v2137_v37 }
 0x3f7   : > { %v2068_v55 = vpop.xlane.xlu0 %2067  ;;  %v2106_v0 = vpop.xlane.xlu1 %2105 }
 0x3f8   : > { %v2119_v19 = vsub.f32 %v8975_v21, %v2068_v55 }
 0x3fa   : > { %v2163_v13 = vmul.f32 1.442695, %v2119_v19 }
 0x3fb   : > { %v2100_v5 = vpop.xlane.xlu0 %2099  ;;  %v2070_v8 = vpop.xlane.xlu1 %2069 }
 0x3fc   : > { %v2120_v40 = vsub.f32 %v8981_v41, %v2070_v8  ;;  %v2138_v41 = vsub.f32 %v9017_v1, %v2106_v0  ;;  %v2135_v55 = vsub.f32 %v9015_v29, %v2100_v5  ;;  %v9067_v8 = vpop.f32.mrf.mxu0 }
 0x3fe   : > { %v2201_v4 = vmul.f32 1.442695, %v2138_v41  ;;  %v9077_v5 = vpop.f32.mrf.mxu0 }
 0x3ff   : > { %v2064_v56 = vpop.xlane.xlu0 %2063  ;;  %v9050_v61 = vpop.xlane.xlu1 %2101 }
 0x400   : > { %v2117_v9 = vsub.f32 %v8961_v44, %v2064_v56  ;;  %v2165_v44 = vmul.f32 1.442695, %v2120_v40  ;;  %v9088_v30 = vpop.f32.mrf.mxu0 }
 0x402   : > { %v2159_v28 = vmul.f32 1.442695, %v2117_v9 }
 0x403   : > { %v2096_v31 = vpop.xlane.xlu0 %2095  ;;  %v2066_v32 = vpop.xlane.xlu1 %2065 }
 0x404   : > { %7768 = vpow2.f32 %v2159_v28  ;;  %v2118_v25 = vsub.f32 %v8967_v60, %v2066_v32  ;;  %v2133_v36 = vsub.f32 %v9003_v48, %v2096_v31  ;;  %v2195_v28 = vmul.f32 1.442695, %v2135_v55 }
 0x405   : > { %7770 = vpow2.f32 %v2167_v24 }
 0x406   : > { %v2161_v18 = vmul.f32 1.442695, %v2118_v25  ;;  %v2191_v3 = vmul.f32 1.442695, %v2133_v36  ;;  %v9098_v36 = vpop.f32.mrf.mxu0 }
 0x407   : > { %v2060_v34 = vpop.xlane.xlu0 %2059  ;;  %v2098_v45 = vpop.xlane.xlu1 %2097 }
 0x408   : > { %7772 = vpow2.f32 %v2161_v18  ;;  %v2134_v60 = vsub.f32 %v9008_v17, %v2098_v45  ;;  %v2115_v48 = vsub.f32 %v8964_v51, %v2060_v34 }
 0x409   : > { %7774 = vpow2.f32 %v2163_v13 }
 0x40a   : > { %7776 = vpow2.f32 %v2169_v26  ;;  %v2193_v52 = vmul.f32 1.442695, %v2134_v60  ;;  %v2155_v17 = vmul.f32 1.442695, %v2115_v48 }
 0x40b   : > { %v2092_v10 = vpop.xlane.xlu0 %2091  ;;  %v2062_v6 = vpop.xlane.xlu1 %2061  ;;  %7778 = vpow2.f32 %v2191_v3 }
 0x40c   : > { %7780 = vpow2.f32 %v2165_v44  ;;  %v2116_v51 = vsub.f32 %v8969_v39, %v2062_v6  ;;  %v2131_v29 = vsub.f32 %v9006_v23, %v2092_v10  ;;  %v2136_v39 = vsub.f32 %v9023_v35, %v9050_v61  ;;  %v9108_v44 = vpop.f32.mrf.mxu0 }
 0x40d   : > { %7782 = vpow2.f32 %v2199_v43 }
 0x40e   : > { %7784 = vpow2.f32 %v2193_v52  ;;  %v2157_v32 = vmul.f32 1.442695, %v2116_v51  ;;  %v2187_v19 = vmul.f32 1.442695, %v2131_v29  ;;  %v2197_v34 = vmul.f32 1.442695, %v2136_v39 }
 0x40f   : > { %v2056_v15 = vpop.xlane.xlu0 %2055  ;;  %v2094_v21 = vpop.xlane.xlu1 %2093  ;;  %7786 = vpow2.f32 %v2155_v17 }
 0x410   : > { %7788 = vpow2.f32 %v2201_v4  ;;  %v2113_v25 = vsub.f32 %v8951_v54, %v2056_v15  ;;  %v2132_v35 = vsub.f32 %v9010_v33, %v2094_v21 }
 0x411   : > { %v9062_v20 = vpop.eup %7768  ;;  %7790 = vpow2.f32 %v2195_v28 }
 0x412   : > { %2223 = vadd.xlane.f32.xlu0 %v9062_v20  ;;  %v9069_v56 = vpop.eup %7770  ;;  %7792 = vpow2.f32 %v2157_v32  ;;  %v2151_v13 = vmul.f32 1.442695, %v2113_v25  ;;  %v2189_v40 = vmul.f32 1.442695, %v2132_v35 }
 0x413   : > { %v2088_v62 = vpop.xlane.xlu0 %2087  ;;  %v2058_v38 = vpop.xlane.xlu1 %2057  ;;  %7794 = vpow2.f32 %v2187_v19 }
 0x414   : > { %v2129_v54 = vsub.f32 %v8993_v63, %v2088_v62  ;;  %7796 = vpow2.f32 %v2197_v34  ;;  %v2114_v10 = vsub.f32 %v8957_v12, %v2058_v38 }
 0x415   : > { %v9072_v9 = vpop.eup %7772  ;;  %7798 = vpow2.f32 %v2151_v13 }
 0x416   : > { %2231 = vadd.xlane.f32.xlu0 %v9069_v56  ;;  %2225 = vadd.xlane.f32.xlu1 %v9072_v9  ;;  %v9079_v31 = vpop.eup %7774  ;;  %v2183_v3 = vmul.f32 1.442695, %v2129_v54  ;;  %7800 = vpow2.f32 %v2189_v40  ;;  %v2153_v15 = vmul.f32 1.442695, %v2114_v10 }
 0x417   : > { %v2052_v1 = vpop.xlane.xlu0 %2051  ;;  %v2090_v0 = vpop.xlane.xlu1 %2089 }
 0x418   : > { %v9083_v24 = vpop.eup %7776  ;;  %v2111_v63 = vsub.f32 %v8954_v42, %v2052_v1  ;;  %v2130_v12 = vsub.f32 %v8999_v7, %v2090_v0  ;;  %7802 = vpow2.f32 %v2183_v3  ;;  %v9118_v42 = vpop.f32.mrf.mxu0 }
 0x419   : > { %v9090_v18 = vpop.eup %7778  ;;  %7804 = vpow2.f32 %v2153_v15 }
 0x41a   : > { %2227 = vadd.xlane.f32.xlu0 %v9079_v31  ;;  %2233 = vadd.xlane.f32.xlu1 %v9083_v24  ;;  %v9093_v45 = vpop.eup %7780  ;;  %v2147_v43 = vmul.f32 1.442695, %v2111_v63  ;;  %v2185_v62 = vmul.f32 1.442695, %v2130_v12  ;;  %v9128_v4 = vpop.f32.mrf.mxu0 }
 0x41b   : > { %v2054_v23 = vpop.xlane.xlu1 %2053  ;;  %v2084_v61 = vpop.xlane.xlu0 %2083 }
 0x41c   : > { %v9100_v26 = vpop.eup %7782  ;;  %v2127_v48 = vsub.f32 %v8996_v27, %v2084_v61  ;;  %v2112_v38 = vsub.f32 %v8959_v16, %v2054_v23  ;;  %7806 = vpow2.f32 %v2147_v43  ;;  %v9138_v32 = vpop.f32.mrf.mxu0 }
 0x41d   : > { %v9103_v33 = vpop.eup %7784  ;;  %7808 = vpow2.f32 %v2185_v62 }
 0x41e   : > { %2255 = vadd.xlane.f32.xlu0 %v9090_v18  ;;  %2229 = vadd.xlane.f32.xlu1 %v9093_v45  ;;  %v9110_v60 = vpop.eup %7786  ;;  %v2179_v17 = vmul.f32 1.442695, %v2127_v48  ;;  %v2149_v1 = vmul.f32 1.442695, %v2112_v38 }
 0x41f   : > { %v2086_v6 = vpop.xlane.xlu1 %2085  ;;  %v2048_v37 = vpop.xlane.xlu0 %2047 }
 0x420   : > { %v9113_v21 = vpop.eup %7788  ;;  %v2109_v27 = vsub.f32 %v8941_v46, %v2048_v37  ;;  %v2128_v0 = vsub.f32 %v9001_v53, %v2086_v6  ;;  %7810 = vpow2.f32 %v2179_v17 }
 0x421   : > { %v9120_v52 = vpop.eup %7790  ;;  %7812 = vpow2.f32 %v2149_v1 }
 0x422   : > { %2263 = vadd.xlane.f32.xlu0 %v9100_v26  ;;  %2257 = vadd.xlane.f32.xlu1 %v9103_v33  ;;  %v9123_v55 = vpop.eup %7792  ;;  %v2143_v39 = vmul.f32 1.442695, %v2109_v27  ;;  %v2181_v25 = vmul.f32 1.442695, %v2128_v0 }
 0x423   : > { %v2050_v41 = vpop.xlane.xlu1 %2049  ;;  %v2080_v7 = vpop.xlane.xlu0 %2079 }
 0x424   : > { %v9130_v51 = vpop.eup %7794  ;;  %v2125_v46 = vsub.f32 %v8983_v47, %v2080_v7  ;;  %v2110_v53 = vsub.f32 %v8947_v57, %v2050_v41  ;;  %7814 = vpow2.f32 %v2143_v39  ;;  %v9148_v47 = vpop.f32.mrf.mxu0 }
 0x425   : > { %v9133_v16 = vpop.eup %7796  ;;  %7816 = vpow2.f32 %v2181_v25 }
 0x426   : > { %2219 = vadd.xlane.f32.xlu0 %v9110_v60  ;;  %2265 = vadd.xlane.f32.xlu1 %v9113_v21  ;;  %v9140_v19 = vpop.eup %7798  ;;  %v2175_v34 = vmul.f32 1.442695, %v2125_v46  ;;  %v2145_v54 = vmul.f32 1.442695, %v2110_v53  ;;  %v9158_v37 = vpop.f32.mrf.mxu0 }
 0x427   : > { %v2082_v28 = vpop.xlane.xlu1 %2081  ;;  %v2044_v29 = vpop.xlane.xlu0 %2043 }
 0x428   : > { %v9143_v23 = vpop.eup %7800  ;;  %v2107_v35 = vsub.f32 %v8944_v50, %v2044_v29  ;;  %v2126_v40 = vsub.f32 %v8989_v58, %v2082_v28  ;;  %7818 = vpow2.f32 %v2175_v34  ;;  %v1714_v48 = vpop.f32.mrf.mxu0 }
 0x429   : > { %v9150_v13 = vpop.eup %7802  ;;  %7820 = vpow2.f32 %v2145_v54 }
 0x42a   : > { %2259 = vadd.xlane.f32.xlu0 %v9120_v52  ;;  %2221 = vadd.xlane.f32.xlu1 %v9123_v55  ;;  %v9153_v10 = vpop.eup %7804  ;;  %v2139_v6 = vmul.f32 1.442695, %v2107_v35  ;;  %v2177_v63 = vmul.f32 1.442695, %v2126_v40 }
 0x42b   : > { %v2046_v61 = vpop.xlane.xlu1 %2045  ;;  %v2076_v57 = vpop.xlane.xlu0 %2075 }
 0x42c   : > { %v2123_v50 = vsub.f32 %v8986_v49, %v2076_v57  ;;  %v9160_v3 = vpop.eup %7806  ;;  %v2108_v15 = vsub.f32 %v8949_v59, %v2046_v61  ;;  %7822 = vpow2.f32 %v2139_v6  ;;  %v1716_v59 = vpop.f32.mrf.mxu0 }
 0x42d   : > { %v9163_v58 = vpop.eup %7808  ;;  %7824 = vpow2.f32 %v2177_v63 }
 0x42e   : > { %2251 = vadd.xlane.f32.xlu0 %v9130_v51  ;;  %2261 = vadd.xlane.f32.xlu1 %v9133_v16  ;;  %v2171_v43 = vmul.f32 1.442695, %v2123_v50  ;;  %v9167_v41 = vpop.eup %7810  ;;  %v2141_v49 = vmul.f32 1.442695, %v2108_v15  ;;  %v1720_v1 = vpop.f32.mrf.mxu0  ;;  %v938_v15 = vsub.s32 4, %v8594_v11 }
 0x42f   : > { %v2078_v12 = vpop.xlane.xlu1 %2077  ;;  %10505 = vst [vmem:[#allocation26_spill] sm:$0xff] %v9167_v41  ;;  %v9170_v38 = vpop.eup %7812 }
 0x430   : > { %v2124_v62 = vsub.f32 %v8991_v2, %v2078_v12  ;;  %7826 = vpow2.f32 %v2171_v43  ;;  %v1722_v28 = vpop.f32.mrf.mxu0  ;;  %v7960_v43 = vld [vmem:[%s10404_s5] sm:$0x3f] }
 0x431   : > { %v9174_v7 = vpop.eup %7814  ;;  %7828 = vpow2.f32 %v2141_v49  ;;  %v939_v49 = vrot.slane %v7960_v43, %v938_v15 }
 0x432   : > { %2215 = vadd.xlane.f32.xlu0 %v9140_v19  ;;  %2253 = vadd.xlane.f32.xlu1 %v9143_v23  ;;  %v2173_v17 = vmul.f32 1.442695, %v2124_v62  ;;  %v9176_v27 = vpop.eup %7816  ;;  %v1724_v46 = vpop.f32.mrf.mxu0  ;;  %v942_v62 = vsub.s32 5, %v8594_v11 }
 0x433   : > { %v1691_v14 = vadd.f32 %v9067_v8, %v939_v49  ;;  %v1695_v22 = vadd.f32 %v9088_v30, %v939_v49  ;;  %v1715_v8 = vadd.f32 %v1714_v48, %v939_v49 }
 0x434   : > { %7830 = vpow2.f32 %v2173_v17  ;;  %v1726_v34 = vpop.f32.mrf.mxu0 }
 0x435   : > { %v9180_v2 = vpop.eup %7818 }
 0x436   : > { %2247 = vadd.xlane.f32.xlu0 %v9150_v13  ;;  %2217 = vadd.xlane.f32.xlu1 %v9153_v10  ;;  %10506 = vst [vmem:[#allocation27_spill] sm:$0xff] %v9180_v2  ;;  %v9182_v0 = vpop.eup %7820  ;;  %v1730_v61 = vpop.f32.mrf.mxu0 }
 0x438   : > { %v1732_v54 = vpop.f32.mrf.mxu0 }
 0x439   : > { %v9186_v29 = vpop.eup %7822 }
 0x43a   : > { %2211 = vadd.xlane.f32.xlu0 %v9160_v3  ;;  %2249 = vadd.xlane.f32.xlu1 %v9163_v58  ;;  %10507 = vst [vmem:[#allocation28_spill] sm:$0xff] %v9186_v29  ;;  %v9188_v39 = vpop.eup %7824  ;;  %v1734_v40 = vpop.f32.mrf.mxu0 }
 0x43b   : > { %10508 = vst [vmem:[#allocation29_spill] sm:$0xff] %v9188_v39 }
 0x43c   : > { %v1736_v57 = vpop.f32.mrf.mxu0 }
 0x43d   : > { %v9192_v25 = vpop.eup %7826 }
 0x43e   : > { %2243 = vadd.xlane.f32.xlu0 %v9167_v41  ;;  %2213 = vadd.xlane.f32.xlu1 %v9170_v38  ;;  %10509 = vst [vmem:[#allocation30_spill] sm:$0xff] %v9192_v25  ;;  %v9194_v53 = vpop.eup %7828  ;;  %v1740_v6 = vpop.f32.mrf.mxu0  ;;  %v1711_v41 = vadd.f32 %v9148_v47, %v939_v49 }
 0x43f   : > { %10510 = vst [vmem:[#allocation31_spill] sm:$0xff] %v9194_v53 }
 0x440   : > { %v1742_v50 = vpop.f32.mrf.mxu0 }
 0x441   : > { %v9198_v35 = vpop.eup %7830 }
 0x442   : > { %2207 = vadd.xlane.f32.xlu0 %v9174_v7  ;;  %2245 = vadd.xlane.f32.xlu1 %v9176_v27  ;;  %10511 = vst [vmem:[#allocation32_spill] sm:$0xff] %v9198_v35  ;;  %v1744_v63 = vpop.f32.mrf.mxu0 }
 0x444   : > { %v1746_v12 = vpop.f32.mrf.mxu0 }
 0x446   : > { %2239 = vadd.xlane.f32.xlu0 %v9180_v2  ;;  %2209 = vadd.xlane.f32.xlu1 %v9182_v0  ;;  %v1750_v17 = vpop.f32.mrf.mxu0  ;;  %v1705_v2 = vadd.f32 %v9128_v4, %v939_v49 }
 0x44a   : > { %2203 = vadd.xlane.f32.xlu0 %v9186_v29  ;;  %2241 = vadd.xlane.f32.xlu1 %v9188_v39  ;;  %v1752_v39 = vpop.f32.mrf.mxu0 }
 0x44c   : > { %v1754_v30 = vpop.f32.mrf.mxu0 }
 0x44e   : > { %2235 = vadd.xlane.f32.xlu0 %v9192_v25  ;;  %2205 = vadd.xlane.f32.xlu1 %v9194_v53  ;;  %v9208_v25 = vrot.slane %v7960_v43, %v942_v62  ;;  %v1801_v53 = vpack.c.bf16 %v1695_v22, %v1691_v14  ;;  %v1805_v14 = vpack.c.bf16 %v1715_v8, %v1711_v41  ;;  %v1756_v47 = vpop.f32.mrf.mxu0 }
 0x44f   : > { %v1721_v22 = vadd.f32 %v1720_v1, %v939_v49  ;;  %v1725_v62 = vadd.f32 %v1724_v46, %v939_v49  ;;  %v1741_v1 = vadd.f32 %v1740_v6, %v939_v49  ;;  %v1745_v46 = vadd.f32 %v1744_v63, %v939_v49 }
 0x450   : > { %v1693_v29 = vadd.f32 %v9077_v5, %v9208_v25  ;;  %v1697_v15 = vadd.f32 %v9098_v36, %v9208_v25  ;;  %v1707_v4 = vadd.f32 %v9138_v32, %v9208_v25  ;;  %v1713_v5 = vadd.f32 %v9158_v37, %v9208_v25  ;;  %v1760_v41 = vpop.f32.mrf.mxu0 }
 0x451   : > { %v1717_v36 = vadd.f32 %v1716_v59, %v9208_v25  ;;  %v1727_v32 = vadd.f32 %v1726_v34, %v9208_v25  ;;  %v1733_v59 = vadd.f32 %v1732_v54, %v9208_v25  ;;  %v1751_v8 = vadd.f32 %v1750_v17, %v939_v49 }
 0x452   : > { %2237 = vadd.xlane.f32.xlu1 %v9198_v35  ;;  %v1701_v35 = vadd.f32 %v9108_v44, %v939_v49  ;;  %v1802_v43 = vpack.c.bf16 %v1697_v15, %v1693_v29  ;;  %v1703_v44 = vadd.f32 %v9118_v42, %v9208_v25  ;;  %v1731_v29 = vadd.f32 %v1730_v61, %v939_v49  ;;  %v1762_v61 = vpop.f32.mrf.mxu0 }
 0x453   : > { %v1806_v42 = vpack.c.bf16 %v1717_v36, %v1713_v5  ;;  %v1737_v15 = vadd.f32 %v1736_v57, %v9208_v25  ;;  %v1743_v34 = vadd.f32 %v1742_v50, %v9208_v25  ;;  %v1753_v57 = vadd.f32 %v1752_v39, %v9208_v25 }
 0x454   : > { %v1803_v11 = vpack.c.bf16 %v1705_v2, %v1701_v35  ;;  %v1804_v48 = vpack.c.bf16 %v1707_v4, %v1703_v44  ;;  %v1807_v2 = vpack.c.bf16 %v1725_v62, %v1721_v22  ;;  %v1723_v35 = vadd.f32 %v1722_v28, %v9208_v25  ;;  %v1764_v6 = vpop.f32.mrf.mxu0 }
 0x455   : > { %v1810_v28 = vpack.c.bf16 %v1737_v15, %v1733_v59  ;;  %v1747_v44 = vadd.f32 %v1746_v12, %v9208_v25  ;;  %v1761_v4 = vadd.f32 %v1760_v41, %v939_v49  ;;  %v1757_v22 = vadd.f32 %v1756_v47, %v9208_v25 }
 0x456   : > { %v1808_v37 = vpack.c.bf16 %v1727_v32, %v1723_v35  ;;  %v1766_v17 = vpop.f32.mrf.mxu0  ;;  %v1763_v50 = vadd.f32 %v1762_v61, %v9208_v25 }
 0x457   : > { %v1812_v54 = vpack.c.bf16 %v1747_v44, %v1743_v34  ;;  %v1814_v62 = vpack.c.bf16 %v1757_v22, %v1753_v57  ;;  %v1767_v12 = vadd.f32 %v1766_v17, %v9208_v25 }
 0x459   : > { %v1816_v5 = vpack.c.bf16 %v1767_v12, %v1763_v50 }
 0x47b   : > { %2347 = vxpose.xlu0.c.b16.start [1/8] %v1801_v53, 128  ;;  %v1735_v53 = vadd.f32 %v1734_v40, %v939_v49  ;;  %v1811_v40 = vpack.c.bf16 %v1745_v46, %v1741_v1 }
 0x47f   : > { %2348 = vxpose.xlu0.c.b16.cont [2/8] %v1803_v11, 128  ;;  %2363 = vxpose.xlu1.c.b16.start [1/8] %v1802_v43, 128  ;;  %v1809_v11 = vpack.c.bf16 %v1735_v53, %v1731_v29  ;;  %v1755_v43 = vadd.f32 %v1754_v30, %v939_v49 }
 0x481   : > { %v1813_v63 = vpack.c.bf16 %v1755_v43, %v1751_v8 }
 0x483   : > { %2349 = vxpose.xlu0.c.b16.cont [3/8] %v1805_v14, 128  ;;  %2364 = vxpose.xlu1.c.b16.cont [2/8] %v1804_v48, 128  ;;  %v1765_v14 = vadd.f32 %v1764_v6, %v939_v49 }
 0x485   : > { %v1815_v30 = vpack.c.bf16 %v1765_v14, %v1761_v4 }
 0x487   : > { %2350 = vxpose.xlu0.c.b16.cont [4/8] %v1807_v2, 128  ;;  %2365 = vxpose.xlu1.c.b16.cont [3/8] %v1806_v42, 128 }
 0x48b   : > { %2351 = vxpose.xlu0.c.b16.cont [5/8] %v1809_v11, 128  ;;  %2366 = vxpose.xlu1.c.b16.cont [4/8] %v1808_v37, 128 }
 0x48f   : > { %2352 = vxpose.xlu0.c.b16.cont [6/8] %v1811_v40, 128  ;;  %2367 = vxpose.xlu1.c.b16.cont [5/8] %v1810_v28, 128 }
 0x493   : > { %2353 = vxpose.xlu0.c.b16.cont [7/8] %v1813_v63, 128  ;;  %2368 = vxpose.xlu1.c.b16.cont [6/8] %v1812_v54, 128 }
 0x497   : > { %2354 = vxpose.xlu0.c.b16.end [8/8] %v1815_v30, 128  ;;  %2369 = vxpose.xlu1.c.b16.cont [7/8] %v1814_v62, 128 }
 0x49b   : > { %v2224_v36 = vpop.xlane.xlu0 %2223  ;;  %2370 = vxpose.xlu1.c.b16.end [8/8] %v1816_v5, 128 }
 0x49f   : > { %v2232_v49 = vpop.xlane.xlu0 %2231  ;;  %v2226_v48 = vpop.xlane.xlu1 %2225 }
 0x4a0   : > { %7832 = vrcp.f32 %v2232_v49 }
 0x4a3   : > { %v2228_v39 = vpop.xlane.xlu0 %2227  ;;  %v2234_v47 = vpop.xlane.xlu1 %2233 }
 0x4a4   : > { %7834 = vrcp.f32 %v2234_v47 }
 0x4a5   : > { %7836 = vrcp.f32 %v2228_v39 }
 0x4a7   : > { %v2256_v2 = vpop.xlane.xlu0 %2255  ;;  %v2230_v29 = vpop.xlane.xlu1 %2229 }
 0x4a8   : > { %7838 = vrcp.f32 %v2230_v29 }
 0x4a9   : > { %7840 = vrcp.f32 %v2226_v48 }
 0x4aa   : > { %7842 = vrcp.f32 %v2224_v36 }
 0x4ab   : > { %v2264_v53 = vpop.xlane.xlu0 %2263  ;;  %v2258_v42 = vpop.xlane.xlu1 %2257 }
 0x4ac   : > { %7844 = vrcp.f32 %v2264_v53 }
 0x4ad   : > { %v7833_v35 = vpop.eup %7832 }
 0x4ae   : > { %v2313_v1 = vmul.f32 %v7833_v35, %v9069_v56 }
 0x4af   : > { %v2220_v25 = vpop.xlane.xlu0 %2219  ;;  %v2266_v32 = vpop.xlane.xlu1 %2265 }
 0x4b0   : > { %7846 = vrcp.f32 %v2266_v32 }
 0x4b1   : > { %v7835_v41 = vpop.eup %7834  ;;  %7848 = vrcp.f32 %v2220_v25 }
 0x4b2   : > { %v2314_v46 = vmul.f32 %v7835_v41, %v9083_v24  ;;  %v7837_v37 = vpop.eup %7836 }
 0x4b3   : > { %v2260_v11 = vpop.xlane.xlu0 %2259  ;;  %v2222_v59 = vpop.xlane.xlu1 %2221  ;;  %v2311_v8 = vmul.f32 %v7837_v37, %v9079_v31 }
 0x4b4   : > { %7850 = vrcp.f32 %v2222_v59  ;;  %v2338_v15 = vpack.c.bf16 %v2314_v46, %v2313_v1 }
 0x4b5   : > { %v7839_v61 = vpop.eup %7838  ;;  %7852 = vrcp.f32 %v2258_v42 }
 0x4b6   : > { %7854 = vrcp.f32 %v2260_v11  ;;  %7096 = vmatprep.subr.bf16.mxu0 %v2338_v15  ;;  %v2312_v43 = vmul.f32 %v7839_v61, %v9093_v45  ;;  %v7841_v28 = vpop.eup %7840 }
 0x4b7   : > { %v2252_v40 = vpop.xlane.xlu0 %2251  ;;  %7856 = vrcp.f32 %v2256_v2  ;;  %7097 = vmatpush3.bf16.xpose.msra.mxu0 %v2338_v15  ;;  %v2262_v56 = vpop.xlane.xlu1 %2261  ;;  %v2310_v6 = vmul.f32 %v7841_v28, %v9072_v9 }
 0x4b8   : > { %7858 = vrcp.f32 %v2262_v56  ;;  %v2337_v24 = vpack.c.bf16 %v2312_v43, %v2311_v8  ;;  %v7843_v34 = vpop.eup %7842 }
 0x4b9   : > { %v7845_v63 = vpop.eup %7844  ;;  %v2309_v14 = vmul.f32 %v7843_v34, %v9062_v20 }
 0x4ba   : > { %7098 = vmatprep.subr.bf16.mxu0 %v2337_v24  ;;  %v2329_v57 = vmul.f32 %v7845_v63, %v9100_v26 }
 0x4bb   : > { %v2216_v44 = vpop.xlane.xlu0 %2215  ;;  %v2254_v4 = vpop.xlane.xlu1 %2253  ;;  %v2336_v45 = vpack.c.bf16 %v2310_v6, %v2309_v14 }
 0x4bc   : > { %7860 = vrcp.f32 %v2216_v44 }
 0x4bd   : > { %v7847_v54 = vpop.eup %7846  ;;  %7862 = vrcp.f32 %v2254_v4 }
 0x4be   : > { %v2330_v22 = vmul.f32 %v7847_v54, %v9113_v21  ;;  %7864 = vrcp.f32 %v2252_v40  ;;  %v7849_v30 = vpop.eup %7848 }
 0x4bf   : > { %v2248_v31 = vpop.xlane.xlu0 %2247  ;;  %7099 = vmatpush3.bf16.xpose.msra.mxu0 %v2337_v24  ;;  %v2218_v17 = vpop.xlane.xlu1 %2217  ;;  %v2307_v26 = vmul.f32 %v7849_v30, %v9110_v60 }
 0x4c0   : > { %7866 = vrcp.f32 %v2218_v17  ;;  %7100 = vmatprep.subr.bf16.mxu0 %v2336_v45  ;;  %v2346_v9 = vpack.c.bf16 %v2330_v22, %v2329_v57  ;;  %v10512_v57 = vld [vmem:[#allocation26_spill] sm:$0xff] }
 0x4c1   : > { %v7851_v62 = vpop.eup %7850 }
 0x4c2   : > { %v7853_v50 = vpop.eup %7852  ;;  %7128 = vmatprep.subr.bf16.mxu1 %v2346_v9  ;;  %v2308_v12 = vmul.f32 %v7851_v62, %v9123_v55 }
 0x4c3   : > { %v2212_v20 = vpop.xlane.xlu0 %2211  ;;  %v7855_v5 = vpop.eup %7854  ;;  %7129 = vmatpush3.bf16.xpose.msra.mxu1 %v2346_v9  ;;  %v2326_v48 = vmul.f32 %v7853_v50, %v9103_v33 }
 0x4c4   : > { %v2250_v36 = vpop.xlane.xlu1 %2249  ;;  %v7857_v49 = vpop.eup %7856  ;;  %7868 = vrcp.f32 %v2212_v20  ;;  %v2335_v47 = vpack.c.bf16 %v2308_v12, %v2307_v26  ;;  %v2327_v2 = vmul.f32 %v7855_v5, %v9120_v52  ;;  %v10516_v26 = vld [vmem:[#allocation27_spill] sm:$0xff] }
 0x4c5   : > { %v7859_v21 = vpop.eup %7858  ;;  %7870 = vrcp.f32 %v2250_v36  ;;  %v2325_v42 = vmul.f32 %v7857_v49, %v9090_v18 }
 0x4c6   : > { %v2328_v29 = vmul.f32 %v7859_v21, %v9133_v16  ;;  %7872 = vrcp.f32 %v2248_v31 }
 0x4c7   : > { %v2244_v39 = vpop.xlane.xlu0 %2243  ;;  %7101 = vmatpush3.bf16.xpose.msra.mxu0 %v2336_v45  ;;  %v2344_v35 = vpack.c.bf16 %v2326_v48, %v2325_v42 }
 0x4c8   : > { %v2214_v55 = vpop.xlane.xlu1 %2213  ;;  %7102 = vmatprep.subr.bf16.mxu0 %v2335_v47  ;;  %v2345_v53 = vpack.c.bf16 %v2328_v29, %v2327_v2  ;;  %v10517_v29 = vld [vmem:[#allocation32_spill] sm:$0xff] }
 0x4c9   : > { %7874 = vrcp.f32 %v2214_v55  ;;  %v7861_v60 = vpop.eup %7860 }
 0x4ca   : > { %7130 = vmatprep.subr.bf16.mxu1 %v2345_v53  ;;  %v7863_v33 = vpop.eup %7862  ;;  %v2305_v11 = vmul.f32 %v7861_v60, %v9140_v19 }
 0x4cb   : > { %v2208_v25 = vpop.xlane.xlu0 %2207  ;;  %7131 = vmatpush3.bf16.xpose.msra.mxu1 %v2345_v53  ;;  %v7865_v41 = vpop.eup %7864  ;;  %v2324_v46 = vmul.f32 %v7863_v33, %v9143_v23  ;;  %v10518_v53 = vld [vmem:[#allocation30_spill] sm:$0xff] }
 0x4cc   : > { %v2246_v32 = vpop.xlane.xlu1 %2245  ;;  %7132 = vmatprep.subr.bf16.mxu1 %v2344_v35  ;;  %7876 = vrcp.f32 %v2208_v25  ;;  %v2323_v59 = vmul.f32 %v7865_v41, %v9130_v51 }
 0x4cd   : > { %v7867_v52 = vpop.eup %7866  ;;  %7878 = vrcp.f32 %v2246_v32 }
 0x4ce   : > { %v2306_v1 = vmul.f32 %v7867_v52, %v9153_v10  ;;  %7880 = vrcp.f32 %v2244_v39  ;;  %v2343_v40 = vpack.c.bf16 %v2324_v46, %v2323_v59 }
 0x4cf   : > { %v2240_v16 = vpop.xlane.xlu0 %2239  ;;  %7103 = vmatpush3.bf16.xpose.msra.mxu0 %v2335_v47 }
 0x4d0   : > { %v2210_v18 = vpop.xlane.xlu1 %2209  ;;  %v2334_v37 = vpack.c.bf16 %v2306_v1, %v2305_v11 }
 0x4d1   : > { %7882 = vrcp.f32 %v2210_v18  ;;  %v7869_v15 = vpop.eup %7868 }
 0x4d2   : > { %7104 = vmatprep.subr.bf16.mxu0 %v2334_v37  ;;  %v7871_v8 = vpop.eup %7870  ;;  %v2303_v23 = vmul.f32 %v7869_v15, %v9160_v3  ;;  %v7464_v15 = vld [vmem:[#allocation11 + $0x70] ss:$8 sps:$4 sm:$0xff]  }
 0x4d3   : > { %v2204_v61 = vpop.xlane.xlu0 %2203  ;;  %7133 = vmatpush3.bf16.xpose.msra.mxu1 %v2344_v35  ;;  %v7873_v28 = vpop.eup %7872  ;;  %v2322_v56 = vmul.f32 %v7871_v8, %v9163_v58  ;;  %v7467_v8 = vld [vmem:[#allocation11 + $0x60] ss:$8 sps:$4 sm:$0xff]  }
 0x4d4   : > { %v2242_v43 = vpop.xlane.xlu1 %2241  ;;  %7134 = vmatprep.subr.bf16.mxu1 %v2343_v40  ;;  %7884 = vrcp.f32 %v2204_v61  ;;  %v2321_v44 = vmul.f32 %v7873_v28, %v9150_v13  ;;  %v7466_v61 = vld [vmem:[#allocation11 + $0x74] ss:$8 sps:$4 sm:$0xff]   ;;  %v7470_v28 = vld [vmem:[#allocation11 + $0x50] ss:$8 sps:$4 sm:$0xff]  }
 0x4d5   : > { %7886 = vrcp.f32 %v2242_v43  ;;  %v7472_v43 = vld [vmem:[#allocation11 + $0x54] ss:$8 sps:$4 sm:$0xff]  }
 0x4d6   : > { %v7875_v19 = vpop.eup %7874  ;;  %7888 = vrcp.f32 %v2240_v16  ;;  %v2342_v63 = vpack.c.bf16 %v2322_v56, %v2321_v44  ;;  %v7476_v56 = vld [vmem:[#allocation11 + $0x30] ss:$8 sps:$4 sm:$0xff]  }
 0x4d7   : > { %v2304_v10 = vmul.f32 %v7875_v19, %v9170_v38  ;;  %7105 = vmatpush3.bf16.xpose.msra.mxu0 %v2334_v37  ;;  %v2236_v24 = vpop.xlane.xlu0 %2235  ;;  %v7475_v19 = vld [vmem:[#allocation11 + $0x44] ss:$8 sps:$4 sm:$0xff]   ;;  %v7482_v44 = vld [vmem:[#allocation11 + $0x10] ss:$8 sps:$4 sm:$0xff]  }
 0x4d8   : > { %v2206_v51 = vpop.xlane.xlu1 %2205 }
 0x4d9   : > { %7890 = vrcp.f32 %v2206_v51  ;;  %v2333_v34 = vpack.c.bf16 %v2304_v10, %v2303_v23  ;;  %v7877_v6 = vpop.eup %7876  ;;  %v7473_v23 = vld [vmem:[#allocation11 + $0x40] ss:$8 sps:$4 sm:$0xff]   ;;  %v7478_v10 = vld [vmem:[#allocation11 + $0x34] ss:$8 sps:$4 sm:$0xff]   ;;  %v7481_v51 = vld [vmem:[#allocation11 + $0x24] ss:$8 sps:$4 sm:$0xff]  }
 0x4da   : > { %v7879_v4 = vpop.eup %7878  ;;  %v2301_v58 = vmul.f32 %v7877_v6, %v9174_v7  ;;  %v10513_v7 = vld [vmem:[#allocation28_spill] sm:$0xff] }
 0x4db   : > { %7106 = vmatprep.subr.bf16.mxu0 %v2333_v34  ;;  %7135 = vmatpush3.bf16.xpose.msra.mxu1 %v2343_v40  ;;  %v7881_v54 = vpop.eup %7880  ;;  %v2320_v45 = vmul.f32 %v7879_v4, %v9176_v27  ;;  %v10515_v27 = vld [vmem:[#allocation29_spill] sm:$0xff]  ;;  %v7469_v40 = vld [vmem:[#allocation11 + $0x64] ss:$8 sps:$4 sm:$0xff]  }
 0x4dc   : > { %v2238_v14 = vpop.xlane.xlu1 %2237  ;;  %7136 = vmatprep.subr.bf16.mxu1 %v2342_v63  ;;  %v2319_v22 = vmul.f32 %v7881_v54, %v10512_v57  ;;  %v7487_v6 = vld [vmem:[#allocation11 + $0x4] ss:$8 sps:$4 sm:$0xff]   ;;  %v7490_v4 = vld [vmem:[#allocation11 + $0xf4] ss:$8 sps:$4 sm:$0xff]  }
 0x4dd   : > { %v2355_v3 = vpop.trf.xlu0  ;;  %7892 = vrcp.f32 %v2238_v14  ;;  %v7488_v14 = vld [vmem:[#allocation11 + $0xf0] ss:$8 sps:$4 sm:$0xff]   ;;  %v7493_v54 = vld [vmem:[#allocation11 + $0xe4] ss:$8 sps:$4 sm:$0xff]   ;;  %v7496_v57 = vld [vmem:[#allocation11 + $0xd4] ss:$8 sps:$4 sm:$0xff]  }
 0x4de   : > { %v7883_v38 = vpop.eup %7882  ;;  %7112 = vmatprep.mubr.bf16.mxu0 %v2355_v3  ;;  %7894 = vrcp.f32 %v2236_v24  ;;  %v2341_v9 = vpack.c.bf16 %v2320_v45, %v2319_v22  ;;  %v7479_v24 = vld [vmem:[#allocation11 + $0x20] ss:$8 sps:$4 sm:$0xff]  }
 0x4df   : > { %v2302_v31 = vmul.f32 %v7883_v38, %v9182_v0  ;;  %7107 = vmatpush3.bf16.xpose.msra.mxu0 %v2333_v34  ;;  %v10514_v0 = vld [vmem:[#allocation31_spill] sm:$0xff]  ;;  %v7484_v34 = vld [vmem:[#allocation11 + $0x14] ss:$8 sps:$4 sm:$0xff]  }
 0x4e0   : > { %v7491_v3 = vld [vmem:[#allocation11 + $0xe0] ss:$8 sps:$4 sm:$0xff]  }
 0x4e1   : > { %v2332_v13 = vpack.c.bf16 %v2302_v31, %v2301_v58  ;;  %v2371_v17 = vpop.trf.xlu1  ;;  %v7885_v30 = vpop.eup %7884 }
 0x4e2   : > { %7144 = vmatprep.mubr.bf16.mxu1 %v2371_v17  ;;  %v7887_v62 = vpop.eup %7886  ;;  %v2299_v12 = vmul.f32 %v7885_v30, %v10513_v7  ;;  %v2356_v2 = vpop.trf.xlu0  ;;  %v7494_v30 = vld [vmem:[#allocation11 + $0xd0] ss:$8 sps:$4 sm:$0xff]   ;;  %v7497_v7 = vld [vmem:[#allocation11 + $0xc0] ss:$8 sps:$4 sm:$0xff]  }
 0x4e3   : > { %7108 = vmatprep.subr.bf16.mxu0 %v2332_v13  ;;  %7137 = vmatpush3.bf16.xpose.msra.mxu1 %v2342_v63  ;;  %v7889_v50 = vpop.eup %7888  ;;  %v2318_v36 = vmul.f32 %v7887_v62, %v10515_v27  ;;  %v7485_v63 = vld [vmem:[#allocation11] ss:$8 sps:$4 sm:$0xff]  }
 0x4e4   : > { %7138 = vmatprep.subr.bf16.mxu1 %v2341_v9  ;;  %v2317_v21 = vmul.f32 %v7889_v50, %v10516_v26 }
 0x4e5   : > { %v2372_v33 = vpop.trf.xlu1 }
 0x4e6   : > { %v7891_v20 = vpop.eup %7890  ;;  %v2340_v48 = vpack.c.bf16 %v2318_v36, %v2317_v21  ;;  %v2357_v60 = vpop.trf.xlu0  ;;  %v7500_v36 = vld [vmem:[#allocation11 + $0xb0] ss:$8 sps:$4 sm:$0xff]   ;;  %v7505_v21 = vld [vmem:[#allocation11 + $0xa4] ss:$8 sps:$4 sm:$0xff]  }
 0x4e7   : > { %v2300_v5 = vmul.f32 %v7891_v20, %v10514_v0  ;;  %7109 = vmatpush3.bf16.xpose.msra.mxu0 %v2332_v13  ;;  %v7499_v20 = vld [vmem:[#allocation11 + $0xc4] ss:$8 sps:$4 sm:$0xff]  }
 0x4e9   : > { %v2331_v49 = vpack.c.bf16 %v2300_v5, %v2299_v12  ;;  %v2373_v41 = vpop.trf.xlu1  ;;  %v7502_v5 = vld [vmem:[#allocation11 + $0xb4] ss:$8 sps:$4 sm:$0xff]  }
 0x4ea   : > { %v7893_v39 = vpop.eup %7892  ;;  %v2358_v35 = vpop.trf.xlu0 }
 0x4eb   : > { %7110 = vmatprep.subr.bf16.mxu0 %v2331_v49  ;;  %7139 = vmatpush3.bf16.xpose.msra.mxu1 %v2341_v9  ;;  %v7895_v47 = vpop.eup %7894  ;;  %v2316_v55 = vmul.f32 %v7893_v39, %v10517_v29 }
 0x4ec   : > { %7140 = vmatprep.subr.bf16.mxu1 %v2340_v48  ;;  %v2315_v42 = vmul.f32 %v7895_v47, %v10518_v53 }
 0x4ed   : > { %v2374_v16 = vpop.trf.xlu1 }
 0x4ee   : > { %v2339_v25 = vpack.c.bf16 %v2316_v55, %v2315_v42  ;;  %v2359_v32 = vpop.trf.xlu0  ;;  %v7506_v55 = vld [vmem:[#allocation11 + $0x90] ss:$8 sps:$4 sm:$0xff]  }
 0x4ef   : > { %7111 = vmatpush3.bf16.xpose.msra.mxu0 %v2331_v49 }
 0x4f0   : > { %4713 = vmatprep.subr.bf16.mxu0 %v7466_v61 }
 0x4f1   : > { %v2375_v1 = vpop.trf.xlu1 }
 0x4f2   : > { %v2360_v52 = vpop.trf.xlu0 }
 0x4f3   : > { %7141 = vmatpush3.bf16.xpose.msra.mxu1 %v2340_v48  ;;  %v7503_v48 = vld [vmem:[#allocation11 + $0xa0] ss:$8 sps:$4 sm:$0xff]  }
 0x4f4   : > { %7142 = vmatprep.subr.bf16.mxu1 %v2339_v25 }
 0x4f5   : > { %v2376_v18 = vpop.trf.xlu1 }
 0x4f6   : > { %7113 = vmatmul.mubr.bf16.vlgmr.msra.gmra.mxu0 %v2356_v2  ;;  %v2361_v11 = vpop.trf.xlu0  ;;  %v7508_v2 = vld [vmem:[#allocation11 + $0x94] ss:$8 sps:$4 sm:$0xff]  }
 0x4f7   : > { %7116 = vmatprep.mubr.bf16.mxu0 %v2357_v60  ;;  %4714 = vmatpush1.bf16.msra.mxu0 %v7464_v15  ;;  %v7511_v60 = vld [vmem:[#allocation11 + $0x84] ss:$8 sps:$4 sm:$0xff]   ;;  %v8299_v15 = vmov 1983009808  }
 0x4f8   : > { %4715 = vmatprep.subr.bf16.mxu0 %v7469_v40  ;;  %v2639_v61 = vunpack.c.l.s4 %v8299_v15 }
 0x4f9   : > { %v2377_v37 = vpop.trf.xlu1 }
 0x4fa   : > { %v2362_v46 = vpop.trf.xlu0 }
 0x4fb   : > { %7143 = vmatpush3.bf16.xpose.msra.mxu1 %v2339_v25  ;;  %4716 = vmatpush1.bf16.msra.mxu0 %v7467_v8  ;;  %v7509_v25 = vld [vmem:[#allocation11 + $0x80] ss:$8 sps:$4 sm:$0xff]   ;;  %v2640_v8 = vunpack.c.0.s8 %v2639_v61 }
 0x4fc   : > { %4717 = vmatprep.subr.bf16.mxu0 %v7472_v43 }
 0x4fd   : > { %v2378_v59 = vpop.trf.xlu1 }
 0x4fe   : > { %7117 = vmatmul.mubr.bf16.gmra.mxu0 %v2358_v35 }
 0x4ff   : > { %7120 = vmatprep.mubr.bf16.mxu0 %v2359_v32  ;;  %4718 = vmatpush1.bf16.msra.mxu0 %v7470_v28  ;;  %v8300_v28 = vmov 1934713408  }
 0x500   : > { %4719 = vmatprep.subr.bf16.mxu0 %v7475_v19  ;;  %v2670_v19 = vunpack.c.l.s4 %v8300_v28 }
 0x502   : > { %7145 = vmatmul.mubr.bf16.vlgmr.msra.gmra.mxu1 %v2372_v33 }
 0x503   : > { %7148 = vmatprep.mubr.bf16.mxu1 %v2373_v41  ;;  %4720 = vmatpush1.bf16.msra.mxu0 %v7473_v23  ;;  %v10519_v23 = vld [vmem:[#allocation23_spill] sm:$0xff] }
 0x504   : > { %4721 = vmatprep.subr.bf16.mxu0 %v7478_v10  ;;  %v9267_v10 = vsub.s32 %v2640_v8, %v10519_v23 }
 0x506   : > { %7121 = vmatmul.mubr.bf16.gmra.mxu0 %v2360_v52 }
 0x507   : > { %7124 = vmatprep.mubr.bf16.mxu0 %v2361_v11  ;;  %4722 = vmatpush1.bf16.msra.mxu0 %v7476_v56 }
 0x508   : > { %4723 = vmatprep.subr.bf16.mxu0 %v7481_v51  ;;  %v2671_v51 = vunpack.c.0.s8 %v2670_v19 }
 0x50a   : > { %7149 = vmatmul.mubr.bf16.gmra.mxu1 %v2374_v16 }
 0x50b   : > { %7152 = vmatprep.mubr.bf16.mxu1 %v2375_v1  ;;  %4724 = vmatpush1.bf16.msra.mxu0 %v7479_v24  ;;  %v8301_v24 = vmov 0.0  }
 0x50c   : > { %4725 = vmatprep.subr.bf16.mxu0 %v7484_v34 }
 0x50e   : > { %7125 = vmatmul.mubr.bf16.gmra.mxu0 %v2362_v46 }
 0x50f   : > { %4726 = vmatpush1.bf16.msra.mxu0 %v7482_v44 }
 0x510   : > { %4727 = vmatprep.subr.bf16.mxu0 %v7487_v6 }
 0x512   : > { %7153 = vmatmul.mubr.bf16.gmra.mxu1 %v2376_v18 }
 0x513   : > { %7156 = vmatprep.mubr.bf16.mxu1 %v2377_v37  ;;  %4728 = vmatpush1.bf16.msra.mxu0 %v7485_v63 }
 0x514   : > { %4729 = vmatprep.subr.bf16.mxu0 %v7490_v4 }
 0x517   : > { %4730 = vmatpush2.bf16.msra.mxu0 %v7488_v14 }
 0x518   : > { %4731 = vmatprep.subr.bf16.mxu0 %v7493_v54  ;;  %v9274_v54 = vsub.s32 %v2671_v51, %v10519_v23 }
 0x51a   : > { %7157 = vmatmul.mubr.bf16.gmra.mxu1 %v2378_v59 }
 0x51b   : > { %4732 = vmatpush2.bf16.msra.mxu0 %v7491_v3 }
 0x51c   : > { %4733 = vmatprep.subr.bf16.mxu0 %v7496_v57 }
 0x51f   : > { %4734 = vmatpush2.bf16.msra.mxu0 %v7494_v30  ;;  %v7517_v30 = vld [vmem:[#allocation13 + $0xec] ss:$16 sps:$4 sm:$0xff]  }
 0x520   : > { %4735 = vmatprep.subr.bf16.mxu0 %v7499_v20 }
 0x523   : > { %4736 = vmatpush2.bf16.msra.mxu0 %v7497_v7 }
 0x524   : > { %4737 = vmatprep.subr.bf16.mxu0 %v7502_v5 }
 0x527   : > { %4738 = vmatpush2.bf16.msra.mxu0 %v7500_v36 }
 0x528   : > { %4739 = vmatprep.subr.bf16.mxu0 %v7505_v21 }
 0x52b   : > { %4740 = vmatpush2.bf16.msra.mxu0 %v7503_v48 }
 0x52c   : > { %4741 = vmatprep.subr.bf16.mxu0 %v7508_v2 }
 0x52f   : > { %4742 = vmatpush2.bf16.msra.mxu0 %v7506_v55 }
 0x530   : > { %4743 = vmatprep.subr.bf16.mxu0 %v7511_v60 }
 0x533   : > { %4744 = vmatpush2.bf16.msra.mxu0 %v7509_v25 }
 0x534   : > { %5644 = vmatprep.subr.bf16.mxu0 %v7517_v30 }
 0x5b6   : > { %v7114_v38 = vpop.f32.mrf.mxu0 }
 0x5b8   : > { %v2413_v58 = vpop.f32.mrf.mxu0 }
 0x5b9   : > { %2573 = vxpose.xlu0.b32.start [1/16] %v2413_v58, 128 }
 0x5ba   : > { %v7115_v31 = vpop.f32.mrf.mxu0 }
 0x5bc   : > { %v2416_v45 = vpop.f32.mrf.mxu0 }
 0x5bd   : > { %2574 = vxpose.xlu0.b32.cont [2/16] %v2416_v45, 128  ;;  %v7514_v45 = vld [vmem:[#allocation13 + $0xe4] ss:$16 sps:$4 sm:$0xff]  }
 0x5be   : > { %v7118_v13 = vpop.f32.mrf.mxu0  ;;  %5242 = vmatprep.subr.bf16.mxu1 %v7514_v45 }
 0x5c0   : > { %v2429_v17 = vpop.f32.mrf.mxu0 }
 0x5c1   : > { %2575 = vxpose.xlu0.b32.cont [3/16] %v7114_v38, 128 }
 0x5c2   : > { %v7146_v22 = vpop.f32.mrf.mxu1  ;;  %v7119_v50 = vpop.f32.mrf.mxu0 }
 0x5c4   : > { %v2510_v9 = vpop.f32.mrf.mxu1  ;;  %v2432_v0 = vpop.f32.mrf.mxu0 }
 0x5c5   : > { %2605 = vxpose.xlu1.b32.start [1/16] %v2510_v9, 128  ;;  %2576 = vxpose.xlu0.b32.cont [4/16] %v7115_v31, 128  ;;  %v7512_v31 = vld [vmem:[#allocation13 + $0xe0] ss:$16 sps:$4 sm:$0xff]   ;;  %v7520_v9 = vld [vmem:[#allocation13 + $0xc4] ss:$16 sps:$4 sm:$0xff]  }
 0x5c6   : > { %v7147_v62 = vpop.f32.mrf.mxu1  ;;  %v7122_v49 = vpop.f32.mrf.mxu0  ;;  %5243 = vmatpush1.bf16.msra.mxu1 %v7512_v31 }
 0x5c7   : > { %5244 = vmatprep.subr.bf16.mxu1 %v7520_v9 }
 0x5c8   : > { %v2513_v12 = vpop.f32.mrf.mxu1  ;;  %v2445_v39 = vpop.f32.mrf.mxu0 }
 0x5c9   : > { %2606 = vxpose.xlu1.b32.cont [2/16] %v2513_v12, 128  ;;  %2577 = vxpose.xlu0.b32.cont [5/16] %v2429_v17, 128 }
 0x5ca   : > { %v7150_v27 = vpop.f32.mrf.mxu1  ;;  %v7123_v29 = vpop.f32.mrf.mxu0 }
 0x5cc   : > { %v2526_v26 = vpop.f32.mrf.mxu1  ;;  %v2448_v42 = vpop.f32.mrf.mxu0 }
 0x5cd   : > { %2607 = vxpose.xlu1.b32.cont [3/16] %v7146_v22, 128  ;;  %2578 = vxpose.xlu0.b32.cont [6/16] %v2432_v0, 128 }
 0x5ce   : > { %v7151_v47 = vpop.f32.mrf.mxu1  ;;  %v7126_v33 = vpop.f32.mrf.mxu0 }
 0x5d0   : > { %v2529_v53 = vpop.f32.mrf.mxu1  ;;  %v2461_v41 = vpop.f32.mrf.mxu0 }
 0x5d1   : > { %2608 = vxpose.xlu1.b32.cont [4/16] %v7147_v62, 128  ;;  %2579 = vxpose.xlu0.b32.cont [7/16] %v7118_v13, 128 }
 0x5d2   : > { %v7154_v35 = vpop.f32.mrf.mxu1  ;;  %v7127_v16 = vpop.f32.mrf.mxu0 }
 0x5d4   : > { %v2542_v32 = vpop.f32.mrf.mxu1  ;;  %v2464_v1 = vpop.f32.mrf.mxu0 }
 0x5d5   : > { %2609 = vxpose.xlu1.b32.cont [5/16] %v2526_v26, 128  ;;  %2580 = vxpose.xlu0.b32.cont [8/16] %v7119_v50, 128 }
 0x5d6   : > { %v7155_v52 = vpop.f32.mrf.mxu1 }
 0x5d8   : > { %v2545_v11 = vpop.f32.mrf.mxu1 }
 0x5d9   : > { %2610 = vxpose.xlu1.b32.cont [6/16] %v2529_v53, 128  ;;  %2581 = vxpose.xlu0.b32.cont [9/16] %v2445_v39, 128 }
 0x5da   : > { %v7158_v46 = vpop.f32.mrf.mxu1 }
 0x5dc   : > { %v2558_v18 = vpop.f32.mrf.mxu1 }
 0x5dd   : > { %2611 = vxpose.xlu1.b32.cont [7/16] %v7150_v27, 128  ;;  %2582 = vxpose.xlu0.b32.cont [10/16] %v2448_v42, 128  ;;  %v7526_v42 = vld [vmem:[#allocation13 + $0xa4] ss:$16 sps:$4 sm:$0xff]  }
 0x5de   : > { %v7159_v37 = vpop.f32.mrf.mxu1 }
 0x5e0   : > { %v2561_v59 = vpop.f32.mrf.mxu1 }
 0x5e1   : > { %2612 = vxpose.xlu1.b32.cont [8/16] %v7151_v47, 128  ;;  %2583 = vxpose.xlu0.b32.cont [11/16] %v7122_v49, 128  ;;  %v7518_v47 = vld [vmem:[#allocation13 + $0xc0] ss:$16 sps:$4 sm:$0xff]  }
 0x5e2   : > { %5245 = vmatpush1.bf16.msra.mxu1 %v7518_v47 }
 0x5e3   : > { %5246 = vmatprep.subr.bf16.mxu1 %v7526_v42 }
 0x5e5   : > { %2613 = vxpose.xlu1.b32.cont [9/16] %v2542_v32, 128  ;;  %2584 = vxpose.xlu0.b32.cont [12/16] %v7123_v29, 128 }
 0x5e9   : > { %2614 = vxpose.xlu1.b32.cont [10/16] %v2545_v11, 128  ;;  %2585 = vxpose.xlu0.b32.cont [13/16] %v2461_v41, 128 }
 0x5ed   : > { %2615 = vxpose.xlu1.b32.cont [11/16] %v7154_v35, 128  ;;  %2586 = vxpose.xlu0.b32.cont [14/16] %v2464_v1, 128 }
 0x5f1   : > { %2616 = vxpose.xlu1.b32.cont [12/16] %v7155_v52, 128  ;;  %2587 = vxpose.xlu0.b32.cont [15/16] %v7126_v33, 128 }
 0x5f5   : > { %2617 = vxpose.xlu1.b32.cont [13/16] %v2558_v18, 128  ;;  %2588 = vxpose.xlu0.b32.end [16/16] %v7127_v16, 128 }
 0x5f9   : > { %2618 = vxpose.xlu1.b32.cont [14/16] %v2561_v59, 128  ;;  %v7524_v59 = vld [vmem:[#allocation13 + $0xa0] ss:$16 sps:$4 sm:$0xff]  }
 0x5fa   : > { %5247 = vmatpush1.bf16.msra.mxu1 %v7524_v59 }
 0x5fd   : > { %2619 = vxpose.xlu1.b32.cont [15/16] %v7158_v46, 128 }
 0x601   : > { %2620 = vxpose.xlu1.b32.end [16/16] %v7159_v37, 128 }
 0x635   : > { %v2589_v40 = vpop.trf.xlu0 }
 0x636   : > { %v2637_v34 = vcombine.high %v2589_v40, %v8301_v24  ;;  %v2644_v44 = vrot.slane %v2589_v40, %v9267_v10 }
 0x638   : > { %v2651_v3 = vrot.slane %v2637_v34, %v9267_v10 }
 0x639   : > { %v2590_v43 = vpop.trf.xlu0 }
 0x63a   : > { %v2703_v63 = vcombine.high %v2590_v43, %v8301_v24  ;;  %v2710_v17 = vrot.slane %v2590_v43, %v9267_v10  ;;  %v7532_v43 = vld [vmem:[#allocation13 + $0x84] ss:$16 sps:$4 sm:$0xff]  }
 0x63b   : > { %5248 = vmatprep.subr.bf16.mxu1 %v7532_v43 }
 0x63c   : > { %v2717_v62 = vrot.slane %v2703_v63, %v9267_v10 }
 0x63d   : > { %v2591_v56 = vpop.trf.xlu0 }
 0x63e   : > { %v2769_v4 = vcombine.high %v2591_v56, %v8301_v24  ;;  %v2776_v20 = vrot.slane %v2591_v56, %v9267_v10 }
 0x640   : > { %v9284_v7 = vrot.slane %v2769_v4, %v9267_v10 }
 0x641   : > { %v2621_v6 = vpop.trf.xlu1  ;;  %v2592_v14 = vpop.trf.xlu0 }
 0x642   : > { %v2652_v38 = vcombine.high %v2621_v6, %v8301_v24  ;;  %v2659_v58 = vrot.slane %v2621_v6, %v9267_v10  ;;  %v2835_v12 = vcombine.high %v2592_v14, %v8301_v24  ;;  %v9292_v48 = vrot.slane %v2592_v14, %v9267_v10 }
 0x644   : > { %v2666_v13 = vrot.slane %v2652_v38, %v9267_v10  ;;  %v2667_v57 = vcombine.low %v2644_v44, %v2659_v58  ;;  %v2668_v22 = vcombine.high %v2644_v44, %v2659_v58  ;;  %v9299_v32 = vrot.slane %v2835_v12, %v9267_v10  ;;  %v7530_v58 = vld [vmem:[#allocation13 + $0x80] ss:$16 sps:$4 sm:$0xff]  }
 0x645   : > { %v2622_v50 = vpop.trf.xlu1  ;;  %v2593_v0 = vpop.trf.xlu0  ;;  %5249 = vmatpush1.bf16.msra.mxu1 %v7530_v58 }
 0x646   : > { %v2675_v5 = vrot.slane %v2667_v57, %v9274_v54  ;;  %v2682_v27 = vrot.slane %v2668_v22, %v9274_v54  ;;  %v2683_v36 = vcombine.low %v2651_v3, %v2666_v13  ;;  %v2684_v49 = vcombine.high %v2651_v3, %v2666_v13  ;;  %v7538_v22 = vld [vmem:[#allocation13 + $0x64] ss:$16 sps:$4 sm:$0xff]  }
 0x647   : > { %v2718_v26 = vcombine.high %v2622_v50, %v8301_v24  ;;  %v2725_v21 = vrot.slane %v2622_v50, %v9267_v10  ;;  %v2901_v39 = vcombine.high %v2593_v0, %v8301_v24  ;;  %v9302_v16 = vrot.slane %v2593_v0, %v9267_v10  ;;  %5250 = vmatprep.subr.bf16.mxu1 %v7538_v22 }
 0x648   : > { %v2691_v2 = vrot.slane %v2683_v36, %v9274_v54  ;;  %v2698_v29 = vrot.slane %v2684_v49, %v9274_v54  ;;  %v3693_v55 = vcombine.low %v2675_v5, %v2682_v27  ;;  %v6768_v53 = vcombine.high %v2675_v5, %v2682_v27 }
 0x649   : > { %v2732_v60 = vrot.slane %v2718_v26, %v9267_v10  ;;  %v2733_v25 = vcombine.low %v2710_v17, %v2725_v21  ;;  %v2734_v35 = vcombine.high %v2710_v17, %v2725_v21  ;;  %v2623_v33 = vpop.trf.xlu1  ;;  %v9305_v11 = vrot.slane %v2901_v39, %v9267_v10  ;;  %v7536_v26 = vld [vmem:[#allocation13 + $0x60] ss:$16 sps:$4 sm:$0xff]  }
 0x64a   : > { %v3709_v41 = vcombine.low %v2691_v2, %v2698_v29  ;;  %v6769_v52 = vcombine.high %v2691_v2, %v2698_v29  ;;  %v9310_v15 = vrot.slane %v3693_v55, %v9267_v10  ;;  %v9313_v61 = vrot.slane %v6768_v53, %v9267_v10  ;;  %v2594_v29 = vpop.trf.xlu0  ;;  %v7544_v55 = vld [vmem:[#allocation13 + $0x44] ss:$16 sps:$4 sm:$0xff]   ;;  %5251 = vmatpush1.bf16.msra.mxu1 %v7536_v26 }
 0x64b   : > { %v2741_v1 = vrot.slane %v2733_v25, %v9274_v54  ;;  %v2748_v46 = vrot.slane %v2734_v35, %v9274_v54  ;;  %v2749_v18 = vcombine.low %v2717_v62, %v2732_v60  ;;  %v2750_v37 = vcombine.high %v2717_v62, %v2732_v60  ;;  %5252 = vmatprep.subr.bf16.mxu1 %v7544_v55 }
 0x64c   : > { %v2784_v40 = vcombine.high %v2623_v33, %v8301_v24  ;;  %v2791_v8 = vrot.slane %v2623_v33, %v9267_v10  ;;  %v9322_v4 = vrot.slane %v3709_v41, %v9267_v10  ;;  %v9325_v14 = vrot.slane %v6769_v52, %v9267_v10 }
 0x64d   : > { %v2757_v28 = vrot.slane %v2749_v18, %v9274_v54  ;;  %v2764_v19 = vrot.slane %v2750_v37, %v9274_v54  ;;  %v3743_v23 = vcombine.low %v2741_v1, %v2748_v46  ;;  %v6770_v56 = vcombine.high %v2741_v1, %v2748_v46  ;;  %v2624_v51 = vpop.trf.xlu1  ;;  %v7542_v18 = vld [vmem:[#allocation13 + $0x40] ss:$16 sps:$4 sm:$0xff]  }
 0x64e   : > { %v2798_v34 = vrot.slane %v2784_v40, %v9267_v10  ;;  %v2799_v44 = vcombine.low %v2776_v20, %v2791_v8  ;;  %v2800_v6 = vcombine.high %v2776_v20, %v2791_v8  ;;  %v2850_v63 = vcombine.high %v2624_v51, %v8301_v24  ;;  %5253 = vmatpush1.bf16.msra.mxu1 %v7542_v18 }
 0x64f   : > { %v3759_v3 = vcombine.low %v2757_v28, %v2764_v19  ;;  %v6771_v38 = vcombine.high %v2757_v28, %v2764_v19  ;;  %v9332_v17 = vrot.slane %v3743_v23, %v9267_v10  ;;  %v9335_v30 = vrot.slane %v6770_v56, %v9267_v10  ;;  %v7550_v28 = vld [vmem:[#allocation13 + $0x24] ss:$16 sps:$4 sm:$0xff]  }
 0x650   : > { %v2807_v31 = vrot.slane %v2799_v44, %v9274_v54  ;;  %v2814_v45 = vrot.slane %v2800_v6, %v9274_v54  ;;  %v2815_v13 = vcombine.low %v9284_v7, %v2798_v34  ;;  %v2816_v57 = vcombine.high %v9284_v7, %v2798_v34  ;;  %5254 = vmatprep.subr.bf16.mxu1 %v7550_v28 }
 0x651   : > { %v2857_v9 = vrot.slane %v2624_v51, %v9267_v10  ;;  %v2864_v62 = vrot.slane %v2850_v63, %v9267_v10  ;;  %v2625_v5 = vpop.trf.xlu1  ;;  %v9346_v21 = vrot.slane %v3759_v3, %v9267_v10  ;;  %v9349_v39 = vrot.slane %v6771_v38, %v9267_v10  ;;  %v2595_v63 = vpop.trf.xlu0 }
 0x652   : > { %v2823_v50 = vrot.slane %v2815_v13, %v9274_v54  ;;  %v2830_v20 = vrot.slane %v2816_v57, %v9274_v54  ;;  %v3793_v12 = vcombine.low %v2807_v31, %v2814_v45  ;;  %v6772_v0 = vcombine.high %v2807_v31, %v2814_v45  ;;  %v7548_v45 = vld [vmem:[#allocation13 + $0x20] ss:$16 sps:$4 sm:$0xff]  }
 0x653   : > { %v2865_v7 = vcombine.low %v9292_v48, %v2857_v9  ;;  %v2866_v27 = vcombine.high %v9292_v48, %v2857_v9  ;;  %v2881_v36 = vcombine.low %v9299_v32, %v2864_v62  ;;  %v2882_v49 = vcombine.high %v9299_v32, %v2864_v62  ;;  %v7556_v62 = vld [vmem:[#allocation13 + $0x4] ss:$16 sps:$4 sm:$0xff]   ;;  %5255 = vmatpush1.bf16.msra.mxu1 %v7548_v45 }
 0x654   : > { %v3809_v47 = vcombine.low %v2823_v50, %v2830_v20  ;;  %v6773_v2 = vcombine.high %v2823_v50, %v2830_v20  ;;  %v9356_v25 = vrot.slane %v3793_v12, %v9267_v10  ;;  %v9359_v35 = vrot.slane %v6772_v0, %v9267_v10  ;;  %5256 = vmatprep.subr.bf16.mxu1 %v7556_v62 }
 0x655   : > { %v2873_v53 = vrot.slane %v2865_v7, %v9274_v54  ;;  %v2880_v48 = vrot.slane %v2866_v27, %v9274_v54  ;;  %v2889_v42 = vrot.slane %v2881_v36, %v9274_v54  ;;  %v2896_v60 = vrot.slane %v2882_v49, %v9274_v54  ;;  %v2626_v43 = vpop.trf.xlu1 }
 0x656   : > { %v2916_v33 = vcombine.high %v2625_v5, %v8301_v24  ;;  %v2923_v32 = vrot.slane %v2625_v5, %v9267_v10  ;;  %v9364_v41 = vrot.slane %v3809_v47, %v9267_v10  ;;  %v9367_v52 = vrot.slane %v6773_v2, %v9267_v10 }
 0x657   : > { %v3843_v1 = vcombine.low %v2873_v53, %v2880_v48  ;;  %v6774_v46 = vcombine.high %v2873_v53, %v2880_v48  ;;  %v2967_v8 = vcombine.high %v2594_v29, %v8301_v24  ;;  %v3859_v56 = vcombine.low %v2889_v42, %v2896_v60 }
 0x658   : > { %v2930_v37 = vrot.slane %v2916_v33, %v9267_v10  ;;  %v2931_v59 = vcombine.low %v9302_v16, %v2923_v32  ;;  %v2932_v40 = vcombine.high %v9302_v16, %v2923_v32  ;;  %v6775_v51 = vcombine.high %v2889_v42, %v2896_v60 }
 0x659   : > { %v9374_v19 = vrot.slane %v3843_v1, %v9267_v10  ;;  %v9377_v23 = vrot.slane %v6774_v46, %v9267_v10  ;;  %v2974_v3 = vrot.slane %v2594_v29, %v9267_v10  ;;  %v2981_v38 = vrot.slane %v2967_v8, %v9267_v10  ;;  %v2627_v2 = vpop.trf.xlu1  ;;  %v7554_v29 = vld [vmem:[#allocation13] ss:$16 sps:$4 sm:$0xff]  }
 0x65a   : > { %v2939_v34 = vrot.slane %v2931_v59, %v9274_v54  ;;  %v2946_v44 = vrot.slane %v2932_v40, %v9274_v54  ;;  %v2947_v6 = vcombine.low %v9305_v11, %v2930_v37  ;;  %v2948_v16 = vcombine.high %v9305_v11, %v2930_v37  ;;  %5257 = vmatpush1.bf16.msra.mxu1 %v7554_v29 }
 0x65b   : > { %v2982_v58 = vcombine.high %v2626_v43, %v8301_v24  ;;  %v2989_v31 = vrot.slane %v2626_v43, %v9267_v10  ;;  %v3033_v12 = vcombine.high %v2595_v63, %v8301_v24  ;;  %v9392_v0 = vrot.slane %v3859_v56, %v9267_v10  ;;  %v2596_v56 = vpop.trf.xlu0 }
 0x65c   : > { %v2955_v13 = vrot.slane %v2947_v6, %v9274_v54  ;;  %v2962_v57 = vrot.slane %v2948_v16, %v9274_v54  ;;  %v3893_v22 = vcombine.low %v2939_v34, %v2946_v44  ;;  %v6776_v9 = vcombine.high %v2939_v34, %v2946_v44 }
 0x65d   : > { %v2996_v11 = vrot.slane %v2982_v58, %v9267_v10  ;;  %v2997_v50 = vcombine.low %v2974_v3, %v2989_v31  ;;  %v2998_v20 = vcombine.high %v2974_v3, %v2989_v31  ;;  %v9395_v5 = vrot.slane %v6775_v51, %v9267_v10  ;;  %v2628_v58 = vpop.trf.xlu1 }
 0x65e   : > { %v3909_v7 = vcombine.low %v2955_v13, %v2962_v57  ;;  %v6777_v27 = vcombine.high %v2955_v13, %v2962_v57  ;;  %v9400_v55 = vrot.slane %v3893_v22, %v9267_v10  ;;  %v9403_v53 = vrot.slane %v6776_v9, %v9267_v10 }
 0x65f   : > { %v3005_v36 = vrot.slane %v2997_v50, %v9274_v54  ;;  %v3012_v49 = vrot.slane %v2998_v20, %v9274_v54  ;;  %v3013_v26 = vcombine.low %v2981_v38, %v2996_v11  ;;  %v3014_v47 = vcombine.high %v2981_v38, %v2996_v11 }
 0x660   : > { %v3040_v48 = vrot.slane %v2595_v63, %v9267_v10  ;;  %v3047_v42 = vrot.slane %v3033_v12, %v9267_v10  ;;  %v3048_v46 = vcombine.high %v2627_v2, %v8301_v24  ;;  %v3055_v18 = vrot.slane %v2627_v2, %v9267_v10  ;;  %v2597_v12 = vpop.trf.xlu0 }
 0x661   : > { %v3021_v60 = vrot.slane %v3013_v26, %v9274_v54  ;;  %v3028_v33 = vrot.slane %v3014_v47, %v9274_v54  ;;  %v3943_v32 = vcombine.low %v3005_v36, %v3012_v49  ;;  %v6778_v1 = vcombine.high %v3005_v36, %v3012_v49 }
 0x662   : > { %v3725_v37 = vcombine.low %v9310_v15, %v9313_v61  ;;  %v3733_v59 = vcombine.low %v9322_v4, %v9325_v14  ;;  %v9416_v40 = vrot.slane %v3909_v7, %v9267_v10  ;;  %v9419_v8 = vrot.slane %v6777_v27, %v9267_v10 }
 0x663   : > { %v3959_v43 = vcombine.low %v3021_v60, %v3028_v33  ;;  %v6779_v28 = vcombine.high %v3021_v60, %v3028_v33  ;;  %v9422_v51 = vrot.slane %v3943_v32, %v9267_v10  ;;  %v3062_v34 = vrot.slane %v3048_v46, %v9267_v10  ;;  %v2629_v60 = vpop.trf.xlu1 }
 0x664   : > { %v3063_v44 = vcombine.low %v3040_v48, %v3055_v18  ;;  %v3064_v15 = vcombine.high %v3040_v48, %v3055_v18  ;;  %v9426_v61 = vrot.slane %v6778_v1, %v9267_v10  ;;  %v3732_v4 = vrot.slane %v3725_v37, %v9274_v54  ;;  %v7515_v18 = vld [vmem:[#allocation13 + $0xe8] ss:$16 sps:$4 sm:$0xff]  }
 0x665   : > { %v3740_v14 = vrot.slane %v3733_v59, %v9274_v54  ;;  %v3775_v6 = vcombine.low %v9332_v17, %v9335_v30  ;;  %v3079_v3 = vcombine.low %v3047_v42, %v3062_v34  ;;  %v3080_v38 = vcombine.high %v3047_v42, %v3062_v34 }
 0x666   : > { %v3071_v16 = vrot.slane %v3063_v44, %v9274_v54  ;;  %v3078_v63 = vrot.slane %v3064_v15, %v9274_v54  ;;  %v9435_v31 = vrot.slane %v3959_v43, %v9267_v10  ;;  %v9438_v45 = vrot.slane %v6779_v28, %v9267_v10 }
 0x667   : > { %v3782_v13 = vrot.slane %v3775_v6, %v9274_v54  ;;  %v3783_v57 = vcombine.low %v9346_v21, %v9349_v39  ;;  %v3087_v17 = vrot.slane %v3079_v3, %v9274_v54  ;;  %v3094_v30 = vrot.slane %v3080_v38, %v9274_v54 }
 0x668   : > { %v3993_v22 = vcombine.low %v3071_v16, %v3078_v63  ;;  %v6780_v9 = vcombine.high %v3071_v16, %v3078_v63  ;;  %v3099_v11 = vcombine.high %v2596_v56, %v8301_v24  ;;  %v3106_v50 = vrot.slane %v2596_v56, %v9267_v10  ;;  %v7523_v56 = vld [vmem:[#allocation13 + $0xcc] ss:$16 sps:$4 sm:$0xff]  }
 0x669   : > { %v3790_v62 = vrot.slane %v3783_v57, %v9274_v54  ;;  %v3114_v20 = vcombine.high %v2628_v58, %v8301_v24  ;;  %v3741_v39 = vcombine.low %v3732_v4, %v3740_v14  ;;  %v3742_v27 = vcombine.high %v3732_v4, %v3740_v14  ;;  %v7521_v57 = vld [vmem:[#allocation13 + $0xc8] ss:$16 sps:$4 sm:$0xff]  }
 0x66a   : > { %v9450_v7 = vrot.slane %v3993_v22, %v9267_v10  ;;  %v9453_v21 = vrot.slane %v6780_v9, %v9267_v10  ;;  %v3113_v26 = vrot.slane %v3099_v11, %v9267_v10  ;;  %v3121_v47 = vrot.slane %v2628_v58, %v9267_v10 }
 0x66b   : > { %v3791_v36 = vcombine.low %v3782_v13, %v3790_v62  ;;  %v3792_v49 = vcombine.high %v3782_v13, %v3790_v62  ;;  %v4009_v2 = vcombine.low %v3087_v17, %v3094_v30  ;;  %v6781_v29 = vcombine.high %v3087_v17, %v3094_v30  ;;  %v2598_v62 = vpop.trf.xlu0 }
 0x66c   : > { %v3128_v48 = vrot.slane %v3114_v20, %v9267_v10  ;;  %v3165_v42 = vcombine.high %v2597_v12, %v8301_v24  ;;  %v3129_v1 = vcombine.low %v3106_v50, %v3121_v47  ;;  %v3130_v46 = vcombine.high %v3106_v50, %v3121_v47  ;;  %v2630_v50 = vpop.trf.xlu1 }
 0x66d   : > { %v4494_v33 = vpack.c.bf16 %v3792_v49, %v3742_v27  ;;  %v4493_v32 = vpack.c.bf16 %v3791_v36, %v3741_v39  ;;  %v3172_v43 = vrot.slane %v2597_v12, %v9267_v10  ;;  %v3180_v15 = vcombine.high %v2629_v60, %v8301_v24 }
 0x66e   : > { %v3145_v37 = vcombine.low %v3113_v26, %v3128_v48  ;;  %v3146_v59 = vcombine.high %v3113_v26, %v3128_v48  ;;  %v3179_v28 = vrot.slane %v3165_v42, %v9267_v10  ;;  %v3137_v34 = vrot.slane %v3129_v1, %v9274_v54 }
 0x66f   : > { %4745 = vmatprep.mubr.bf16.mxu0 %v4494_v33  ;;  %v3144_v44 = vrot.slane %v3130_v46, %v9274_v54  ;;  %v3187_v4 = vrot.slane %v2629_v60, %v9267_v10  ;;  %v3825_v16 = vcombine.low %v9356_v25, %v9359_v35  ;;  %v3833_v63 = vcombine.low %v9364_v41, %v9367_v52  ;;  %v7529_v25 = vld [vmem:[#allocation13 + $0xac] ss:$16 sps:$4 sm:$0xff]  }
 0x670   : > { %4746 = vmatmul.mubr.bf16.vlgmr.msra.gmra.mxu0 %v4493_v32  ;;  %v3153_v14 = vrot.slane %v3145_v37, %v9274_v54  ;;  %v3160_v6 = vrot.slane %v3146_v59, %v9274_v54  ;;  %v3194_v58 = vrot.slane %v3180_v15, %v9267_v10  ;;  %v9473_v17 = vrot.slane %v4009_v2, %v9267_v10  ;;  %v7527_v2 = vld [vmem:[#allocation13 + $0xa8] ss:$16 sps:$4 sm:$0xff]   ;;  %v7535_v33 = vld [vmem:[#allocation13 + $0x8c] ss:$16 sps:$4 sm:$0xff]   ;;  %v2599_v37 = vpop.trf.xlu0 }
 0x671   : > { %v4043_v3 = vcombine.low %v3137_v34, %v3144_v44  ;;  %v6782_v38 = vcombine.high %v3137_v34, %v3144_v44  ;;  %v3195_v13 = vcombine.low %v3172_v43, %v3187_v4  ;;  %5645 = vmatpush1.bf16.msra.mxu0 %v7515_v18  ;;  %v9476_v30 = vrot.slane %v6781_v29, %v9267_v10  ;;  %v2631_v34 = vpop.trf.xlu1 }
 0x672   : > { %v4059_v22 = vcombine.low %v3153_v14, %v3160_v6  ;;  %v3196_v9 = vcombine.high %v3172_v43, %v3187_v4  ;;  %5646 = vmatprep.subr.bf16.mxu0 %v7523_v56  ;;  %v6783_v35 = vcombine.high %v3153_v14, %v3160_v6  ;;  %v3211_v52 = vcombine.low %v3179_v28, %v3194_v58 }
 0x673   : > { %v3203_v41 = vrot.slane %v3195_v13, %v9274_v54  ;;  %v3832_v11 = vrot.slane %v3825_v16, %v9274_v54  ;;  %v9481_v20 = vrot.slane %v4043_v3, %v9267_v10  ;;  %v9484_v12 = vrot.slane %v6782_v38, %v9267_v10  ;;  %v7533_v38 = vld [vmem:[#allocation13 + $0x88] ss:$16 sps:$4 sm:$0xff]  }
 0x674   : > { %v3210_v39 = vrot.slane %v3196_v9, %v9274_v54  ;;  %v3212_v27 = vcombine.high %v3179_v28, %v3194_v58  ;;  %v9488_v36 = vrot.slane %v3211_v52, %v9274_v54  ;;  %v3840_v49 = vrot.slane %v3833_v63, %v9274_v54  ;;  %v7541_v9 = vld [vmem:[#allocation13 + $0x6c] ss:$16 sps:$4 sm:$0xff]  }
 0x675   : > { %v3875_v26 = vcombine.low %v9374_v19, %v9377_v23  ;;  %v3883_v47 = vcombine.low %v9392_v0, %v9395_v5  ;;  %5647 = vmatpush1.bf16.msra.mxu0 %v7521_v57  ;;  %v3231_v60 = vcombine.high %v2598_v62, %v8301_v24  ;;  %v9500_v32 = vrot.slane %v4059_v22, %v9267_v10 }
 0x676   : > { %v9496_v29 = vrot.slane %v3212_v27, %v9274_v54  ;;  %v4093_v48 = vcombine.low %v3203_v41, %v3210_v39  ;;  %v6784_v42 = vcombine.high %v3203_v41, %v3210_v39  ;;  %5648 = vmatprep.subr.bf16.mxu0 %v7529_v25  ;;  %v9503_v1 = vrot.slane %v6783_v35, %v9267_v10 }
 0x677   : > { %v3882_v19 = vrot.slane %v3875_v26, %v9274_v54  ;;  %v3890_v23 = vrot.slane %v3883_v47, %v9274_v54  ;;  %v3842_v46 = vcombine.high %v3832_v11, %v3840_v49  ;;  %v3841_v18 = vcombine.low %v3832_v11, %v3840_v49  ;;  %v2600_v47 = vpop.trf.xlu0 }
 0x678   : > { %v9508_v0 = vrot.slane %v4093_v48, %v9267_v10  ;;  %v9511_v5 = vrot.slane %v6784_v42, %v9267_v10  ;;  %v4109_v59 = vcombine.low %v9488_v36, %v9496_v29  ;;  %v3238_v56 = vrot.slane %v2598_v62, %v9267_v10  ;;  %v2632_v42 = vpop.trf.xlu1 }
 0x679   : > { %v3892_v43 = vcombine.high %v3882_v19, %v3890_v23  ;;  %v3891_v28 = vcombine.low %v3882_v19, %v3890_v23  ;;  %5649 = vmatpush1.bf16.msra.mxu0 %v7527_v2  ;;  %v6785_v44 = vcombine.high %v9488_v36, %v9496_v29  ;;  %v3245_v15 = vrot.slane %v3231_v60, %v9267_v10  ;;  %v7539_v2 = vld [vmem:[#allocation13 + $0x68] ss:$16 sps:$4 sm:$0xff]   ;;  %v7547_v60 = vld [vmem:[#allocation13 + $0x4c] ss:$16 sps:$4 sm:$0xff]  }
 0x67a   : > { %v3246_v4 = vcombine.high %v2630_v50, %v8301_v24  ;;  %v3253_v14 = vrot.slane %v2630_v50, %v9267_v10  ;;  %5650 = vmatprep.subr.bf16.mxu0 %v7535_v33  ;;  %v3297_v63 = vcombine.high %v2599_v37, %v8301_v24  ;;  %v3304_v3 = vrot.slane %v2599_v37, %v9267_v10 }
 0x67b   : > { %v4496_v6 = vpack.c.bf16 %v3892_v43, %v3842_v46  ;;  %v4495_v16 = vpack.c.bf16 %v3891_v28, %v3841_v18  ;;  %v3312_v22 = vcombine.high %v2631_v34, %v8301_v24  ;;  %v9526_v62 = vrot.slane %v4109_v59, %v9267_v10 }
 0x67c   : > { %v3260_v58 = vrot.slane %v3246_v4, %v9267_v10  ;;  %v3261_v13 = vcombine.low %v3238_v56, %v3253_v14  ;;  %v3262_v57 = vcombine.high %v3238_v56, %v3253_v14  ;;  %v3311_v25 = vrot.slane %v3297_v63, %v9267_v10 }
 0x67d   : > { %4755 = vmatprep.mubr.bf16.mxu0 %v4496_v6  ;;  %v3319_v35 = vrot.slane %v2631_v34, %v9267_v10  ;;  %v3925_v41 = vcombine.low %v9400_v55, %v9403_v53  ;;  %v3326_v27 = vrot.slane %v3312_v22, %v9267_v10  ;;  %v3933_v26 = vcombine.low %v9416_v40, %v9419_v8  ;;  %v7545_v34 = vld [vmem:[#allocation13 + $0x48] ss:$16 sps:$4 sm:$0xff]   ;;  %v7553_v6 = vld [vmem:[#allocation13 + $0x2c] ss:$16 sps:$4 sm:$0xff]   ;;  %v2633_v22 = vpop.trf.xlu1 }
 0x67e   : > { %4756 = vmatmul.mubr.bf16.gmra.mxu0 %v4495_v16  ;;  %v3269_v52 = vrot.slane %v3261_v13, %v9274_v54  ;;  %v3276_v11 = vrot.slane %v3262_v57, %v9274_v54  ;;  %v3277_v50 = vcombine.low %v3245_v15, %v3260_v58  ;;  %v3278_v39 = vcombine.high %v3245_v15, %v3260_v58  ;;  %v2601_v58 = vpop.trf.xlu0 }
 0x67f   : > { %v3327_v36 = vcombine.low %v3304_v3, %v3319_v35  ;;  %v3328_v49 = vcombine.high %v3304_v3, %v3319_v35  ;;  %5651 = vmatpush1.bf16.msra.mxu0 %v7533_v38  ;;  %v3343_v23 = vcombine.low %v3311_v25, %v3326_v27  ;;  %v3344_v46 = vcombine.high %v3311_v25, %v3326_v27 }
 0x680   : > { %v3285_v29 = vrot.slane %v3277_v50, %v9274_v54  ;;  %v3292_v55 = vrot.slane %v3278_v39, %v9274_v54  ;;  %v4143_v53 = vcombine.low %v3269_v52, %v3276_v11  ;;  %v6786_v48 = vcombine.high %v3269_v52, %v3276_v11  ;;  %5652 = vmatprep.subr.bf16.mxu0 %v7541_v9  ;;  %v7551_v52 = vld [vmem:[#allocation13 + $0x28] ss:$16 sps:$4 sm:$0xff]  }
 0x681   : > { %v3335_v33 = vrot.slane %v3327_v36, %v9274_v54  ;;  %v3342_v19 = vrot.slane %v3328_v49, %v9274_v54  ;;  %v9542_v40 = vrot.slane %v6785_v44, %v9267_v10  ;;  %v3932_v37 = vrot.slane %v3925_v41, %v9274_v54 }
 0x682   : > { %v4159_v8 = vcombine.low %v3285_v29, %v3292_v55  ;;  %v6787_v18 = vcombine.high %v3285_v29, %v3292_v55  ;;  %v9546_v59 = vrot.slane %v3343_v23, %v9274_v54  ;;  %v9549_v43 = vrot.slane %v3344_v46, %v9274_v54 }
 0x683   : > { %v4193_v28 = vcombine.low %v3335_v33, %v3342_v19  ;;  %v6788_v56 = vcombine.high %v3335_v33, %v3342_v19  ;;  %5653 = vmatpush1.bf16.msra.mxu0 %v7539_v2  ;;  %v9552_v15 = vrot.slane %v4143_v53, %v9267_v10  ;;  %v9555_v44 = vrot.slane %v6786_v48, %v9267_v10 }
 0x684   : > { %v3940_v4 = vrot.slane %v3933_v26, %v9274_v54  ;;  %v3975_v14 = vcombine.low %v9422_v51, %v9426_v61  ;;  %5654 = vmatprep.subr.bf16.mxu0 %v7547_v60  ;;  %v9561_v16 = vrot.slane %v4159_v8, %v9267_v10  ;;  %v9564_v63 = vrot.slane %v6787_v18, %v9267_v10  ;;  %v7557_v8 = vld [vmem:[#allocation13 + $0x8] ss:$16 sps:$4 sm:$0xff]  }
 0x685   : > { %v9567_v3 = vrot.slane %v4193_v28, %v9267_v10  ;;  %v9570_v38 = vrot.slane %v6788_v56, %v9267_v10  ;;  %v4209_v13 = vcombine.low %v9546_v59, %v9549_v43  ;;  %v6789_v51 = vcombine.high %v9546_v59, %v9549_v43 }
 0x686   : > { %v3942_v61 = vcombine.high %v3932_v37, %v3940_v4  ;;  %v3983_v57 = vcombine.low %v9435_v31, %v9438_v45  ;;  %v3982_v9 = vrot.slane %v3975_v14, %v9274_v54  ;;  %v3941_v25 = vcombine.low %v3932_v37, %v3940_v4  ;;  %v7559_v31 = vld [vmem:[#allocation13 + $0xc] ss:$16 sps:$4 sm:$0xff]   ;;  %v2602_v14 = vpop.trf.xlu0 }
 0x687   : > { %v3363_v35 = vcombine.high %v2600_v47, %v8301_v24  ;;  %v3370_v41 = vrot.slane %v2600_v47, %v9267_v10  ;;  %5655 = vmatpush1.bf16.msra.mxu0 %v7545_v34  ;;  %v3378_v50 = vcombine.high %v2632_v42, %v8301_v24  ;;  %v3385_v39 = vrot.slane %v2632_v42, %v9267_v10 }
 0x688   : > { %v3990_v11 = vrot.slane %v3983_v57, %v9274_v54  ;;  %v3429_v27 = vcombine.high %v2601_v58, %v8301_v24  ;;  %5656 = vmatprep.subr.bf16.mxu0 %v7553_v6  ;;  %v3436_v36 = vrot.slane %v2601_v58, %v9267_v10  ;;  %v3444_v49 = vcombine.high %v2633_v22, %v8301_v24  ;;  %v2634_v6 = vpop.trf.xlu1 }
 0x689   : > { %v3377_v45 = vrot.slane %v3363_v35, %v9267_v10  ;;  %v3451_v26 = vrot.slane %v2633_v22, %v9267_v10  ;;  %v3392_v29 = vrot.slane %v3378_v50, %v9267_v10  ;;  %v3393_v55 = vcombine.low %v3370_v41, %v3385_v39 }
 0x68a   : > { %v3992_v47 = vcombine.high %v3982_v9, %v3990_v11  ;;  %v3991_v2 = vcombine.low %v3982_v9, %v3990_v11  ;;  %v3394_v53 = vcombine.high %v3370_v41, %v3385_v39  ;;  %v3443_v48 = vrot.slane %v3429_v27, %v9267_v10 }
 0x68b   : > { %v3458_v42 = vrot.slane %v3444_v49, %v9267_v10  ;;  %v3459_v60 = vcombine.low %v3436_v36, %v3451_v26  ;;  %5657 = vmatpush1.bf16.msra.mxu0 %v7551_v52  ;;  %v3401_v23 = vrot.slane %v3393_v55, %v9274_v54  ;;  %v3409_v46 = vcombine.low %v3377_v45, %v3392_v29 }
 0x68c   : > { %v4498_v33 = vpack.c.bf16 %v3992_v47, %v3942_v61  ;;  %v4497_v19 = vpack.c.bf16 %v3991_v2, %v3941_v25  ;;  %5658 = vmatprep.subr.bf16.mxu0 %v7559_v31  ;;  %v3408_v18 = vrot.slane %v3394_v53, %v9274_v54  ;;  %v3410_v37 = vcombine.high %v3377_v45, %v3392_v29  ;;  %v2603_v47 = vpop.trf.xlu0  ;;  %v2635_v2 = vpop.trf.xlu1 }
 0x68d   : > { %v3460_v59 = vcombine.high %v3436_v36, %v3451_v26  ;;  %v3467_v43 = vrot.slane %v3459_v60, %v9274_v54  ;;  %v3417_v28 = vrot.slane %v3409_v46, %v9274_v54  ;;  %v3475_v56 = vcombine.low %v3443_v48, %v3458_v42 }
 0x68e   : > { %4765 = vmatprep.mubr.bf16.mxu0 %v4498_v33  ;;  %v3476_v34 = vcombine.high %v3443_v48, %v3458_v42  ;;  %v4025_v4 = vcombine.low %v9450_v7, %v9453_v21  ;;  %v3424_v58 = vrot.slane %v3410_v37, %v9274_v54  ;;  %v4243_v61 = vcombine.low %v3401_v23, %v3408_v18 }
 0x68f   : > { %4766 = vmatmul.mubr.bf16.gmra.mxu0 %v4497_v19  ;;  %v6790_v57 = vcombine.high %v3401_v23, %v3408_v18  ;;  %v3474_v22 = vrot.slane %v3460_v59, %v9274_v54  ;;  %v9601_v9 = vrot.slane %v4209_v13, %v9267_v10  ;;  %v3483_v25 = vrot.slane %v3475_v56, %v9274_v54 }
 0x690   : > { %v3490_v35 = vrot.slane %v3476_v34, %v9274_v54  ;;  %v4033_v41 = vcombine.low %v9473_v17, %v9476_v30  ;;  %5659 = vmatpush1.bf16.msra.mxu0 %v7557_v8  ;;  %v9608_v7 = vrot.slane %v6789_v51, %v9267_v10  ;;  %v4259_v21 = vcombine.low %v3417_v28, %v3424_v58 }
 0x691   : > { %v6791_v52 = vcombine.high %v3417_v28, %v3424_v58  ;;  %v4032_v11 = vrot.slane %v4025_v4, %v9274_v54  ;;  %v9612_v50 = vrot.slane %v4243_v61, %v9267_v10  ;;  %v9615_v13 = vrot.slane %v6790_v57, %v9267_v10 }
 0x692   : > { %v4293_v39 = vcombine.low %v3467_v43, %v3474_v22  ;;  %v6792_v27 = vcombine.high %v3467_v43, %v3474_v22  ;;  %v4309_v31 = vcombine.low %v3483_v25, %v3490_v35  ;;  %v6793_v45 = vcombine.high %v3483_v25, %v3490_v35 }
 0x693   : > { %v4040_v17 = vrot.slane %v4033_v41, %v9274_v54  ;;  %v4075_v30 = vcombine.low %v9481_v20, %v9484_v12  ;;  %v9621_v51 = vrot.slane %v4259_v21, %v9267_v10  ;;  %v9624_v36 = vrot.slane %v6791_v52, %v9267_v10 }
 0x694   : > { %v9627_v49 = vrot.slane %v4293_v39, %v9267_v10  ;;  %v9630_v26 = vrot.slane %v6792_v27, %v9267_v10  ;;  %v4083_v20 = vcombine.low %v9500_v32, %v9503_v1  ;;  %v3495_v53 = vcombine.high %v2602_v14, %v8301_v24 }
 0x695   : > { %v4042_v29 = vcombine.high %v4032_v11, %v4040_v17  ;;  %v4082_v55 = vrot.slane %v4075_v30, %v9274_v54  ;;  %v4041_v12 = vcombine.low %v4032_v11, %v4040_v17  ;;  %v3502_v48 = vrot.slane %v2602_v14, %v9267_v10 }
 0x696   : > { %v3510_v42 = vcombine.high %v2634_v6, %v8301_v24  ;;  %v3517_v60 = vrot.slane %v2634_v6, %v9267_v10  ;;  %v4090_v33 = vrot.slane %v4083_v20, %v9274_v54  ;;  %v3561_v19 = vcombine.high %v2603_v47, %v8301_v24 }
 0x697   : > { %v3568_v23 = vrot.slane %v2603_v47, %v9267_v10  ;;  %v3576_v46 = vcombine.high %v2635_v2, %v8301_v24  ;;  %v3509_v8 = vrot.slane %v3495_v53, %v9267_v10  ;;  %v3583_v28 = vrot.slane %v2635_v2, %v9267_v10 }
 0x698   : > { %v3524_v32 = vrot.slane %v3510_v42, %v9267_v10  ;;  %v3525_v1 = vcombine.low %v3502_v48, %v3517_v60  ;;  %v3526_v18 = vcombine.high %v3502_v48, %v3517_v60  ;;  %v4092_v37 = vcombine.high %v4082_v55, %v4090_v33 }
 0x699   : > { %v4091_v59 = vcombine.low %v4082_v55, %v4090_v33  ;;  %v3575_v43 = vrot.slane %v3561_v19, %v9267_v10  ;;  %v3590_v61 = vrot.slane %v3576_v46, %v9267_v10  ;;  %v3591_v57 = vcombine.low %v3568_v23, %v3583_v28 }
 0x69a   : > { %v3533_v56 = vrot.slane %v3525_v1, %v9274_v54  ;;  %v3540_v34 = vrot.slane %v3526_v18, %v9274_v54  ;;  %v3541_v4 = vcombine.low %v3509_v8, %v3524_v32  ;;  %v3542_v14 = vcombine.high %v3509_v8, %v3524_v32 }
 0x69b   : > { %v4500_v6 = vpack.c.bf16 %v4092_v37, %v4042_v29  ;;  %v4499_v58 = vpack.c.bf16 %v4091_v59, %v4041_v12  ;;  %v3592_v21 = vcombine.high %v3568_v23, %v3583_v28  ;;  %v3599_v52 = vrot.slane %v3591_v57, %v9274_v54 }
 0x69c   : > { %v3549_v22 = vrot.slane %v3541_v4, %v9274_v54  ;;  %v3556_v25 = vrot.slane %v3542_v14, %v9274_v54  ;;  %v4343_v35 = vcombine.low %v3533_v56, %v3540_v34  ;;  %v6794_v41 = vcombine.high %v3533_v56, %v3540_v34 }
 0x69d   : > { %4775 = vmatprep.mubr.bf16.mxu0 %v4500_v6  ;;  %v3607_v11 = vcombine.low %v3575_v43, %v3590_v61  ;;  %v3608_v39 = vcombine.high %v3575_v43, %v3590_v61  ;;  %v9654_v27 = vrot.slane %v4309_v31, %v9267_v10  ;;  %v9657_v17 = vrot.slane %v6793_v45, %v9267_v10 }
 0x69e   : > { %4776 = vmatmul.mubr.bf16.gmra.mxu0 %v4499_v58  ;;  %v4359_v30 = vcombine.low %v3549_v22, %v3556_v25  ;;  %v6795_v47 = vcombine.high %v3549_v22, %v3556_v25  ;;  %v3606_v2 = vrot.slane %v3592_v21, %v9274_v54  ;;  %v4125_v20 = vcombine.low %v9508_v0, %v9511_v5  ;;  %v2604_v5 = vpop.trf.xlu0 }
 0x69f   : > { %v3615_v29 = vrot.slane %v3607_v11, %v9274_v54  ;;  %v3622_v55 = vrot.slane %v3608_v39, %v9274_v54  ;;  %v9665_v12 = vrot.slane %v4343_v35, %v9267_v10  ;;  %v9668_v31 = vrot.slane %v6794_v41, %v9267_v10 }
 0x6a0   : > { %v4133_v45 = vcombine.low %v9526_v62, %v9542_v40  ;;  %v4175_v53 = vcombine.low %v9552_v15, %v9555_v44  ;;  %v9675_v48 = vrot.slane %v4359_v30, %v9267_v10  ;;  %v9678_v42 = vrot.slane %v6795_v47, %v9267_v10  ;;  %v2636_v40 = vpop.trf.xlu1 }
 0x6a1   : > { %v4393_v60 = vcombine.low %v3599_v52, %v3606_v2  ;;  %v6796_v0 = vcombine.high %v3599_v52, %v3606_v2  ;;  %v4409_v33 = vcombine.low %v3615_v29, %v3622_v55  ;;  %v4132_v19 = vrot.slane %v4125_v20, %v9274_v54 }
 0x6a2   : > { %v4140_v23 = vrot.slane %v4133_v45, %v9274_v54  ;;  %v4183_v62 = vcombine.low %v9561_v16, %v9564_v63  ;;  %v6797_v46 = vcombine.high %v3615_v29, %v3622_v55  ;;  %v4182_v8 = vrot.slane %v4175_v53, %v9274_v54 }
 0x6a3   : > { %v9685_v15 = vrot.slane %v4393_v60, %v9267_v10  ;;  %v9688_v44 = vrot.slane %v6796_v0, %v9267_v10  ;;  %v3627_v37 = vcombine.high %v2604_v5, %v8301_v24  ;;  %v3634_v59 = vrot.slane %v2604_v5, %v9267_v10 }
 0x6a4   : > { %v4142_v32 = vcombine.high %v4132_v19, %v4140_v23  ;;  %v4190_v1 = vrot.slane %v4183_v62, %v9274_v54  ;;  %v4141_v18 = vcombine.low %v4132_v19, %v4140_v23  ;;  %v3642_v16 = vcombine.high %v2636_v40, %v8301_v24 }
 0x6a5   : > { %v3649_v63 = vrot.slane %v2636_v40, %v9267_v10  ;;  %v4225_v43 = vcombine.low %v9567_v3, %v9570_v38  ;;  %v3641_v34 = vrot.slane %v3627_v37, %v9267_v10  ;;  %v4233_v4 = vcombine.low %v9601_v9, %v9608_v7 }
 0x6a6   : > { %v4192_v28 = vcombine.high %v4182_v8, %v4190_v1  ;;  %v4191_v56 = vcombine.low %v4182_v8, %v4190_v1  ;;  %v4416_v14 = vrot.slane %v4409_v33, %v9267_v10  ;;  %v3656_v6 = vrot.slane %v3642_v16, %v9267_v10 }
 0x6a7   : > { %v3657_v58 = vcombine.low %v3634_v59, %v3649_v63  ;;  %v3658_v61 = vcombine.high %v3634_v59, %v3649_v63  ;;  %v4424_v24 = vrot.slane %v6797_v46, %v9267_v10  ;;  %v4275_v3 = vcombine.low %v9612_v50, %v9615_v13 }
 0x6a8   : > { %v4502_v57 = vpack.c.bf16 %v4192_v28, %v4142_v32  ;;  %v4501_v22 = vpack.c.bf16 %v4191_v56, %v4141_v18  ;;  %v3673_v35 = vcombine.low %v3641_v34, %v3656_v6  ;;  %v3674_v41 = vcombine.high %v3641_v34, %v3656_v6  ;;  %v7562_v28 = vld [vmem:[#allocation13 + $0x1e4] ss:$16 sps:$4 sm:$0xff]   ;;  %v7563_v56 = vld [vmem:[#allocation13 + $0x1e8] ss:$16 sps:$4 sm:$0xff]   ;;  %v7565_v34 = vld [vmem:[#allocation13 + $0x1ec] ss:$16 sps:$4 sm:$0xff]  }
 0x6a9   : > { %v3665_v38 = vrot.slane %v3657_v58, %v9274_v54  ;;  %v3672_v25 = vrot.slane %v3658_v61, %v9274_v54  ;;  %v4232_v9 = vrot.slane %v4225_v43, %v9274_v54  ;;  %v4240_v7 = vrot.slane %v4233_v4, %v9274_v54  ;;  %v7560_v43 = vld [vmem:[#allocation13 + $0x1e0] ss:$16 sps:$4 sm:$0xff]   ;;  %5258 = vmatprep.subr.bf16.mxu1 %v7562_v28  ;;  %v7568_v6 = vld [vmem:[#allocation13 + $0x1c4] ss:$16 sps:$4 sm:$0xff]   ;;  %v7569_v58 = vld [vmem:[#allocation13 + $0x1c8] ss:$16 sps:$4 sm:$0xff]  }
 0x6aa   : > { %4785 = vmatprep.mubr.bf16.mxu0 %v4502_v57  ;;  %v4282_v21 = vrot.slane %v4275_v3, %v9274_v54  ;;  %v4283_v52 = vcombine.low %v9621_v51, %v9624_v36  ;;  %v3681_v11 = vrot.slane %v3673_v35, %v9274_v54  ;;  %v3688_v50 = vrot.slane %v3674_v41, %v9274_v54  ;;  %v7571_v61 = vld [vmem:[#allocation13 + $0x1cc] ss:$16 sps:$4 sm:$0xff]   ;;  %v7572_v57 = vld [vmem:[#allocation13 + $0x1a0] ss:$16 sps:$4 sm:$0xff]   ;;  %v7575_v3 = vld [vmem:[#allocation13 + $0x1a8] ss:$16 sps:$4 sm:$0xff]  }
 0x6ab   : > { %4786 = vmatmul.mubr.bf16.gmra.mxu0 %v4501_v22  ;;  %v4443_v13 = vcombine.low %v3665_v38, %v3672_v25  ;;  %v6798_v39 = vcombine.high %v3665_v38, %v3672_v25  ;;  %v4325_v47 = vcombine.low %v9627_v49, %v9630_v26  ;;  %v4333_v2 = vcombine.low %v9654_v27, %v9657_v17  ;;  %v7574_v22 = vld [vmem:[#allocation13 + $0x1a4] ss:$16 sps:$4 sm:$0xff]   ;;  %v7577_v38 = vld [vmem:[#allocation13 + $0x1ac] ss:$16 sps:$4 sm:$0xff]   ;;  %v7578_v25 = vld [vmem:[#allocation13 + $0x180] ss:$16 sps:$4 sm:$0xff]  }
 0x6ac   : > { %v4290_v30 = vrot.slane %v4283_v52, %v9274_v54  ;;  %v4375_v29 = vcombine.low %v9665_v12, %v9668_v31  ;;  %v4459_v55 = vcombine.low %v3681_v11, %v3688_v50  ;;  %v6799_v20 = vcombine.high %v3681_v11, %v3688_v50  ;;  %5660 = vmatprep.subr.bf16.mxu0 %v7565_v34  ;;  %v7580_v35 = vld [vmem:[#allocation13 + $0x184] ss:$16 sps:$4 sm:$0xff]   ;;  %v7581_v41 = vld [vmem:[#allocation13 + $0x188] ss:$16 sps:$4 sm:$0xff]   ;;  %v7589_v11 = vld [vmem:[#allocation13 + $0x16c] ss:$16 sps:$4 sm:$0xff]  }
 0x6ad   : > { %v4450_v51 = vrot.slane %v4443_v13, %v9267_v10  ;;  %v4458_v36 = vrot.slane %v6798_v39, %v9267_v10  ;;  %v4242_v45 = vcombine.high %v4232_v9, %v4240_v7  ;;  %v4241_v60 = vcombine.low %v4232_v9, %v4240_v7  ;;  %5259 = vmatpush2.bf16.msra.mxu1 %v7560_v43  ;;  %v7583_v9 = vld [vmem:[#allocation13 + $0x18c] ss:$16 sps:$4 sm:$0xff]   ;;  %v7584_v7 = vld [vmem:[#allocation13 + $0x160] ss:$16 sps:$4 sm:$0xff]   ;;  %v7587_v52 = vld [vmem:[#allocation13 + $0x168] ss:$16 sps:$4 sm:$0xff]  }
 0x6ae   : > { %v4292_v53 = vcombine.high %v4282_v21, %v4290_v30  ;;  %v4291_v0 = vcombine.low %v4282_v21, %v4290_v30  ;;  %v4466_v5 = vrot.slane %v4459_v55, %v9267_v10  ;;  %v4474_v49 = vrot.slane %v6799_v20, %v9267_v10  ;;  %5661 = vmatpush2.bf16.msra.mxu0 %v7563_v56  ;;  %v7586_v21 = vld [vmem:[#allocation13 + $0x164] ss:$16 sps:$4 sm:$0xff]   ;;  %v7590_v50 = vld [vmem:[#allocation13 + $0x140] ss:$16 sps:$4 sm:$0xff]   ;;  %v7593_v39 = vld [vmem:[#allocation13 + $0x148] ss:$16 sps:$4 sm:$0xff]  }
 0x6af   : > { %v4340_v26 = vrot.slane %v4333_v2, %v9274_v54  ;;  %v4383_v27 = vcombine.low %v9675_v48, %v9678_v42  ;;  %v4332_v31 = vrot.slane %v4325_v47, %v9274_v54  ;;  %v4382_v33 = vrot.slane %v4375_v29, %v9274_v54  ;;  %5260 = vmatprep.subr.bf16.mxu1 %v7568_v6  ;;  %v7592_v13 = vld [vmem:[#allocation13 + $0x144] ss:$16 sps:$4 sm:$0xff]   ;;  %v7595_v30 = vld [vmem:[#allocation13 + $0x14c] ss:$16 sps:$4 sm:$0xff]   ;;  %v7596_v47 = vld [vmem:[#allocation13 + $0x120] ss:$16 sps:$4 sm:$0xff]  }
 0x6b0   : > { %v4504_v17 = vpack.c.bf16 %v4292_v53, %v4242_v45  ;;  %v4503_v12 = vpack.c.bf16 %v4291_v0, %v4241_v60  ;;  %v4425_v23 = vcombine.low %v9685_v15, %v9688_v44  ;;  %v4433_v62 = vcombine.low %v4416_v14, %v4424_v24  ;;  %5662 = vmatprep.subr.bf16.mxu0 %v7571_v61  ;;  %v7598_v2 = vld [vmem:[#allocation13 + $0x124] ss:$16 sps:$4 sm:$0xff]   ;;  %v7599_v29 = vld [vmem:[#allocation13 + $0x128] ss:$16 sps:$4 sm:$0xff]   ;;  %v7607_v45 = vld [vmem:[#allocation13 + $0x10c] ss:$16 sps:$4 sm:$0xff]  }
 0x6b1   : > { %v4390_v19 = vrot.slane %v4383_v27, %v9274_v54  ;;  %v4475_v40 = vcombine.low %v4450_v51, %v4458_v36  ;;  %v4483_v10 = vcombine.low %v4466_v5, %v4474_v49  ;;  %v4342_v46 = vcombine.high %v4332_v31, %v4340_v26  ;;  %v7601_v51 = vld [vmem:[#allocation13 + $0x12c] ss:$16 sps:$4 sm:$0xff]   ;;  %v7602_v36 = vld [vmem:[#allocation13 + $0x100] ss:$16 sps:$4 sm:$0xff]   ;;  %v7604_v55 = vld [vmem:[#allocation13 + $0x104] ss:$16 sps:$4 sm:$0xff]  }
 0x6b2   : > { %4795 = vmatprep.mubr.bf16.mxu0 %v4504_v17  ;;  %v4440_v48 = vrot.slane %v4433_v62, %v9274_v54  ;;  %v4432_v42 = vrot.slane %v4425_v23, %v9274_v54  ;;  %v4341_v59 = vcombine.low %v4332_v31, %v4340_v26  ;;  %5663 = vmatpush2.bf16.msra.mxu0 %v7569_v58  ;;  %v7605_v20 = vld [vmem:[#allocation13 + $0x108] ss:$16 sps:$4 sm:$0xff]   ;;  %v7610_v53 = vld [vmem:[#allocation14 + $0x174] ss:$8 sps:$4 sm:$0xff]  }
 0x6b3   : > { %4796 = vmatmul.mubr.bf16.gmra.mxu0 %v4503_v12  ;;  %v4392_v8 = vcombine.high %v4382_v33, %v4390_v19  ;;  %v4391_v32 = vcombine.low %v4382_v33, %v4390_v19  ;;  %v4482_v1 = vrot.slane %v4475_v40, %v9274_v54  ;;  %v4490_v18 = vrot.slane %v4483_v10, %v9274_v54  ;;  %v7566_v54 = vld [vmem:[#allocation13 + $0x1c0] ss:$16 sps:$4 sm:$0xff]   ;;  %v9738_v60 = vld [vmem:[#allocation14 + $0x74] ss:$8 sps:$4 sm:$0xff]   ;;  %v4541_v0 = vld [vmem:[%s10406_s7] sm:$0x3] }
 0x6b4   : > { %v4442_v16 = vcombine.high %v4432_v42, %v4440_v48  ;;  %v4441_v14 = vcombine.low %v4432_v42, %v4440_v48  ;;  %5261 = vmatpush2.bf16.msra.mxu1 %v7566_v54  ;;  %5664 = vmatprep.subr.bf16.mxu0 %v7577_v38  ;;  %v10520_v5 = vld [vmem:[#allocation25_spill] sm:$0xff]  ;;  %v4859_v26 = vld [vmem:[%s10407_s8] sm:$0x3]  ;;  %v10521_v27 = vld [vmem:[#allocation24_spill] sm:$0xff] }
 0x6b5   : > { %v4506_v37 = vpack.c.bf16 %v4392_v8, %v4342_v46  ;;  %v4492_v15 = vcombine.high %v4482_v1, %v4490_v18  ;;  %v4505_v44 = vpack.c.bf16 %v4391_v32, %v4341_v59  ;;  %v4491_v4 = vcombine.low %v4482_v1, %v4490_v18  ;;  %5262 = vmatprep.subr.bf16.mxu1 %v7574_v22  ;;  %v7961_v23 = vld [vmem:[%s8572_s30] sm:$0xff]  ;;  %v7962_v8 = vld [vmem:[%s8572_s30 + $0x8] sm:$0xff] }
 0x6b6   : > { %5665 = vmatpush2.bf16.msra.mxu0 %v7575_v3  ;;  %v9745_v49 = vrot.slane %v4541_v0, %v10520_v5  ;;  %v9751_v17 = vrot.slane %v4541_v0, %v10521_v27  ;;  %v9755_v33 = vrot.slane %v4859_v26, %v10520_v5  ;;  %v9762_v10 = vrot.slane %v4859_v26, %v10521_v27  ;;  %v7966_v58 = vld [vmem:[%s8572_s30 + $0x28] sm:$0xff] }
 0x6b7   : > { %4805 = vmatprep.mubr.bf16.mxu0 %v4506_v37  ;;  %v4508_v63 = vpack.c.bf16 %v4492_v15, %v4442_v16  ;;  %v4507_v24 = vpack.c.bf16 %v4491_v4, %v4441_v14  ;;  %5666 = vmatprep.subr.bf16.mxu0 %v7583_v9  ;;  %v7963_v37 = vld [vmem:[%s8572_s30 + $0x10] sm:$0xff]  ;;  %v7965_v4 = vld [vmem:[%s8572_s30 + $0x20] sm:$0xff] }
 0x6b8   : > { %5263 = vmatpush2.bf16.msra.mxu1 %v7572_v57  ;;  %v4858_v57 = vld [vmem:[%s10408_s9] sm:$0x3] }
 0x6b9   : > { %5264 = vmatprep.subr.bf16.mxu1 %v7580_v35  ;;  %v9804_v9 = vrot.slane %v4858_v57, %v10521_v27 }
 0x6ba   : > { %5667 = vmatpush2.bf16.msra.mxu0 %v7581_v41 }
 0x6bb   : > { %4806 = vmatmul.mubr.bf16.gmra.mxu0 %v4505_v44  ;;  %5668 = vmatprep.subr.bf16.mxu0 %v7589_v11  ;;  %v7964_v44 = vld [vmem:[%s8572_s30 + $0x18] sm:$0xff] }
 0x6bc   : > { %4815 = vmatprep.mubr.bf16.mxu0 %v4508_v63  ;;  %5265 = vmatpush2.bf16.msra.mxu1 %v7578_v25  ;;  %v7967_v25 = vld [vmem:[%s8572_s30 + $0x30] sm:$0xff] }
 0x6bd   : > { %5266 = vmatprep.subr.bf16.mxu1 %v7586_v21  ;;  %v9807_v21 = vrot.slane %v4858_v57, %v10520_v5 }
 0x6be   : > { %5669 = vmatpush2.bf16.msra.mxu0 %v7587_v52 }
 0x6bf   : > { %5670 = vmatprep.subr.bf16.mxu0 %v7595_v30 }
 0x6c0   : > { %5267 = vmatpush2.bf16.msra.mxu1 %v7584_v7 }
 0x6c1   : > { %5268 = vmatprep.subr.bf16.mxu1 %v7592_v13 }
 0x6c2   : > { %5671 = vmatpush2.bf16.msra.mxu0 %v7593_v39  ;;  %v4978_v39 = vld [vmem:[%s10409_s10] sm:$0x3] }
 0x6c3   : > { %4816 = vmatmul.mubr.bf16.gmra.mxu0 %v4507_v24  ;;  %5672 = vmatprep.subr.bf16.mxu0 %v7601_v51 }
 0x6c4   : > { %5269 = vmatpush2.bf16.msra.mxu1 %v7590_v50  ;;  %v7968_v50 = vld [vmem:[%s8572_s30 + $0x38] sm:$0xff] }
 0x6c5   : > { %5270 = vmatprep.subr.bf16.mxu1 %v7598_v2 }
 0x6c6   : > { %5673 = vmatpush2.bf16.msra.mxu0 %v7599_v29 }
 0x6c7   : > { %5674 = vmatprep.subr.bf16.mxu0 %v7607_v45 }
 0x6c8   : > { %5271 = vmatpush2.bf16.msra.mxu1 %v7596_v47  ;;  %v9818_v47 = vrot.slane %v4978_v39, %v10521_v27 }
 0x6c9   : > { %5272 = vmatprep.subr.bf16.mxu1 %v7604_v55  ;;  %v9825_v55 = vrot.slane %v4978_v39, %v10520_v5 }
 0x6ca   : > { %5675 = vmatpush2.bf16.msra.mxu0 %v7605_v20 }
 0x6cb   : > { %6273 = vmatprep.subr.bf16.mxu0 %v9738_v60 }
 0x6cc   : > { %5273 = vmatpush2.bf16.msra.mxu1 %v7602_v36 }
 0x6cd   : > { %6000 = vmatprep.subr.bf16.mxu1 %v7610_v53 }
 0x730   : > { %v4747_v12 = vpop.f32.mrf.mxu0 }
 0x731   : > { %v4748_v31 = vadd.f32 %v4747_v12, %v9745_v49 }
 0x732   : > { %v4749_v19 = vpop.f32.mrf.mxu0 }
 0x733   : > { %v9758_v62 = vadd.f32 %v7961_v23, %v4748_v31  ;;  %v4750_v40 = vadd.f32 %v4749_v19, %v9751_v17  ;;  %v7608_v23 = vld [vmem:[#allocation14 + $0x170] ss:$8 sps:$4 sm:$0xff]  }
 0x734   : > { %v4751_v46 = vpop.f32.mrf.mxu0 }
 0x735   : > { %v9765_v32 = vadd.f32 %v7962_v8, %v4750_v40  ;;  %v4752_v48 = vadd.f32 %v4751_v46, %v9745_v49  ;;  %v4871_v42 = vmul.f32 %v9755_v33, %v9758_v62  ;;  %v9833_v40 = vld [vmem:[#allocation14 + $0x70] ss:$8 sps:$4 sm:$0xff]  }
 0x736   : > { %v4753_v1 = vpop.f32.mrf.mxu0 }
 0x737   : > { %v4872_v18 = vmul.f32 %v9762_v10, %v9765_v32  ;;  %v9773_v59 = vadd.f32 %v7963_v37, %v4752_v48  ;;  %v4754_v16 = vadd.f32 %v4753_v1, %v9751_v17  ;;  %v7616_v48 = vld [vmem:[#allocation14 + $0x164] ss:$8 sps:$4 sm:$0xff]  }
 0x739   : > { %7896 = vtanh.f32 %v4872_v18  ;;  %v4873_v15 = vmul.f32 %v9755_v33, %v9773_v59  ;;  %v9779_v63 = vadd.f32 %v7964_v44, %v4754_v16  ;;  %v7969_v18 = vld [vmem:[%s8572_s30 + $0x40] sm:$0xff] }
 0x73a   : > { %7898 = vtanh.f32 %v4871_v42  ;;  %v9836_v42 = vld [vmem:[#allocation14 + $0x64] ss:$8 sps:$4 sm:$0xff]   ;;  %v7614_v44 = vld [vmem:[#allocation14 + $0x160] ss:$8 sps:$4 sm:$0xff]  }
 0x73b   : > { %10522 = vst [vmem:[#allocation26_spill] sm:$0xff] %v9779_v63  ;;  %7900 = vtanh.f32 %v4873_v15  ;;  %v4874_v43 = vmul.f32 %v9762_v10, %v9779_v63 }
 0x73d   : > { %7902 = vtanh.f32 %v4874_v43  ;;  %v9843_v43 = vld [vmem:[#allocation14 + $0x60] ss:$8 sps:$4 sm:$0xff]  }
 0x73e   : > { %v4757_v28 = vpop.f32.mrf.mxu0 }
 0x73f   : > { %v4758_v56 = vadd.f32 %v4757_v28, %v9745_v49 }
 0x740   : > { %v4759_v34 = vpop.f32.mrf.mxu0 }
 0x741   : > { %v9785_v14 = vadd.f32 %v7965_v4, %v4758_v56  ;;  %v4760_v54 = vadd.f32 %v4759_v34, %v9751_v17  ;;  %v7970_v56 = vld [vmem:[%s8572_s30 + $0x48] sm:$0xff] }
 0x742   : > { %v4761_v6 = vpop.f32.mrf.mxu0 }
 0x743   : > { %10523 = vst [vmem:[#allocation28_spill] sm:$0xff] %v9785_v14  ;;  %v9789_v61 = vadd.f32 %v7966_v58, %v4760_v54  ;;  %v4762_v24 = vadd.f32 %v4761_v6, %v9745_v49  ;;  %v4875_v22 = vmul.f32 %v9755_v33, %v9785_v14  ;;  %v7622_v54 = vld [vmem:[#allocation14 + $0x154] ss:$8 sps:$4 sm:$0xff]  }
 0x744   : > { %v4763_v3 = vpop.f32.mrf.mxu0  ;;  %v9850_v6 = vld [vmem:[#allocation14 + $0x54] ss:$8 sps:$4 sm:$0xff]  }
 0x745   : > { %10524 = vst [vmem:[#allocation31_spill] sm:$0xff] %v9789_v61  ;;  %v4876_v38 = vmul.f32 %v9762_v10, %v9789_v61  ;;  %v9800_v35 = vadd.f32 %v7967_v25, %v4762_v24  ;;  %v4764_v41 = vadd.f32 %v4763_v3, %v9751_v17 }
 0x746   : > { %v7897_v7 = vpop.eup %7896 }
 0x747   : > { %10525 = vst [vmem:[#allocation29_spill] sm:$0xff] %v9800_v35  ;;  %v7899_v52 = vpop.eup %7898  ;;  %7904 = vtanh.f32 %v4876_v38  ;;  %v4877_v11 = vmul.f32 %v9755_v33, %v9800_v35  ;;  %v9812_v13 = vadd.f32 %v7968_v50, %v4764_v41  ;;  %v4947_v29 = vmul.f32 %v7897_v7, %v9804_v9  ;;  %v7971_v38 = vld [vmem:[%s8572_s30 + $0x50] sm:$0xff] }
 0x748   : > { %v7901_v30 = vpop.eup %7900  ;;  %7906 = vtanh.f32 %v4875_v22  ;;  %v4946_v20 = vmul.f32 %v7899_v52, %v9807_v21  ;;  %v9863_v50 = vld [vmem:[#allocation14 + $0x50] ss:$8 sps:$4 sm:$0xff]  }
 0x749   : > { %10526 = vst [vmem:[#allocation27_spill] sm:$0xff] %v9812_v13  ;;  %7908 = vtanh.f32 %v4877_v11  ;;  %v4878_v2 = vmul.f32 %v9762_v10, %v9812_v13  ;;  %v4948_v51 = vmul.f32 %v7901_v30, %v9807_v21  ;;  %v4991_v0 = vadd.f32 %v9818_v47, %v4947_v29  ;;  %v7620_v11 = vld [vmem:[#allocation14 + $0x150] ss:$8 sps:$4 sm:$0xff]  }
 0x74a   : > { %v7903_v36 = vpop.eup %7902  ;;  %v4990_v12 = vadd.f32 %v9825_v55, %v4946_v20  ;;  %v9872_v20 = vld [vmem:[#allocation14 + $0x44] ss:$8 sps:$4 sm:$0xff]  }
 0x74b   : > { %7910 = vtanh.f32 %v4878_v2  ;;  %v4949_v45 = vmul.f32 %v7903_v36, %v9804_v9  ;;  %v4992_v53 = vadd.f32 %v9825_v55, %v4948_v51  ;;  %v7972_v2 = vld [vmem:[%s8572_s30 + $0x58] sm:$0xff]  ;;  %v7628_v36 = vld [vmem:[#allocation14 + $0x144] ss:$8 sps:$4 sm:$0xff]  }
 0x74d   : > { %v4993_v26 = vadd.f32 %v9818_v47, %v4949_v45  ;;  %v5022_v8 = vpack.c.bf16 %v4992_v53, %v4990_v12 }
 0x74f   : > { %v4767_v31 = vpop.f32.mrf.mxu0  ;;  %v5023_v19 = vpack.c.bf16 %v4993_v26, %v4991_v0 }
 0x750   : > { %v4768_v46 = vadd.f32 %v4767_v31, %v9745_v49 }
 0x751   : > { %v4769_v1 = vpop.f32.mrf.mxu0  ;;  %5274 = vmatprep.mubr.bf16.mxu1 %v5023_v19  ;;  %5676 = vmatprep.mubr.bf16.mxu0 %v5023_v19 }
 0x752   : > { %v9839_v37 = vadd.f32 %v7969_v18, %v4768_v46  ;;  %v4770_v16 = vadd.f32 %v4769_v1, %v9751_v17  ;;  %5275 = vmatmul.mubr.bf16.vlgmr.msra.gmra.mxu1 %v5022_v8  ;;  %5677 = vmatmul.mubr.bf16.vlgmr.msra.gmra.mxu0 %v5022_v8  ;;  %v9883_v46 = vld [vmem:[#allocation14 + $0x40] ss:$8 sps:$4 sm:$0xff]   ;;  %v7634_v1 = vld [vmem:[#allocation14 + $0x134] ss:$8 sps:$4 sm:$0xff]  }
 0x753   : > { %v4771_v15 = vpop.f32.mrf.mxu0  ;;  %6001 = vmatpush1.bf16.msra.mxu1 %v7608_v23  ;;  %6274 = vmatpush1.bf16.msra.mxu0 %v9833_v40  ;;  %v7626_v23 = vld [vmem:[#allocation14 + $0x140] ss:$8 sps:$4 sm:$0xff]   ;;  %v9885_v18 = vld [vmem:[#allocation14 + $0x34] ss:$8 sps:$4 sm:$0xff]  }
 0x754   : > { %10527 = vst [vmem:[#allocation32_spill] sm:$0xff] %v9839_v37  ;;  %v7905_v28 = vpop.eup %7904  ;;  %v9846_v34 = vadd.f32 %v7970_v56, %v4770_v16  ;;  %v4772_v4 = vadd.f32 %v4771_v15, %v9745_v49  ;;  %6002 = vmatprep.subr.bf16.mxu1 %v7616_v48  ;;  %6275 = vmatprep.subr.bf16.mxu0 %v9836_v42 }
 0x755   : > { %v7907_v58 = vpop.eup %7906  ;;  %v4879_v24 = vmul.f32 %v9755_v33, %v9839_v37  ;;  %v4773_v57 = vpop.f32.mrf.mxu0  ;;  %v4951_v7 = vmul.f32 %v7905_v28, %v9804_v9 }
 0x756   : > { %10528 = vst [vmem:[#allocation30_spill] sm:$0xff] %v9846_v34  ;;  %v7909_v22 = vpop.eup %7908  ;;  %v4880_v3 = vmul.f32 %v9762_v10, %v9846_v34  ;;  %v9857_v25 = vadd.f32 %v7971_v38, %v4772_v4  ;;  %v4774_v41 = vadd.f32 %v4773_v57, %v9751_v17  ;;  %v4950_v51 = vmul.f32 %v7907_v58, %v9807_v21  ;;  %v7632_v4 = vld [vmem:[#allocation14 + $0x130] ss:$8 sps:$4 sm:$0xff]   ;;  %v9896_v57 = vld [vmem:[#allocation14 + $0x24] ss:$8 sps:$4 sm:$0xff]  }
 0x757   : > { %v4952_v52 = vmul.f32 %v7909_v22, %v9807_v21  ;;  %6003 = vmatpush1.bf16.msra.mxu1 %v7614_v44  ;;  %6276 = vmatpush1.bf16.msra.mxu0 %v9843_v43  ;;  %v4995_v26 = vadd.f32 %v9818_v47, %v4951_v7  ;;  %v7973_v44 = vld [vmem:[%s8572_s30 + $0x60] sm:$0xff] }
 0x758   : > { %10529 = vst [vmem:[#allocation23_spill] sm:$0xff] %v9857_v25  ;;  %v7911_v39 = vpop.eup %7910  ;;  %7912 = vtanh.f32 %v4880_v3  ;;  %v4881_v30 = vmul.f32 %v9755_v33, %v9857_v25  ;;  %v9868_v29 = vadd.f32 %v7972_v2, %v4774_v41  ;;  %6004 = vmatprep.subr.bf16.mxu1 %v7622_v54  ;;  %6277 = vmatprep.subr.bf16.mxu0 %v9850_v6  ;;  %v9893_v54 = vld [vmem:[#allocation14 + $0x30] ss:$8 sps:$4 sm:$0xff]   ;;  %v7974_v3 = vld [vmem:[%s8572_s30 + $0x68] sm:$0xff] }
 0x759   : > { %7914 = vtanh.f32 %v4879_v24  ;;  %v4953_v45 = vmul.f32 %v7911_v39, %v9804_v9  ;;  %v4996_v0 = vadd.f32 %v9825_v55, %v4952_v52  ;;  %v4994_v31 = vadd.f32 %v9825_v55, %v4950_v51  ;;  %v7640_v24 = vld [vmem:[#allocation14 + $0x124] ss:$8 sps:$4 sm:$0xff]   ;;  %v7638_v51 = vld [vmem:[#allocation14 + $0x120] ss:$8 sps:$4 sm:$0xff]  }
 0x75a   : > { %10530 = vst [vmem:[#allocation25_spill] sm:$0xff] %v9868_v29  ;;  %7916 = vtanh.f32 %v4881_v30  ;;  %v4882_v53 = vmul.f32 %v9762_v10, %v9868_v29  ;;  %v7975_v39 = vld [vmem:[%s8572_s30 + $0x70] sm:$0xff] }
 0x75b   : > { %v4997_v12 = vadd.f32 %v9818_v47, %v4953_v45  ;;  %6005 = vmatpush1.bf16.msra.mxu1 %v7620_v11  ;;  %6278 = vmatpush1.bf16.msra.mxu0 %v9863_v50  ;;  %v5024_v48 = vpack.c.bf16 %v4996_v0, %v4994_v31  ;;  %v9914_v0 = vld [vmem:[#allocation14 + $0x14] ss:$8 sps:$4 sm:$0xff]   ;;  %v10014_v29 = vld [vmem:[#allocation14 + $0xc4] ss:$8 sps:$4 sm:$0xff]  }
 0x75c   : > { %7918 = vtanh.f32 %v4882_v53  ;;  %6006 = vmatprep.subr.bf16.mxu1 %v7628_v36  ;;  %6279 = vmatprep.subr.bf16.mxu0 %v9872_v20  ;;  %v9911_v36 = vld [vmem:[#allocation14 + $0x20] ss:$8 sps:$4 sm:$0xff]   ;;  %v7646_v53 = vld [vmem:[#allocation14 + $0x114] ss:$8 sps:$4 sm:$0xff]  }
 0x75d   : > { %v5025_v19 = vpack.c.bf16 %v4997_v12, %v4995_v26  ;;  %v7976_v31 = vld [vmem:[%s8572_s30 + $0x78] sm:$0xff] }
 0x75e   : > { %v4777_v8 = vpop.f32.mrf.mxu0 }
 0x75f   : > { %v4778_v16 = vadd.f32 %v4777_v8, %v9745_v49  ;;  %5284 = vmatprep.mubr.bf16.mxu1 %v5025_v19  ;;  %5686 = vmatprep.mubr.bf16.mxu0 %v5025_v19 }
 0x760   : > { %v4779_v15 = vpop.f32.mrf.mxu0  ;;  %5285 = vmatmul.mubr.bf16.gmra.mxu1 %v5024_v48  ;;  %5687 = vmatmul.mubr.bf16.gmra.mxu0 %v5024_v48 }
 0x761   : > { %v9889_v28 = vadd.f32 %v7973_v44, %v4778_v16  ;;  %v4780_v56 = vadd.f32 %v4779_v15, %v9751_v17  ;;  %6007 = vmatpush1.bf16.msra.mxu1 %v7626_v23  ;;  %6280 = vmatpush1.bf16.msra.mxu0 %v9883_v46  ;;  %v7644_v15 = vld [vmem:[#allocation14 + $0x110] ss:$8 sps:$4 sm:$0xff]  }
 0x762   : > { %v4781_v58 = vpop.f32.mrf.mxu0  ;;  %6008 = vmatprep.subr.bf16.mxu1 %v7634_v1  ;;  %6281 = vmatprep.subr.bf16.mxu0 %v9885_v18  ;;  %v9927_v44 = vld [vmem:[#allocation14 + $0x10] ss:$8 sps:$4 sm:$0xff]  }
 0x763   : > { %10531 = vst [vmem:[#allocation24_spill] sm:$0xff] %v9889_v28  ;;  %v4883_v22 = vmul.f32 %v9755_v33, %v9889_v28  ;;  %v9901_v38 = vadd.f32 %v7974_v3, %v4780_v56  ;;  %v4782_v41 = vadd.f32 %v4781_v58, %v9745_v49  ;;  %v9931_v58 = vld [vmem:[#allocation14 + $0x4] ss:$8 sps:$4 sm:$0xff]  }
 0x764   : > { %v4783_v7 = vpop.f32.mrf.mxu0 }
 0x765   : > { %10532 = vst [vmem:[#allocation33_spill] sm:$0xff] %v9901_v38  ;;  %v7913_v52 = vpop.eup %7912  ;;  %v4884_v11 = vmul.f32 %v9762_v10, %v9901_v38  ;;  %v9907_v30 = vadd.f32 %v7975_v39, %v4782_v41  ;;  %v4784_v2 = vadd.f32 %v4783_v7, %v9751_v17  ;;  %6009 = vmatpush1.bf16.msra.mxu1 %v7632_v4  ;;  %7920 = vtanh.f32 %v4883_v22  ;;  %v7652_v4 = vld [vmem:[#allocation14 + $0x104] ss:$8 sps:$4 sm:$0xff]   ;;  %v7977_v39 = vld [vmem:[%s8572_s30 + $0x80] sm:$0xff] }
 0x766   : > { %6282 = vmatpush1.bf16.msra.mxu0 %v9893_v54  ;;  %v7915_v45 = vpop.eup %7914  ;;  %6010 = vmatprep.subr.bf16.mxu1 %v7640_v24  ;;  %v4955_v23 = vmul.f32 %v7913_v52, %v9804_v9 }
 0x767   : > { %10533 = vst [vmem:[#allocation34_spill] sm:$0xff] %v9907_v30  ;;  %6283 = vmatprep.subr.bf16.mxu0 %v9896_v57  ;;  %v7917_v26 = vpop.eup %7916  ;;  %7922 = vtanh.f32 %v4884_v11  ;;  %v4885_v12 = vmul.f32 %v9755_v33, %v9907_v30  ;;  %v9919_v19 = vadd.f32 %v7976_v31, %v4784_v2  ;;  %v4954_v16 = vmul.f32 %v7915_v45, %v9807_v21  ;;  %v7983_v30 = vld [vmem:[%s8572_s30 + $0xb0] sm:$0xff] }
 0x768   : > { %v4956_v8 = vmul.f32 %v7917_v26, %v9807_v21  ;;  %v4999_v41 = vadd.f32 %v9818_v47, %v4955_v23  ;;  %v9943_v26 = vld [vmem:[#allocation14] ss:$8 sps:$4 sm:$0xff]   ;;  %v7658_v23 = vld [vmem:[#allocation14 + $0x1f4] ss:$8 sps:$4 sm:$0xff]  }
 0x769   : > { %10534 = vst [vmem:[#allocation35_spill] sm:$0xff] %v9919_v19  ;;  %v7919_v48 = vpop.eup %7918  ;;  %7924 = vtanh.f32 %v4885_v12  ;;  %v4886_v1 = vmul.f32 %v9762_v10, %v9919_v19  ;;  %6011 = vmatpush1.bf16.msra.mxu1 %v7638_v51  ;;  %v4998_v11 = vadd.f32 %v9825_v55, %v4954_v16 }
 0x76a   : > { %6284 = vmatpush1.bf16.msra.mxu0 %v9911_v36  ;;  %v4957_v56 = vmul.f32 %v7919_v48, %v9804_v9  ;;  %6012 = vmatprep.subr.bf16.mxu1 %v7646_v53  ;;  %v5000_v22 = vadd.f32 %v9825_v55, %v4956_v8  ;;  %v7650_v53 = vld [vmem:[#allocation14 + $0x100] ss:$8 sps:$4 sm:$0xff]   ;;  %v9946_v8 = vld [vmem:[#allocation14 + $0xf4] ss:$8 sps:$4 sm:$0xff]  }
 0x76b   : > { %6285 = vmatprep.subr.bf16.mxu0 %v9914_v0  ;;  %7926 = vtanh.f32 %v4886_v1  ;;  %v4787_v24 = vpop.f32.mrf.mxu0  ;;  %v7978_v1 = vld [vmem:[%s8572_s30 + $0x88] sm:$0xff] }
 0x76c   : > { %v4788_v3 = vadd.f32 %v4787_v24, %v9745_v49  ;;  %v5001_v7 = vadd.f32 %v9818_v47, %v4957_v56  ;;  %v5026_v31 = vpack.c.bf16 %v5000_v22, %v4998_v11  ;;  %v7979_v24 = vld [vmem:[%s8572_s30 + $0x90] sm:$0xff] }
 0x76d   : > { %v4789_v52 = vpop.f32.mrf.mxu0  ;;  %6013 = vmatpush1.bf16.msra.mxu1 %v7644_v15 }
 0x76e   : > { %6286 = vmatpush1.bf16.msra.mxu0 %v9927_v44  ;;  %v9940_v2 = vadd.f32 %v7977_v39, %v4788_v3  ;;  %v4790_v51 = vadd.f32 %v4789_v52, %v9751_v17  ;;  %v5027_v45 = vpack.c.bf16 %v5001_v7, %v4999_v41  ;;  %6014 = vmatprep.subr.bf16.mxu1 %v7652_v4  ;;  %v7656_v41 = vld [vmem:[#allocation14 + $0x1f0] ss:$8 sps:$4 sm:$0xff]   ;;  %v7664_v39 = vld [vmem:[#allocation14 + $0x1e4] ss:$8 sps:$4 sm:$0xff]  }
 0x76f   : > { %6287 = vmatprep.subr.bf16.mxu0 %v9931_v58  ;;  %v4791_v12 = vpop.f32.mrf.mxu0  ;;  %v9961_v7 = vld [vmem:[#allocation14 + $0xf0] ss:$8 sps:$4 sm:$0xff]  }
 0x770   : > { %10535 = vst [vmem:[#allocation36_spill] sm:$0xff] %v9940_v2  ;;  %v4887_v48 = vmul.f32 %v9755_v33, %v9940_v2  ;;  %v9951_v16 = vadd.f32 %v7978_v1, %v4790_v51  ;;  %v4792_v15 = vadd.f32 %v4791_v12, %v9745_v49  ;;  %5294 = vmatprep.mubr.bf16.mxu1 %v5027_v45  ;;  %v9964_v51 = vld [vmem:[#allocation14 + $0xe4] ss:$8 sps:$4 sm:$0xff]  }
 0x771   : > { %5696 = vmatprep.mubr.bf16.mxu0 %v5027_v45  ;;  %v4793_v56 = vpop.f32.mrf.mxu0  ;;  %5295 = vmatmul.mubr.bf16.gmra.mxu1 %v5026_v31 }
 0x772   : > { %10536 = vst [vmem:[#allocation37_spill] sm:$0xff] %v9951_v16  ;;  %5697 = vmatmul.mubr.bf16.gmra.mxu0 %v5026_v31  ;;  %v4888_v4 = vmul.f32 %v9762_v10, %v9951_v16  ;;  %v9957_v22 = vadd.f32 %v7979_v24, %v4792_v15  ;;  %v4794_v3 = vadd.f32 %v4793_v56, %v9751_v17  ;;  %v7921_v52 = vpop.eup %7920  ;;  %7928 = vtanh.f32 %v4887_v48  ;;  %v7981_v24 = vld [vmem:[%s8572_s30 + $0xa0] sm:$0xff] }
 0x773   : > { %6015 = vmatpush1.bf16.msra.mxu1 %v7650_v53  ;;  %6288 = vmatpush1.bf16.msra.mxu0 %v9943_v26  ;;  %v4797_v11 = vpop.f32.mrf.mxu0  ;;  %v7980_v53 = vld [vmem:[%s8572_s30 + $0x98] sm:$0xff] }
 0x774   : > { %10537 = vst [vmem:[#allocation38_spill] sm:$0xff] %v9957_v22  ;;  %6016 = vmatprep.subr.bf16.mxu1 %v7658_v23  ;;  %6289 = vmatprep.subr.bf16.mxu0 %v9946_v8  ;;  %v7923_v45 = vpop.eup %7922  ;;  %v4889_v12 = vmul.f32 %v9755_v33, %v9957_v22  ;;  %v9969_v31 = vadd.f32 %v7980_v53, %v4794_v3  ;;  %7930 = vtanh.f32 %v4888_v4  ;;  %v7662_v3 = vld [vmem:[#allocation14 + $0x1e0] ss:$8 sps:$4 sm:$0xff]  }
 0x775   : > { %v4798_v1 = vadd.f32 %v4797_v11, %v9745_v49  ;;  %v4799_v15 = vpop.f32.mrf.mxu0  ;;  %v9979_v53 = vld [vmem:[#allocation14 + $0xe0] ss:$8 sps:$4 sm:$0xff]   ;;  %v4959_v4 = vmul.f32 %v7923_v45, %v9804_v9 }
 0x776   : > { %10538 = vst [vmem:[#allocation39_spill] sm:$0xff] %v9969_v31  ;;  %v7925_v56 = vpop.eup %7924  ;;  %7932 = vtanh.f32 %v4889_v12  ;;  %v4890_v23 = vmul.f32 %v9762_v10, %v9969_v31  ;;  %v4800_v48 = vadd.f32 %v4799_v15, %v9751_v17  ;;  %v4958_v12 = vmul.f32 %v7921_v52, %v9807_v21  ;;  %v7982_v15 = vld [vmem:[%s8572_s30 + $0xa8] sm:$0xff] }
 0x777   : > { %v9975_v16 = vadd.f32 %v7981_v24, %v4798_v1  ;;  %6017 = vmatpush2.bf16.msra.mxu1 %v7656_v41  ;;  %6290 = vmatpush2.bf16.msra.mxu0 %v9961_v7  ;;  %v4801_v11 = vpop.f32.mrf.mxu0  ;;  %v4960_v31 = vmul.f32 %v7925_v56, %v9807_v21  ;;  %v7670_v1 = vld [vmem:[#allocation14 + $0x1d4] ss:$8 sps:$4 sm:$0xff]  }
 0x778   : > { %6018 = vmatprep.subr.bf16.mxu1 %v7664_v39  ;;  %6291 = vmatprep.subr.bf16.mxu0 %v9964_v51  ;;  %v9985_v24 = vld [vmem:[#allocation14 + $0xd4] ss:$8 sps:$4 sm:$0xff]   ;;  %v7927_v41 = vpop.eup %7926  ;;  %7934 = vtanh.f32 %v4890_v23  ;;  %v9988_v22 = vadd.f32 %v7982_v15, %v4800_v48  ;;  %v4802_v2 = vadd.f32 %v4801_v11, %v9745_v49  ;;  %v7668_v48 = vld [vmem:[#allocation14 + $0x1d0] ss:$8 sps:$4 sm:$0xff]  }
 0x779   : > { %10539 = vst [vmem:[#allocation40_spill] sm:$0xff] %v9975_v16  ;;  %v4891_v45 = vmul.f32 %v9755_v33, %v9975_v16  ;;  %v4803_v52 = vpop.f32.mrf.mxu0  ;;  %v4961_v19 = vmul.f32 %v7927_v41, %v9804_v9  ;;  %v5004_v39 = vadd.f32 %v9825_v55, %v4960_v31  ;;  %v10002_v11 = vld [vmem:[#allocation14 + $0xd0] ss:$8 sps:$4 sm:$0xff]   ;;  %v5003_v41 = vadd.f32 %v9818_v47, %v4959_v4 }
 0x77a   : > { %10540 = vst [vmem:[#allocation41_spill] sm:$0xff] %v9988_v22  ;;  %v4892_v56 = vmul.f32 %v9762_v10, %v9988_v22  ;;  %v9998_v38 = vadd.f32 %v7983_v30, %v4802_v2  ;;  %v4804_v23 = vadd.f32 %v4803_v52, %v9751_v17  ;;  %v5002_v16 = vadd.f32 %v9825_v55, %v4958_v12  ;;  %v7984_v2 = vld [vmem:[%s8572_s30 + $0xb8] sm:$0xff] }
 0x77b   : > { %6019 = vmatpush2.bf16.msra.mxu1 %v7662_v3  ;;  %6292 = vmatpush2.bf16.msra.mxu0 %v9979_v53  ;;  %v4807_v15 = vpop.f32.mrf.mxu0  ;;  %v5005_v31 = vadd.f32 %v9818_v47, %v4961_v19  ;;  %v7676_v19 = vld [vmem:[#allocation14 + $0x1c4] ss:$8 sps:$4 sm:$0xff]  }
 0x77c   : > { %10541 = vst [vmem:[#allocation42_spill] sm:$0xff] %v9998_v38  ;;  %6020 = vmatprep.subr.bf16.mxu1 %v7670_v1  ;;  %6293 = vmatprep.subr.bf16.mxu0 %v9985_v24  ;;  %7936 = vtanh.f32 %v4892_v56  ;;  %v4893_v30 = vmul.f32 %v9755_v33, %v9998_v38  ;;  %v10011_v3 = vadd.f32 %v7984_v2, %v4804_v23  ;;  %v7985_v1 = vld [vmem:[%s8572_s30 + $0xc0] sm:$0xff] }
 0x77d   : > { %v4808_v52 = vadd.f32 %v4807_v15, %v9745_v49  ;;  %7938 = vtanh.f32 %v4891_v45  ;;  %v4809_v22 = vpop.f32.mrf.mxu0  ;;  %v5029_v4 = vpack.c.bf16 %v5005_v31, %v5003_v41  ;;  %v5028_v28 = vpack.c.bf16 %v5004_v39, %v5002_v16  ;;  %v7674_v45 = vld [vmem:[#allocation14 + $0x1c0] ss:$8 sps:$4 sm:$0xff]   ;;  %v7682_v39 = vld [vmem:[#allocation14 + $0x1b4] ss:$8 sps:$4 sm:$0xff]  }
 0x77e   : > { %10542 = vst [vmem:[#allocation43_spill] sm:$0xff] %v10011_v3  ;;  %7940 = vtanh.f32 %v4893_v30  ;;  %v4894_v12 = vmul.f32 %v9762_v10, %v10011_v3  ;;  %v4810_v23 = vadd.f32 %v4809_v22, %v9751_v17  ;;  %v10023_v15 = vld [vmem:[#allocation14 + $0xc0] ss:$8 sps:$4 sm:$0xff]   ;;  %v10025_v41 = vld [vmem:[#allocation14 + $0xb4] ss:$8 sps:$4 sm:$0xff]  }
 0x77f   : > { %v10019_v56 = vadd.f32 %v7985_v1, %v4808_v52  ;;  %6021 = vmatpush2.bf16.msra.mxu1 %v7668_v48  ;;  %6294 = vmatpush2.bf16.msra.mxu0 %v10002_v11  ;;  %v4811_v16 = vpop.f32.mrf.mxu0  ;;  %v7986_v31 = vld [vmem:[%s8572_s30 + $0xc8] sm:$0xff]  ;;  %v7929_v22 = vpop.eup %7928  ;;  %v7987_v1 = vld [vmem:[%s8572_s30 + $0xd0] sm:$0xff] }
 0x780   : > { %5304 = vmatprep.mubr.bf16.mxu1 %v5029_v4  ;;  %5706 = vmatprep.mubr.bf16.mxu0 %v5029_v4  ;;  %7942 = vtanh.f32 %v4894_v12  ;;  %v10028_v30 = vadd.f32 %v7986_v31, %v4810_v23  ;;  %v4812_v2 = vadd.f32 %v4811_v16, %v9745_v49  ;;  %v10041_v31 = vld [vmem:[#allocation14 + $0xb0] ss:$8 sps:$4 sm:$0xff]   ;;  %v4962_v25 = vmul.f32 %v7929_v22, %v9807_v21 }
 0x781   : > { %10543 = vst [vmem:[#allocation44_spill] sm:$0xff] %v10019_v56  ;;  %5305 = vmatmul.mubr.bf16.gmra.mxu1 %v5028_v28  ;;  %5707 = vmatmul.mubr.bf16.gmra.mxu0 %v5028_v28  ;;  %v4895_v48 = vmul.f32 %v9755_v33, %v10019_v56  ;;  %v4813_v52 = vpop.f32.mrf.mxu0  ;;  %v7931_v4 = vpop.eup %7930  ;;  %v7680_v28 = vld [vmem:[#allocation14 + $0x1b0] ss:$8 sps:$4 sm:$0xff]  }
 0x782   : > { %10544 = vst [vmem:[#allocation45_spill] sm:$0xff] %v10028_v30  ;;  %6022 = vmatprep.subr.bf16.mxu1 %v7676_v19  ;;  %6295 = vmatprep.subr.bf16.mxu0 %v10014_v29  ;;  %v4896_v12 = vmul.f32 %v9762_v10, %v10028_v30  ;;  %v10037_v23 = vadd.f32 %v7987_v1, %v4812_v2  ;;  %v7988_v2 = vld [vmem:[%s8572_s30 + $0xd8] sm:$0xff] }
 0x783   : > { %v4814_v16 = vadd.f32 %v4813_v52, %v9751_v17  ;;  %6023 = vmatpush2.bf16.msra.mxu1 %v7674_v45  ;;  %6296 = vmatpush2.bf16.msra.mxu0 %v10023_v15  ;;  %v7933_v56 = vpop.eup %7932  ;;  %v4817_v19 = vpop.f32.mrf.mxu0  ;;  %v4963_v38 = vmul.f32 %v7931_v4, %v9804_v9 }
 0x784   : > { %10545 = vst [vmem:[#allocation46_spill] sm:$0xff] %v10037_v23  ;;  %6024 = vmatprep.subr.bf16.mxu1 %v7682_v39  ;;  %6297 = vmatprep.subr.bf16.mxu0 %v10025_v41  ;;  %7944 = vtanh.f32 %v4896_v12  ;;  %v4897_v30 = vmul.f32 %v9755_v33, %v10037_v23  ;;  %v4818_v45 = vadd.f32 %v4817_v19, %v9745_v49  ;;  %v7989_v23 = vld [vmem:[%s8572_s30 + $0xe0] sm:$0xff] }
 0x785   : > { %v10047_v1 = vadd.f32 %v7988_v2, %v4814_v16  ;;  %v7935_v52 = vpop.eup %7934  ;;  %7946 = vtanh.f32 %v4895_v48  ;;  %v4819_v3 = vpop.f32.mrf.mxu0  ;;  %v4964_v39 = vmul.f32 %v7933_v56, %v9807_v21  ;;  %v7990_v56 = vld [vmem:[%s8572_s30 + $0xe8] sm:$0xff] }
 0x786   : > { %7948 = vtanh.f32 %v4897_v30  ;;  %v10056_v34 = vadd.f32 %v7989_v23, %v4818_v45  ;;  %v4820_v16 = vadd.f32 %v4819_v3, %v9751_v17  ;;  %v4965_v4 = vmul.f32 %v7935_v52, %v9804_v9 }
 0x787   : > { %10546 = vst [vmem:[#allocation47_spill] sm:$0xff] %v10047_v1  ;;  %v4898_v12 = vmul.f32 %v9762_v10, %v10047_v1  ;;  %6025 = vmatpush2.bf16.msra.mxu1 %v7680_v28  ;;  %6298 = vmatpush2.bf16.msra.mxu0 %v10041_v31  ;;  %v4821_v48 = vpop.f32.mrf.mxu0  ;;  %v5008_v22 = vadd.f32 %v9825_v55, %v4964_v39 }
 0x788   : > { %10547 = vst [vmem:[#allocation48_spill] sm:$0xff] %v10056_v34  ;;  %v10063_v30 = vadd.f32 %v7990_v56, %v4820_v16  ;;  %v4822_v19 = vadd.f32 %v4821_v48, %v9745_v49  ;;  %v4899_v23 = vmul.f32 %v9755_v33, %v10056_v34  ;;  %v5007_v28 = vadd.f32 %v9818_v47, %v4963_v38 }
 0x789   : > { %7950 = vtanh.f32 %v4898_v12  ;;  %v7937_v2 = vpop.eup %7936  ;;  %v4823_v3 = vpop.f32.mrf.mxu0  ;;  %v5009_v45 = vadd.f32 %v9818_v47, %v4965_v4  ;;  %v5006_v52 = vadd.f32 %v9825_v55, %v4962_v25  ;;  %v7991_v12 = vld [vmem:[%s8572_s30 + $0xf0] sm:$0xff]  ;;  %v7992_v4 = vld [vmem:[%s8572_s30 + $0xf8] sm:$0xff]  ;;  %s8203_s30 = scalar_lea.vmem %s10353_s28, 4096 }
 0x78a   : > { %10548 = vst [vmem:[#allocation49_spill] sm:$0xff] %v10063_v30  ;;  %v7939_v1 = vpop.eup %7938  ;;  %v4900_v39 = vmul.f32 %v9762_v10, %v10063_v30  ;;  %v10074_v16 = vadd.f32 %v7991_v12, %v4822_v19  ;;  %v4824_v49 = vadd.f32 %v4823_v3, %v9751_v17  ;;  %v4967_v37 = vmul.f32 %v7937_v2, %v9804_v9  ;;  %v7686_v12 = vld [vmem:[#allocation14 + $0x1a0] ss:$8 sps:$4 sm:$0xff]   ;;  %p8204_p3 = scmp.ne.s32.totalorder %s10353_s28, %s8203_s30  ;;  %p8211_p4 = scmp.lt.s32.totalorder %s8209_s25, %s8203_s30 }
 0x78b   : > { %v7941_v48 = vpop.eup %7940  ;;  %v5031_v56 = vpack.c.bf16 %v5009_v45, %v5007_v28  ;;  %v5030_v34 = vpack.c.bf16 %v5008_v22, %v5006_v52  ;;  %v4966_v19 = vmul.f32 %v7939_v1, %v9807_v21 }
 0x78c   : > { %10549 = vst [vmem:[#allocation50_spill] sm:$0xff] %v10074_v16  ;;  %7952 = vtanh.f32 %v4900_v39  ;;  %v4901_v38 = vmul.f32 %v9755_v33, %v10074_v16  ;;  %v10081_v25 = vadd.f32 %v7992_v4, %v4824_v49  ;;  %v4968_v13 = vmul.f32 %v7941_v48, %v9807_v21  ;;  %v7688_v49 = vld [vmem:[#allocation14 + $0x1a4] ss:$8 sps:$4 sm:$0xff]   ;;  %v10096_v48 = vld [vmem:[#allocation14 + $0xa0] ss:$8 sps:$4 sm:$0xff]   ;;  %p8205_p8 = pnand %p8204_p3, %p10582_p0  ;;  %p8212_p6 = por %p8211_p4, %p8210_p7 }
 0x78d   : > { %v7943_v30 = vpop.eup %7942  ;;  %7954 = vtanh.f32 %v4899_v23  ;;  %5314 = vmatprep.mubr.bf16.mxu1 %v5031_v56  ;;  %5716 = vmatprep.mubr.bf16.mxu0 %v5031_v56  ;;  %v5011_v33 = vadd.f32 %v9818_v47, %v4967_v37  ;;  %v5010_v52 = vadd.f32 %v9825_v55, %v4966_v19 }
 0x78e   : > { %10550 = vst [vmem:[#allocation51_spill] sm:$0xff] %v10081_v25  ;;  %7956 = vtanh.f32 %v4901_v38  ;;  %v4902_v17 = vmul.f32 %v9762_v10, %v10081_v25  ;;  %5315 = vmatmul.mubr.bf16.gmra.mxu1 %v5030_v34  ;;  %5717 = vmatmul.mubr.bf16.gmra.mxu0 %v5030_v34  ;;  %v4969_v22 = vmul.f32 %v7943_v30, %v9804_v9  ;;  %p8206_p9 = pneg %p8205_p8 }
 0x78f   : > { %v5012_v3 = vadd.f32 %v9825_v55, %v4968_v13  ;;  %6026 = vmatprep.subr.bf16.mxu1 %v7688_v49 }
 0x790   : > { %7958 = vtanh.f32 %v4902_v17  ;;  %v5013_v2 = vadd.f32 %v9818_v47, %v4969_v22  ;;  %v10101_v17 = vld [vmem:[#allocation14 + $0xa4] ss:$8 sps:$4 sm:$0xff]   ;;  %6027 = vmatpush2.bf16.msra.mxu1 %v7686_v12  ;;  %p8213_p2 = pnand %p8212_p6, %p8206_p9 }
 0x791   : > { %v7945_v23 = vpop.eup %7944  ;;  %v5032_v10 = vpack.c.bf16 %v5012_v3, %v5010_v52  ;;  %6299 = vmatprep.subr.bf16.mxu0 %v10101_v17 }
 0x792   : > { %v7947_v28 = vpop.eup %7946  ;;  %v5033_v45 = vpack.c.bf16 %v5013_v2, %v5011_v33  ;;  %v4971_v34 = vmul.f32 %v7945_v23, %v9804_v9  ;;  %6300 = vmatpush2.bf16.msra.mxu0 %v10096_v48 }
 0x793   : > { %v7949_v39 = vpop.eup %7948  ;;  %v4970_v13 = vmul.f32 %v7947_v28, %v9807_v21 }
 0x794   : > { %5324 = vmatprep.mubr.bf16.mxu1 %v5033_v45  ;;  %5726 = vmatprep.mubr.bf16.mxu0 %v5033_v45  ;;  %v4972_v1 = vmul.f32 %v7949_v39, %v9807_v21  ;;  %v5015_v56 = vadd.f32 %v9818_v47, %v4971_v34  ;;  %v7692_v39 = vld [vmem:[#allocation14 + $0x190] ss:$8 sps:$4 sm:$0xff]  }
 0x795   : > { %v5014_v2 = vadd.f32 %v9825_v55, %v4970_v13  ;;  %v10108_v34 = vld [vmem:[#allocation14 + $0x90] ss:$8 sps:$4 sm:$0xff]  }
 0x796   : > { %v7951_v30 = vpop.eup %7950  ;;  %5325 = vmatmul.mubr.bf16.gmra.mxu1 %v5032_v10  ;;  %5727 = vmatmul.mubr.bf16.gmra.mxu0 %v5032_v10  ;;  %v5016_v4 = vadd.f32 %v9825_v55, %v4972_v1  ;;  %v7694_v10 = vld [vmem:[#allocation14 + $0x194] ss:$8 sps:$4 sm:$0xff]  }
 0x797   : > { %v4973_v37 = vmul.f32 %v7951_v30, %v9804_v9  ;;  %6028 = vmatprep.subr.bf16.mxu1 %v7694_v10 }
 0x798   : > { %v5034_v23 = vpack.c.bf16 %v5016_v4, %v5014_v2  ;;  %6029 = vmatpush2.bf16.msra.mxu1 %v7692_v39  ;;  %v7700_v4 = vld [vmem:[#allocation14 + $0x184] ss:$8 sps:$4 sm:$0xff]  }
 0x799   : > { %v5017_v38 = vadd.f32 %v9818_v47, %v4973_v37  ;;  %v7953_v22 = vpop.eup %7952  ;;  %v10112_v37 = vld [vmem:[#allocation14 + $0x94] ss:$8 sps:$4 sm:$0xff]   ;;  %6030 = vmatprep.subr.bf16.mxu1 %v7700_v4 }
 0x79a   : > { %v7955_v19 = vpop.eup %7954  ;;  %v4975_v28 = vmul.f32 %v7953_v22, %v9804_v9  ;;  %6301 = vmatprep.subr.bf16.mxu0 %v10112_v37  ;;  %v10120_v22 = vld [vmem:[#allocation14 + $0x80] ss:$8 sps:$4 sm:$0xff]  }
 0x79b   : > { %v5035_v33 = vpack.c.bf16 %v5017_v38, %v5015_v56  ;;  %v7957_v3 = vpop.eup %7956  ;;  %v4974_v30 = vmul.f32 %v7955_v19, %v9807_v21  ;;  %6302 = vmatpush2.bf16.msra.mxu0 %v10108_v34  ;;  %v7698_v38 = vld [vmem:[#allocation14 + $0x180] ss:$8 sps:$4 sm:$0xff]   ;;  %v6864_v19 = vld [vmem:[%s10411_s12 + $0x2] sm:$0x3] }
 0x79c   : > { %v4976_v45 = vmul.f32 %v7957_v3, %v9807_v21  ;;  %v5019_v13 = vadd.f32 %v9818_v47, %v4975_v28  ;;  %6031 = vmatpush2.bf16.msra.mxu1 %v7698_v38 }
 0x79d   : > { %5736 = vmatprep.mubr.bf16.mxu0 %v5035_v33  ;;  %5334 = vmatprep.mubr.bf16.mxu1 %v5035_v33  ;;  %v7959_v52 = vpop.eup %7958 }
 0x79e   : > { %5737 = vmatmul.mubr.bf16.gmra.mxu0 %v5034_v23  ;;  %v4977_v1 = vmul.f32 %v7959_v52, %v9804_v9  ;;  %5335 = vmatmul.mubr.bf16.gmra.mxu1 %v5034_v23  ;;  %v5020_v49 = vadd.f32 %v9825_v55, %v4976_v45  ;;  %v5018_v9 = vadd.f32 %v9825_v55, %v4974_v30  ;;  %v5070_v55 = vld [vmem:[%s10411_s12] sm:$0x3] }
 0x79f   : > { %7160 = vmatprep.subr.bf16.mxu1 %v9738_v60  ;;  %v10134_v3 = vrot.slane %v5070_v55, %v10521_v27  ;;  %v10137_v23 = vrot.slane %v6864_v19, %v10521_v27  ;;  %v10140_v28 = vrot.slane %v5070_v55, %v10520_v5  ;;  %v10143_v60 = vrot.slane %v6864_v19, %v10520_v5 }
 0x7a0   : > { %v5021_v12 = vadd.f32 %v9818_v47, %v4977_v1  ;;  %v5036_v21 = vpack.c.bf16 %v5020_v49, %v5018_v9  ;;  %v10122_v47 = vld [vmem:[#allocation14 + $0x84] ss:$8 sps:$4 sm:$0xff]  }
 0x7a1   : > { %6303 = vmatprep.subr.bf16.mxu0 %v10122_v47 }
 0x7a2   : > { %v5037_v56 = vpack.c.bf16 %v5021_v12, %v5019_v13  ;;  %6304 = vmatpush2.bf16.msra.mxu0 %v10120_v22 }
 0x7a4   : > { %5746 = vmatprep.mubr.bf16.mxu0 %v5037_v56  ;;  %5344 = vmatprep.mubr.bf16.mxu1 %v5037_v56 }
 0x7a6   : > { %5747 = vmatmul.mubr.bf16.gmra.mxu0 %v5036_v21  ;;  %5345 = vmatmul.mubr.bf16.gmra.mxu1 %v5036_v21 }
 0x812   : > { %v5276_v33 = vpop.f32.mrf.mxu1  ;;  %v5678_v2 = vpop.f32.mrf.mxu0 }
 0x813   : > { %v5277_v49 = vadd.f32 %v5276_v33, %v10140_v28  ;;  %v5679_v56 = vadd.f32 %v5678_v2, %v10143_v60 }
 0x814   : > { %v5278_v45 = vpop.f32.mrf.mxu1  ;;  %v5680_v52 = vpop.f32.mrf.mxu0 }
 0x815   : > { %v5279_v1 = vadd.f32 %v5278_v45, %v10134_v3  ;;  %v5681_v30 = vadd.f32 %v5680_v52, %v10137_v23  ;;  %v5355_v35 = vmax.f32 %v5277_v49, 0.0 }
 0x816   : > { %v5280_v39 = vpop.f32.mrf.mxu1  ;;  %v5682_v10 = vpop.f32.mrf.mxu0 }
 0x817   : > { %v5281_v13 = vadd.f32 %v5280_v39, %v10140_v28  ;;  %v5683_v12 = vadd.f32 %v5682_v10, %v10143_v60  ;;  %v5356_v25 = vmax.f32 %v5279_v1, 0.0  ;;  %v5758_v45 = vmax.f32 %v5681_v30, 0.0 }
 0x818   : > { %v5282_v9 = vpop.f32.mrf.mxu1  ;;  %v5684_v21 = vpop.f32.mrf.mxu0  ;;  %v5757_v39 = vmax.f32 %v5679_v56, 0.0 }
 0x819   : > { %v5283_v38 = vadd.f32 %v5282_v9, %v10134_v3  ;;  %v5685_v4 = vadd.f32 %v5684_v21, %v10137_v23  ;;  %v5357_v55 = vmax.f32 %v5281_v13, 0.0  ;;  %v5759_v19 = vmax.f32 %v5683_v12, 0.0 }
 0x81b   : > { %v5358_v16 = vmax.f32 %v5283_v38, 0.0  ;;  %v5760_v52 = vmax.f32 %v5685_v4, 0.0  ;;  %v5387_v14 = vpack.c.bf16 %v5357_v55, %v5355_v35  ;;  %v5789_v33 = vpack.c.bf16 %v5759_v19, %v5757_v39 }
 0x81d   : > { %v5388_v61 = vpack.c.bf16 %v5358_v16, %v5356_v25  ;;  %v5790_v10 = vpack.c.bf16 %v5760_v52, %v5758_v45 }
 0x81f   : > { %6032 = vmatprep.mubr.bf16.mxu1 %v5790_v10  ;;  %6305 = vmatprep.mubr.bf16.mxu0 %v5388_v61 }
 0x820   : > { %v5286_v2 = vpop.f32.mrf.mxu1  ;;  %v5688_v63 = vpop.f32.mrf.mxu0  ;;  %6033 = vmatmul.mubr.bf16.vlgmr.msra.gmra.mxu1 %v5789_v33  ;;  %6306 = vmatmul.mubr.bf16.vlgmr.msra.gmra.mxu0 %v5387_v14 }
 0x821   : > { %7176 = vmatpush1.bf16.msra.mxu1 %v9833_v40  ;;  %v5287_v14 = vadd.f32 %v5286_v2, %v10140_v28  ;;  %v5689_v40 = vadd.f32 %v5688_v63, %v10143_v60 }
 0x822   : > { %v5288_v13 = vpop.f32.mrf.mxu1  ;;  %v5690_v12 = vpop.f32.mrf.mxu0  ;;  %7161 = vmatprep.subr.bf16.mxu1 %v9836_v42 }
 0x823   : > { %v5289_v49 = vadd.f32 %v5288_v13, %v10134_v3  ;;  %v5691_v16 = vadd.f32 %v5690_v12, %v10137_v23  ;;  %v5761_v52 = vmax.f32 %v5689_v40, 0.0 }
 0x824   : > { %v5290_v1 = vpop.f32.mrf.mxu1  ;;  %v5692_v30 = vpop.f32.mrf.mxu0 }
 0x825   : > { %v5291_v35 = vadd.f32 %v5290_v1, %v10140_v28  ;;  %v5693_v61 = vadd.f32 %v5692_v30, %v10143_v60  ;;  %7177 = vmatpush1.bf16.msra.mxu1 %v9843_v43  ;;  %v5360_v4 = vmax.f32 %v5289_v49, 0.0  ;;  %v5762_v55 = vmax.f32 %v5691_v16, 0.0 }
 0x826   : > { %v5292_v25 = vpop.f32.mrf.mxu1  ;;  %v5694_v56 = vpop.f32.mrf.mxu0  ;;  %7162 = vmatprep.subr.bf16.mxu1 %v9850_v6  ;;  %v5359_v43 = vmax.f32 %v5287_v14, 0.0 }
 0x827   : > { %v5293_v42 = vadd.f32 %v5292_v25, %v10134_v3  ;;  %v5695_v9 = vadd.f32 %v5694_v56, %v10137_v23  ;;  %v5361_v21 = vmax.f32 %v5291_v35, 0.0  ;;  %v5763_v38 = vmax.f32 %v5693_v61, 0.0 }
 0x829   : > { %v5362_v19 = vmax.f32 %v5293_v42, 0.0  ;;  %v5764_v45 = vmax.f32 %v5695_v9, 0.0  ;;  %7178 = vmatpush1.bf16.msra.mxu1 %v9863_v50  ;;  %v5389_v10 = vpack.c.bf16 %v5361_v21, %v5359_v43  ;;  %v5791_v6 = vpack.c.bf16 %v5763_v38, %v5761_v52 }
 0x82a   : > { %7163 = vmatprep.subr.bf16.mxu1 %v9872_v20 }
 0x82b   : > { %v5390_v63 = vpack.c.bf16 %v5362_v19, %v5360_v4  ;;  %v5792_v39 = vpack.c.bf16 %v5764_v45, %v5762_v55 }
 0x82d   : > { %6042 = vmatprep.mubr.bf16.mxu1 %v5792_v39  ;;  %6315 = vmatprep.mubr.bf16.mxu0 %v5390_v63 }
 0x82e   : > { %6043 = vmatmul.mubr.bf16.gmra.mxu1 %v5791_v6  ;;  %6316 = vmatmul.mubr.bf16.gmra.mxu0 %v5389_v10 }
 0x82f   : > { %7179 = vmatpush1.bf16.msra.mxu1 %v9883_v46 }
 0x830   : > { %7164 = vmatprep.subr.bf16.mxu1 %v9885_v18 }
 0x831   : > { %v5296_v33 = vpop.f32.mrf.mxu1 }
 0x832   : > { %v5698_v2 = vpop.f32.mrf.mxu0  ;;  %v5297_v18 = vadd.f32 %v5296_v33, %v10140_v28 }
 0x833   : > { %v5298_v13 = vpop.f32.mrf.mxu1  ;;  %7180 = vmatpush1.bf16.msra.mxu1 %v9893_v54  ;;  %v5699_v16 = vadd.f32 %v5698_v2, %v10143_v60 }
 0x834   : > { %v5700_v50 = vpop.f32.mrf.mxu0  ;;  %7165 = vmatprep.subr.bf16.mxu1 %v9896_v57  ;;  %v5299_v1 = vadd.f32 %v5298_v13, %v10134_v3  ;;  %v5363_v21 = vmax.f32 %v5297_v18, 0.0 }
 0x835   : > { %v5300_v20 = vpop.f32.mrf.mxu1  ;;  %v5701_v30 = vadd.f32 %v5700_v50, %v10137_v23  ;;  %v5765_v38 = vmax.f32 %v5699_v16, 0.0 }
 0x836   : > { %v5702_v12 = vpop.f32.mrf.mxu0  ;;  %v5301_v49 = vadd.f32 %v5300_v20, %v10140_v28  ;;  %v5364_v25 = vmax.f32 %v5299_v1, 0.0 }
 0x837   : > { %v5703_v46 = vadd.f32 %v5702_v12, %v10143_v60  ;;  %v5302_v35 = vpop.f32.mrf.mxu1  ;;  %7181 = vmatpush1.bf16.msra.mxu1 %v9911_v36  ;;  %v5766_v56 = vmax.f32 %v5701_v30, 0.0 }
 0x838   : > { %v5704_v61 = vpop.f32.mrf.mxu0  ;;  %v5303_v54 = vadd.f32 %v5302_v35, %v10134_v3  ;;  %7166 = vmatprep.subr.bf16.mxu1 %v9914_v0  ;;  %v5365_v14 = vmax.f32 %v5301_v49, 0.0 }
 0x839   : > { %v5705_v57 = vadd.f32 %v5704_v61, %v10137_v23  ;;  %v5767_v40 = vmax.f32 %v5703_v46, 0.0 }
 0x83a   : > { %v5366_v42 = vmax.f32 %v5303_v54, 0.0  ;;  %v5391_v36 = vpack.c.bf16 %v5365_v14, %v5363_v21 }
 0x83b   : > { %v5768_v9 = vmax.f32 %v5705_v57, 0.0  ;;  %7182 = vmatpush1.bf16.msra.mxu1 %v9927_v44  ;;  %v5793_v19 = vpack.c.bf16 %v5767_v40, %v5765_v38 }
 0x83c   : > { %v5392_v4 = vpack.c.bf16 %v5366_v42, %v5364_v25  ;;  %7167 = vmatprep.subr.bf16.mxu1 %v9931_v58 }
 0x83d   : > { %v5794_v55 = vpack.c.bf16 %v5768_v9, %v5766_v56 }
 0x83e   : > { %6325 = vmatprep.mubr.bf16.mxu0 %v5392_v4 }
 0x83f   : > { %6052 = vmatprep.mubr.bf16.mxu1 %v5794_v55  ;;  %6326 = vmatmul.mubr.bf16.gmra.mxu0 %v5391_v36 }
 0x840   : > { %6053 = vmatmul.mubr.bf16.gmra.mxu1 %v5793_v19 }
 0x841   : > { %v5306_v0 = vpop.f32.mrf.mxu1  ;;  %v5708_v45 = vpop.f32.mrf.mxu0  ;;  %7183 = vmatpush1.bf16.msra.mxu1 %v9943_v26 }
 0x842   : > { %7168 = vmatprep.subr.bf16.mxu1 %v9946_v8  ;;  %v5307_v26 = vadd.f32 %v5306_v0, %v10140_v28  ;;  %v5709_v8 = vadd.f32 %v5708_v45, %v10143_v60 }
 0x843   : > { %v5308_v43 = vpop.f32.mrf.mxu1  ;;  %v5710_v52 = vpop.f32.mrf.mxu0 }
 0x844   : > { %v5309_v58 = vadd.f32 %v5308_v43, %v10134_v3  ;;  %v5711_v39 = vadd.f32 %v5710_v52, %v10137_v23  ;;  %v5769_v46 = vmax.f32 %v5709_v8, 0.0 }
 0x845   : > { %v5310_v63 = vpop.f32.mrf.mxu1  ;;  %v5712_v44 = vpop.f32.mrf.mxu0  ;;  %7184 = vmatpush2.bf16.msra.mxu1 %v9961_v7 }
 0x846   : > { %v5311_v10 = vadd.f32 %v5310_v63, %v10140_v28  ;;  %v5713_v6 = vadd.f32 %v5712_v44, %v10143_v60  ;;  %7169 = vmatprep.subr.bf16.mxu1 %v9964_v51  ;;  %v5368_v12 = vmax.f32 %v5309_v58, 0.0  ;;  %v5770_v1 = vmax.f32 %v5711_v39, 0.0 }
 0x847   : > { %v5312_v33 = vpop.f32.mrf.mxu1  ;;  %v5714_v2 = vpop.f32.mrf.mxu0  ;;  %v5367_v51 = vmax.f32 %v5307_v26, 0.0 }
 0x848   : > { %v5313_v13 = vadd.f32 %v5312_v33, %v10134_v3  ;;  %v5715_v7 = vadd.f32 %v5714_v2, %v10137_v23  ;;  %v5369_v50 = vmax.f32 %v5311_v10, 0.0  ;;  %v5771_v20 = vmax.f32 %v5713_v6, 0.0 }
 0x849   : > { %7185 = vmatpush2.bf16.msra.mxu1 %v9979_v53 }
 0x84a   : > { %v5370_v30 = vmax.f32 %v5313_v13, 0.0  ;;  %v5772_v49 = vmax.f32 %v5715_v7, 0.0  ;;  %7170 = vmatprep.subr.bf16.mxu1 %v9985_v24  ;;  %v5393_v35 = vpack.c.bf16 %v5369_v50, %v5367_v51  ;;  %v5795_v61 = vpack.c.bf16 %v5771_v20, %v5769_v46 }
 0x84c   : > { %v5394_v18 = vpack.c.bf16 %v5370_v30, %v5368_v12  ;;  %v5796_v16 = vpack.c.bf16 %v5772_v49, %v5770_v1 }
 0x84d   : > { %7186 = vmatpush2.bf16.msra.mxu1 %v10002_v11 }
 0x84e   : > { %6062 = vmatprep.mubr.bf16.mxu1 %v5796_v16  ;;  %6335 = vmatprep.mubr.bf16.mxu0 %v5394_v18  ;;  %v5316_v54 = vpop.f32.mrf.mxu1  ;;  %v5718_v57 = vpop.f32.mrf.mxu0 }
 0x84f   : > { %6063 = vmatmul.mubr.bf16.gmra.mxu1 %v5795_v61  ;;  %6336 = vmatmul.mubr.bf16.gmra.mxu0 %v5393_v35  ;;  %v5317_v9 = vadd.f32 %v5316_v54, %v10140_v28 }
 0x850   : > { %7171 = vmatprep.subr.bf16.mxu1 %v10014_v29  ;;  %v5318_v53 = vpop.f32.mrf.mxu1  ;;  %v5720_v14 = vpop.f32.mrf.mxu0  ;;  %v5719_v29 = vadd.f32 %v5718_v57, %v10143_v60 }
 0x851   : > { %7187 = vmatpush2.bf16.msra.mxu1 %v10023_v15  ;;  %v5319_v25 = vadd.f32 %v5318_v53, %v10134_v3  ;;  %v5721_v11 = vadd.f32 %v5720_v14, %v10137_v23  ;;  %v5371_v63 = vmax.f32 %v5317_v9, 0.0 }
 0x852   : > { %7172 = vmatprep.subr.bf16.mxu1 %v10025_v41  ;;  %v5320_v24 = vpop.f32.mrf.mxu1  ;;  %v5722_v40 = vpop.f32.mrf.mxu0  ;;  %v5773_v44 = vmax.f32 %v5719_v29, 0.0 }
 0x853   : > { %v5321_v56 = vadd.f32 %v5320_v24, %v10140_v28  ;;  %v5723_v42 = vadd.f32 %v5722_v40, %v10143_v60  ;;  %v5372_v0 = vmax.f32 %v5319_v25, 0.0  ;;  %v5774_v45 = vmax.f32 %v5721_v11, 0.0 }
 0x854   : > { %v5322_v21 = vpop.f32.mrf.mxu1  ;;  %v5724_v38 = vpop.f32.mrf.mxu0 }
 0x855   : > { %7188 = vmatpush2.bf16.msra.mxu1 %v10041_v31  ;;  %v5323_v15 = vadd.f32 %v5322_v21, %v10134_v3  ;;  %v5725_v41 = vadd.f32 %v5724_v38, %v10137_v23  ;;  %v5373_v4 = vmax.f32 %v5321_v56, 0.0  ;;  %v5775_v55 = vmax.f32 %v5723_v42, 0.0 }
 0x856   : > { %7173 = vmatprep.subr.bf16.mxu1 %v10101_v17  ;;  %v5326_v36 = vpop.f32.mrf.mxu1  ;;  %v5728_v19 = vpop.f32.mrf.mxu0 }
 0x857   : > { %v5374_v43 = vmax.f32 %v5323_v15, 0.0  ;;  %v5776_v52 = vmax.f32 %v5725_v41, 0.0  ;;  %v5395_v6 = vpack.c.bf16 %v5373_v4, %v5371_v63  ;;  %v5797_v17 = vpack.c.bf16 %v5775_v55, %v5773_v44 }
 0x858   : > { %v5328_v58 = vpop.f32.mrf.mxu1  ;;  %v5730_v39 = vpop.f32.mrf.mxu0  ;;  %v5729_v50 = vadd.f32 %v5728_v19, %v10143_v60 }
 0x859   : > { %7189 = vmatpush2.bf16.msra.mxu1 %v10096_v48  ;;  %v5396_v31 = vpack.c.bf16 %v5374_v43, %v5372_v0  ;;  %v5798_v10 = vpack.c.bf16 %v5776_v52, %v5774_v45  ;;  %v5329_v26 = vadd.f32 %v5328_v58, %v10134_v3  ;;  %v5731_v2 = vadd.f32 %v5730_v39, %v10137_v23 }
 0x85a   : > { %7174 = vmatprep.subr.bf16.mxu1 %v10112_v37  ;;  %v5330_v8 = vpop.f32.mrf.mxu1  ;;  %v5732_v33 = vpop.f32.mrf.mxu0  ;;  %v5327_v48 = vadd.f32 %v5326_v36, %v10140_v28  ;;  %v5777_v57 = vmax.f32 %v5729_v50, 0.0 }
 0x85b   : > { %v5331_v13 = vadd.f32 %v5330_v8, %v10140_v28  ;;  %v5733_v7 = vadd.f32 %v5732_v33, %v10143_v60  ;;  %6072 = vmatprep.mubr.bf16.mxu1 %v5798_v10  ;;  %6345 = vmatprep.mubr.bf16.mxu0 %v5396_v31  ;;  %v5376_v18 = vmax.f32 %v5329_v26, 0.0  ;;  %v5778_v16 = vmax.f32 %v5731_v2, 0.0 }
 0x85c   : > { %v5332_v20 = vpop.f32.mrf.mxu1  ;;  %v5734_v37 = vpop.f32.mrf.mxu0  ;;  %6073 = vmatmul.mubr.bf16.gmra.mxu1 %v5797_v17  ;;  %6346 = vmatmul.mubr.bf16.gmra.mxu0 %v5395_v6  ;;  %v5375_v54 = vmax.f32 %v5327_v48, 0.0 }
 0x85d   : > { %v5333_v12 = vadd.f32 %v5332_v20, %v10134_v3  ;;  %v5735_v1 = vadd.f32 %v5734_v37, %v10137_v23  ;;  %7190 = vmatpush2.bf16.msra.mxu1 %v10108_v34  ;;  %v5377_v30 = vmax.f32 %v5331_v13, 0.0  ;;  %v5779_v49 = vmax.f32 %v5733_v7, 0.0 }
 0x85e   : > { %v5738_v51 = vpop.f32.mrf.mxu0  ;;  %v5336_v46 = vpop.f32.mrf.mxu1  ;;  %7175 = vmatprep.subr.bf16.mxu1 %v10122_v47 }
 0x85f   : > { %v5378_v35 = vmax.f32 %v5333_v12, 0.0  ;;  %v5780_v61 = vmax.f32 %v5735_v1, 0.0  ;;  %v5397_v25 = vpack.c.bf16 %v5377_v30, %v5375_v54  ;;  %v5799_v34 = vpack.c.bf16 %v5779_v49, %v5777_v57 }
 0x860   : > { %v5740_v53 = vpop.f32.mrf.mxu0  ;;  %v5338_v14 = vpop.f32.mrf.mxu1  ;;  %v5739_v9 = vadd.f32 %v5738_v51, %v10143_v60  ;;  %v5337_v1 = vadd.f32 %v5336_v46, %v10140_v28 }
 0x861   : > { %v5398_v24 = vpack.c.bf16 %v5378_v35, %v5376_v18  ;;  %v5800_v40 = vpack.c.bf16 %v5780_v61, %v5778_v16  ;;  %7191 = vmatpush2.bf16.msra.mxu1 %v10120_v22  ;;  %v5741_v42 = vadd.f32 %v5740_v53, %v10137_v23  ;;  %v5339_v17 = vadd.f32 %v5338_v14, %v10134_v3 }
 0x862   : > { %v5742_v11 = vpop.f32.mrf.mxu0  ;;  %v5340_v56 = vpop.f32.mrf.mxu1  ;;  %v5781_v36 = vmax.f32 %v5739_v9, 0.0  ;;  %v5379_v51 = vmax.f32 %v5337_v1, 0.0 }
 0x863   : > { %v5743_v47 = vadd.f32 %v5742_v11, %v10143_v60  ;;  %6082 = vmatprep.mubr.bf16.mxu1 %v5800_v40  ;;  %6355 = vmatprep.mubr.bf16.mxu0 %v5398_v24  ;;  %v5782_v4 = vmax.f32 %v5741_v42, 0.0  ;;  %v5380_v50 = vmax.f32 %v5339_v17, 0.0  ;;  %v5341_v37 = vadd.f32 %v5340_v56, %v10140_v28 }
 0x864   : > { %v5744_v29 = vpop.f32.mrf.mxu0  ;;  %6083 = vmatmul.mubr.bf16.gmra.mxu1 %v5799_v34  ;;  %6356 = vmatmul.mubr.bf16.gmra.mxu0 %v5397_v25  ;;  %v5342_v21 = vpop.f32.mrf.mxu1 }
 0x865   : > { %v5745_v38 = vadd.f32 %v5744_v29, %v10137_v23  ;;  %v5783_v15 = vmax.f32 %v5743_v47, 0.0  ;;  %v5343_v58 = vadd.f32 %v5342_v21, %v10134_v3  ;;  %v5381_v30 = vmax.f32 %v5341_v37, 0.0 }
 0x866   : > { %v5748_v22 = vpop.f32.mrf.mxu0  ;;  %v5346_v41 = vpop.f32.mrf.mxu1 }
 0x867   : > { %v5784_v55 = vmax.f32 %v5745_v38, 0.0  ;;  %v5801_v43 = vpack.c.bf16 %v5783_v15, %v5781_v36  ;;  %v5749_v39 = vadd.f32 %v5748_v22, %v10143_v60  ;;  %v5382_v2 = vmax.f32 %v5343_v58, 0.0 }
 0x868   : > { %v5750_v19 = vpop.f32.mrf.mxu0  ;;  %v5348_v0 = vpop.f32.mrf.mxu1  ;;  %v5399_v16 = vpack.c.bf16 %v5381_v30, %v5379_v51  ;;  %v5347_v54 = vadd.f32 %v5346_v41, %v10140_v28  ;;  %v10557_v30 = vld [vmem:[#allocation32_spill] sm:$0xff] }
 0x869   : > { %v5802_v45 = vpack.c.bf16 %v5784_v55, %v5782_v4  ;;  %v5751_v63 = vadd.f32 %v5750_v19, %v10137_v23  ;;  %v5785_v13 = vmax.f32 %v5749_v39, 0.0  ;;  %v5400_v12 = vpack.c.bf16 %v5382_v2, %v5380_v50 }
 0x86a   : > { %v5752_v52 = vpop.f32.mrf.mxu0  ;;  %v5350_v10 = vpop.f32.mrf.mxu1  ;;  %v5383_v53 = vmax.f32 %v5347_v54, 0.0 }
 0x86b   : > { %v5753_v44 = vadd.f32 %v5752_v52, %v10143_v60  ;;  %6092 = vmatprep.mubr.bf16.mxu1 %v5802_v45  ;;  %v5786_v8 = vmax.f32 %v5751_v63, 0.0  ;;  %v5351_v35 = vadd.f32 %v5350_v10, %v10140_v28  ;;  %v10553_v52 = vld [vmem:[#allocation28_spill] sm:$0xff] }
 0x86c   : > { %v5754_v31 = vpop.f32.mrf.mxu0  ;;  %6093 = vmatmul.mubr.bf16.gmra.mxu1 %v5801_v43  ;;  %v5352_v7 = vpop.f32.mrf.mxu1 }
 0x86d   : > { %v5755_v6 = vadd.f32 %v5754_v31, %v10137_v23  ;;  %v5787_v26 = vmax.f32 %v5753_v44, 0.0  ;;  %v5353_v60 = vadd.f32 %v5352_v7, %v10134_v3  ;;  %v5349_v23 = vadd.f32 %v5348_v0, %v10134_v3  ;;  %v6418_v3 = vld [vmem:[%s10551_s22] sm:$0x3]  ;;  %v10554_v31 = vld [vmem:[#allocation31_spill] sm:$0xff] }
 0x86e   : > { %v5385_v57 = vmax.f32 %v5351_v35, 0.0  ;;  %v10244_v25 = vrot.slane %v6418_v3, %v10520_v5  ;;  %v10248_v42 = vrot.slane %v6418_v3, %v10521_v27 }
 0x86f   : > { %v5788_v33 = vmax.f32 %v5755_v6, 0.0  ;;  %v5803_v20 = vpack.c.bf16 %v5787_v26, %v5785_v13  ;;  %v5386_v49 = vmax.f32 %v5353_v60, 0.0  ;;  %v5384_v18 = vmax.f32 %v5349_v23, 0.0 }
 0x870   : > { %v5401_v14 = vpack.c.bf16 %v5385_v57, %v5383_v53 }
 0x871   : > { %v5804_v48 = vpack.c.bf16 %v5788_v33, %v5786_v8  ;;  %v5402_v61 = vpack.c.bf16 %v5386_v49, %v5384_v18  ;;  %v10555_v33 = vld [vmem:[#allocation29_spill] sm:$0xff] }
 0x873   : > { %6102 = vmatprep.mubr.bf16.mxu1 %v5804_v48  ;;  %v10556_v48 = vld [vmem:[#allocation27_spill] sm:$0xff] }
 0x874   : > { %6103 = vmatmul.mubr.bf16.gmra.mxu1 %v5803_v20 }
 0x875   : > { %6365 = vmatprep.mubr.bf16.mxu1 %v5400_v12 }
 0x87c   : > { %6366 = vmatmul.mubr.bf16.vlgmr.msra.gmra.mxu1 %v5399_v16 }
 0x87d   : > { %6375 = vmatprep.mubr.bf16.mxu1 %v5402_v61  ;;  %v10558_v61 = vld [vmem:[#allocation30_spill] sm:$0xff] }
 0x884   : > { %6376 = vmatmul.mubr.bf16.gmra.mxu1 %v5401_v14 }
 0x8e0   : > { %v6034_v46 = vpop.f32.mrf.mxu1  ;;  %v6307_v24 = vpop.f32.mrf.mxu0 }
 0x8e1   : > { %v6308_v40 = vadd.f32 %v6307_v24, %v6034_v46  ;;  %v10559_v46 = vld [vmem:[#allocation23_spill] sm:$0xff] }
 0x8e2   : > { %v6036_v34 = vpop.f32.mrf.mxu1  ;;  %v6309_v11 = vpop.f32.mrf.mxu0 }
 0x8e3   : > { %v6386_v28 = vadd.f32 %v6308_v40, %v9758_v62  ;;  %v6310_v56 = vadd.f32 %v6309_v11, %v6036_v34  ;;  %v10560_v11 = vld [vmem:[#allocation25_spill] sm:$0xff] }
 0x8e4   : > { %v6038_v47 = vpop.f32.mrf.mxu1  ;;  %v6311_v9 = vpop.f32.mrf.mxu0 }
 0x8e5   : > { %v6430_v29 = vadd.f32 %v10244_v25, %v6386_v28  ;;  %v6387_v21 = vadd.f32 %v6310_v56, %v9765_v32  ;;  %v6312_v38 = vadd.f32 %v6311_v9, %v6038_v47  ;;  %v10552_v32 = vld [vmem:[#allocation26_spill] sm:$0xff] }
 0x8e6   : > { %v6040_v15 = vpop.f32.mrf.mxu1  ;;  %v6313_v22 = vpop.f32.mrf.mxu0 }
 0x8e7   : > { %6462 = vst [vmem:[%s10254_s3] sm:$0xff] %v6430_v29  ;;  %v6431_v5 = vadd.f32 %v10248_v42, %v6387_v21  ;;  %v6388_v27 = vadd.f32 %v6312_v38, %v9773_v59  ;;  %v6314_v62 = vadd.f32 %v6313_v22, %v6040_v15  ;;  %v10561_v15 = vld [vmem:[#allocation24_spill] sm:$0xff] }
 0x8e9   : > { %6463 = vst [vmem:[%s10254_s3 + $0x8] sm:$0xff] %v6431_v5  ;;  %v6432_v41 = vadd.f32 %v10244_v25, %v6388_v27  ;;  %v6389_v4 = vadd.f32 %v6314_v62, %v10552_v32  ;;  %v10562_v32 = vld [vmem:[#allocation33_spill] sm:$0xff] }
 0x8eb   : > { %6464 = vst [vmem:[%s10254_s3 + $0x10] sm:$0xff] %v6432_v41  ;;  %v6433_v55 = vadd.f32 %v10248_v42, %v6389_v4 }
 0x8ed   : > { %6465 = vst [vmem:[%s10254_s3 + $0x18] sm:$0xff] %v6433_v55 }
 0x8ee   : > { %v6044_v36 = vpop.f32.mrf.mxu1  ;;  %v6317_v19 = vpop.f32.mrf.mxu0 }
 0x8ef   : > { %v6318_v0 = vadd.f32 %v6317_v19, %v6044_v36 }
 0x8f0   : > { %v6046_v45 = vpop.f32.mrf.mxu1  ;;  %v6319_v43 = vpop.f32.mrf.mxu0 }
 0x8f1   : > { %v6390_v63 = vadd.f32 %v6318_v0, %v10553_v52  ;;  %v6320_v59 = vadd.f32 %v6319_v43, %v6046_v45  ;;  %v10563_v45 = vld [vmem:[#allocation34_spill] sm:$0xff] }
 0x8f2   : > { %v6048_v44 = vpop.f32.mrf.mxu1  ;;  %v6321_v58 = vpop.f32.mrf.mxu0 }
 0x8f3   : > { %v6434_v39 = vadd.f32 %v10244_v25, %v6390_v63  ;;  %v6391_v10 = vadd.f32 %v6320_v59, %v10554_v31  ;;  %v6322_v6 = vadd.f32 %v6321_v58, %v6048_v44  ;;  %v10564_v59 = vld [vmem:[#allocation35_spill] sm:$0xff] }
 0x8f4   : > { %v6050_v17 = vpop.f32.mrf.mxu1  ;;  %v6323_v26 = vpop.f32.mrf.mxu0 }
 0x8f5   : > { %6466 = vst [vmem:[%s10254_s3 + $0x20] sm:$0xff] %v6434_v39  ;;  %v6435_v8 = vadd.f32 %v10248_v42, %v6391_v10  ;;  %v6392_v2 = vadd.f32 %v6322_v6, %v10555_v33  ;;  %v6324_v13 = vadd.f32 %v6323_v26, %v6050_v17  ;;  %v10565_v26 = vld [vmem:[#allocation36_spill] sm:$0xff] }
 0x8f7   : > { %6467 = vst [vmem:[%s10254_s3 + $0x28] sm:$0xff] %v6435_v8  ;;  %v6436_v7 = vadd.f32 %v10244_v25, %v6392_v2  ;;  %v6393_v50 = vadd.f32 %v6324_v13, %v10556_v48  ;;  %v10566_v48 = vld [vmem:[#allocation37_spill] sm:$0xff] }
 0x8f9   : > { %6468 = vst [vmem:[%s10254_s3 + $0x30] sm:$0xff] %v6436_v7  ;;  %v6437_v20 = vadd.f32 %v10248_v42, %v6393_v50 }
 0x8fb   : > { %6469 = vst [vmem:[%s10254_s3 + $0x38] sm:$0xff] %v6437_v20 }
 0x8ff   : > { %v6327_v12 = vpop.f32.mrf.mxu0 }
 0x900   : > { %v6054_v37 = vpop.f32.mrf.mxu1 }
 0x901   : > { %v6328_v60 = vadd.f32 %v6327_v12, %v6054_v37  ;;  %v6329_v23 = vpop.f32.mrf.mxu0 }
 0x902   : > { %v6056_v1 = vpop.f32.mrf.mxu1 }
 0x903   : > { %v6394_v49 = vadd.f32 %v6328_v60, %v10557_v30  ;;  %v6330_v51 = vadd.f32 %v6329_v23, %v6056_v1  ;;  %v6331_v16 = vpop.f32.mrf.mxu0  ;;  %v10567_v1 = vld [vmem:[#allocation38_spill] sm:$0xff] }
 0x904   : > { %v6058_v18 = vpop.f32.mrf.mxu1 }
 0x905   : > { %v6438_v35 = vadd.f32 %v10244_v25, %v6394_v49  ;;  %v6395_v54 = vadd.f32 %v6330_v51, %v10558_v61  ;;  %v6332_v57 = vadd.f32 %v6331_v16, %v6058_v18  ;;  %v6333_v14 = vpop.f32.mrf.mxu0  ;;  %v10568_v16 = vld [vmem:[#allocation39_spill] sm:$0xff] }
 0x906   : > { %v6060_v53 = vpop.f32.mrf.mxu1 }
 0x907   : > { %6470 = vst [vmem:[%s10254_s3 + $0x40] sm:$0xff] %v6438_v35  ;;  %v6439_v3 = vadd.f32 %v10248_v42, %v6395_v54  ;;  %v6396_v24 = vadd.f32 %v6332_v57, %v10559_v46  ;;  %v6334_v40 = vadd.f32 %v6333_v14, %v6060_v53  ;;  %v10569_v14 = vld [vmem:[#allocation40_spill] sm:$0xff] }
 0x909   : > { %6471 = vst [vmem:[%s10254_s3 + $0x48] sm:$0xff] %v6439_v3  ;;  %v6440_v34 = vadd.f32 %v10244_v25, %v6396_v24  ;;  %v6397_v28 = vadd.f32 %v6334_v40, %v10560_v11  ;;  %v10570_v11 = vld [vmem:[#allocation41_spill] sm:$0xff] }
 0x90b   : > { %6472 = vst [vmem:[%s10254_s3 + $0x50] sm:$0xff] %v6440_v34  ;;  %v6441_v56 = vadd.f32 %v10248_v42, %v6397_v28 }
 0x90d   : > { %6473 = vst [vmem:[%s10254_s3 + $0x58] sm:$0xff] %v6441_v56 }
 0x90f   : > { %v6064_v47 = vpop.f32.mrf.mxu1  ;;  %v6337_v9 = vpop.f32.mrf.mxu0 }
 0x910   : > { %v6338_v29 = vadd.f32 %v6337_v9, %v6064_v47 }
 0x911   : > { %v6066_v21 = vpop.f32.mrf.mxu1  ;;  %v6339_v38 = vpop.f32.mrf.mxu0 }
 0x912   : > { %v6398_v22 = vadd.f32 %v6338_v29, %v10561_v15  ;;  %v6340_v5 = vadd.f32 %v6339_v38, %v6066_v21  ;;  %v10571_v21 = vld [vmem:[#allocation42_spill] sm:$0xff] }
 0x913   : > { %v6068_v27 = vpop.f32.mrf.mxu1  ;;  %v6341_v62 = vpop.f32.mrf.mxu0 }
 0x914   : > { %v6442_v41 = vadd.f32 %v10244_v25, %v6398_v22  ;;  %v6399_v4 = vadd.f32 %v6340_v5, %v10562_v32  ;;  %v6342_v55 = vadd.f32 %v6341_v62, %v6068_v27  ;;  %v10572_v27 = vld [vmem:[#allocation43_spill] sm:$0xff] }
 0x915   : > { %v6070_v36 = vpop.f32.mrf.mxu1  ;;  %v6343_v19 = vpop.f32.mrf.mxu0 }
 0x916   : > { %6474 = vst [vmem:[%s10254_s3 + $0x60] sm:$0xff] %v6442_v41  ;;  %v6443_v0 = vadd.f32 %v10248_v42, %v6399_v4  ;;  %v6400_v43 = vadd.f32 %v6342_v55, %v10563_v45  ;;  %v6344_v52 = vadd.f32 %v6343_v19, %v6070_v36 }
 0x918   : > { %6475 = vst [vmem:[%s10254_s3 + $0x68] sm:$0xff] %v6443_v0  ;;  %v6444_v63 = vadd.f32 %v10244_v25, %v6400_v43  ;;  %v6401_v44 = vadd.f32 %v6344_v52, %v10564_v59  ;;  %v10573_v59 = vld [vmem:[#allocation44_spill] sm:$0xff] }
 0x91a   : > { %6476 = vst [vmem:[%s10254_s3 + $0x70] sm:$0xff] %v6444_v63  ;;  %v6445_v58 = vadd.f32 %v10248_v42, %v6401_v44 }
 0x91c   : > { %6477 = vst [vmem:[%s10254_s3 + $0x78] sm:$0xff] %v6445_v58  ;;  %v6074_v39 = vpop.f32.mrf.mxu1  ;;  %v6347_v31 = vpop.f32.mrf.mxu0 }
 0x91d   : > { %v6348_v10 = vadd.f32 %v6347_v31, %v6074_v39 }
 0x91e   : > { %v6076_v6 = vpop.f32.mrf.mxu1  ;;  %v6349_v17 = vpop.f32.mrf.mxu0 }
 0x91f   : > { %v6402_v8 = vadd.f32 %v6348_v10, %v10565_v26  ;;  %v6350_v33 = vadd.f32 %v6349_v17, %v6076_v6  ;;  %v10574_v10 = vld [vmem:[#allocation45_spill] sm:$0xff] }
 0x920   : > { %v6078_v2 = vpop.f32.mrf.mxu1  ;;  %v6351_v13 = vpop.f32.mrf.mxu0 }
 0x921   : > { %v6446_v7 = vadd.f32 %v10244_v25, %v6402_v8  ;;  %v6403_v50 = vadd.f32 %v6350_v33, %v10566_v48  ;;  %v6352_v20 = vadd.f32 %v6351_v13, %v6078_v2  ;;  %v10575_v33 = vld [vmem:[#allocation46_spill] sm:$0xff] }
 0x922   : > { %v6080_v37 = vpop.f32.mrf.mxu1  ;;  %v6353_v12 = vpop.f32.mrf.mxu0 }
 0x923   : > { %6478 = vst [vmem:[%s10254_s3 + $0x80] sm:$0xff] %v6446_v7  ;;  %v6447_v60 = vadd.f32 %v10248_v42, %v6403_v50  ;;  %v6404_v23 = vadd.f32 %v6352_v20, %v10567_v1  ;;  %v6354_v30 = vadd.f32 %v6353_v12, %v6080_v37  ;;  %v10576_v50 = vld [vmem:[#allocation47_spill] sm:$0xff]  ;;  %v10577_v1 = vld [vmem:[#allocation48_spill] sm:$0xff] }
 0x924   : > { %v6084_v49 = vpop.f32.mrf.mxu1  ;;  %v6357_v51 = vpop.f32.mrf.mxu0 }
 0x925   : > { %6479 = vst [vmem:[%s10254_s3 + $0x88] sm:$0xff] %v6447_v60  ;;  %v6448_v18 = vadd.f32 %v10244_v25, %v6404_v23  ;;  %v6405_v35 = vadd.f32 %v6354_v30, %v10568_v16  ;;  %v6358_v61 = vadd.f32 %v6357_v51, %v6084_v49 }
 0x926   : > { %v6086_v54 = vpop.f32.mrf.mxu1  ;;  %v6359_v57 = vpop.f32.mrf.mxu0 }
 0x927   : > { %6480 = vst [vmem:[%s10254_s3 + $0x90] sm:$0xff] %v6448_v18  ;;  %v6449_v53 = vadd.f32 %v10248_v42, %v6405_v35  ;;  %v6406_v3 = vadd.f32 %v6358_v61, %v10569_v14  ;;  %v6360_v46 = vadd.f32 %v6359_v57, %v6086_v54  ;;  %v10578_v18 = vld [vmem:[#allocation49_spill] sm:$0xff]  ;;  %v10579_v57 = vld [vmem:[#allocation50_spill] sm:$0xff] }
 0x928   : > { %v6088_v24 = vpop.f32.mrf.mxu1  ;;  %v6361_v40 = vpop.f32.mrf.mxu0 }
 0x929   : > { %6481 = vst [vmem:[%s10254_s3 + $0x98] sm:$0xff] %v6449_v53  ;;  %v6450_v34 = vadd.f32 %v10244_v25, %v6406_v3  ;;  %v6407_v28 = vadd.f32 %v6360_v46, %v10570_v11  ;;  %v6362_v56 = vadd.f32 %v6361_v40, %v6088_v24  ;;  %v10580_v46 = vld [vmem:[#allocation51_spill] sm:$0xff] }
 0x92a   : > { %v6090_v47 = vpop.f32.mrf.mxu1  ;;  %v6363_v9 = vpop.f32.mrf.mxu0 }
 0x92b   : > { %6482 = vst [vmem:[%s10254_s3 + $0xa0] sm:$0xff] %v6450_v34  ;;  %v6451_v29 = vadd.f32 %v10248_v42, %v6407_v28  ;;  %v6408_v38 = vadd.f32 %v6362_v56, %v10571_v21  ;;  %v6364_v15 = vadd.f32 %v6363_v9, %v6090_v47 }
 0x92c   : > { %v6094_v22 = vpop.f32.mrf.mxu1 }
 0x92d   : > { %6483 = vst [vmem:[%s10254_s3 + $0xa8] sm:$0xff] %v6451_v29  ;;  %v6452_v5 = vadd.f32 %v10244_v25, %v6408_v38  ;;  %v6409_v62 = vadd.f32 %v6364_v15, %v10572_v27 }
 0x92e   : > { %v6096_v41 = vpop.f32.mrf.mxu1 }
 0x92f   : > { %6484 = vst [vmem:[%s10254_s3 + $0xb0] sm:$0xff] %v6452_v5  ;;  %v6453_v32 = vadd.f32 %v10248_v42, %v6409_v62 }
 0x930   : > { %v6098_v4 = vpop.f32.mrf.mxu1 }
 0x931   : > { %6485 = vst [vmem:[%s10254_s3 + $0xb8] sm:$0xff] %v6453_v32 }
 0x932   : > { %v6100_v55 = vpop.f32.mrf.mxu1 }
 0x934   : > { %v6104_v36 = vpop.f32.mrf.mxu1 }
 0x936   : > { %v6106_v19 = vpop.f32.mrf.mxu1 }
 0x938   : > { %v6108_v0 = vpop.f32.mrf.mxu1 }
 0x93a   : > { %v6110_v45 = vpop.f32.mrf.mxu1 }
 0x93c   : > { %v6367_v43 = vpop.f32.mrf.mxu1 }
 0x93d   : > { %v6368_v52 = vadd.f32 %v6367_v43, %v6094_v22 }
 0x93e   : > { %v6369_v63 = vpop.f32.mrf.mxu1 }
 0x93f   : > { %v6410_v44 = vadd.f32 %v6368_v52, %v10573_v59  ;;  %v6370_v58 = vadd.f32 %v6369_v63, %v6096_v41 }
 0x940   : > { %v6371_v39 = vpop.f32.mrf.mxu1 }
 0x941   : > { %v6454_v31 = vadd.f32 %v10244_v25, %v6410_v44  ;;  %v6411_v6 = vadd.f32 %v6370_v58, %v10574_v10  ;;  %v6372_v17 = vadd.f32 %v6371_v39, %v6098_v4 }
 0x942   : > { %v6373_v26 = vpop.f32.mrf.mxu1 }
 0x943   : > { %6486 = vst [vmem:[%s10254_s3 + $0xc0] sm:$0xff] %v6454_v31  ;;  %v6455_v8 = vadd.f32 %v10248_v42, %v6411_v6  ;;  %v6412_v2 = vadd.f32 %v6372_v17, %v10575_v33  ;;  %v6374_v13 = vadd.f32 %v6373_v26, %v6100_v55 }
 0x944   : > { %v6377_v7 = vpop.f32.mrf.mxu1 }
 0x945   : > { %6487 = vst [vmem:[%s10254_s3 + $0xc8] sm:$0xff] %v6455_v8  ;;  %v6456_v48 = vadd.f32 %v10244_v25, %v6412_v2  ;;  %v6413_v20 = vadd.f32 %v6374_v13, %v10576_v50  ;;  %v6378_v37 = vadd.f32 %v6377_v7, %v6104_v36 }
 0x946   : > { %v6379_v12 = vpop.f32.mrf.mxu1 }
 0x947   : > { %6488 = vst [vmem:[%s10254_s3 + $0xd0] sm:$0xff] %v6456_v48  ;;  %v6457_v60 = vadd.f32 %v10248_v42, %v6413_v20  ;;  %v6414_v23 = vadd.f32 %v6378_v37, %v10577_v1  ;;  %v6380_v30 = vadd.f32 %v6379_v12, %v6106_v19 }
 0x948   : > { %v6381_v49 = vpop.f32.mrf.mxu1 }
 0x949   : > { %6489 = vst [vmem:[%s10254_s3 + $0xd8] sm:$0xff] %v6457_v60  ;;  %v6458_v51 = vadd.f32 %v10244_v25, %v6414_v23  ;;  %v6415_v16 = vadd.f32 %v6380_v30, %v10578_v18  ;;  %v6382_v35 = vadd.f32 %v6381_v49, %v6108_v0 }
 0x94a   : > { %v6383_v61 = vpop.f32.mrf.mxu1 }
 0x94b   : > { %6490 = vst [vmem:[%s10254_s3 + $0xe0] sm:$0xff] %v6458_v51  ;;  %v6459_v54 = vadd.f32 %v10248_v42, %v6415_v16  ;;  %v6416_v53 = vadd.f32 %v6382_v35, %v10579_v57  ;;  %v6384_v14 = vadd.f32 %v6383_v61, %v6110_v45 }
 0x94d   : > { %6491 = vst [vmem:[%s10254_s3 + $0xe8] sm:$0xff] %v6459_v54  ;;  %v6460_v3 = vadd.f32 %v10244_v25, %v6416_v53  ;;  %v6417_v24 = vadd.f32 %v6384_v14, %v10580_v46 }
 0x94f   : > { %6492 = vst [vmem:[%s10254_s3 + $0xf0] sm:$0xff] %v6460_v3  ;;  %v6461_v40 = vadd.f32 %v10248_v42, %v6417_v24 }
 0x951   : > { %6493 = vst [vmem:[%s10254_s3 + $0xf8] sm:$0xff] %v6461_v40 }
 0x952   : > { %8216 = shalt.err (!%p8213_p2)
}
 0x953   : > { %s8217_s29 = scalar_lea.hbm %s10351_s27, 4096  ;;  %s8221_s3 = scalar_lea.hbm %s10581_s1, 8192 }
 0x954   : > { %p8218_p5 = scmp.ne.s32.totalorder %s10351_s27, %s8217_s29  ;;  %p8222_p12 = scmp.lt.s32.totalorder %s10351_s27, %s10581_s1 }
 0x955   : > { %p8223_p13 = scmp.lt.s32.totalorder %s8221_s3, %s8217_s29 }
 0x956   : > { %p8219_p10 = pnand %p8218_p5, %p10582_p0 }
 0x957   : > { %p8224_p1 = por %p8223_p13, %p8222_p12 }
 0x958   : > { %p8220_p11 = pneg %p8219_p10 }
 0x95a   : > { %p8225_p3 = pnand %p8224_p1, %p8220_p11 }
 0x95c   : > { %8228 = shalt.err (!%p8225_p3)
}
 0x95d   : > { %s8303_s6 = smov 256   ;;  %s8304_s30 = smov 16  }
 0x95e   : > { %7222 = dma.vmem_to_hbm [thread:$0]  (%p10582_p0), %s10353_s28, 4096, %s10351_s27, %s6495_s24, %s8303_s6, %s8303_s6, %s8304_s30  }
 0x95f PF: > { %s6523_s2 = sand.u32 1, %s8271_s18   ;;  %p10583_p8 = scmp.ne.s32.totalorder %s10488_s17, 0 }
 0x960   : > { %p10584_p9 = scmp.ge.s32.totalorder %s8283_s21, 2  ;;  %s6524_s4 = scalar_lea.sflag [#allocation4], %s6523_s2 }
 0x962   : > { %p7251_p7 = pnand %p10584_p9, %p10583_p8 }
 0x964   : > { %p7252_p4 = pneg %p7251_p7 }
 0x966   : > { %8266 = dma.done.wait (%p7252_p4), %s6524_s4, 4096  }
 0x967   : > { %8268 = vsyncadd (%p7252_p4), %s6524_s4, 4294963200  ;;  %p32_p6 = scmp.ge.s32.totalorder %s8497_s16, 4   ;;  %s10585_s18 = smov %s8275_s19 }
 0x968   : > { %s10586_s19 = smov %s8279_s20  ;;  %s10587_s20 = smov %s8509_s26 }
 0x969   : > { %s10588_s21 = smov %s8497_s16  ;;  %34 = sbr.rel (!%p32_p6) target bundleno = 19 (0x13), region = 157 }
 0x96e   :  { %6529 = vsyncpa [#allocation3], 1 }
 0x96f   :  { %6531 = vsyncpa [#allocation3 + $0x1], 1 }
 0x970   :  { %6532 = vsyncpa [#allocation6], 1 }
 0x971   :  { %6533 = vsyncpa [#allocation9], 1 }
 0x972   :  { %6534 = vsyncpa [#allocation12], 1 }
 0x973   :  { %6535 = vsyncpa [#allocation15], 1 }
 0x974   :  { %6536 = vsyncpa [#allocation4], 1 }
 0x975   :  { %6538 = vsyncpa [#allocation4 + $0x1], 1 }

// kernel: tpu_custom_call.1
= control target key start
LH: loop header
LB: loop body
LE: loop exit
PB: predicated region body
PF: predicated region fallthrough
CT: control target
= control target key end

     0   :  { %s10399_s0 = inlined_call_operand.hbm [shape: f32[2,128,256], index: 0, kind: input, shape index: {}]   ;;  %s10400_s1 = inlined_call_operand.hbm [shape: f32[1,256], index: 1, kind: input, shape index: {}]   ;;  %s10401_s2 = inlined_call_operand.hbm [shape: f32[1,256], index: 2, kind: input, shape index: {}]   ;;  %s10402_s3 = inlined_call_operand.hbm [shape: f32[1,256], index: 3, kind: input, shape index: {}]   ;;  %s10403_s4 = inlined_call_operand.hbm [shape: bf16[256,768], index: 4, kind: input, shape index: {}]   ;;  %s10404_s5 = inlined_call_operand.vmem [shape: f32[1,768], index: 5, kind: input, shape index: {}]   ;;  %s10405_s6 = inlined_call_operand.hbm [shape: bf16[256,256], index: 6, kind: input, shape index: {}]   ;;  %s10406_s7 = inlined_call_operand.vmem [shape: f32[1,256], index: 7, kind: input, shape index: {}]   ;;  %s10407_s8 = inlined_call_operand.vmem [shape: f32[1,256], index: 8, kind: input, shape index: {}]   ;;  %s10408_s9 = inlined_call_operand.vmem [shape: f32[1,256], index: 9, kind: input, shape index: {}]   ;;  %s10409_s10 = inlined_call_operand.vmem [shape: f32[1,256], index: 10, kind: input, shape index: {}]   ;;  %s10410_s11 = inlined_call_operand.hbm [shape: bf16[256,512], index: 11, kind: input, shape index: {}]   ;;  %s10411_s12 = inlined_call_operand.vmem [shape: f32[1,512], index: 12, kind: input, shape index: {}]   ;;  %s10412_s13 = inlined_call_operand.hbm [shape: bf16[512,256], index: 13, kind: input, shape index: {}]   ;;  %s10413_s14 = inlined_call_operand.vmem [shape: f32[1,256], index: 14, kind: input, shape index: {}]   ;;  %s10414_s15 = inlined_call_operand.hbm [shape: f32[2,128,256], index: 15, kind: output, shape index: {}]  }
   0x1   :  { %10465 = sst [smem:[#allocation52_spill]] %s10400_s1 }
   0x2   :  { %10466 = sst [smem:[#allocation53_spill]] %s10401_s2 }
   0x3   :  { %10467 = sst [smem:[#allocation54_spill]] %s10402_s3 }
   0x4   :  { %10468 = sst [smem:[#allocation55_spill]] %s10403_s4 }
   0x5   :  { %10469 = sst [smem:[#allocation56_spill]] %s10405_s6 }
   0x6   :  { %10470 = sst [smem:[#allocation57_spill]] %s10410_s11 }
   0x7   :  { %10471 = sst [smem:[#allocation58_spill]] %s10412_s13 }
   0x8   :  { %10472 = sst [smem:[#allocation59_spill]] %s10413_s14 }
   0x9   :  { %10473 = sst [smem:[#allocation60_spill]] %s10414_s15 }
   0xa   :  { %20 = vsyncpa [#allocation3], 0 }
   0xb   :  { %22 = vsyncpa [#allocation3 + $0x1], 0 }
   0xc   :  { %23 = vsyncpa [#allocation6], 0 }
   0xd   :  { %24 = vsyncpa [#allocation9], 0 }
   0xe   :  { %25 = vsyncpa [#allocation12], 0 }
   0xf   :  { %26 = vsyncpa [#allocation15], 0 }
  0x10   :  { %27 = vsyncpa [#allocation4], 0 }
  0x11   :  { %29 = vsyncpa [#allocation4 + $0x1], 0  ;;  %s8385_s18 = smov 0   ;;  %s8387_s19 = smov 0  }
  0x12   :  { %s8389_s20 = smov 0   ;;  %s8391_s21 = smov 0  }
  0x13 LB: > { %s8285_s22 = smov [#allocation5]   ;;  %s8406_s24 = sadd.s32 4294967295, %s8283_s21   ;;  %s8283_s21 = sphi %s8391_s21, %s10588_s21   ;;  %s8279_s20 = sphi %s8389_s20, %s10587_s20   ;;  %s8275_s19 = sphi %s8387_s19, %s10586_s19   ;;  %s8271_s18 = sphi %s8385_s18, %s10585_s18  }
  0x14   : > { %s399_s23 = sshll.u32 %s8285_s22, 4  ;;  %p6650_p0 = scmp.ge.s32.totalorder %s8283_s21, 1  ;;  %s400_s23 = int_to_ptr.vmem [resolvable:$true] %s399_s23 }
  0x15   : > { %p10415_p1 = scmp.eq.s32.totalorder %s8406_s24, 0  ;;  %p386_p2 = scmp.lt.s32.totalorder %s8283_s21, 3 }
  0x16   : > { %s8286_s26 = smov [#allocation8]   ;;  %s8287_s28 = smov [#allocation11]  }
  0x17   : > { %p8411_p3 = pnand %p6650_p0, %p386_p2  ;;  %s421_s27 = sshll.u32 %s8286_s26, 4  ;;  %s422_s27 = int_to_ptr.vmem [resolvable:$true] %s421_s27 }
  0x18   : > { %s447_s29 = sshll.u32 %s8287_s28, 4  ;;  %s8004_s17 = scalar_lea.vmem %s400_s23, 32  ;;  %s8424_s29 = int_to_ptr.vmem [resolvable:$true] %s447_s29 }
  0x19   : > { %s10474_s25 = scalar_select %p8411_p3, 1, 0 }
  0x1a   : > { %p7224_p5 = pneg %p8411_p3  ;;  %p8005_p8 = scmp.ne.s32.totalorder %s400_s23, %s8004_s17 }
  0x1b   : > { %p8012_p11 = scmp.lt.s32.totalorder %s400_s23, %s400_s23  ;;  %p8013_p12 = scmp.lt.s32.totalorder %s8004_s17, %s8004_s17 }
  0x1c   : > { %p8420_p6 = pnand %p7224_p5, %p10415_p1 }
  0x1d   : > { %p8014_p13 = por %p8013_p12, %p8012_p11 }
  0x1e   : > { %p8428_p7 = pneg %p8420_p6 }
  0x20   : > { %p8007_p9 = pnand %p8005_p8, %p8428_p7 }
  0x22   : > { %p8008_p10 = pneg %p8007_p9 }
  0x24   : > { %p8015_p0 = pnand %p8014_p13, %p8008_p10 }
  0x26   : > { %8018 = shalt.err (!%p8015_p0)
}
  0x27   : > { %s10477_s1 = sld [smem:[#allocation52_spill]]  ;;  %s8030_s28 = scalar_lea.vmem %s422_s27, 32 }
  0x28   : > { %p8031_p2 = scmp.ne.s32.totalorder %s422_s27, %s8030_s28  ;;  %p8038_p1 = scmp.lt.s32.totalorder %s422_s27, %s422_s27 }
  0x29   : > { %p8039_p8 = scmp.lt.s32.totalorder %s8030_s28, %s8030_s28 }
  0x2a   : > { %p8033_p5 = pnand %p8031_p2, %p8428_p7 }
  0x2b   : > { %p8040_p9 = por %p8039_p8, %p8038_p1 }
  0x2c   : > { %p8034_p4 = pneg %p8033_p5 }
  0x2d   : > { %7227 = dma.hbm_to_vmem [thread:$0]  (!%p8420_p6), %s10477_s1, 32, %s400_s23, [#allocation6]  }
  0x2e   : > { %p8041_p3 = pnand %p8040_p9, %p8034_p4 }
  0x30   : > { %8044 = shalt.err (!%p8041_p3)
}
  0x31   : > { %s10478_s3 = sld [smem:[#allocation54_spill]]  ;;  %s8056_s23 = scalar_lea.vmem %s8424_s29, 4096 }
  0x32   : > { %p8057_p10 = scmp.ne.s32.totalorder %s8424_s29, %s8056_s23  ;;  %p8064_p13 = scmp.lt.s32.totalorder %s8424_s29, %s8424_s29 }
  0x33   : > { %p8065_p1 = scmp.lt.s32.totalorder %s8056_s23, %s8056_s23 }
  0x34   : > { %p8059_p11 = pnand %p8057_p10, %p8428_p7 }
  0x35   : > { %p8066_p4 = por %p8065_p1, %p8064_p13 }
  0x36   : > { %p8060_p12 = pneg %p8059_p11 }
  0x37   : > { %7233 = dma.hbm_to_vmem [thread:$0]  (!%p8420_p6), %s10478_s3, 32, %s422_s27, [#allocation9]  }
  0x38   : > { %p8067_p3 = pnand %p8066_p4, %p8060_p12 }
  0x3a   : > { %8070 = shalt.err (!%p8067_p3)
}
  0x3b   : > { %s10418_s22 = smov 128   ;;  %s8289_s15 = smov 8  }
  0x3c   : > { %s10479_s6 = sld [smem:[#allocation56_spill]]  ;;  %s8290_s28 = smov [#allocation7]  }
  0x3d   : > { %s410_s17 = sshll.u32 %s8290_s28, 4  ;;  %s8291_s23 = smov [#allocation10]   ;;  %s411_s17 = int_to_ptr.vmem [resolvable:$true] %s410_s17 }
  0x3e   : > { %s431_s1 = sshll.u32 %s8291_s23, 4  ;;  %s8082_s3 = scalar_lea.vmem %s411_s17, 32  ;;  %s432_s1 = int_to_ptr.vmem [resolvable:$true] %s431_s1 }
  0x3f   : > { %p8083_p0 = scmp.ne.s32.totalorder %s411_s17, %s8082_s3  ;;  %p8090_p8 = scmp.lt.s32.totalorder %s411_s17, %s411_s17 }
  0x40   : > { %p8091_p9 = scmp.lt.s32.totalorder %s8082_s3, %s8082_s3 }
  0x41   : > { %p8085_p2 = pnand %p8083_p0, %p8428_p7 }
  0x42   : > { %7239 = dma.hbm_to_vmem [thread:$0]  (!%p8420_p6), %s10479_s6, 4096, %s8424_s29, [#allocation12], %s10418_s22, %s10418_s22, %s8289_s15  }
  0x43   : > { %p8086_p5 = pneg %p8085_p2  ;;  %p8092_p10 = por %p8091_p9, %p8090_p8 }
  0x45   : > { %p8093_p11 = pnand %p8092_p10, %p8086_p5 }
  0x47   : > { %8096 = shalt.err (!%p8093_p11)
}
  0x48   : > { %s10480_s2 = sld [smem:[#allocation53_spill]]  ;;  %s8108_s29 = scalar_lea.vmem %s432_s1, 12288 }
  0x49   : > { %p8109_p12 = scmp.ne.s32.totalorder %s432_s1, %s8108_s29  ;;  %p8116_p4 = scmp.lt.s32.totalorder %s432_s1, %s432_s1 }
  0x4a   : > { %p8117_p3 = scmp.lt.s32.totalorder %s8108_s29, %s8108_s29 }
  0x4b   : > { %p8111_p13 = pnand %p8109_p12, %p8428_p7 }
  0x4c   : > { %p8118_p0 = por %p8117_p3, %p8116_p4 }
  0x4d   : > { %p8112_p1 = pneg %p8111_p13 }
  0x4e   : > { %7230 = dma.hbm_to_vmem [thread:$0]  (!%p8420_p6), %s10480_s2, 32, %s411_s17, [#allocation6]  }
  0x4f   : > { %p8119_p2 = pnand %p8118_p0, %p8112_p1 }
  0x51   : > { %8122 = shalt.err (!%p8119_p2)
}
  0x52   : > { %s8292_s3 = smov 384   ;;  %s8293_s26 = smov 24  }
  0x53   : > { %s10481_s4 = sld [smem:[#allocation55_spill]]  ;;  %s8294_s17 = smov [#allocation13]  }
  0x54   : > { %s472_s23 = sshll.u32 %s8294_s17, 4  ;;  %s473_s23 = int_to_ptr.vmem [resolvable:$true] %s472_s23 }
  0x55   : > { %s8134_s27 = scalar_lea.vmem %s473_s23, 8192  ;;  %p8142_p10 = scmp.lt.s32.totalorder %s473_s23, %s473_s23 }
  0x56   : > { %p8135_p5 = scmp.ne.s32.totalorder %s473_s23, %s8134_s27  ;;  %p8143_p11 = scmp.lt.s32.totalorder %s8134_s27, %s8134_s27 }
  0x58   : > { %p8137_p8 = pnand %p8135_p5, %p8428_p7  ;;  %p8144_p12 = por %p8143_p11, %p8142_p10 }
  0x59   : > { %7236 = dma.hbm_to_vmem [thread:$0]  (!%p8420_p6), %s10481_s4, 12288, %s432_s1, [#allocation9], %s8292_s3, %s8292_s3, %s8293_s26  }
  0x5a   : > { %p8138_p9 = pneg %p8137_p8 }
  0x5c   : > { %p8145_p13 = pnand %p8144_p12, %p8138_p9 }
  0x5e   : > { %8148 = shalt.err (!%p8145_p13)
}
  0x5f   : > { %s10419_s29 = smov 256   ;;  %s10420_s22 = smov 16  }
  0x60   : > { %s10482_s11 = sld [smem:[#allocation57_spill]]  ;;  %s8297_s26 = smov [#allocation14]  }
  0x61   : > { %s488_s28 = sshll.u32 %s8297_s26, 4  ;;  %s489_s28 = int_to_ptr.vmem [resolvable:$true] %s488_s28 }
  0x62   : > { %s8160_s14 = scalar_lea.vmem %s489_s28, 8192  ;;  %p8168_p0 = scmp.lt.s32.totalorder %s489_s28, %s489_s28 }
  0x63   : > { %p8161_p1 = scmp.ne.s32.totalorder %s489_s28, %s8160_s14  ;;  %p8169_p2 = scmp.lt.s32.totalorder %s8160_s14, %s8160_s14 }
  0x65   : > { %p8163_p4 = pnand %p8161_p1, %p8428_p7  ;;  %p8170_p5 = por %p8169_p2, %p8168_p0 }
  0x66   : > { %7242 = dma.hbm_to_vmem [thread:$0]  (!%p8420_p6), %s10482_s11, 8192, %s473_s23, [#allocation12], %s10419_s29, %s10419_s29, %s10420_s22  }
  0x67   : > { %p8164_p3 = pneg %p8163_p4 }
  0x69   : > { %p8171_p8 = pnand %p8170_p5, %p8164_p3 }
  0x6b   : > { %8174 = shalt.err (!%p8171_p8)
}
  0x6c   : > { %s10483_s17 = smov 128   ;;  %s10484_s13 = sld [smem:[#allocation58_spill]] }
  0x6d   : > { %s6649_s30 = sadd.s32 4294967294, %s8283_s21   ;;  %s8497_s16 = sadd.s32 1, %s8283_s21  }
  0x6e   : > { %s42_s1 = sadd.s32 1, %s8279_s20  ;;  %s39_s3 = ssub.s32 %s8283_s21, %s8497_s16 }
  0x6f   : > { %p49_p7 = scmp.ne.s32.totalorder %s8279_s20, %s8275_s19  ;;  %p40_p9 = scmp.eq.s32.totalorder %s39_s3, 0 }
  0x70   : > { %p50_p10 = scmp.eq.s32.totalorder %s8283_s21, 0  ;;  %p55_p11 = scmp.ne.s32.totalorder %s8275_s19, %s8271_s18 }
  0x71   : > { %p373_p12 = scmp.eq.s32.totalorder %s8406_s24, 1  ;;  %p10485_p1 = scmp.eq.s32.totalorder %s8406_s24, 0 }
  0x72   : > { %7245 = dma.hbm_to_vmem [thread:$0]  (!%p8420_p6), %s10484_s13, 8192, %s489_s28, [#allocation15], %s10483_s17, %s10483_s17, %s8289_s15  }
  0x73   : > { %s8509_s26 = scalar_select %p40_p9, %s8279_s20, %s42_s1  }
  0x74   : > { %p51_p13 = por %p50_p10, %p49_p7  ;;  %p8513_p4 = por %p10485_p1, %p55_p11 }
  0x75   : > { %p8517_p6 = por %p373_p12, %p49_p7  ;;  %p379_p3 = scmp.eq.s32.totalorder %s6649_s30, 1 }
  0x76   : > { %s10486_s14 = scalar_select %p8513_p4, 1, 0 }
  0x77   : > { %s10487_s15 = scalar_select %p8517_p6, 1, 0 }
  0x78   : > { %p7261_p0 = scmp.lt.s32.totalorder %s8283_s21, 2  ;;  %s505_s28 = sand.u32 1, %s8279_s20  }
  0x79   : > { %p8523_p2 = por %p379_p3, %p55_p11  ;;  %s6659_s27 = sshll.u32 %s505_s28, 8 }
  0x7a   : > { %s6966_s23 = sshll.u32 %s8283_s21, 12  ;;  %s509_s22 = scalar_lea.vmem [#allocation2], %s6659_s27 }
  0x7b   : > { %s10488_s17 = scalar_select %p8523_p2, 1, 0 }
  0x7c   : > { %s8531_s29 = scalar_lea.hbm %s10399_s0, %s6966_s23  ;;  %s516_s2 = sshll.u32 %s509_s22, 4  ;;  %s8537_s2 = int_to_ptr.vmem [resolvable:$true] %s516_s2 }
  0x7d   : > { %p8533_p5 = pnand %p7261_p0, %p51_p13  ;;  %s8539_s4 = scalar_lea.sflag [#allocation3], %s505_s28 }
  0x7e   : > { %s8175_s6 = scalar_lea.hbm %s8531_s29, 4096  ;;  %s8180_s27 = scalar_lea.hbm %s10399_s0, 8192 }
  0x7f   : > { %p8176_p8 = scmp.ne.s32.totalorder %s8531_s29, %s8175_s6  ;;  %p8177_p7 = pneg %p8533_p5 }
  0x80   : > { %p8181_p11 = scmp.lt.s32.totalorder %s8531_s29, %s10399_s0  ;;  %p8182_p12 = scmp.lt.s32.totalorder %s8180_s27, %s8175_s6 }
  0x81   : > { %p8178_p9 = pnand %p8177_p7, %p8176_p8 }
  0x82   : > { %p8183_p13 = por %p8182_p12, %p8181_p11 }
  0x83   : > { %p8179_p10 = pneg %p8178_p9 }
  0x85   : > { %p8184_p1 = pnand %p8183_p13, %p8179_p10 }
  0x87   : > { %8187 = shalt.err (!%p8184_p1)
}
  0x88   : > { %s8188_s28 = scalar_lea.vmem %s8537_s2, 4096  ;;  %s8298_s11 = smov [#allocation2]  }
  0x89   : > { %p8189_p3 = scmp.ne.s32.totalorder %s8537_s2, %s8188_s28  ;;  %s8193_s13 = sshll.u32 %s8298_s11, 4  ;;  %s8194_s13 = int_to_ptr.vmem [resolvable:$false] %s8193_s13 }
  0x8a   : > { %s8195_s23 = scalar_lea.vmem %s8194_s13, 8192  ;;  %p8196_p9 = scmp.lt.s32.totalorder %s8537_s2, %s8194_s13 }
  0x8b   : > { %p8191_p0 = pnand %p8189_p3, %p8177_p7  ;;  %p8197_p2 = scmp.lt.s32.totalorder %s8195_s23, %s8188_s28 }
  0x8d   : > { %p8192_p8 = pneg %p8191_p0  ;;  %p8198_p6 = por %p8197_p2, %p8196_p9 }
  0x8f   : > { %p8199_p4 = pnand %p8198_p6, %p8192_p8 }
  0x91   : > { %8202 = shalt.err (!%p8199_p4)
}
  0x92   : > { %s10490_s6 = smov 16   ;;  %s10491_s1 = smov 256  }
  0x93   : > { %7249 = dma.hbm_to_vmem [thread:$0]  (!%p8533_p5), %s8531_s29, 4096, %s8537_s2, %s8539_s4, %s10491_s1, %s10491_s1, %s10490_s6  }
  0x94   : > { %p10492_p7 = scmp.ne.s32.totalorder %s10474_s25, 0 }
  0x96   : > { %528 = sbr.rel (%p10492_p7) target bundleno = 2399 (0x95f), region = 80 }
  0x9b   : > { %s8566_s11 = sand.u32 1, %s8275_s19   ;;  %p10493_p4 = scmp.ne.s32.totalorder %s10486_s14, 0 }
  0x9c   : > { %s6663_s13 = sshll.u32 %s8566_s11, 8  ;;  %s531_s27 = scalar_lea.sflag [#allocation3], %s8566_s11 }
  0x9d   : > { %s8572_s30 = scalar_lea.vmem [#allocation2], %s6663_s13 }
  0x9e   : > { %8246 = dma.done.wait (%p10493_p4), %s531_s27, 4096  }
  0x9f   : > { %8248 = vsyncadd (%p10493_p4), %s531_s27, 4294963200  ;;  %p10494_p6 = scmp.eq.s32.totalorder %s8406_s24, 0 }
  0xa1   : > { %8250 = dma.done.wait (%p10494_p6), [#allocation6], 64   ;;  %p10495_p2 = pmov %p10494_p6 }
  0xa3   : > { %8252 = vsyncadd (%p10495_p2), [#allocation6], 4294967232  ;;  %p10496_p5 = pmov %p10495_p2 }
  0xa4   : > { %p10497_p10 = pmov %p10495_p2 }
  0xa5   : > { %8254 = dma.done.wait (%p10496_p5), [#allocation9], 12320  }
  0xa6   : > { %8256 = vsyncadd (%p10497_p10), [#allocation9], 4294954976  ;;  %p10498_p11 = pmov %p10495_p2 }
  0xa7   : > { %p10499_p12 = pmov %p10495_p2 }
  0xa8   : > { %8258 = dma.done.wait (%p10498_p11), [#allocation12], 12288  }
  0xa9   : > { %8260 = vsyncadd (%p10499_p12), [#allocation12], 4294955008  ;;  %p10500_p13 = pmov %p10495_p2 }
  0xaa   : > { %p10501_p1 = pmov %p10495_p2 }
  0xab   : > { %8262 = dma.done.wait (%p10500_p13), [#allocation15], 8192  }
  0xac   : > { %8264 = vsyncadd (%p10501_p1), [#allocation15], 4294959104  ;;  %v7320_v0 = vld [vmem:[#allocation10 + $0x15c] ss:$24 sps:$4 sm:$0xff]   ;;  %v7322_v1 = vld [vmem:[#allocation10 + $0x158] ss:$24 sps:$4 sm:$0xff]   ;;  %v645_v8 = vlaneseq }
  0xad   : > { %1543 = vmatprep.subr.bf16.mxu1 %v7320_v0  ;;  %v7323_v2 = vld [vmem:[#allocation10 + $0x12c] ss:$24 sps:$4 sm:$0xff]   ;;  %v7325_v3 = vld [vmem:[#allocation10 + $0x128] ss:$24 sps:$4 sm:$0xff]   ;;  %v7326_v4 = vld [vmem:[#allocation10 + $0xfc] ss:$24 sps:$4 sm:$0xff]  }
  0xae   : > { %1544 = vmatpush1.bf16.msra.mxu1 %v7322_v1  ;;  %v7328_v5 = vld [vmem:[#allocation10 + $0xf8] ss:$24 sps:$4 sm:$0xff]   ;;  %v7329_v6 = vld [vmem:[#allocation10 + $0xcc] ss:$24 sps:$4 sm:$0xff]   ;;  %v7331_v7 = vld [vmem:[#allocation10 + $0xc8] ss:$24 sps:$4 sm:$0xff]  }
  0xaf   : > { %1545 = vmatprep.subr.bf16.mxu1 %v7323_v2  ;;  %v7332_v9 = vld [vmem:[#allocation10 + $0x9c] ss:$24 sps:$4 sm:$0xff]   ;;  %v7334_v10 = vld [vmem:[#allocation10 + $0x98] ss:$24 sps:$4 sm:$0xff]   ;;  %v8594_v11 = vshrl.u32 %v645_v8, 7  ;;  %v611_v16 = vld [vmem:[%s8572_s30 + $0x8] sm:$0xff] }
  0xb0   : > { %v7335_v12 = vld [vmem:[#allocation10 + $0x6c] ss:$24 sps:$4 sm:$0xff]   ;;  %v7337_v13 = vld [vmem:[#allocation10 + $0x68] ss:$24 sps:$4 sm:$0xff]   ;;  %v7338_v15 = vld [vmem:[#allocation10 + $0x3c] ss:$24 sps:$4 sm:$0xff]  }
  0xb1   : > { %10502 = vst [vmem:[#allocation23_spill] sm:$0xff] %v8594_v11  ;;  %v8597_v14 = vsub.s32 1, %v8594_v11  ;;  %v613_v17 = vld [vmem:[%s8572_s30 + $0x18] sm:$0xff]  ;;  %v643_v18 = vld [vmem:[#allocation5] sm:$0x3]  ;;  %v8605_v22 = vsub.s32 0, %v8594_v11 }
  0xb2   : > { %1546 = vmatpush1.bf16.msra.mxu1 %v7325_v3  ;;  %v7340_v19 = vld [vmem:[#allocation10 + $0x38] ss:$24 sps:$4 sm:$0xff]   ;;  %v7341_v21 = vld [vmem:[#allocation10 + $0xc] ss:$24 sps:$4 sm:$0xff]   ;;  %v7343_v25 = vld [vmem:[#allocation10 + $0x8] ss:$24 sps:$4 sm:$0xff]  }
  0xb3   : > { %1547 = vmatprep.subr.bf16.mxu1 %v7326_v4  ;;  %10503 = vst [vmem:[#allocation24_spill] sm:$0xff] %v8597_v14  ;;  %v8602_v20 = vrot.slane %v643_v18, %v8597_v14  ;;  %10504 = vst [vmem:[#allocation25_spill] sm:$0xff] %v8605_v22  ;;  %v7344_v26 = vld [vmem:[#allocation10 + $0x2dc] ss:$24 sps:$4 sm:$0xff]   ;;  %v8610_v27 = vrot.slane %v643_v18, %v8605_v22  ;;  %v612_v29 = vld [vmem:[%s8572_s30 + $0x10] sm:$0xff]  ;;  %s10551_s22 = sld [smem:[#allocation59_spill]] }
  0xb4   : > { %v610_v28 = vld [vmem:[%s8572_s30] sm:$0xff]  ;;  %v615_v31 = vld [vmem:[%s8572_s30 + $0x28] sm:$0xff]  ;;  %v617_v35 = vld [vmem:[%s8572_s30 + $0x38] sm:$0xff]  ;;  %s10254_s3 = scalar_lea.vmem [#allocation16], %s6663_s13  ;;  %s6967_s13 = sshll.u32 %s8406_s24, 12 }
  0xb5   : > { %v656_v23 = vmul.f32 %v8602_v20, %v611_v16  ;;  %v658_v24 = vmul.f32 %v8602_v20, %v613_v17  ;;  %v7346_v30 = vld [vmem:[#allocation10 + $0x2d8] ss:$24 sps:$4 sm:$0xff]   ;;  %v7347_v32 = vld [vmem:[#allocation10 + $0x2ac] ss:$24 sps:$4 sm:$0xff]   ;;  %v8615_v33 = vld [vmem:[#allocation7] sm:$0x3]  ;;  %v655_v34 = vmul.f32 %v8610_v27, %v610_v28  ;;  %v657_v37 = vmul.f32 %v8610_v27, %v612_v29 }
  0xb6   : > { %1548 = vmatpush1.bf16.msra.mxu1 %v7328_v5  ;;  %v7349_v36 = vld [vmem:[#allocation10 + $0x2a8] ss:$24 sps:$4 sm:$0xff]   ;;  %v7368_v38 = vld [vmem:[#allocation10 + $0x154] ss:$24 sps:$4 sm:$0xff]   ;;  %v660_v40 = vmul.f32 %v8602_v20, %v615_v31  ;;  %v8621_v42 = vld [vmem:[#allocation8] sm:$0x3]  ;;  %v662_v43 = vmul.f32 %v8602_v20, %v617_v35  ;;  %v8627_v48 = vrot.slane %v8615_v33, %v8597_v14 }
  0xb7   : > { %1549 = vmatprep.subr.bf16.mxu1 %v7329_v6  ;;  %7704 = vtanh.f32 %v656_v23  ;;  %v7350_v39 = vld [vmem:[#allocation10 + $0x27c] ss:$24 sps:$4 sm:$0xff]   ;;  %v7370_v41 = vld [vmem:[#allocation10 + $0x150] ss:$24 sps:$4 sm:$0xff]   ;;  %1430 = vmatprep.subr.bf16.mxu0 %v7368_v38  ;;  %v7373_v46 = vld [vmem:[#allocation10 + $0x120] ss:$24 sps:$4 sm:$0xff]   ;;  %v8632_v52 = vrot.slane %v8621_v42, %v8597_v14 }
  0xb8   : > { %7706 = vtanh.f32 %v658_v24  ;;  %v7371_v44 = vld [vmem:[#allocation10 + $0x124] ss:$24 sps:$4 sm:$0xff]   ;;  %1431 = vmatpush1.bf16.msra.mxu0 %v7370_v41  ;;  %v7352_v47 = vld [vmem:[#allocation10 + $0x278] ss:$24 sps:$4 sm:$0xff]   ;;  %v7374_v49 = vld [vmem:[#allocation10 + $0xf4] ss:$24 sps:$4 sm:$0xff]  }
  0xb9   : > { %7708 = vtanh.f32 %v655_v34  ;;  %v614_v45 = vld [vmem:[%s8572_s30 + $0x20] sm:$0xff]  ;;  %1432 = vmatprep.subr.bf16.mxu0 %v7371_v44  ;;  %v616_v50 = vld [vmem:[%s8572_s30 + $0x30] sm:$0xff]  ;;  %v619_v53 = vld [vmem:[%s8572_s30 + $0x48] sm:$0xff]  ;;  %s6508_s28 = sshll.u32 %s10254_s3, 4  ;;  %s10581_s1 = sld [smem:[#allocation60_spill]]  ;;  %s10353_s28 = int_to_ptr.vmem [resolvable:$true] %s6508_s28 }
  0xba   : > { %1550 = vmatpush1.bf16.msra.mxu1 %v7331_v7  ;;  %7710 = vtanh.f32 %v657_v37  ;;  %v7353_v51 = vld [vmem:[#allocation10 + $0x24c] ss:$24 sps:$4 sm:$0xff]   ;;  %v659_v55 = vmul.f32 %v8610_v27, %v614_v45  ;;  %v621_v56 = vld [vmem:[%s8572_s30 + $0x58] sm:$0xff]  ;;  %v661_v60 = vmul.f32 %v8610_v27, %v616_v50  ;;  %v7355_v62 = vld [vmem:[#allocation10 + $0x248] ss:$24 sps:$4 sm:$0xff]   ;;  %v664_v0 = vmul.f32 %v8602_v20, %v619_v53  ;;  %s6495_s24 = scalar_lea.sflag [#allocation4], %s8566_s11 }
  0xbb   : > { %1551 = vmatprep.subr.bf16.mxu1 %v7332_v9  ;;  %7712 = vtanh.f32 %v660_v40  ;;  %v7376_v57 = vld [vmem:[#allocation10 + $0xf0] ss:$24 sps:$4 sm:$0xff]   ;;  %v7377_v61 = vld [vmem:[#allocation10 + $0xc4] ss:$24 sps:$4 sm:$0xff]   ;;  %v666_v3 = vmul.f32 %v8602_v20, %v621_v56  ;;  %v7379_v9 = vld [vmem:[#allocation10 + $0xc0] ss:$24 sps:$4 sm:$0xff]   ;;  %v8671_v45 = vrot.slane %v8621_v42, %v8605_v22 }
  0xbc   : > { %7714 = vtanh.f32 %v662_v43  ;;  %1433 = vmatpush1.bf16.msra.mxu0 %v7373_v46  ;;  %v7356_v1 = vld [vmem:[#allocation10 + $0x21c] ss:$24 sps:$4 sm:$0xff]   ;;  %v620_v6 = vld [vmem:[%s8572_s30 + $0x50] sm:$0xff]  ;;  %v623_v7 = vld [vmem:[%s8572_s30 + $0x68] sm:$0xff]  ;;  %p10582_p0 = scmp.ne.s32.totalorder %s10487_s15, 0  ;;  %s8302_s2 = smov [#allocation16]  }
  0xbd   : > { %1434 = vmatprep.subr.bf16.mxu0 %v7374_v49  ;;  %v618_v4 = vld [vmem:[%s8572_s30 + $0x40] sm:$0xff]  ;;  %7716 = vtanh.f32 %v659_v55  ;;  %v625_v16 = vld [vmem:[%s8572_s30 + $0x78] sm:$0xff]  ;;  %v665_v17 = vmul.f32 %v8610_v27, %v620_v6  ;;  %v639_v18 = vld [vmem:[%s8572_s30 + $0xe8] sm:$0xff]  ;;  %v668_v23 = vmul.f32 %v8602_v20, %v623_v7  ;;  %s8207_s4 = sshll.u32 %s8302_s2, 4  ;;  %s8208_s4 = int_to_ptr.vmem [resolvable:$false] %s8207_s4 }
  0xbe   : > { %1552 = vmatpush1.bf16.msra.mxu1 %v7334_v10  ;;  %v7358_v8 = vld [vmem:[#allocation10 + $0x218] ss:$24 sps:$4 sm:$0xff]   ;;  %7718 = vtanh.f32 %v661_v60  ;;  %v670_v28 = vmul.f32 %v8602_v20, %v625_v16  ;;  %v7383_v29 = vld [vmem:[#allocation10 + $0x64] ss:$24 sps:$4 sm:$0xff]   ;;  %v7361_v31 = vld [vmem:[#allocation10 + $0x1e8] ss:$24 sps:$4 sm:$0xff]   ;;  %v684_v34 = vmul.f32 %v8602_v20, %v639_v18  ;;  %p8210_p7 = scmp.lt.s32.totalorder %s10353_s28, %s8208_s4 }
  0xbf   : > { %1553 = vmatprep.subr.bf16.mxu1 %v7335_v12  ;;  %7720 = vtanh.f32 %v664_v0  ;;  %v7380_v12 = vld [vmem:[#allocation10 + $0x94] ss:$24 sps:$4 sm:$0xff]   ;;  %v7382_v24 = vld [vmem:[#allocation10 + $0x90] ss:$24 sps:$4 sm:$0xff]   ;;  %v7385_v40 = vld [vmem:[#allocation10 + $0x60] ss:$24 sps:$4 sm:$0xff]   ;;  %s10351_s27 = scalar_lea.hbm %s10581_s1, %s6967_s13 }
  0xc0   : > { %1435 = vmatpush1.bf16.msra.mxu0 %v7376_v57  ;;  %7722 = vtanh.f32 %v666_v3  ;;  %v624_v37 = vld [vmem:[%s8572_s30 + $0x70] sm:$0xff]  ;;  %v629_v46 = vld [vmem:[%s8572_s30 + $0x98] sm:$0xff]  ;;  %v7389_v42 = vld [vmem:[#allocation10 + $0x4] ss:$24 sps:$4 sm:$0xff]   ;;  %s8209_s25 = scalar_lea.vmem %s8208_s4, 8192 }
  0xc1   : > { %1436 = vmatprep.subr.bf16.mxu0 %v7377_v61  ;;  %v7364_v38 = vld [vmem:[#allocation10 + $0x1b8] ss:$24 sps:$4 sm:$0xff]   ;;  %v7365_v41 = vld [vmem:[#allocation10 + $0x18c] ss:$24 sps:$4 sm:$0xff]   ;;  %v7367_v57 = vld [vmem:[#allocation10 + $0x188] ss:$24 sps:$4 sm:$0xff]  }
  0xc2   : > { %1554 = vmatpush1.bf16.msra.mxu1 %v7337_v13  ;;  %v7359_v13 = vld [vmem:[#allocation10 + $0x1ec] ss:$24 sps:$4 sm:$0xff]   ;;  %v633_v6 = vld [vmem:[%s8572_s30 + $0xb8] sm:$0xff] }
  0xc3   : > { %1555 = vmatprep.subr.bf16.mxu1 %v7338_v15  ;;  %v663_v15 = vmul.f32 %v8610_v27, %v618_v4  ;;  %v628_v55 = vld [vmem:[%s8572_s30 + $0x90] sm:$0xff]  ;;  %v631_v3 = vld [vmem:[%s8572_s30 + $0xa8] sm:$0xff] }
  0xc4   : > { %v7705_v54 = vpop.eup %7704  ;;  %1437 = vmatpush1.bf16.msra.mxu0 %v7379_v9  ;;  %v7391_v4 = vld [vmem:[#allocation10] ss:$24 sps:$4 sm:$0xff]   ;;  %v7392_v7 = vld [vmem:[#allocation10 + $0x2d4] ss:$24 sps:$4 sm:$0xff]   ;;  %v673_v9 = vmul.f32 %v8610_v27, %v628_v55 }
  0xc5   : > { %v7707_v58 = vpop.eup %7706  ;;  %v731_v59 = vmul.f32 %v7705_v54, %v8627_v48  ;;  %1438 = vmatprep.subr.bf16.mxu0 %v7380_v12  ;;  %7724 = vtanh.f32 %v663_v15  ;;  %v626_v54 = vld [vmem:[%s8572_s30 + $0x80] sm:$0xff] }
  0xc6   : > { %1556 = vmatpush1.bf16.msra.mxu1 %v7340_v19  ;;  %v733_v63 = vmul.f32 %v7707_v58, %v8627_v48  ;;  %v641_v19 = vld [vmem:[%s8572_s30 + $0xf8] sm:$0xff]  ;;  %7726 = vtanh.f32 %v665_v17  ;;  %v669_v58 = vmul.f32 %v8610_v27, %v624_v37 }
  0xc7   : > { %1557 = vmatprep.subr.bf16.mxu1 %v7341_v21  ;;  %v775_v2 = vadd.f32 %v8632_v52, %v731_v59  ;;  %v7709_v21 = vpop.eup %7708  ;;  %7728 = vtanh.f32 %v668_v23  ;;  %v676_v23 = vmul.f32 %v8602_v20, %v631_v3  ;;  %v7397_v37 = vld [vmem:[#allocation10 + $0x2a0] ss:$24 sps:$4 sm:$0xff]  }
  0xc8   : > { %v777_v5 = vadd.f32 %v8632_v52, %v733_v63  ;;  %1439 = vmatpush1.bf16.msra.mxu0 %v7382_v24  ;;  %7730 = vtanh.f32 %v670_v28  ;;  %v7395_v24 = vld [vmem:[#allocation10 + $0x2a4] ss:$24 sps:$4 sm:$0xff]   ;;  %v678_v28 = vmul.f32 %v8602_v20, %v633_v6  ;;  %v7403_v6 = vld [vmem:[#allocation10 + $0x240] ss:$24 sps:$4 sm:$0xff]  }
  0xc9   : > { %1440 = vmatprep.subr.bf16.mxu0 %v7383_v29  ;;  %7732 = vtanh.f32 %v684_v34 }
  0xca   : > { %1558 = vmatpush1.bf16.msra.mxu1 %v7343_v25  ;;  %v8647_v10 = vpack.c.bf16 %v777_v5, %v775_v2  ;;  %v7711_v25 = vpop.eup %7710  ;;  %v674_v2 = vmul.f32 %v8602_v20, %v629_v46 }
  0xcb   : > { %1559 = vmatprep.subr.bf16.mxu1 %v7344_v26  ;;  %v8659_v26 = vrot.slane %v8615_v33, %v8605_v22  ;;  %v686_v33 = vmul.f32 %v8602_v20, %v641_v19  ;;  %v7394_v19 = vld [vmem:[#allocation10 + $0x2d0] ss:$24 sps:$4 sm:$0xff]  }
  0xcc   : > { %1575 = vmatprep.mubr.bf16.mxu1 %v8647_v10  ;;  %1462 = vmatprep.mubr.bf16.mxu0 %v8647_v10 }
  0xcd   : > { %v730_v43 = vmul.f32 %v7709_v21, %v8659_v26  ;;  %v732_v44 = vmul.f32 %v7711_v25, %v8659_v26  ;;  %7734 = vtanh.f32 %v686_v33  ;;  %1441 = vmatpush1.bf16.msra.mxu0 %v7385_v40  ;;  %v7398_v40 = vld [vmem:[#allocation10 + $0x274] ss:$24 sps:$4 sm:$0xff]  }
  0xce   : > { %1560 = vmatpush2.bf16.msra.mxu1 %v7346_v30  ;;  %v7713_v30 = vpop.eup %7712 }
  0xcf   : > { %1561 = vmatprep.subr.bf16.mxu1 %v7347_v32  ;;  %v7362_v32 = vld [vmem:[#allocation10 + $0x1bc] ss:$24 sps:$4 sm:$0xff]   ;;  %v7715_v35 = vpop.eup %7714  ;;  %v735_v49 = vmul.f32 %v7713_v30, %v8627_v48  ;;  %v774_v60 = vadd.f32 %v8671_v45, %v730_v43  ;;  %v776_v61 = vadd.f32 %v8671_v45, %v732_v44 }
  0xd0   : > { %v737_v50 = vmul.f32 %v7715_v35, %v8627_v48  ;;  %v7717_v56 = vpop.eup %7716 }
  0xd1   : > { %v7719_v59 = vpop.eup %7718  ;;  %v779_v0 = vadd.f32 %v8632_v52, %v735_v49  ;;  %v8690_v12 = vpack.c.bf16 %v776_v61, %v774_v60  ;;  %v637_v49 = vld [vmem:[%s8572_s30 + $0xd8] sm:$0xff] }
  0xd2   : > { %1562 = vmatpush2.bf16.msra.mxu1 %v7349_v36  ;;  %v622_v36 = vld [vmem:[%s8572_s30 + $0x60] sm:$0xff]  ;;  %v7721_v63 = vpop.eup %7720  ;;  %v736_v15 = vmul.f32 %v7719_v59, %v8659_v26 }
  0xd3   : > { %1563 = vmatprep.subr.bf16.mxu1 %v7350_v39  ;;  %v627_v39 = vld [vmem:[%s8572_s30 + $0x88] sm:$0xff]  ;;  %v667_v53 = vmul.f32 %v8610_v27, %v622_v36  ;;  %v7723_v5 = vpop.eup %7722  ;;  %v739_v17 = vmul.f32 %v7721_v63, %v8627_v48  ;;  %v630_v36 = vld [vmem:[%s8572_s30 + $0xa0] sm:$0xff] }
  0xd4   : > { %v741_v18 = vmul.f32 %v7723_v5, %v8627_v48  ;;  %v7725_v21 = vpop.eup %7724  ;;  %v682_v5 = vmul.f32 %v8602_v20, %v637_v49 }
  0xd5   : > { %7736 = vtanh.f32 %v667_v53  ;;  %v7727_v25 = vpop.eup %7726  ;;  %v783_v34 = vadd.f32 %v8632_v52, %v739_v17  ;;  %v738_v46 = vmul.f32 %v7725_v21, %v8659_v26 }
  0xd6   : > { %1564 = vmatpush2.bf16.msra.mxu1 %v7352_v47  ;;  %v7386_v47 = vld [vmem:[#allocation10 + $0x34] ss:$24 sps:$4 sm:$0xff]   ;;  %7738 = vtanh.f32 %v669_v58  ;;  %v7729_v29 = vpop.eup %7728  ;;  %v785_v35 = vadd.f32 %v8632_v52, %v741_v18  ;;  %v7401_v58 = vld [vmem:[#allocation10 + $0x244] ss:$24 sps:$4 sm:$0xff]  }
  0xd7   : > { %1565 = vmatprep.subr.bf16.mxu1 %v7353_v51  ;;  %v7388_v51 = vld [vmem:[#allocation10 + $0x30] ss:$24 sps:$4 sm:$0xff]   ;;  %1442 = vmatprep.subr.bf16.mxu0 %v7386_v47  ;;  %v740_v47 = vmul.f32 %v7727_v25, %v8659_v26  ;;  %v743_v53 = vmul.f32 %v7729_v29, %v8627_v48  ;;  %v782_v63 = vadd.f32 %v8671_v45, %v738_v46 }
  0xd8   : > { %1443 = vmatpush1.bf16.msra.mxu0 %v7388_v51  ;;  %v8716_v51 = vpack.c.bf16 %v785_v35, %v783_v34 }
  0xd9   : > { %1444 = vmatprep.subr.bf16.mxu0 %v7389_v42  ;;  %v7400_v42 = vld [vmem:[#allocation10 + $0x270] ss:$24 sps:$4 sm:$0xff]   ;;  %v787_v3 = vadd.f32 %v8632_v52, %v743_v53 }
  0xda   : > { %1566 = vmatpush2.bf16.msra.mxu1 %v7355_v62  ;;  %v672_v62 = vmul.f32 %v8602_v20, %v627_v39  ;;  %v635_v39 = vld [vmem:[%s8572_s30 + $0xc8] sm:$0xff] }
  0xdb   : > { %1567 = vmatprep.subr.bf16.mxu1 %v7356_v1  ;;  %v781_v1 = vadd.f32 %v8632_v52, %v737_v50  ;;  %v680_v61 = vmul.f32 %v8602_v20, %v635_v39  ;;  %v7410_v39 = vld [vmem:[#allocation10 + $0x1b4] ss:$24 sps:$4 sm:$0xff]   ;;  %v7412_v53 = vld [vmem:[#allocation10 + $0x1b0] ss:$24 sps:$4 sm:$0xff]  }
  0xdc   : > { %7740 = vtanh.f32 %v672_v62  ;;  %1445 = vmatpush1.bf16.msra.mxu0 %v7391_v4 }
  0xdd   : > { %v8694_v16 = vpack.c.bf16 %v781_v1, %v779_v0  ;;  %7742 = vtanh.f32 %v674_v2  ;;  %1446 = vmatprep.subr.bf16.mxu0 %v7392_v7  ;;  %v784_v0 = vadd.f32 %v8671_v45, %v740_v47 }
  0xde   : > { %1568 = vmatpush2.bf16.msra.mxu1 %v7358_v8  ;;  %v671_v8 = vmul.f32 %v8610_v27, %v626_v54 }
  0xdf   : > { %1569 = vmatprep.subr.bf16.mxu1 %v7359_v13  ;;  %v734_v13 = vmul.f32 %v7717_v56, %v8659_v26  ;;  %v675_v56 = vmul.f32 %v8610_v27, %v630_v36 }
  0xe0   : > { %7744 = vtanh.f32 %v671_v8  ;;  %1447 = vmatpush2.bf16.msra.mxu0 %v7394_v19  ;;  %v634_v8 = vld [vmem:[%s8572_s30 + $0xc0] sm:$0xff] }
  0xe1   : > { %v778_v30 = vadd.f32 %v8671_v45, %v734_v13  ;;  %7746 = vtanh.f32 %v673_v9  ;;  %1448 = vmatprep.subr.bf16.mxu0 %v7395_v24  ;;  %v7404_v9 = vld [vmem:[#allocation10 + $0x214] ss:$24 sps:$4 sm:$0xff]   ;;  %v7406_v24 = vld [vmem:[#allocation10 + $0x210] ss:$24 sps:$4 sm:$0xff]  }
  0xe2   : > { %1570 = vmatpush2.bf16.msra.mxu1 %v7361_v31  ;;  %v780_v31 = vadd.f32 %v8671_v45, %v736_v15  ;;  %7748 = vtanh.f32 %v676_v23  ;;  %v636_v13 = vld [vmem:[%s8572_s30 + $0xd0] sm:$0xff]  ;;  %v8736_v15 = vpack.c.bf16 %v784_v0, %v782_v63  ;;  %v7415_v63 = vld [vmem:[#allocation10 + $0x180] ss:$24 sps:$4 sm:$0xff]  }
  0xe3   : > { %1571 = vmatprep.subr.bf16.mxu1 %v7362_v32  ;;  %v7731_v32 = vpop.eup %7730  ;;  %7750 = vtanh.f32 %v678_v28  ;;  %v7407_v28 = vld [vmem:[#allocation10 + $0x1e4] ss:$24 sps:$4 sm:$0xff]   ;;  %v681_v35 = vmul.f32 %v8610_v27, %v636_v13 }
  0xe4   : > { %v7733_v33 = vpop.eup %7732  ;;  %v8710_v44 = vpack.c.bf16 %v780_v31, %v778_v30  ;;  %v745_v54 = vmul.f32 %v7731_v32, %v8627_v48  ;;  %1449 = vmatpush2.bf16.msra.mxu0 %v7397_v37  ;;  %7752 = vtanh.f32 %v675_v56  ;;  %v679_v30 = vmul.f32 %v8610_v27, %v634_v8 }
  0xe5   : > { %v759_v43 = vmul.f32 %v7733_v33, %v8627_v48  ;;  %1450 = vmatprep.subr.bf16.mxu0 %v7398_v40  ;;  %v7409_v33 = vld [vmem:[#allocation10 + $0x1e0] ss:$24 sps:$4 sm:$0xff]   ;;  %v640_v40 = vld [vmem:[%s8572_s30 + $0xf0] sm:$0xff] }
  0xe6   : > { %1572 = vmatpush2.bf16.msra.mxu1 %v7364_v38  ;;  %v632_v38 = vld [vmem:[%s8572_s30 + $0xb0] sm:$0xff]  ;;  %v789_v4 = vadd.f32 %v8632_v52, %v745_v54  ;;  %v7413_v54 = vld [vmem:[#allocation10 + $0x184] ss:$24 sps:$4 sm:$0xff]  }
  0xe7   : > { %1573 = vmatprep.subr.bf16.mxu1 %v7365_v41  ;;  %v7735_v41 = vpop.eup %7734  ;;  %v803_v55 = vadd.f32 %v8632_v52, %v759_v43  ;;  %v677_v60 = vmul.f32 %v8610_v27, %v632_v38  ;;  %v638_v38 = vld [vmem:[%s8572_s30 + $0xe0] sm:$0xff] }
  0xe8   : > { %v761_v50 = vmul.f32 %v7735_v41, %v8627_v48  ;;  %v7737_v59 = vpop.eup %7736  ;;  %1451 = vmatpush2.bf16.msra.mxu0 %v7400_v42  ;;  %v8740_v21 = vpack.c.bf16 %v789_v4, %v787_v3  ;;  %v683_v42 = vmul.f32 %v8610_v27, %v638_v38 }
  0xe9   : > { %v7739_v62 = vpop.eup %7738  ;;  %7754 = vtanh.f32 %v677_v60  ;;  %v742_v17 = vmul.f32 %v7737_v59, %v8659_v26  ;;  %1452 = vmatprep.subr.bf16.mxu0 %v7401_v58  ;;  %v685_v59 = vmul.f32 %v8610_v27, %v640_v40 }
  0xea   : > { %1574 = vmatpush2.bf16.msra.mxu1 %v7367_v57  ;;  %v805_v57 = vadd.f32 %v8632_v52, %v761_v50  ;;  %v7741_v2 = vpop.eup %7740  ;;  %v744_v18 = vmul.f32 %v7739_v62, %v8659_v26  ;;  %7756 = vtanh.f32 %v680_v61 }
  0xeb   : > { %v7743_v7 = vpop.eup %7742  ;;  %v747_v20 = vmul.f32 %v7741_v2, %v8627_v48  ;;  %7758 = vtanh.f32 %v682_v5  ;;  %v786_v32 = vadd.f32 %v8671_v45, %v742_v17 }
  0xec   : > { %v8728_v1 = vpack.c.bf16 %v805_v57, %v803_v55  ;;  %v749_v23 = vmul.f32 %v7743_v7, %v8627_v48  ;;  %1453 = vmatpush2.bf16.msra.mxu0 %v7403_v6  ;;  %v788_v34 = vadd.f32 %v8671_v45, %v744_v18  ;;  %7760 = vtanh.f32 %v679_v30 }
  0xed   : > { %1576 = vmatmul.mubr.bf16.vlgmr.msra.gmra.mxu1 %v8690_v12  ;;  %v7745_v19 = vpop.eup %7744  ;;  %1454 = vmatprep.subr.bf16.mxu0 %v7404_v9  ;;  %v791_v36 = vadd.f32 %v8632_v52, %v747_v20  ;;  %7762 = vtanh.f32 %v681_v35 }
  0xee   : > { %1585 = vmatprep.mubr.bf16.mxu1 %v8694_v16  ;;  %v7747_v25 = vpop.eup %7746  ;;  %v793_v37 = vadd.f32 %v8632_v52, %v749_v23  ;;  %v8754_v41 = vpack.c.bf16 %v788_v34, %v786_v32  ;;  %v746_v43 = vmul.f32 %v7745_v19, %v8659_v26  ;;  %7764 = vtanh.f32 %v683_v42 }
  0xef   : > { %v7749_v29 = vpop.eup %7748  ;;  %v748_v46 = vmul.f32 %v7747_v25, %v8659_v26  ;;  %7766 = vtanh.f32 %v685_v59 }
  0xf0   : > { %v7751_v31 = vpop.eup %7750  ;;  %1455 = vmatpush2.bf16.msra.mxu0 %v7406_v24  ;;  %v8758_v47 = vpack.c.bf16 %v793_v37, %v791_v36  ;;  %v751_v49 = vmul.f32 %v7749_v29, %v8627_v48  ;;  %v790_v57 = vadd.f32 %v8671_v45, %v746_v43  ;;  %v934_v36 = vsub.s32 3, %v8594_v11 }
  0xf1   : > { %1456 = vmatprep.subr.bf16.mxu0 %v7407_v28  ;;  %v753_v50 = vmul.f32 %v7751_v31, %v8627_v48  ;;  %v7753_v55 = vpop.eup %7752  ;;  %v792_v58 = vadd.f32 %v8671_v45, %v748_v46 }
  0xf2   : > { %v795_v61 = vadd.f32 %v8632_v52, %v751_v49  ;;  %v750_v3 = vmul.f32 %v7753_v55, %v8659_v26 }
  0xf3   : > { %v797_v62 = vadd.f32 %v8632_v52, %v753_v50  ;;  %v8770_v2 = vpack.c.bf16 %v792_v58, %v790_v57 }
  0xf4   : > { %1457 = vmatpush2.bf16.msra.mxu0 %v7409_v33  ;;  %v794_v8 = vadd.f32 %v8671_v45, %v750_v3 }
  0xf5   : > { %1586 = vmatmul.mubr.bf16.gmra.mxu1 %v8710_v44  ;;  %1458 = vmatprep.subr.bf16.mxu0 %v7410_v39  ;;  %v8774_v27 = vpack.c.bf16 %v797_v62, %v795_v61 }
  0xf6   : > { %1595 = vmatprep.mubr.bf16.mxu1 %v8716_v51  ;;  %v7755_v56 = vpop.eup %7754 }
  0xf7   : > { %v7757_v60 = vpop.eup %7756  ;;  %v752_v4 = vmul.f32 %v7755_v56, %v8659_v26 }
  0xf8   : > { %v7759_v0 = vpop.eup %7758  ;;  %1459 = vmatpush2.bf16.msra.mxu0 %v7412_v53  ;;  %v755_v5 = vmul.f32 %v7757_v60, %v8627_v48 }
  0xf9   : > { %1460 = vmatprep.subr.bf16.mxu0 %v7413_v54  ;;  %v757_v6 = vmul.f32 %v7759_v0, %v8627_v48  ;;  %v7761_v7 = vpop.eup %7760  ;;  %v796_v9 = vadd.f32 %v8671_v45, %v752_v4 }
  0xfa   : > { %v7763_v13 = vpop.eup %7762  ;;  %v799_v17 = vadd.f32 %v8632_v52, %v755_v5  ;;  %v754_v19 = vmul.f32 %v7761_v7, %v8659_v26 }
  0xfb   : > { %v801_v18 = vadd.f32 %v8632_v52, %v757_v6  ;;  %v8786_v48 = vpack.c.bf16 %v796_v9, %v794_v8  ;;  %v756_v20 = vmul.f32 %v7763_v13, %v8659_v26  ;;  %v7765_v24 = vpop.eup %7764 }
  0xfc   : > { %1461 = vmatpush2.bf16.msra.mxu0 %v7415_v63  ;;  %v798_v25 = vadd.f32 %v8671_v45, %v754_v19  ;;  %v7767_v52 = vpop.eup %7766  ;;  %v758_v30 = vmul.f32 %v7765_v24, %v8659_v26 }
  0xfd   : > { %1596 = vmatmul.mubr.bf16.gmra.mxu1 %v8736_v15  ;;  %v8790_v23 = vpack.c.bf16 %v801_v18, %v799_v17  ;;  %v800_v28 = vadd.f32 %v8671_v45, %v756_v20  ;;  %v760_v31 = vmul.f32 %v7767_v52, %v8659_v26  ;;  %v930_v26 = vsub.s32 2, %v8594_v11 }
  0xfe   : > { %1605 = vmatprep.mubr.bf16.mxu1 %v8740_v21  ;;  %v802_v32 = vadd.f32 %v8671_v45, %v758_v30 }
  0xff   : > { %1463 = vmatmul.mubr.bf16.vlgmr.msra.gmra.mxu0 %v8690_v12  ;;  %v8798_v29 = vpack.c.bf16 %v800_v28, %v798_v25  ;;  %v804_v34 = vadd.f32 %v8671_v45, %v760_v31  ;;  %v8825_v45 = vld [vmem:[%s10404_s5] sm:$0x3f] }
 0x100   : > { %1472 = vmatprep.mubr.bf16.mxu0 %v8694_v16  ;;  %v8829_v33 = vrot.slane %v8825_v45, %v930_v26  ;;  %v8832_v39 = vrot.slane %v8825_v45, %v934_v36  ;;  %v8852_v26 = vrot.slane %v8825_v45, %v8605_v22 }
 0x101   : > { %v8808_v35 = vpack.c.bf16 %v804_v34, %v802_v32 }
 0x105   : > { %1606 = vmatmul.mubr.bf16.gmra.mxu1 %v8754_v41 }
 0x106   : > { %1615 = vmatprep.mubr.bf16.mxu1 %v8758_v47 }
 0x107   : > { %1473 = vmatmul.mubr.bf16.gmra.mxu0 %v8710_v44 }
 0x108   : > { %1482 = vmatprep.mubr.bf16.mxu0 %v8716_v51 }
 0x10d   : > { %1616 = vmatmul.mubr.bf16.gmra.mxu1 %v8770_v2 }
 0x10e   : > { %1625 = vmatprep.mubr.bf16.mxu1 %v8774_v27 }
 0x10f   : > { %1483 = vmatmul.mubr.bf16.gmra.mxu0 %v8736_v15 }
 0x110   : > { %1492 = vmatprep.mubr.bf16.mxu0 %v8740_v21 }
 0x115   : > { %1626 = vmatmul.mubr.bf16.gmra.mxu1 %v8786_v48 }
 0x116   : > { %1635 = vmatprep.mubr.bf16.mxu1 %v8790_v23 }
 0x117   : > { %1493 = vmatmul.mubr.bf16.gmra.mxu0 %v8754_v41 }
 0x118   : > { %1502 = vmatprep.mubr.bf16.mxu0 %v8758_v47 }
 0x11d   : > { %1636 = vmatmul.mubr.bf16.gmra.mxu1 %v8798_v29 }
 0x11e   : > { %1645 = vmatprep.mubr.bf16.mxu1 %v8728_v1 }
 0x11f   : > { %1503 = vmatmul.mubr.bf16.gmra.mxu0 %v8770_v2 }
 0x120   : > { %1512 = vmatprep.mubr.bf16.mxu0 %v8774_v27 }
 0x125   : > { %1646 = vmatmul.mubr.bf16.gmra.mxu1 %v8808_v35 }
 0x127   : > { %1513 = vmatmul.mubr.bf16.gmra.mxu0 %v8786_v48 }
 0x128   : > { %1522 = vmatprep.mubr.bf16.mxu0 %v8790_v23 }
 0x12f   : > { %1523 = vmatmul.mubr.bf16.gmra.mxu0 %v8798_v29 }
 0x130   : > { %1532 = vmatprep.mubr.bf16.mxu0 %v8728_v1 }
 0x137   : > { %1533 = vmatmul.mubr.bf16.gmra.mxu0 %v8808_v35 }
 0x138   : > { %1688 = vmatprep.mubr.bf16.mxu0 %v8647_v10 }
 0x1ad   : > { %v1577_v37 = vpop.f32.mrf.mxu1 }
 0x1ae   : > { %v1578_v10 = vadd.f32 %v1577_v37, %v8829_v33 }
 0x1af   : > { %v1579_v38 = vpop.f32.mrf.mxu1 }
 0x1b0   : > { %v1580_v49 = vadd.f32 %v1579_v38, %v8832_v39 }
 0x1b1   : > { %v1581_v40 = vpop.f32.mrf.mxu1 }
 0x1b2   : > { %v1582_v43 = vadd.f32 %v1581_v40, %v8829_v33 }
 0x1b3   : > { %v1583_v46 = vpop.f32.mrf.mxu1 }
 0x1b4   : > { %v1584_v50 = vadd.f32 %v1583_v46, %v8832_v39  ;;  %v1785_v53 = vpack.c.bf16 %v1582_v43, %v1578_v10 }
 0x1b5   : > { %v1587_v54 = vpop.f32.mrf.mxu1 }
 0x1b6   : > { %1817 = vxpose.xlu0.c.b16.start [1/8] %v1785_v53, 128  ;;  %v1786_v55 = vpack.c.bf16 %v1584_v50, %v1580_v49  ;;  %v1588_v57 = vadd.f32 %v1587_v54, %v8829_v33 }
 0x1b7   : > { %v1589_v42 = vpop.f32.mrf.mxu1 }
 0x1b8   : > { %1833 = vxpose.xlu1.c.b16.start [1/8] %v1786_v55, 128  ;;  %v1590_v60 = vadd.f32 %v1589_v42, %v8832_v39 }
 0x1b9   : > { %v1591_v56 = vpop.f32.mrf.mxu1 }
 0x1ba   : > { %v1592_v58 = vadd.f32 %v1591_v56, %v8829_v33 }
 0x1bb   : > { %v1593_v59 = vpop.f32.mrf.mxu1 }
 0x1bc   : > { %v1594_v61 = vadd.f32 %v1593_v59, %v8832_v39  ;;  %v1787_v62 = vpack.c.bf16 %v1592_v58, %v1588_v57 }
 0x1bd   : > { %v1597_v63 = vpop.f32.mrf.mxu1 }
 0x1be   : > { %1818 = vxpose.xlu0.c.b16.cont [2/8] %v1787_v62, 128  ;;  %v1788_v0 = vpack.c.bf16 %v1594_v61, %v1590_v60  ;;  %v1598_v5 = vadd.f32 %v1597_v63, %v8829_v33 }
 0x1bf   : > { %v1599_v3 = vpop.f32.mrf.mxu1  ;;  %v1464_v37 = vpop.f32.mrf.mxu0 }
 0x1c0   : > { %1834 = vxpose.xlu1.c.b16.cont [2/8] %v1788_v0, 128  ;;  %v1600_v8 = vadd.f32 %v1599_v3, %v8832_v39  ;;  %v1465_v46 = vadd.f32 %v1464_v37, %v8852_v26 }
 0x1c1   : > { %v1601_v4 = vpop.f32.mrf.mxu1  ;;  %v8854_v40 = vpop.f32.mrf.mxu0 }
 0x1c2   : > { %v1602_v6 = vadd.f32 %v1601_v4, %v8829_v33 }
 0x1c3   : > { %v1603_v7 = vpop.f32.mrf.mxu1  ;;  %v1468_v50 = vpop.f32.mrf.mxu0 }
 0x1c4   : > { %v1604_v9 = vadd.f32 %v1603_v7, %v8832_v39  ;;  %v1789_v13 = vpack.c.bf16 %v1602_v6, %v1598_v5  ;;  %v1469_v42 = vadd.f32 %v1468_v50, %v8852_v26 }
 0x1c5   : > { %v1607_v17 = vpop.f32.mrf.mxu1 }
 0x1c6   : > { %1819 = vxpose.xlu0.c.b16.cont [3/8] %v1789_v13, 128  ;;  %v1790_v18 = vpack.c.bf16 %v1604_v9, %v1600_v8  ;;  %v1608_v24 = vadd.f32 %v1607_v17, %v8829_v33  ;;  %v1769_v58 = vpack.c.bf16 %v1469_v42, %v1465_v46 }
 0x1c7   : > { %v1609_v19 = vpop.f32.mrf.mxu1 }
 0x1c8   : > { %1835 = vxpose.xlu1.c.b16.cont [3/8] %v1790_v18, 128  ;;  %v1610_v52 = vadd.f32 %v1609_v19, %v8832_v39  ;;  %7048 = vmatprep.mubr.bf16.mxu1 %v1769_v58 }
 0x1c9   : > { %v1611_v20 = vpop.f32.mrf.mxu1 }
 0x1ca   : > { %v1612_v25 = vadd.f32 %v1611_v20, %v8829_v33 }
 0x1cb   : > { %v1613_v28 = vpop.f32.mrf.mxu1 }
 0x1cc   : > { %v1614_v30 = vadd.f32 %v1613_v28, %v8832_v39  ;;  %v1791_v31 = vpack.c.bf16 %v1612_v25, %v1608_v24 }
 0x1cd   : > { %v1617_v32 = vpop.f32.mrf.mxu1 }
 0x1ce   : > { %1820 = vxpose.xlu0.c.b16.cont [4/8] %v1791_v31, 128  ;;  %v1792_v34 = vpack.c.bf16 %v1614_v30, %v1610_v52  ;;  %v1618_v10 = vadd.f32 %v1617_v32, %v8829_v33 }
 0x1cf   : > { %v1619_v36 = vpop.f32.mrf.mxu1 }
 0x1d0   : > { %1836 = vxpose.xlu1.c.b16.cont [4/8] %v1792_v34, 128  ;;  %v1620_v53 = vadd.f32 %v1619_v36, %v8832_v39 }
 0x1d1   : > { %v1621_v38 = vpop.f32.mrf.mxu1 }
 0x1d2   : > { %v1622_v43 = vadd.f32 %v1621_v38, %v8829_v33 }
 0x1d3   : > { %v1623_v49 = vpop.f32.mrf.mxu1 }
 0x1d4   : > { %v1624_v54 = vadd.f32 %v1623_v49, %v8832_v39  ;;  %v1793_v55 = vpack.c.bf16 %v1622_v43, %v1618_v10  ;;  %v8874_v10 = vpop.f32.mrf.mxu0 }
 0x1d5   : > { %v1627_v56 = vpop.f32.mrf.mxu1 }
 0x1d6   : > { %1821 = vxpose.xlu0.c.b16.cont [5/8] %v1793_v55, 128  ;;  %v1794_v57 = vpack.c.bf16 %v1624_v54, %v1620_v53  ;;  %v1628_v61 = vadd.f32 %v1627_v56, %v8829_v33  ;;  %v1474_v43 = vpop.f32.mrf.mxu0 }
 0x1d7   : > { %v1629_v59 = vpop.f32.mrf.mxu1 }
 0x1d8   : > { %1837 = vxpose.xlu1.c.b16.cont [5/8] %v1794_v57, 128  ;;  %v1630_v0 = vadd.f32 %v1629_v59, %v8832_v39  ;;  %v8876_v46 = vpop.f32.mrf.mxu0 }
 0x1d9   : > { %v1631_v60 = vpop.f32.mrf.mxu1 }
 0x1da   : > { %v1632_v62 = vadd.f32 %v1631_v60, %v8829_v33  ;;  %v1478_v49 = vpop.f32.mrf.mxu0 }
 0x1db   : > { %v1633_v63 = vpop.f32.mrf.mxu1 }
 0x1dc   : > { %v1634_v3 = vadd.f32 %v1633_v63, %v8832_v39  ;;  %v1795_v4 = vpack.c.bf16 %v1632_v62, %v1628_v61  ;;  %v8878_v50 = vpop.f32.mrf.mxu0 }
 0x1dd   : > { %v1637_v5 = vpop.f32.mrf.mxu1 }
 0x1de   : > { %1822 = vxpose.xlu0.c.b16.cont [6/8] %v1795_v4, 128  ;;  %v1796_v6 = vpack.c.bf16 %v1634_v3, %v1630_v0  ;;  %v1638_v9 = vadd.f32 %v1637_v5, %v8829_v33  ;;  %v1484_v53 = vpop.f32.mrf.mxu0 }
 0x1df   : > { %v1639_v7 = vpop.f32.mrf.mxu1 }
 0x1e0   : > { %1838 = vxpose.xlu1.c.b16.cont [6/8] %v1796_v6, 128  ;;  %v1640_v18 = vadd.f32 %v1639_v7, %v8832_v39  ;;  %v8880_v54 = vpop.f32.mrf.mxu0 }
 0x1e1   : > { %v1641_v8 = vpop.f32.mrf.mxu1 }
 0x1e2   : > { %v1642_v13 = vadd.f32 %v1641_v8, %v8829_v33 }
 0x1e3   : > { %v1643_v17 = vpop.f32.mrf.mxu1 }
 0x1e4   : > { %v1644_v19 = vadd.f32 %v1643_v17, %v8832_v39  ;;  %v1797_v20 = vpack.c.bf16 %v1642_v13, %v1638_v9 }
 0x1e5   : > { %v1647_v24 = vpop.f32.mrf.mxu1 }
 0x1e6   : > { %1823 = vxpose.xlu0.c.b16.cont [7/8] %v1797_v20, 128  ;;  %v1798_v25 = vpack.c.bf16 %v1644_v19, %v1640_v18  ;;  %v1648_v30 = vadd.f32 %v1647_v24, %v8829_v33 }
 0x1e7   : > { %v1649_v28 = vpop.f32.mrf.mxu1 }
 0x1e8   : > { %1839 = vxpose.xlu1.c.b16.cont [7/8] %v1798_v25, 128  ;;  %v1650_v34 = vadd.f32 %v1649_v28, %v8832_v39 }
 0x1e9   : > { %v1651_v52 = vpop.f32.mrf.mxu1 }
 0x1ea   : > { %v1652_v31 = vadd.f32 %v1651_v52, %v8829_v33  ;;  %v1488_v33 = vpop.f32.mrf.mxu0 }
 0x1eb   : > { %v1653_v32 = vpop.f32.mrf.mxu1 }
 0x1ec   : > { %v1654_v36 = vadd.f32 %v1653_v32, %v8832_v39  ;;  %v1799_v37 = vpack.c.bf16 %v1652_v31, %v1648_v30  ;;  %v8882_v42 = vpop.f32.mrf.mxu0  ;;  %v1475_v31 = vadd.f32 %v1474_v43, %v8852_v26  ;;  %v1479_v32 = vadd.f32 %v1478_v49, %v8852_v26 }
 0x1ee   : > { %1824 = vxpose.xlu0.c.b16.end [8/8] %v1799_v37, 128  ;;  %v1800_v38 = vpack.c.bf16 %v1654_v36, %v1650_v34  ;;  %v1494_v56 = vpop.f32.mrf.mxu0  ;;  %v1485_v34 = vadd.f32 %v1484_v53, %v8852_v26  ;;  %v1489_v36 = vadd.f32 %v1488_v33, %v8852_v26 }
 0x1ef   : > { %v1495_v43 = vadd.f32 %v1494_v56, %v8852_v26 }
 0x1f0   : > { %1840 = vxpose.xlu1.c.b16.end [8/8] %v1800_v38, 128  ;;  %v8884_v58 = vpop.f32.mrf.mxu0 }
 0x1f2   : > { %v1498_v61 = vpop.f32.mrf.mxu0 }
 0x1f3   : > { %v1499_v49 = vadd.f32 %v1498_v61, %v8852_v26 }
 0x1f4   : > { %v8888_v63 = vpop.f32.mrf.mxu0 }
 0x1f6   : > { %v1504_v4 = vpop.f32.mrf.mxu0 }
 0x1f7   : > { %v1505_v53 = vadd.f32 %v1504_v4, %v8852_v26 }
 0x1f8   : > { %v8894_v7 = vpop.f32.mrf.mxu0 }
 0x1fa   : > { %v1508_v9 = vpop.f32.mrf.mxu0 }
 0x1fb   : > { %v1509_v33 = vadd.f32 %v1508_v9, %v8852_v26 }
 0x1fc   : > { %v8896_v17 = vpop.f32.mrf.mxu0 }
 0x1fe   : > { %v1514_v19 = vpop.f32.mrf.mxu0 }
 0x200   : > { %v8898_v20 = vpop.f32.mrf.mxu0 }
 0x202   : > { %v1518_v25 = vpop.f32.mrf.mxu0 }
 0x203   : > { %v1519_v56 = vadd.f32 %v1518_v25, %v8852_v26 }
 0x204   : > { %v8900_v52 = vpop.f32.mrf.mxu0 }
 0x206   : > { %v1524_v30 = vpop.f32.mrf.mxu0 }
 0x207   : > { %v1525_v61 = vadd.f32 %v1524_v30, %v8852_v26 }
 0x208   : > { %v8906_v38 = vpop.f32.mrf.mxu0 }
 0x234   : > { %v1825_v55 = vpop.trf.xlu0 }
 0x236   : > { %v8886_v60 = vpop.trf.xlu1 }
 0x238   : > { %v1826_v39 = vpop.trf.xlu0 }
 0x23a   : > { %v8890_v3 = vpop.trf.xlu1 }
 0x23c   : > { %v1827_v57 = vpop.trf.xlu0 }
 0x23e   : > { %v8892_v6 = vpop.trf.xlu1 }
 0x240   : > { %v1828_v59 = vpop.trf.xlu0 }
 0x242   : > { %v1844_v13 = vpop.trf.xlu1 }
 0x244   : > { %v1829_v62 = vpop.trf.xlu0 }
 0x246   : > { %v1845_v18 = vpop.trf.xlu1 }
 0x248   : > { %v1830_v0 = vpop.trf.xlu0 }
 0x24a   : > { %v1846_v24 = vpop.trf.xlu1 }
 0x24c   : > { %v1831_v5 = vpop.trf.xlu0 }
 0x24e   : > { %v1847_v28 = vpop.trf.xlu1 }
 0x250   : > { %v1832_v8 = vpop.trf.xlu0 }
 0x251   : > { %7032 = vmatprep.subr.bf16.mxu1 %v1832_v8 }
 0x252   : > { %7033 = vmatpush3.bf16.msra.mxu1 %v1832_v8  ;;  %v1848_v37 = vpop.trf.xlu1  ;;  %v1515_v8 = vadd.f32 %v1514_v19, %v8852_v26 }
 0x253   : > { %7034 = vmatprep.subr.bf16.mxu1 %v1831_v5 }
 0x256   : > { %7035 = vmatpush3.bf16.msra.mxu1 %v1831_v5 }
 0x257   : > { %7036 = vmatprep.subr.bf16.mxu1 %v1830_v0 }
 0x25a   : > { %7037 = vmatpush3.bf16.msra.mxu1 %v1830_v0  ;;  %v1777_v0 = vpack.c.bf16 %v1509_v33, %v1505_v53  ;;  %v7416_v33 = vld [vmem:[#allocation10 + $0x160] ss:$24 sps:$4 sm:$0xff]  }
 0x25b   : > { %7038 = vmatprep.subr.bf16.mxu1 %v1829_v62 }
 0x25e   : > { %7039 = vmatpush3.bf16.msra.mxu1 %v1829_v62  ;;  %v1775_v62 = vpack.c.bf16 %v1499_v49, %v1495_v43 }
 0x25f   : > { %7040 = vmatprep.subr.bf16.mxu1 %v1828_v59 }
 0x262   : > { %7041 = vmatpush3.bf16.msra.mxu1 %v1828_v59  ;;  %v1773_v59 = vpack.c.bf16 %v1489_v36, %v1485_v34 }
 0x263   : > { %7042 = vmatprep.subr.bf16.mxu1 %v1827_v57 }
 0x266   : > { %7043 = vmatpush3.bf16.msra.mxu1 %v1827_v57  ;;  %v1771_v57 = vpack.c.bf16 %v1479_v32, %v1475_v31  ;;  %v927_v31 = vrot.slane %v8825_v45, %v8597_v14 }
 0x267   : > { %7044 = vmatprep.subr.bf16.mxu1 %v1826_v39 }
 0x268   : > { %v1467_v30 = vadd.f32 %v8854_v40, %v927_v31  ;;  %v1481_v36 = vadd.f32 %v8878_v50, %v927_v31  ;;  %v1491_v40 = vadd.f32 %v8882_v42, %v927_v31  ;;  %v1511_v50 = vadd.f32 %v8896_v17, %v927_v31  ;;  %v7418_v17 = vld [vmem:[#allocation10 + $0x164] ss:$24 sps:$4 sm:$0xff]  }
 0x269   : > { %v1521_v42 = vadd.f32 %v8900_v52, %v927_v31  ;;  %1656 = vmatprep.subr.bf16.mxu0 %v7418_v17  ;;  %v7424_v52 = vld [vmem:[#allocation10 + $0x104] ss:$24 sps:$4 sm:$0xff]  }
 0x26a   : > { %7045 = vmatpush3.bf16.msra.mxu1 %v1826_v39  ;;  %v1528_v39 = vpop.f32.mrf.mxu0  ;;  %1657 = vmatpush1.bf16.msra.mxu0 %v7416_v33 }
 0x26b   : > { %7046 = vmatprep.subr.bf16.mxu1 %v1825_v55  ;;  %v1529_v4 = vadd.f32 %v1528_v39, %v8852_v26 }
 0x26d   : > { %v1781_v32 = vpack.c.bf16 %v1529_v4, %v1525_v61  ;;  %v7431_v61 = vld [vmem:[#allocation10 + $0x70] ss:$24 sps:$4 sm:$0xff]   ;;  %v7436_v4 = vld [vmem:[#allocation10 + $0x44] ss:$24 sps:$4 sm:$0xff]  }
 0x26e   : > { %7047 = vmatpush3.bf16.msra.mxu1 %v1825_v55  ;;  %v1530_v55 = vpop.f32.mrf.mxu0 }
 0x26f   : > { %7064 = vmatprep.subr.bf16.mxu1 %v1848_v37  ;;  %v1531_v39 = vadd.f32 %v1530_v55, %v927_v31  ;;  %v7427_v55 = vld [vmem:[#allocation10 + $0xd4] ss:$24 sps:$4 sm:$0xff]  }
 0x270   : > { %v1534_v5 = vpop.f32.mrf.mxu0 }
 0x271   : > { %7049 = vmatmul.mubr.bf16.vlgmr.msra.gmra.mxu1 %v1771_v57  ;;  %v1535_v19 = vadd.f32 %v1534_v5, %v8852_v26  ;;  %v7430_v5 = vld [vmem:[#allocation10 + $0xa4] ss:$24 sps:$4 sm:$0xff]  }
 0x272   : > { %7065 = vmatpush3.bf16.msra.mxu1 %v1848_v37  ;;  %7052 = vmatprep.mubr.bf16.mxu1 %v1773_v59  ;;  %v1536_v9 = vpop.f32.mrf.mxu0  ;;  %v1497_v37 = vadd.f32 %v8884_v58, %v927_v31 }
 0x273   : > { %7066 = vmatprep.subr.bf16.mxu1 %v1847_v28 }
 0x276   : > { %7067 = vmatpush3.bf16.msra.mxu1 %v1847_v28  ;;  %v1779_v28 = vpack.c.bf16 %v1519_v56, %v1515_v8  ;;  %v7428_v8 = vld [vmem:[#allocation10 + $0xa0] ss:$24 sps:$4 sm:$0xff]   ;;  %v7433_v56 = vld [vmem:[#allocation10 + $0x74] ss:$24 sps:$4 sm:$0xff]  }
 0x277   : > { %7068 = vmatprep.subr.bf16.mxu1 %v1846_v24 }
 0x279   : > { %7053 = vmatmul.mubr.bf16.gmra.mxu1 %v1775_v62  ;;  %v7421_v62 = vld [vmem:[#allocation10 + $0x134] ss:$24 sps:$4 sm:$0xff]  }
 0x27a   : > { %7069 = vmatpush3.bf16.msra.mxu1 %v1846_v24  ;;  %7056 = vmatprep.mubr.bf16.mxu1 %v1777_v0  ;;  %v1538_v24 = vpop.f32.mrf.mxu0  ;;  %v7425_v0 = vld [vmem:[#allocation10 + $0xd0] ss:$24 sps:$4 sm:$0xff]  }
 0x27b   : > { %7070 = vmatprep.subr.bf16.mxu1 %v1845_v18  ;;  %v1539_v25 = vadd.f32 %v1538_v24, %v8852_v26  ;;  %v1487_v26 = vadd.f32 %v8880_v54, %v927_v31  ;;  %v1517_v54 = vadd.f32 %v8898_v20, %v927_v31  ;;  %v7419_v20 = vld [vmem:[#allocation10 + $0x130] ss:$24 sps:$4 sm:$0xff]   ;;  %1658 = vmatprep.subr.bf16.mxu0 %v7421_v62  ;;  %v7440_v24 = vld [vmem:[#allocation10 + $0x2e0] ss:$24 sps:$4 sm:$0xff]  }
 0x27c   : > { %v1540_v58 = vpop.f32.mrf.mxu0  ;;  %1659 = vmatpush1.bf16.msra.mxu0 %v7419_v20 }
 0x27d   : > { %v1783_v34 = vpack.c.bf16 %v1539_v25, %v1535_v19  ;;  %v1780_v43 = vpack.c.bf16 %v1521_v42, %v1517_v54  ;;  %1660 = vmatprep.subr.bf16.mxu0 %v7424_v52  ;;  %v7445_v19 = vld [vmem:[#allocation10 + $0x2b4] ss:$24 sps:$4 sm:$0xff]   ;;  %v7443_v25 = vld [vmem:[#allocation10 + $0x2b0] ss:$24 sps:$4 sm:$0xff]  }
 0x27e   : > { %7071 = vmatpush3.bf16.msra.mxu1 %v1845_v18  ;;  %v1471_v18 = vadd.f32 %v8874_v10, %v927_v31 }
 0x27f   : > { %7072 = vmatprep.subr.bf16.mxu1 %v1844_v13 }
 0x280   : > { %v1770_v45 = vpack.c.bf16 %v1471_v18, %v1467_v30  ;;  %v7448_v30 = vld [vmem:[#allocation10 + $0x284] ss:$24 sps:$4 sm:$0xff]   ;;  %v7446_v18 = vld [vmem:[#allocation10 + $0x280] ss:$24 sps:$4 sm:$0xff]  }
 0x281   : > { %7057 = vmatmul.mubr.bf16.gmra.mxu1 %v1779_v28  ;;  %v7439_v28 = vld [vmem:[#allocation10 + $0x14] ss:$24 sps:$4 sm:$0xff]  }
 0x282   : > { %7073 = vmatpush3.bf16.msra.mxu1 %v1844_v13  ;;  %7060 = vmatprep.mubr.bf16.mxu1 %v1781_v32  ;;  %v1477_v13 = vadd.f32 %v8876_v46, %v927_v31  ;;  %v1507_v46 = vadd.f32 %v8894_v7, %v927_v31  ;;  %v1541_v7 = vadd.f32 %v1540_v58, %v927_v31  ;;  %v7442_v32 = vld [vmem:[#allocation10 + $0x2e4] ss:$24 sps:$4 sm:$0xff]  }
 0x283   : > { %7074 = vmatprep.subr.bf16.mxu1 %v8892_v6 }
 0x284   : > { %v1772_v10 = vpack.c.bf16 %v1481_v36, %v1477_v13  ;;  %v1778_v59 = vpack.c.bf16 %v1511_v50, %v1507_v46  ;;  %v7454_v13 = vld [vmem:[#allocation10 + $0x224] ss:$24 sps:$4 sm:$0xff]   ;;  %v7452_v36 = vld [vmem:[#allocation10 + $0x220] ss:$24 sps:$4 sm:$0xff]  }
 0x286   : > { %7075 = vmatpush3.bf16.msra.mxu1 %v8892_v6  ;;  %v1774_v6 = vpack.c.bf16 %v1491_v40, %v1487_v26  ;;  %v7457_v26 = vld [vmem:[#allocation10 + $0x1f4] ss:$24 sps:$4 sm:$0xff]   ;;  %v7455_v40 = vld [vmem:[#allocation10 + $0x1f0] ss:$24 sps:$4 sm:$0xff]  }
 0x287   : > { %7076 = vmatprep.subr.bf16.mxu1 %v8890_v3 }
 0x289   : > { %7061 = vmatmul.mubr.bf16.gmra.mxu1 %v1783_v34  ;;  %v7451_v34 = vld [vmem:[#allocation10 + $0x254] ss:$24 sps:$4 sm:$0xff]  }
 0x28a   : > { %7077 = vmatpush3.bf16.msra.mxu1 %v8890_v3  ;;  %7080 = vmatprep.mubr.bf16.mxu1 %v1770_v45  ;;  %v1501_v3 = vadd.f32 %v8888_v63, %v927_v31  ;;  %v1537_v63 = vadd.f32 %v1536_v9, %v927_v31  ;;  %v7434_v9 = vld [vmem:[#allocation10 + $0x40] ss:$24 sps:$4 sm:$0xff]   ;;  %v7449_v45 = vld [vmem:[#allocation10 + $0x250] ss:$24 sps:$4 sm:$0xff]  }
 0x28b   : > { %7078 = vmatprep.subr.bf16.mxu1 %v8886_v60 }
 0x28c   : > { %v1776_v57 = vpack.c.bf16 %v1501_v3, %v1497_v37  ;;  %v1784_v53 = vpack.c.bf16 %v1541_v7, %v1537_v63  ;;  %v7463_v37 = vld [vmem:[#allocation10 + $0x194] ss:$24 sps:$4 sm:$0xff]   ;;  %v7461_v3 = vld [vmem:[#allocation10 + $0x190] ss:$24 sps:$4 sm:$0xff]  }
 0x28e   : > { %7079 = vmatpush3.bf16.msra.mxu1 %v8886_v60  ;;  %v1527_v60 = vadd.f32 %v8906_v38, %v927_v31  ;;  %v7422_v38 = vld [vmem:[#allocation10 + $0x100] ss:$24 sps:$4 sm:$0xff]   ;;  %v7437_v31 = vld [vmem:[#allocation10 + $0x10] ss:$24 sps:$4 sm:$0xff]  }
 0x28f   : > { %1661 = vmatpush1.bf16.msra.mxu0 %v7422_v38 }
 0x290   : > { %v1782_v49 = vpack.c.bf16 %v1531_v39, %v1527_v60  ;;  %1662 = vmatprep.subr.bf16.mxu0 %v7427_v55 }
 0x291   : > { %7081 = vmatmul.mubr.bf16.vlgmr.msra.gmra.mxu1 %v1772_v10  ;;  %v7460_v10 = vld [vmem:[#allocation10 + $0x1c4] ss:$24 sps:$4 sm:$0xff]  }
 0x292   : > { %7084 = vmatprep.mubr.bf16.mxu1 %v1774_v6  ;;  %v7458_v6 = vld [vmem:[#allocation10 + $0x1c0] ss:$24 sps:$4 sm:$0xff]  }
 0x293   : > { %1663 = vmatpush1.bf16.msra.mxu0 %v7425_v0 }
 0x294   : > { %1664 = vmatprep.subr.bf16.mxu0 %v7430_v5 }
 0x297   : > { %1665 = vmatpush1.bf16.msra.mxu0 %v7428_v8 }
 0x298   : > { %1666 = vmatprep.subr.bf16.mxu0 %v7433_v56 }
 0x299   : > { %7085 = vmatmul.mubr.bf16.gmra.mxu1 %v1776_v57 }
 0x29a   : > { %7088 = vmatprep.mubr.bf16.mxu1 %v1778_v59 }
 0x29b   : > { %1667 = vmatpush1.bf16.msra.mxu0 %v7431_v61 }
 0x29c   : > { %1668 = vmatprep.subr.bf16.mxu0 %v7436_v4 }
 0x29f   : > { %1669 = vmatpush1.bf16.msra.mxu0 %v7434_v9 }
 0x2a0   : > { %1670 = vmatprep.subr.bf16.mxu0 %v7439_v28 }
 0x2a1   : > { %7089 = vmatmul.mubr.bf16.gmra.mxu1 %v1780_v43 }
 0x2a2   : > { %7092 = vmatprep.mubr.bf16.mxu1 %v1782_v49 }
 0x2a3   : > { %1671 = vmatpush1.bf16.msra.mxu0 %v7437_v31 }
 0x2a4   : > { %1672 = vmatprep.subr.bf16.mxu0 %v7442_v32 }
 0x2a7   : > { %1673 = vmatpush2.bf16.msra.mxu0 %v7440_v24 }
 0x2a8   : > { %1674 = vmatprep.subr.bf16.mxu0 %v7445_v19 }
 0x2a9   : > { %7093 = vmatmul.mubr.bf16.gmra.mxu1 %v1784_v53 }
 0x2ab   : > { %1675 = vmatpush2.bf16.msra.mxu0 %v7443_v25 }
 0x2ac   : > { %1676 = vmatprep.subr.bf16.mxu0 %v7448_v30 }
 0x2af   : > { %1677 = vmatpush2.bf16.msra.mxu0 %v7446_v18 }
 0x2b0   : > { %1678 = vmatprep.subr.bf16.mxu0 %v7451_v34 }
 0x2b3   : > { %1679 = vmatpush2.bf16.msra.mxu0 %v7449_v45 }
 0x2b4   : > { %1680 = vmatprep.subr.bf16.mxu0 %v7454_v13 }
 0x2b7   : > { %1681 = vmatpush2.bf16.msra.mxu0 %v7452_v36 }
 0x2b8   : > { %1682 = vmatprep.subr.bf16.mxu0 %v7457_v26 }
 0x2bb   : > { %1683 = vmatpush2.bf16.msra.mxu0 %v7455_v40 }
 0x2bc   : > { %1684 = vmatprep.subr.bf16.mxu0 %v7460_v10 }
 0x2bf   : > { %1685 = vmatpush2.bf16.msra.mxu0 %v7458_v6 }
 0x2c0   : > { %1686 = vmatprep.subr.bf16.mxu0 %v7463_v37 }
 0x2c3   : > { %1687 = vmatpush2.bf16.msra.mxu0 %v7461_v3 }
 0x2c6   : > { %1689 = vmatmul.mubr.bf16.vlgmr.msra.gmra.mxu0 %v8690_v12 }
 0x2c7   : > { %1698 = vmatprep.mubr.bf16.mxu0 %v8694_v16 }
 0x2ce   : > { %1699 = vmatmul.mubr.bf16.gmra.mxu0 %v8710_v44 }
 0x2cf   : > { %1708 = vmatprep.mubr.bf16.mxu0 %v8716_v51 }
 0x2d6   : > { %1709 = vmatmul.mubr.bf16.gmra.mxu0 %v8736_v15 }
 0x2d7   : > { %1718 = vmatprep.mubr.bf16.mxu0 %v8740_v21 }
 0x2de   : > { %1719 = vmatmul.mubr.bf16.gmra.mxu0 %v8754_v41 }
 0x2df   : > { %1728 = vmatprep.mubr.bf16.mxu0 %v8758_v47 }
 0x2e6   : > { %1729 = vmatmul.mubr.bf16.gmra.mxu0 %v8770_v2 }
 0x2e7   : > { %1738 = vmatprep.mubr.bf16.mxu0 %v8774_v27 }
 0x2ee   : > { %1739 = vmatmul.mubr.bf16.gmra.mxu0 %v8786_v48 }
 0x2ef   : > { %1748 = vmatprep.mubr.bf16.mxu0 %v8790_v23 }
 0x2f6   : > { %1749 = vmatmul.mubr.bf16.gmra.mxu0 %v8798_v29 }
 0x2f7   : > { %1758 = vmatprep.mubr.bf16.mxu0 %v8728_v1 }
 0x2fe   : > { %1759 = vmatmul.mubr.bf16.gmra.mxu0 %v8808_v35 }
 0x331   : > { %v8941_v46 = vpop.f32.mrf.mxu1 }
 0x333   : > { %v8944_v50 = vpop.f32.mrf.mxu1 }
 0x335   : > { %v8947_v57 = vpop.f32.mrf.mxu1 }
 0x337   : > { %v8949_v59 = vpop.f32.mrf.mxu1 }
 0x339   : > { %v8951_v54 = vpop.f32.mrf.mxu1 }
 0x33b   : > { %v8954_v42 = vpop.f32.mrf.mxu1 }
 0x33d   : > { %v8957_v12 = vpop.f32.mrf.mxu1 }
 0x33f   : > { %v8959_v16 = vpop.f32.mrf.mxu1 }
 0x341   : > { %v8961_v44 = vpop.f32.mrf.mxu1 }
 0x343   : > { %v8964_v51 = vpop.f32.mrf.mxu1 }
 0x345   : > { %v8967_v60 = vpop.f32.mrf.mxu1 }
 0x347   : > { %v8969_v39 = vpop.f32.mrf.mxu1 }
 0x349   : > { %v8971_v15 = vpop.f32.mrf.mxu1 }
 0x34a   : > { %2071 = vmax.xlane.f32.xlu0 %v8971_v15 }
 0x34b   : > { %v8975_v21 = vpop.f32.mrf.mxu1 }
 0x34d   : > { %v8978_v43 = vpop.f32.mrf.mxu1 }
 0x34e   : > { %2073 = vmax.xlane.f32.xlu1 %v8978_v43 }
 0x34f   : > { %v8981_v41 = vpop.f32.mrf.mxu1 }
 0x351   : > { %v8983_v47 = vpop.f32.mrf.mxu1 }
 0x353   : > { %v8986_v49 = vpop.f32.mrf.mxu1 }
 0x355   : > { %v8989_v58 = vpop.f32.mrf.mxu1 }
 0x357   : > { %v8991_v2 = vpop.f32.mrf.mxu1 }
 0x359   : > { %v8993_v63 = vpop.f32.mrf.mxu1 }
 0x35b   : > { %v8996_v27 = vpop.f32.mrf.mxu1 }
 0x35d   : > { %v8999_v7 = vpop.f32.mrf.mxu1 }
 0x35f   : > { %v9001_v53 = vpop.f32.mrf.mxu1 }
 0x361   : > { %v9003_v48 = vpop.f32.mrf.mxu1 }
 0x363   : > { %v9006_v23 = vpop.f32.mrf.mxu1 }
 0x365   : > { %v9008_v17 = vpop.f32.mrf.mxu1 }
 0x367   : > { %v9010_v33 = vpop.f32.mrf.mxu1 }
 0x369   : > { %v9012_v62 = vpop.f32.mrf.mxu1 }
 0x36a   : > { %2103 = vmax.xlane.f32.xlu0 %v9012_v62 }
 0x36b   : > { %v9015_v29 = vpop.f32.mrf.mxu1 }
 0x36d   : > { %v9017_v1 = vpop.f32.mrf.mxu1 }
 0x36e   : > { %2067 = vmax.xlane.f32.xlu0 %v8975_v21  ;;  %2105 = vmax.xlane.f32.xlu1 %v9017_v1 }
 0x36f   : > { %v9023_v35 = vpop.f32.mrf.mxu1 }
 0x372   : > { %2099 = vmax.xlane.f32.xlu0 %v9015_v29  ;;  %2069 = vmax.xlane.f32.xlu1 %v8981_v41 }
 0x376   : > { %2063 = vmax.xlane.f32.xlu0 %v8961_v44  ;;  %2101 = vmax.xlane.f32.xlu1 %v9023_v35 }
 0x37a   : > { %2095 = vmax.xlane.f32.xlu0 %v9003_v48  ;;  %2065 = vmax.xlane.f32.xlu1 %v8967_v60 }
 0x37e   : > { %2059 = vmax.xlane.f32.xlu0 %v8964_v51  ;;  %2097 = vmax.xlane.f32.xlu1 %v9008_v17 }
 0x382   : > { %2091 = vmax.xlane.f32.xlu0 %v9006_v23  ;;  %2061 = vmax.xlane.f32.xlu1 %v8969_v39 }
 0x386   : > { %2055 = vmax.xlane.f32.xlu0 %v8951_v54  ;;  %2093 = vmax.xlane.f32.xlu1 %v9010_v33 }
 0x38a   : > { %2087 = vmax.xlane.f32.xlu0 %v8993_v63  ;;  %2057 = vmax.xlane.f32.xlu1 %v8957_v12 }
 0x38e   : > { %2051 = vmax.xlane.f32.xlu0 %v8954_v42  ;;  %2089 = vmax.xlane.f32.xlu1 %v8999_v7 }
 0x392   : > { %2083 = vmax.xlane.f32.xlu0 %v8996_v27  ;;  %2053 = vmax.xlane.f32.xlu1 %v8959_v16 }
 0x396   : > { %2047 = vmax.xlane.f32.xlu0 %v8941_v46  ;;  %2085 = vmax.xlane.f32.xlu1 %v9001_v53 }
 0x39a   : > { %2079 = vmax.xlane.f32.xlu0 %v8983_v47  ;;  %2049 = vmax.xlane.f32.xlu1 %v8947_v57 }
 0x39e   : > { %2043 = vmax.xlane.f32.xlu0 %v8944_v50  ;;  %2081 = vmax.xlane.f32.xlu1 %v8989_v58 }
 0x3a2   : > { %2075 = vmax.xlane.f32.xlu0 %v8986_v49  ;;  %2045 = vmax.xlane.f32.xlu1 %v8949_v59 }
 0x3a6   : > { %2077 = vmax.xlane.f32.xlu1 %v8991_v2 }
 0x3d3   : > { %v2072_v20 = vpop.xlane.xlu0 %2071 }
 0x3d4   : > { %v2121_v4 = vsub.f32 %v8971_v15, %v2072_v20 }
 0x3d6   : > { %v2167_v24 = vmul.f32 1.442695, %v2121_v4 }
 0x3d7   : > { %v2074_v52 = vpop.xlane.xlu1 %2073 }
 0x3d8   : > { %v2122_v30 = vsub.f32 %v8978_v43, %v2074_v52 }
 0x3da   : > { %v2169_v26 = vmul.f32 1.442695, %v2122_v30 }
 0x3f3   : > { %v2104_v38 = vpop.xlane.xlu0 %2103 }
 0x3f4   : > { %v2137_v37 = vsub.f32 %v9012_v62, %v2104_v38 }
 0x3f6   : > { %v2199_v43 = vmul.f32 1.442695, %v2137_v37 }
 0x3f7   : > { %v2068_v55 = vpop.xlane.xlu0 %2067  ;;  %v2106_v0 = vpop.xlane.xlu1 %2105 }
 0x3f8   : > { %v2119_v19 = vsub.f32 %v8975_v21, %v2068_v55 }
 0x3fa   : > { %v2163_v13 = vmul.f32 1.442695, %v2119_v19 }
 0x3fb   : > { %v2100_v5 = vpop.xlane.xlu0 %2099  ;;  %v2070_v8 = vpop.xlane.xlu1 %2069 }
 0x3fc   : > { %v2120_v40 = vsub.f32 %v8981_v41, %v2070_v8  ;;  %v2138_v41 = vsub.f32 %v9017_v1, %v2106_v0  ;;  %v2135_v55 = vsub.f32 %v9015_v29, %v2100_v5  ;;  %v9067_v8 = vpop.f32.mrf.mxu0 }
 0x3fe   : > { %v2201_v4 = vmul.f32 1.442695, %v2138_v41  ;;  %v9077_v5 = vpop.f32.mrf.mxu0 }
 0x3ff   : > { %v2064_v56 = vpop.xlane.xlu0 %2063  ;;  %v9050_v61 = vpop.xlane.xlu1 %2101 }
 0x400   : > { %v2117_v9 = vsub.f32 %v8961_v44, %v2064_v56  ;;  %v2165_v44 = vmul.f32 1.442695, %v2120_v40  ;;  %v9088_v30 = vpop.f32.mrf.mxu0 }
 0x402   : > { %v2159_v28 = vmul.f32 1.442695, %v2117_v9 }
 0x403   : > { %v2096_v31 = vpop.xlane.xlu0 %2095  ;;  %v2066_v32 = vpop.xlane.xlu1 %2065 }
 0x404   : > { %7768 = vpow2.f32 %v2159_v28  ;;  %v2118_v25 = vsub.f32 %v8967_v60, %v2066_v32  ;;  %v2133_v36 = vsub.f32 %v9003_v48, %v2096_v31  ;;  %v2195_v28 = vmul.f32 1.442695, %v2135_v55 }
 0x405   : > { %7770 = vpow2.f32 %v2167_v24 }
 0x406   : > { %v2161_v18 = vmul.f32 1.442695, %v2118_v25  ;;  %v2191_v3 = vmul.f32 1.442695, %v2133_v36  ;;  %v9098_v36 = vpop.f32.mrf.mxu0 }
 0x407   : > { %v2060_v34 = vpop.xlane.xlu0 %2059  ;;  %v2098_v45 = vpop.xlane.xlu1 %2097 }
 0x408   : > { %7772 = vpow2.f32 %v2161_v18  ;;  %v2134_v60 = vsub.f32 %v9008_v17, %v2098_v45  ;;  %v2115_v48 = vsub.f32 %v8964_v51, %v2060_v34 }
 0x409   : > { %7774 = vpow2.f32 %v2163_v13 }
 0x40a   : > { %7776 = vpow2.f32 %v2169_v26  ;;  %v2193_v52 = vmul.f32 1.442695, %v2134_v60  ;;  %v2155_v17 = vmul.f32 1.442695, %v2115_v48 }
 0x40b   : > { %v2092_v10 = vpop.xlane.xlu0 %2091  ;;  %v2062_v6 = vpop.xlane.xlu1 %2061  ;;  %7778 = vpow2.f32 %v2191_v3 }
 0x40c   : > { %7780 = vpow2.f32 %v2165_v44  ;;  %v2116_v51 = vsub.f32 %v8969_v39, %v2062_v6  ;;  %v2131_v29 = vsub.f32 %v9006_v23, %v2092_v10  ;;  %v2136_v39 = vsub.f32 %v9023_v35, %v9050_v61  ;;  %v9108_v44 = vpop.f32.mrf.mxu0 }
 0x40d   : > { %7782 = vpow2.f32 %v2199_v43 }
 0x40e   : > { %7784 = vpow2.f32 %v2193_v52  ;;  %v2157_v32 = vmul.f32 1.442695, %v2116_v51  ;;  %v2187_v19 = vmul.f32 1.442695, %v2131_v29  ;;  %v2197_v34 = vmul.f32 1.442695, %v2136_v39 }
 0x40f   : > { %v2056_v15 = vpop.xlane.xlu0 %2055  ;;  %v2094_v21 = vpop.xlane.xlu1 %2093  ;;  %7786 = vpow2.f32 %v2155_v17 }
 0x410   : > { %7788 = vpow2.f32 %v2201_v4  ;;  %v2113_v25 = vsub.f32 %v8951_v54, %v2056_v15  ;;  %v2132_v35 = vsub.f32 %v9010_v33, %v2094_v21 }
 0x411   : > { %v9062_v20 = vpop.eup %7768  ;;  %7790 = vpow2.f32 %v2195_v28 }
 0x412   : > { %2223 = vadd.xlane.f32.xlu0 %v9062_v20  ;;  %v9069_v56 = vpop.eup %7770  ;;  %7792 = vpow2.f32 %v2157_v32  ;;  %v2151_v13 = vmul.f32 1.442695, %v2113_v25  ;;  %v2189_v40 = vmul.f32 1.442695, %v2132_v35 }
 0x413   : > { %v2088_v62 = vpop.xlane.xlu0 %2087  ;;  %v2058_v38 = vpop.xlane.xlu1 %2057  ;;  %7794 = vpow2.f32 %v2187_v19 }
 0x414   : > { %v2129_v54 = vsub.f32 %v8993_v63, %v2088_v62  ;;  %7796 = vpow2.f32 %v2197_v34  ;;  %v2114_v10 = vsub.f32 %v8957_v12, %v2058_v38 }
 0x415   : > { %v9072_v9 = vpop.eup %7772  ;;  %7798 = vpow2.f32 %v2151_v13 }
 0x416   : > { %2231 = vadd.xlane.f32.xlu0 %v9069_v56  ;;  %2225 = vadd.xlane.f32.xlu1 %v9072_v9  ;;  %v9079_v31 = vpop.eup %7774  ;;  %v2183_v3 = vmul.f32 1.442695, %v2129_v54  ;;  %7800 = vpow2.f32 %v2189_v40  ;;  %v2153_v15 = vmul.f32 1.442695, %v2114_v10 }
 0x417   : > { %v2052_v1 = vpop.xlane.xlu0 %2051  ;;  %v2090_v0 = vpop.xlane.xlu1 %2089 }
 0x418   : > { %v9083_v24 = vpop.eup %7776  ;;  %v2111_v63 = vsub.f32 %v8954_v42, %v2052_v1  ;;  %v2130_v12 = vsub.f32 %v8999_v7, %v2090_v0  ;;  %7802 = vpow2.f32 %v2183_v3  ;;  %v9118_v42 = vpop.f32.mrf.mxu0 }
 0x419   : > { %v9090_v18 = vpop.eup %7778  ;;  %7804 = vpow2.f32 %v2153_v15 }
 0x41a   : > { %2227 = vadd.xlane.f32.xlu0 %v9079_v31  ;;  %2233 = vadd.xlane.f32.xlu1 %v9083_v24  ;;  %v9093_v45 = vpop.eup %7780  ;;  %v2147_v43 = vmul.f32 1.442695, %v2111_v63  ;;  %v2185_v62 = vmul.f32 1.442695, %v2130_v12  ;;  %v9128_v4 = vpop.f32.mrf.mxu0 }
 0x41b   : > { %v2054_v23 = vpop.xlane.xlu1 %2053  ;;  %v2084_v61 = vpop.xlane.xlu0 %2083 }
 0x41c   : > { %v9100_v26 = vpop.eup %7782  ;;  %v2127_v48 = vsub.f32 %v8996_v27, %v2084_v61  ;;  %v2112_v38 = vsub.f32 %v8959_v16, %v2054_v23  ;;  %7806 = vpow2.f32 %v2147_v43  ;;  %v9138_v32 = vpop.f32.mrf.mxu0 }
 0x41d   : > { %v9103_v33 = vpop.eup %7784  ;;  %7808 = vpow2.f32 %v2185_v62 }
 0x41e   : > { %2255 = vadd.xlane.f32.xlu0 %v9090_v18  ;;  %2229 = vadd.xlane.f32.xlu1 %v9093_v45  ;;  %v9110_v60 = vpop.eup %7786  ;;  %v2179_v17 = vmul.f32 1.442695, %v2127_v48  ;;  %v2149_v1 = vmul.f32 1.442695, %v2112_v38 }
 0x41f   : > { %v2086_v6 = vpop.xlane.xlu1 %2085  ;;  %v2048_v37 = vpop.xlane.xlu0 %2047 }
 0x420   : > { %v9113_v21 = vpop.eup %7788  ;;  %v2109_v27 = vsub.f32 %v8941_v46, %v2048_v37  ;;  %v2128_v0 = vsub.f32 %v9001_v53, %v2086_v6  ;;  %7810 = vpow2.f32 %v2179_v17 }
 0x421   : > { %v9120_v52 = vpop.eup %7790  ;;  %7812 = vpow2.f32 %v2149_v1 }
 0x422   : > { %2263 = vadd.xlane.f32.xlu0 %v9100_v26  ;;  %2257 = vadd.xlane.f32.xlu1 %v9103_v33  ;;  %v9123_v55 = vpop.eup %7792  ;;  %v2143_v39 = vmul.f32 1.442695, %v2109_v27  ;;  %v2181_v25 = vmul.f32 1.442695, %v2128_v0 }
 0x423   : > { %v2050_v41 = vpop.xlane.xlu1 %2049  ;;  %v2080_v7 = vpop.xlane.xlu0 %2079 }
 0x424   : > { %v9130_v51 = vpop.eup %7794  ;;  %v2125_v46 = vsub.f32 %v8983_v47, %v2080_v7  ;;  %v2110_v53 = vsub.f32 %v8947_v57, %v2050_v41  ;;  %7814 = vpow2.f32 %v2143_v39  ;;  %v9148_v47 = vpop.f32.mrf.mxu0 }
 0x425   : > { %v9133_v16 = vpop.eup %7796  ;;  %7816 = vpow2.f32 %v2181_v25 }
 0x426   : > { %2219 = vadd.xlane.f32.xlu0 %v9110_v60  ;;  %2265 = vadd.xlane.f32.xlu1 %v9113_v21  ;;  %v9140_v19 = vpop.eup %7798  ;;  %v2175_v34 = vmul.f32 1.442695, %v2125_v46  ;;  %v2145_v54 = vmul.f32 1.442695, %v2110_v53  ;;  %v9158_v37 = vpop.f32.mrf.mxu0 }
 0x427   : > { %v2082_v28 = vpop.xlane.xlu1 %2081  ;;  %v2044_v29 = vpop.xlane.xlu0 %2043 }
 0x428   : > { %v9143_v23 = vpop.eup %7800  ;;  %v2107_v35 = vsub.f32 %v8944_v50, %v2044_v29  ;;  %v2126_v40 = vsub.f32 %v8989_v58, %v2082_v28  ;;  %7818 = vpow2.f32 %v2175_v34  ;;  %v1714_v48 = vpop.f32.mrf.mxu0 }
 0x429   : > { %v9150_v13 = vpop.eup %7802  ;;  %7820 = vpow2.f32 %v2145_v54 }
 0x42a   : > { %2259 = vadd.xlane.f32.xlu0 %v9120_v52  ;;  %2221 = vadd.xlane.f32.xlu1 %v9123_v55  ;;  %v9153_v10 = vpop.eup %7804  ;;  %v2139_v6 = vmul.f32 1.442695, %v2107_v35  ;;  %v2177_v63 = vmul.f32 1.442695, %v2126_v40 }
 0x42b   : > { %v2046_v61 = vpop.xlane.xlu1 %2045  ;;  %v2076_v57 = vpop.xlane.xlu0 %2075 }
 0x42c   : > { %v2123_v50 = vsub.f32 %v8986_v49, %v2076_v57  ;;  %v9160_v3 = vpop.eup %7806  ;;  %v2108_v15 = vsub.f32 %v8949_v59, %v2046_v61  ;;  %7822 = vpow2.f32 %v2139_v6  ;;  %v1716_v59 = vpop.f32.mrf.mxu0 }
 0x42d   : > { %v9163_v58 = vpop.eup %7808  ;;  %7824 = vpow2.f32 %v2177_v63 }
 0x42e   : > { %2251 = vadd.xlane.f32.xlu0 %v9130_v51  ;;  %2261 = vadd.xlane.f32.xlu1 %v9133_v16  ;;  %v2171_v43 = vmul.f32 1.442695, %v2123_v50  ;;  %v9167_v41 = vpop.eup %7810  ;;  %v2141_v49 = vmul.f32 1.442695, %v2108_v15  ;;  %v1720_v1 = vpop.f32.mrf.mxu0  ;;  %v938_v15 = vsub.s32 4, %v8594_v11 }
 0x42f   : > { %v2078_v12 = vpop.xlane.xlu1 %2077  ;;  %10505 = vst [vmem:[#allocation26_spill] sm:$0xff] %v9167_v41  ;;  %v9170_v38 = vpop.eup %7812 }
 0x430   : > { %v2124_v62 = vsub.f32 %v8991_v2, %v2078_v12  ;;  %7826 = vpow2.f32 %v2171_v43  ;;  %v1722_v28 = vpop.f32.mrf.mxu0  ;;  %v7960_v43 = vld [vmem:[%s10404_s5] sm:$0x3f] }
 0x431   : > { %v9174_v7 = vpop.eup %7814  ;;  %7828 = vpow2.f32 %v2141_v49  ;;  %v939_v49 = vrot.slane %v7960_v43, %v938_v15 }
 0x432   : > { %2215 = vadd.xlane.f32.xlu0 %v9140_v19  ;;  %2253 = vadd.xlane.f32.xlu1 %v9143_v23  ;;  %v2173_v17 = vmul.f32 1.442695, %v2124_v62  ;;  %v9176_v27 = vpop.eup %7816  ;;  %v1724_v46 = vpop.f32.mrf.mxu0  ;;  %v942_v62 = vsub.s32 5, %v8594_v11 }
 0x433   : > { %v1691_v14 = vadd.f32 %v9067_v8, %v939_v49  ;;  %v1695_v22 = vadd.f32 %v9088_v30, %v939_v49  ;;  %v1715_v8 = vadd.f32 %v1714_v48, %v939_v49 }
 0x434   : > { %7830 = vpow2.f32 %v2173_v17  ;;  %v1726_v34 = vpop.f32.mrf.mxu0 }
 0x435   : > { %v9180_v2 = vpop.eup %7818 }
 0x436   : > { %2247 = vadd.xlane.f32.xlu0 %v9150_v13  ;;  %2217 = vadd.xlane.f32.xlu1 %v9153_v10  ;;  %10506 = vst [vmem:[#allocation27_spill] sm:$0xff] %v9180_v2  ;;  %v9182_v0 = vpop.eup %7820  ;;  %v1730_v61 = vpop.f32.mrf.mxu0 }
 0x438   : > { %v1732_v54 = vpop.f32.mrf.mxu0 }
 0x439   : > { %v9186_v29 = vpop.eup %7822 }
 0x43a   : > { %2211 = vadd.xlane.f32.xlu0 %v9160_v3  ;;  %2249 = vadd.xlane.f32.xlu1 %v9163_v58  ;;  %10507 = vst [vmem:[#allocation28_spill] sm:$0xff] %v9186_v29  ;;  %v9188_v39 = vpop.eup %7824  ;;  %v1734_v40 = vpop.f32.mrf.mxu0 }
 0x43b   : > { %10508 = vst [vmem:[#allocation29_spill] sm:$0xff] %v9188_v39 }
 0x43c   : > { %v1736_v57 = vpop.f32.mrf.mxu0 }
 0x43d   : > { %v9192_v25 = vpop.eup %7826 }
 0x43e   : > { %2243 = vadd.xlane.f32.xlu0 %v9167_v41  ;;  %2213 = vadd.xlane.f32.xlu1 %v9170_v38  ;;  %10509 = vst [vmem:[#allocation30_spill] sm:$0xff] %v9192_v25  ;;  %v9194_v53 = vpop.eup %7828  ;;  %v1740_v6 = vpop.f32.mrf.mxu0  ;;  %v1711_v41 = vadd.f32 %v9148_v47, %v939_v49 }
 0x43f   : > { %10510 = vst [vmem:[#allocation31_spill] sm:$0xff] %v9194_v53 }
 0x440   : > { %v1742_v50 = vpop.f32.mrf.mxu0 }
 0x441   : > { %v9198_v35 = vpop.eup %7830 }
 0x442   : > { %2207 = vadd.xlane.f32.xlu0 %v9174_v7  ;;  %2245 = vadd.xlane.f32.xlu1 %v9176_v27  ;;  %10511 = vst [vmem:[#allocation32_spill] sm:$0xff] %v9198_v35  ;;  %v1744_v63 = vpop.f32.mrf.mxu0 }
 0x444   : > { %v1746_v12 = vpop.f32.mrf.mxu0 }
 0x446   : > { %2239 = vadd.xlane.f32.xlu0 %v9180_v2  ;;  %2209 = vadd.xlane.f32.xlu1 %v9182_v0  ;;  %v1750_v17 = vpop.f32.mrf.mxu0  ;;  %v1705_v2 = vadd.f32 %v9128_v4, %v939_v49 }
 0x44a   : > { %2203 = vadd.xlane.f32.xlu0 %v9186_v29  ;;  %2241 = vadd.xlane.f32.xlu1 %v9188_v39  ;;  %v1752_v39 = vpop.f32.mrf.mxu0 }
 0x44c   : > { %v1754_v30 = vpop.f32.mrf.mxu0 }
 0x44e   : > { %2235 = vadd.xlane.f32.xlu0 %v9192_v25  ;;  %2205 = vadd.xlane.f32.xlu1 %v9194_v53  ;;  %v9208_v25 = vrot.slane %v7960_v43, %v942_v62  ;;  %v1801_v53 = vpack.c.bf16 %v1695_v22, %v1691_v14  ;;  %v1805_v14 = vpack.c.bf16 %v1715_v8, %v1711_v41  ;;  %v1756_v47 = vpop.f32.mrf.mxu0 }
 0x44f   : > { %v1721_v22 = vadd.f32 %v1720_v1, %v939_v49  ;;  %v1725_v62 = vadd.f32 %v1724_v46, %v939_v49  ;;  %v1741_v1 = vadd.f32 %v1740_v6, %v939_v49  ;;  %v1745_v46 = vadd.f32 %v1744_v63, %v939_v49 }
 0x450   : > { %v1693_v29 = vadd.f32 %v9077_v5, %v9208_v25  ;;  %v1697_v15 = vadd.f32 %v9098_v36, %v9208_v25  ;;  %v1707_v4 = vadd.f32 %v9138_v32, %v9208_v25  ;;  %v1713_v5 = vadd.f32 %v9158_v37, %v9208_v25  ;;  %v1760_v41 = vpop.f32.mrf.mxu0 }
 0x451   : > { %v1717_v36 = vadd.f32 %v1716_v59, %v9208_v25  ;;  %v1727_v32 = vadd.f32 %v1726_v34, %v9208_v25  ;;  %v1733_v59 = vadd.f32 %v1732_v54, %v9208_v25  ;;  %v1751_v8 = vadd.f32 %v1750_v17, %v939_v49 }
 0x452   : > { %2237 = vadd.xlane.f32.xlu1 %v9198_v35  ;;  %v1701_v35 = vadd.f32 %v9108_v44, %v939_v49  ;;  %v1802_v43 = vpack.c.bf16 %v1697_v15, %v1693_v29  ;;  %v1703_v44 = vadd.f32 %v9118_v42, %v9208_v25  ;;  %v1731_v29 = vadd.f32 %v1730_v61, %v939_v49  ;;  %v1762_v61 = vpop.f32.mrf.mxu0 }
 0x453   : > { %v1806_v42 = vpack.c.bf16 %v1717_v36, %v1713_v5  ;;  %v1737_v15 = vadd.f32 %v1736_v57, %v9208_v25  ;;  %v1743_v34 = vadd.f32 %v1742_v50, %v9208_v25  ;;  %v1753_v57 = vadd.f32 %v1752_v39, %v9208_v25 }
 0x454   : > { %v1803_v11 = vpack.c.bf16 %v1705_v2, %v1701_v35  ;;  %v1804_v48 = vpack.c.bf16 %v1707_v4, %v1703_v44  ;;  %v1807_v2 = vpack.c.bf16 %v1725_v62, %v1721_v22  ;;  %v1723_v35 = vadd.f32 %v1722_v28, %v9208_v25  ;;  %v1764_v6 = vpop.f32.mrf.mxu0 }
 0x455   : > { %v1810_v28 = vpack.c.bf16 %v1737_v15, %v1733_v59  ;;  %v1747_v44 = vadd.f32 %v1746_v12, %v9208_v25  ;;  %v1761_v4 = vadd.f32 %v1760_v41, %v939_v49  ;;  %v1757_v22 = vadd.f32 %v1756_v47, %v9208_v25 }
 0x456   : > { %v1808_v37 = vpack.c.bf16 %v1727_v32, %v1723_v35  ;;  %v1766_v17 = vpop.f32.mrf.mxu0  ;;  %v1763_v50 = vadd.f32 %v1762_v61, %v9208_v25 }
 0x457   : > { %v1812_v54 = vpack.c.bf16 %v1747_v44, %v1743_v34  ;;  %v1814_v62 = vpack.c.bf16 %v1757_v22, %v1753_v57  ;;  %v1767_v12 = vadd.f32 %v1766_v17, %v9208_v25 }
 0x459   : > { %v1816_v5 = vpack.c.bf16 %v1767_v12, %v1763_v50 }
 0x47b   : > { %2347 = vxpose.xlu0.c.b16.start [1/8] %v1801_v53, 128  ;;  %v1735_v53 = vadd.f32 %v1734_v40, %v939_v49  ;;  %v1811_v40 = vpack.c.bf16 %v1745_v46, %v1741_v1 }
 0x47f   : > { %2348 = vxpose.xlu0.c.b16.cont [2/8] %v1803_v11, 128  ;;  %2363 = vxpose.xlu1.c.b16.start [1/8] %v1802_v43, 128  ;;  %v1809_v11 = vpack.c.bf16 %v1735_v53, %v1731_v29  ;;  %v1755_v43 = vadd.f32 %v1754_v30, %v939_v49 }
 0x481   : > { %v1813_v63 = vpack.c.bf16 %v1755_v43, %v1751_v8 }
 0x483   : > { %2349 = vxpose.xlu0.c.b16.cont [3/8] %v1805_v14, 128  ;;  %2364 = vxpose.xlu1.c.b16.cont [2/8] %v1804_v48, 128  ;;  %v1765_v14 = vadd.f32 %v1764_v6, %v939_v49 }
 0x485   : > { %v1815_v30 = vpack.c.bf16 %v1765_v14, %v1761_v4 }
 0x487   : > { %2350 = vxpose.xlu0.c.b16.cont [4/8] %v1807_v2, 128  ;;  %2365 = vxpose.xlu1.c.b16.cont [3/8] %v1806_v42, 128 }
 0x48b   : > { %2351 = vxpose.xlu0.c.b16.cont [5/8] %v1809_v11, 128  ;;  %2366 = vxpose.xlu1.c.b16.cont [4/8] %v1808_v37, 128 }
 0x48f   : > { %2352 = vxpose.xlu0.c.b16.cont [6/8] %v1811_v40, 128  ;;  %2367 = vxpose.xlu1.c.b16.cont [5/8] %v1810_v28, 128 }
 0x493   : > { %2353 = vxpose.xlu0.c.b16.cont [7/8] %v1813_v63, 128  ;;  %2368 = vxpose.xlu1.c.b16.cont [6/8] %v1812_v54, 128 }
 0x497   : > { %2354 = vxpose.xlu0.c.b16.end [8/8] %v1815_v30, 128  ;;  %2369 = vxpose.xlu1.c.b16.cont [7/8] %v1814_v62, 128 }
 0x49b   : > { %v2224_v36 = vpop.xlane.xlu0 %2223  ;;  %2370 = vxpose.xlu1.c.b16.end [8/8] %v1816_v5, 128 }
 0x49f   : > { %v2232_v49 = vpop.xlane.xlu0 %2231  ;;  %v2226_v48 = vpop.xlane.xlu1 %2225 }
 0x4a0   : > { %7832 = vrcp.f32 %v2232_v49 }
 0x4a3   : > { %v2228_v39 = vpop.xlane.xlu0 %2227  ;;  %v2234_v47 = vpop.xlane.xlu1 %2233 }
 0x4a4   : > { %7834 = vrcp.f32 %v2234_v47 }
 0x4a5   : > { %7836 = vrcp.f32 %v2228_v39 }
 0x4a7   : > { %v2256_v2 = vpop.xlane.xlu0 %2255  ;;  %v2230_v29 = vpop.xlane.xlu1 %2229 }
 0x4a8   : > { %7838 = vrcp.f32 %v2230_v29 }
 0x4a9   : > { %7840 = vrcp.f32 %v2226_v48 }
 0x4aa   : > { %7842 = vrcp.f32 %v2224_v36 }
 0x4ab   : > { %v2264_v53 = vpop.xlane.xlu0 %2263  ;;  %v2258_v42 = vpop.xlane.xlu1 %2257 }
 0x4ac   : > { %7844 = vrcp.f32 %v2264_v53 }
 0x4ad   : > { %v7833_v35 = vpop.eup %7832 }
 0x4ae   : > { %v2313_v1 = vmul.f32 %v7833_v35, %v9069_v56 }
 0x4af   : > { %v2220_v25 = vpop.xlane.xlu0 %2219  ;;  %v2266_v32 = vpop.xlane.xlu1 %2265 }
 0x4b0   : > { %7846 = vrcp.f32 %v2266_v32 }
 0x4b1   : > { %v7835_v41 = vpop.eup %7834  ;;  %7848 = vrcp.f32 %v2220_v25 }
 0x4b2   : > { %v2314_v46 = vmul.f32 %v7835_v41, %v9083_v24  ;;  %v7837_v37 = vpop.eup %7836 }
 0x4b3   : > { %v2260_v11 = vpop.xlane.xlu0 %2259  ;;  %v2222_v59 = vpop.xlane.xlu1 %2221  ;;  %v2311_v8 = vmul.f32 %v7837_v37, %v9079_v31 }
 0x4b4   : > { %7850 = vrcp.f32 %v2222_v59  ;;  %v2338_v15 = vpack.c.bf16 %v2314_v46, %v2313_v1 }
 0x4b5   : > { %v7839_v61 = vpop.eup %7838  ;;  %7852 = vrcp.f32 %v2258_v42 }
 0x4b6   : > { %7854 = vrcp.f32 %v2260_v11  ;;  %7096 = vmatprep.subr.bf16.mxu0 %v2338_v15  ;;  %v2312_v43 = vmul.f32 %v7839_v61, %v9093_v45  ;;  %v7841_v28 = vpop.eup %7840 }
 0x4b7   : > { %v2252_v40 = vpop.xlane.xlu0 %2251  ;;  %7856 = vrcp.f32 %v2256_v2  ;;  %7097 = vmatpush3.bf16.xpose.msra.mxu0 %v2338_v15  ;;  %v2262_v56 = vpop.xlane.xlu1 %2261  ;;  %v2310_v6 = vmul.f32 %v7841_v28, %v9072_v9 }
 0x4b8   : > { %7858 = vrcp.f32 %v2262_v56  ;;  %v2337_v24 = vpack.c.bf16 %v2312_v43, %v2311_v8  ;;  %v7843_v34 = vpop.eup %7842 }
 0x4b9   : > { %v7845_v63 = vpop.eup %7844  ;;  %v2309_v14 = vmul.f32 %v7843_v34, %v9062_v20 }
 0x4ba   : > { %7098 = vmatprep.subr.bf16.mxu0 %v2337_v24  ;;  %v2329_v57 = vmul.f32 %v7845_v63, %v9100_v26 }
 0x4bb   : > { %v2216_v44 = vpop.xlane.xlu0 %2215  ;;  %v2254_v4 = vpop.xlane.xlu1 %2253  ;;  %v2336_v45 = vpack.c.bf16 %v2310_v6, %v2309_v14 }
 0x4bc   : > { %7860 = vrcp.f32 %v2216_v44 }
 0x4bd   : > { %v7847_v54 = vpop.eup %7846  ;;  %7862 = vrcp.f32 %v2254_v4 }
 0x4be   : > { %v2330_v22 = vmul.f32 %v7847_v54, %v9113_v21  ;;  %7864 = vrcp.f32 %v2252_v40  ;;  %v7849_v30 = vpop.eup %7848 }
 0x4bf   : > { %v2248_v31 = vpop.xlane.xlu0 %2247  ;;  %7099 = vmatpush3.bf16.xpose.msra.mxu0 %v2337_v24  ;;  %v2218_v17 = vpop.xlane.xlu1 %2217  ;;  %v2307_v26 = vmul.f32 %v7849_v30, %v9110_v60 }
 0x4c0   : > { %7866 = vrcp.f32 %v2218_v17  ;;  %7100 = vmatprep.subr.bf16.mxu0 %v2336_v45  ;;  %v2346_v9 = vpack.c.bf16 %v2330_v22, %v2329_v57  ;;  %v10512_v57 = vld [vmem:[#allocation26_spill] sm:$0xff] }
 0x4c1   : > { %v7851_v62 = vpop.eup %7850 }
 0x4c2   : > { %v7853_v50 = vpop.eup %7852  ;;  %7128 = vmatprep.subr.bf16.mxu1 %v2346_v9  ;;  %v2308_v12 = vmul.f32 %v7851_v62, %v9123_v55 }
 0x4c3   : > { %v2212_v20 = vpop.xlane.xlu0 %2211  ;;  %v7855_v5 = vpop.eup %7854  ;;  %7129 = vmatpush3.bf16.xpose.msra.mxu1 %v2346_v9  ;;  %v2326_v48 = vmul.f32 %v7853_v50, %v9103_v33 }
 0x4c4   : > { %v2250_v36 = vpop.xlane.xlu1 %2249  ;;  %v7857_v49 = vpop.eup %7856  ;;  %7868 = vrcp.f32 %v2212_v20  ;;  %v2335_v47 = vpack.c.bf16 %v2308_v12, %v2307_v26  ;;  %v2327_v2 = vmul.f32 %v7855_v5, %v9120_v52  ;;  %v10516_v26 = vld [vmem:[#allocation27_spill] sm:$0xff] }
 0x4c5   : > { %v7859_v21 = vpop.eup %7858  ;;  %7870 = vrcp.f32 %v2250_v36  ;;  %v2325_v42 = vmul.f32 %v7857_v49, %v9090_v18 }
 0x4c6   : > { %v2328_v29 = vmul.f32 %v7859_v21, %v9133_v16  ;;  %7872 = vrcp.f32 %v2248_v31 }
 0x4c7   : > { %v2244_v39 = vpop.xlane.xlu0 %2243  ;;  %7101 = vmatpush3.bf16.xpose.msra.mxu0 %v2336_v45  ;;  %v2344_v35 = vpack.c.bf16 %v2326_v48, %v2325_v42 }
 0x4c8   : > { %v2214_v55 = vpop.xlane.xlu1 %2213  ;;  %7102 = vmatprep.subr.bf16.mxu0 %v2335_v47  ;;  %v2345_v53 = vpack.c.bf16 %v2328_v29, %v2327_v2  ;;  %v10517_v29 = vld [vmem:[#allocation32_spill] sm:$0xff] }
 0x4c9   : > { %7874 = vrcp.f32 %v2214_v55  ;;  %v7861_v60 = vpop.eup %7860 }
 0x4ca   : > { %7130 = vmatprep.subr.bf16.mxu1 %v2345_v53  ;;  %v7863_v33 = vpop.eup %7862  ;;  %v2305_v11 = vmul.f32 %v7861_v60, %v9140_v19 }
 0x4cb   : > { %v2208_v25 = vpop.xlane.xlu0 %2207  ;;  %7131 = vmatpush3.bf16.xpose.msra.mxu1 %v2345_v53  ;;  %v7865_v41 = vpop.eup %7864  ;;  %v2324_v46 = vmul.f32 %v7863_v33, %v9143_v23  ;;  %v10518_v53 = vld [vmem:[#allocation30_spill] sm:$0xff] }
 0x4cc   : > { %v2246_v32 = vpop.xlane.xlu1 %2245  ;;  %7132 = vmatprep.subr.bf16.mxu1 %v2344_v35  ;;  %7876 = vrcp.f32 %v2208_v25  ;;  %v2323_v59 = vmul.f32 %v7865_v41, %v9130_v51 }
 0x4cd   : > { %v7867_v52 = vpop.eup %7866  ;;  %7878 = vrcp.f32 %v2246_v32 }
 0x4ce   : > { %v2306_v1 = vmul.f32 %v7867_v52, %v9153_v10  ;;  %7880 = vrcp.f32 %v2244_v39  ;;  %v2343_v40 = vpack.c.bf16 %v2324_v46, %v2323_v59 }
 0x4cf   : > { %v2240_v16 = vpop.xlane.xlu0 %2239  ;;  %7103 = vmatpush3.bf16.xpose.msra.mxu0 %v2335_v47 }
 0x4d0   : > { %v2210_v18 = vpop.xlane.xlu1 %2209  ;;  %v2334_v37 = vpack.c.bf16 %v2306_v1, %v2305_v11 }
 0x4d1   : > { %7882 = vrcp.f32 %v2210_v18  ;;  %v7869_v15 = vpop.eup %7868 }
 0x4d2   : > { %7104 = vmatprep.subr.bf16.mxu0 %v2334_v37  ;;  %v7871_v8 = vpop.eup %7870  ;;  %v2303_v23 = vmul.f32 %v7869_v15, %v9160_v3  ;;  %v7464_v15 = vld [vmem:[#allocation11 + $0x70] ss:$8 sps:$4 sm:$0xff]  }
 0x4d3   : > { %v2204_v61 = vpop.xlane.xlu0 %2203  ;;  %7133 = vmatpush3.bf16.xpose.msra.mxu1 %v2344_v35  ;;  %v7873_v28 = vpop.eup %7872  ;;  %v2322_v56 = vmul.f32 %v7871_v8, %v9163_v58  ;;  %v7467_v8 = vld [vmem:[#allocation11 + $0x60] ss:$8 sps:$4 sm:$0xff]  }
 0x4d4   : > { %v2242_v43 = vpop.xlane.xlu1 %2241  ;;  %7134 = vmatprep.subr.bf16.mxu1 %v2343_v40  ;;  %7884 = vrcp.f32 %v2204_v61  ;;  %v2321_v44 = vmul.f32 %v7873_v28, %v9150_v13  ;;  %v7466_v61 = vld [vmem:[#allocation11 + $0x74] ss:$8 sps:$4 sm:$0xff]   ;;  %v7470_v28 = vld [vmem:[#allocation11 + $0x50] ss:$8 sps:$4 sm:$0xff]  }
 0x4d5   : > { %7886 = vrcp.f32 %v2242_v43  ;;  %v7472_v43 = vld [vmem:[#allocation11 + $0x54] ss:$8 sps:$4 sm:$0xff]  }
 0x4d6   : > { %v7875_v19 = vpop.eup %7874  ;;  %7888 = vrcp.f32 %v2240_v16  ;;  %v2342_v63 = vpack.c.bf16 %v2322_v56, %v2321_v44  ;;  %v7476_v56 = vld [vmem:[#allocation11 + $0x30] ss:$8 sps:$4 sm:$0xff]  }
 0x4d7   : > { %v2304_v10 = vmul.f32 %v7875_v19, %v9170_v38  ;;  %7105 = vmatpush3.bf16.xpose.msra.mxu0 %v2334_v37  ;;  %v2236_v24 = vpop.xlane.xlu0 %2235  ;;  %v7475_v19 = vld [vmem:[#allocation11 + $0x44] ss:$8 sps:$4 sm:$0xff]   ;;  %v7482_v44 = vld [vmem:[#allocation11 + $0x10] ss:$8 sps:$4 sm:$0xff]  }
 0x4d8   : > { %v2206_v51 = vpop.xlane.xlu1 %2205 }
 0x4d9   : > { %7890 = vrcp.f32 %v2206_v51  ;;  %v2333_v34 = vpack.c.bf16 %v2304_v10, %v2303_v23  ;;  %v7877_v6 = vpop.eup %7876  ;;  %v7473_v23 = vld [vmem:[#allocation11 + $0x40] ss:$8 sps:$4 sm:$0xff]   ;;  %v7478_v10 = vld [vmem:[#allocation11 + $0x34] ss:$8 sps:$4 sm:$0xff]   ;;  %v7481_v51 = vld [vmem:[#allocation11 + $0x24] ss:$8 sps:$4 sm:$0xff]  }
 0x4da   : > { %v7879_v4 = vpop.eup %7878  ;;  %v2301_v58 = vmul.f32 %v7877_v6, %v9174_v7  ;;  %v10513_v7 = vld [vmem:[#allocation28_spill] sm:$0xff] }
 0x4db   : > { %7106 = vmatprep.subr.bf16.mxu0 %v2333_v34  ;;  %7135 = vmatpush3.bf16.xpose.msra.mxu1 %v2343_v40  ;;  %v7881_v54 = vpop.eup %7880  ;;  %v2320_v45 = vmul.f32 %v7879_v4, %v9176_v27  ;;  %v10515_v27 = vld [vmem:[#allocation29_spill] sm:$0xff]  ;;  %v7469_v40 = vld [vmem:[#allocation11 + $0x64] ss:$8 sps:$4 sm:$0xff]  }
 0x4dc   : > { %v2238_v14 = vpop.xlane.xlu1 %2237  ;;  %7136 = vmatprep.subr.bf16.mxu1 %v2342_v63  ;;  %v2319_v22 = vmul.f32 %v7881_v54, %v10512_v57  ;;  %v7487_v6 = vld [vmem:[#allocation11 + $0x4] ss:$8 sps:$4 sm:$0xff]   ;;  %v7490_v4 = vld [vmem:[#allocation11 + $0xf4] ss:$8 sps:$4 sm:$0xff]  }
 0x4dd   : > { %v2355_v3 = vpop.trf.xlu0  ;;  %7892 = vrcp.f32 %v2238_v14  ;;  %v7488_v14 = vld [vmem:[#allocation11 + $0xf0] ss:$8 sps:$4 sm:$0xff]   ;;  %v7493_v54 = vld [vmem:[#allocation11 + $0xe4] ss:$8 sps:$4 sm:$0xff]   ;;  %v7496_v57 = vld [vmem:[#allocation11 + $0xd4] ss:$8 sps:$4 sm:$0xff]  }
 0x4de   : > { %v7883_v38 = vpop.eup %7882  ;;  %7112 = vmatprep.mubr.bf16.mxu0 %v2355_v3  ;;  %7894 = vrcp.f32 %v2236_v24  ;;  %v2341_v9 = vpack.c.bf16 %v2320_v45, %v2319_v22  ;;  %v7479_v24 = vld [vmem:[#allocation11 + $0x20] ss:$8 sps:$4 sm:$0xff]  }
 0x4df   : > { %v2302_v31 = vmul.f32 %v7883_v38, %v9182_v0  ;;  %7107 = vmatpush3.bf16.xpose.msra.mxu0 %v2333_v34  ;;  %v10514_v0 = vld [vmem:[#allocation31_spill] sm:$0xff]  ;;  %v7484_v34 = vld [vmem:[#allocation11 + $0x14] ss:$8 sps:$4 sm:$0xff]  }
 0x4e0   : > { %v7491_v3 = vld [vmem:[#allocation11 + $0xe0] ss:$8 sps:$4 sm:$0xff]  }
 0x4e1   : > { %v2332_v13 = vpack.c.bf16 %v2302_v31, %v2301_v58  ;;  %v2371_v17 = vpop.trf.xlu1  ;;  %v7885_v30 = vpop.eup %7884 }
 0x4e2   : > { %7144 = vmatprep.mubr.bf16.mxu1 %v2371_v17  ;;  %v7887_v62 = vpop.eup %7886  ;;  %v2299_v12 = vmul.f32 %v7885_v30, %v10513_v7  ;;  %v2356_v2 = vpop.trf.xlu0  ;;  %v7494_v30 = vld [vmem:[#allocation11 + $0xd0] ss:$8 sps:$4 sm:$0xff]   ;;  %v7497_v7 = vld [vmem:[#allocation11 + $0xc0] ss:$8 sps:$4 sm:$0xff]  }
 0x4e3   : > { %7108 = vmatprep.subr.bf16.mxu0 %v2332_v13  ;;  %7137 = vmatpush3.bf16.xpose.msra.mxu1 %v2342_v63  ;;  %v7889_v50 = vpop.eup %7888  ;;  %v2318_v36 = vmul.f32 %v7887_v62, %v10515_v27  ;;  %v7485_v63 = vld [vmem:[#allocation11] ss:$8 sps:$4 sm:$0xff]  }
 0x4e4   : > { %7138 = vmatprep.subr.bf16.mxu1 %v2341_v9  ;;  %v2317_v21 = vmul.f32 %v7889_v50, %v10516_v26 }
 0x4e5   : > { %v2372_v33 = vpop.trf.xlu1 }
 0x4e6   : > { %v7891_v20 = vpop.eup %7890  ;;  %v2340_v48 = vpack.c.bf16 %v2318_v36, %v2317_v21  ;;  %v2357_v60 = vpop.trf.xlu0  ;;  %v7500_v36 = vld [vmem:[#allocation11 + $0xb0] ss:$8 sps:$4 sm:$0xff]   ;;  %v7505_v21 = vld [vmem:[#allocation11 + $0xa4] ss:$8 sps:$4 sm:$0xff]  }
 0x4e7   : > { %v2300_v5 = vmul.f32 %v7891_v20, %v10514_v0  ;;  %7109 = vmatpush3.bf16.xpose.msra.mxu0 %v2332_v13  ;;  %v7499_v20 = vld [vmem:[#allocation11 + $0xc4] ss:$8 sps:$4 sm:$0xff]  }
 0x4e9   : > { %v2331_v49 = vpack.c.bf16 %v2300_v5, %v2299_v12  ;;  %v2373_v41 = vpop.trf.xlu1  ;;  %v7502_v5 = vld [vmem:[#allocation11 + $0xb4] ss:$8 sps:$4 sm:$0xff]  }
 0x4ea   : > { %v7893_v39 = vpop.eup %7892  ;;  %v2358_v35 = vpop.trf.xlu0 }
 0x4eb   : > { %7110 = vmatprep.subr.bf16.mxu0 %v2331_v49  ;;  %7139 = vmatpush3.bf16.xpose.msra.mxu1 %v2341_v9  ;;  %v7895_v47 = vpop.eup %7894  ;;  %v2316_v55 = vmul.f32 %v7893_v39, %v10517_v29 }
 0x4ec   : > { %7140 = vmatprep.subr.bf16.mxu1 %v2340_v48  ;;  %v2315_v42 = vmul.f32 %v7895_v47, %v10518_v53 }
 0x4ed   : > { %v2374_v16 = vpop.trf.xlu1 }
 0x4ee   : > { %v2339_v25 = vpack.c.bf16 %v2316_v55, %v2315_v42  ;;  %v2359_v32 = vpop.trf.xlu0  ;;  %v7506_v55 = vld [vmem:[#allocation11 + $0x90] ss:$8 sps:$4 sm:$0xff]  }
 0x4ef   : > { %7111 = vmatpush3.bf16.xpose.msra.mxu0 %v2331_v49 }
 0x4f0   : > { %4713 = vmatprep.subr.bf16.mxu0 %v7466_v61 }
 0x4f1   : > { %v2375_v1 = vpop.trf.xlu1 }
 0x4f2   : > { %v2360_v52 = vpop.trf.xlu0 }
 0x4f3   : > { %7141 = vmatpush3.bf16.xpose.msra.mxu1 %v2340_v48  ;;  %v7503_v48 = vld [vmem:[#allocation11 + $0xa0] ss:$8 sps:$4 sm:$0xff]  }
 0x4f4   : > { %7142 = vmatprep.subr.bf16.mxu1 %v2339_v25 }
 0x4f5   : > { %v2376_v18 = vpop.trf.xlu1 }
 0x4f6   : > { %7113 = vmatmul.mubr.bf16.vlgmr.msra.gmra.mxu0 %v2356_v2  ;;  %v2361_v11 = vpop.trf.xlu0  ;;  %v7508_v2 = vld [vmem:[#allocation11 + $0x94] ss:$8 sps:$4 sm:$0xff]  }
 0x4f7   : > { %7116 = vmatprep.mubr.bf16.mxu0 %v2357_v60  ;;  %4714 = vmatpush1.bf16.msra.mxu0 %v7464_v15  ;;  %v7511_v60 = vld [vmem:[#allocation11 + $0x84] ss:$8 sps:$4 sm:$0xff]   ;;  %v8299_v15 = vmov 1983009808  }
 0x4f8   : > { %4715 = vmatprep.subr.bf16.mxu0 %v7469_v40  ;;  %v2639_v61 = vunpack.c.l.s4 %v8299_v15 }
 0x4f9   : > { %v2377_v37 = vpop.trf.xlu1 }
 0x4fa   : > { %v2362_v46 = vpop.trf.xlu0 }
 0x4fb   : > { %7143 = vmatpush3.bf16.xpose.msra.mxu1 %v2339_v25  ;;  %4716 = vmatpush1.bf16.msra.mxu0 %v7467_v8  ;;  %v7509_v25 = vld [vmem:[#allocation11 + $0x80] ss:$8 sps:$4 sm:$0xff]   ;;  %v2640_v8 = vunpack.c.0.s8 %v2639_v61 }
 0x4fc   : > { %4717 = vmatprep.subr.bf16.mxu0 %v7472_v43 }
 0x4fd   : > { %v2378_v59 = vpop.trf.xlu1 }
 0x4fe   : > { %7117 = vmatmul.mubr.bf16.gmra.mxu0 %v2358_v35 }
 0x4ff   : > { %7120 = vmatprep.mubr.bf16.mxu0 %v2359_v32  ;;  %4718 = vmatpush1.bf16.msra.mxu0 %v7470_v28  ;;  %v8300_v28 = vmov 1934713408  }
 0x500   : > { %4719 = vmatprep.subr.bf16.mxu0 %v7475_v19  ;;  %v2670_v19 = vunpack.c.l.s4 %v8300_v28 }
 0x502   : > { %7145 = vmatmul.mubr.bf16.vlgmr.msra.gmra.mxu1 %v2372_v33 }
 0x503   : > { %7148 = vmatprep.mubr.bf16.mxu1 %v2373_v41  ;;  %4720 = vmatpush1.bf16.msra.mxu0 %v7473_v23  ;;  %v10519_v23 = vld [vmem:[#allocation23_spill] sm:$0xff] }
 0x504   : > { %4721 = vmatprep.subr.bf16.mxu0 %v7478_v10  ;;  %v9267_v10 = vsub.s32 %v2640_v8, %v10519_v23 }
 0x506   : > { %7121 = vmatmul.mubr.bf16.gmra.mxu0 %v2360_v52 }
 0x507   : > { %7124 = vmatprep.mubr.bf16.mxu0 %v2361_v11  ;;  %4722 = vmatpush1.bf16.msra.mxu0 %v7476_v56 }
 0x508   : > { %4723 = vmatprep.subr.bf16.mxu0 %v7481_v51  ;;  %v2671_v51 = vunpack.c.0.s8 %v2670_v19 }
 0x50a   : > { %7149 = vmatmul.mubr.bf16.gmra.mxu1 %v2374_v16 }
 0x50b   : > { %7152 = vmatprep.mubr.bf16.mxu1 %v2375_v1  ;;  %4724 = vmatpush1.bf16.msra.mxu0 %v7479_v24  ;;  %v8301_v24 = vmov 0.0  }
 0x50c   : > { %4725 = vmatprep.subr.bf16.mxu0 %v7484_v34 }
 0x50e   : > { %7125 = vmatmul.mubr.bf16.gmra.mxu0 %v2362_v46 }
 0x50f   : > { %4726 = vmatpush1.bf16.msra.mxu0 %v7482_v44 }
 0x510   : > { %4727 = vmatprep.subr.bf16.mxu0 %v7487_v6 }
 0x512   : > { %7153 = vmatmul.mubr.bf16.gmra.mxu1 %v2376_v18 }
 0x513   : > { %7156 = vmatprep.mubr.bf16.mxu1 %v2377_v37  ;;  %4728 = vmatpush1.bf16.msra.mxu0 %v7485_v63 }
 0x514   : > { %4729 = vmatprep.subr.bf16.mxu0 %v7490_v4 }
 0x517   : > { %4730 = vmatpush2.bf16.msra.mxu0 %v7488_v14 }
 0x518   : > { %4731 = vmatprep.subr.bf16.mxu0 %v7493_v54  ;;  %v9274_v54 = vsub.s32 %v2671_v51, %v10519_v23 }
 0x51a   : > { %7157 = vmatmul.mubr.bf16.gmra.mxu1 %v2378_v59 }
 0x51b   : > { %4732 = vmatpush2.bf16.msra.mxu0 %v7491_v3 }
 0x51c   : > { %4733 = vmatprep.subr.bf16.mxu0 %v7496_v57 }
 0x51f   : > { %4734 = vmatpush2.bf16.msra.mxu0 %v7494_v30  ;;  %v7517_v30 = vld [vmem:[#allocation13 + $0xec] ss:$16 sps:$4 sm:$0xff]  }
 0x520   : > { %4735 = vmatprep.subr.bf16.mxu0 %v7499_v20 }
 0x523   : > { %4736 = vmatpush2.bf16.msra.mxu0 %v7497_v7 }
 0x524   : > { %4737 = vmatprep.subr.bf16.mxu0 %v7502_v5 }
 0x527   : > { %4738 = vmatpush2.bf16.msra.mxu0 %v7500_v36 }
 0x528   : > { %4739 = vmatprep.subr.bf16.mxu0 %v7505_v21 }
 0x52b   : > { %4740 = vmatpush2.bf16.msra.mxu0 %v7503_v48 }
 0x52c   : > { %4741 = vmatprep.subr.bf16.mxu0 %v7508_v2 }
 0x52f   : > { %4742 = vmatpush2.bf16.msra.mxu0 %v7506_v55 }
 0x530   : > { %4743 = vmatprep.subr.bf16.mxu0 %v7511_v60 }
 0x533   : > { %4744 = vmatpush2.bf16.msra.mxu0 %v7509_v25 }
 0x534   : > { %5644 = vmatprep.subr.bf16.mxu0 %v7517_v30 }
 0x5b6   : > { %v7114_v38 = vpop.f32.mrf.mxu0 }
 0x5b8   : > { %v2413_v58 = vpop.f32.mrf.mxu0 }
 0x5b9   : > { %2573 = vxpose.xlu0.b32.start [1/16] %v2413_v58, 128 }
 0x5ba   : > { %v7115_v31 = vpop.f32.mrf.mxu0 }
 0x5bc   : > { %v2416_v45 = vpop.f32.mrf.mxu0 }
 0x5bd   : > { %2574 = vxpose.xlu0.b32.cont [2/16] %v2416_v45, 128  ;;  %v7514_v45 = vld [vmem:[#allocation13 + $0xe4] ss:$16 sps:$4 sm:$0xff]  }
 0x5be   : > { %v7118_v13 = vpop.f32.mrf.mxu0  ;;  %5242 = vmatprep.subr.bf16.mxu1 %v7514_v45 }
 0x5c0   : > { %v2429_v17 = vpop.f32.mrf.mxu0 }
 0x5c1   : > { %2575 = vxpose.xlu0.b32.cont [3/16] %v7114_v38, 128 }
 0x5c2   : > { %v7146_v22 = vpop.f32.mrf.mxu1  ;;  %v7119_v50 = vpop.f32.mrf.mxu0 }
 0x5c4   : > { %v2510_v9 = vpop.f32.mrf.mxu1  ;;  %v2432_v0 = vpop.f32.mrf.mxu0 }
 0x5c5   : > { %2605 = vxpose.xlu1.b32.start [1/16] %v2510_v9, 128  ;;  %2576 = vxpose.xlu0.b32.cont [4/16] %v7115_v31, 128  ;;  %v7512_v31 = vld [vmem:[#allocation13 + $0xe0] ss:$16 sps:$4 sm:$0xff]   ;;  %v7520_v9 = vld [vmem:[#allocation13 + $0xc4] ss:$16 sps:$4 sm:$0xff]  }
 0x5c6   : > { %v7147_v62 = vpop.f32.mrf.mxu1  ;;  %v7122_v49 = vpop.f32.mrf.mxu0  ;;  %5243 = vmatpush1.bf16.msra.mxu1 %v7512_v31 }
 0x5c7   : > { %5244 = vmatprep.subr.bf16.mxu1 %v7520_v9 }
 0x5c8   : > { %v2513_v12 = vpop.f32.mrf.mxu1  ;;  %v2445_v39 = vpop.f32.mrf.mxu0 }
 0x5c9   : > { %2606 = vxpose.xlu1.b32.cont [2/16] %v2513_v12, 128  ;;  %2577 = vxpose.xlu0.b32.cont [5/16] %v2429_v17, 128 }
 0x5ca   : > { %v7150_v27 = vpop.f32.mrf.mxu1  ;;  %v7123_v29 = vpop.f32.mrf.mxu0 }
 0x5cc   : > { %v2526_v26 = vpop.f32.mrf.mxu1  ;;  %v2448_v42 = vpop.f32.mrf.mxu0 }
 0x5cd   : > { %2607 = vxpose.xlu1.b32.cont [3/16] %v7146_v22, 128  ;;  %2578 = vxpose.xlu0.b32.cont [6/16] %v2432_v0, 128 }
 0x5ce   : > { %v7151_v47 = vpop.f32.mrf.mxu1  ;;  %v7126_v33 = vpop.f32.mrf.mxu0 }
 0x5d0   : > { %v2529_v53 = vpop.f32.mrf.mxu1  ;;  %v2461_v41 = vpop.f32.mrf.mxu0 }
 0x5d1   : > { %2608 = vxpose.xlu1.b32.cont [4/16] %v7147_v62, 128  ;;  %2579 = vxpose.xlu0.b32.cont [7/16] %v7118_v13, 128 }
 0x5d2   : > { %v7154_v35 = vpop.f32.mrf.mxu1  ;;  %v7127_v16 = vpop.f32.mrf.mxu0 }
 0x5d4   : > { %v2542_v32 = vpop.f32.mrf.mxu1  ;;  %v2464_v1 = vpop.f32.mrf.mxu0 }
 0x5d5   : > { %2609 = vxpose.xlu1.b32.cont [5/16] %v2526_v26, 128  ;;  %2580 = vxpose.xlu0.b32.cont [8/16] %v7119_v50, 128 }
 0x5d6   : > { %v7155_v52 = vpop.f32.mrf.mxu1 }
 0x5d8   : > { %v2545_v11 = vpop.f32.mrf.mxu1 }
 0x5d9   : > { %2610 = vxpose.xlu1.b32.cont [6/16] %v2529_v53, 128  ;;  %2581 = vxpose.xlu0.b32.cont [9/16] %v2445_v39, 128 }
 0x5da   : > { %v7158_v46 = vpop.f32.mrf.mxu1 }
 0x5dc   : > { %v2558_v18 = vpop.f32.mrf.mxu1 }
 0x5dd   : > { %2611 = vxpose.xlu1.b32.cont [7/16] %v7150_v27, 128  ;;  %2582 = vxpose.xlu0.b32.cont [10/16] %v2448_v42, 128  ;;  %v7526_v42 = vld [vmem:[#allocation13 + $0xa4] ss:$16 sps:$4 sm:$0xff]  }
 0x5de   : > { %v7159_v37 = vpop.f32.mrf.mxu1 }
 0x5e0   : > { %v2561_v59 = vpop.f32.mrf.mxu1 }
 0x5e1   : > { %2612 = vxpose.xlu1.b32.cont [8/16] %v7151_v47, 128  ;;  %2583 = vxpose.xlu0.b32.cont [11/16] %v7122_v49, 128  ;;  %v7518_v47 = vld [vmem:[#allocation13 + $0xc0] ss:$16 sps:$4 sm:$0xff]  }
 0x5e2   : > { %5245 = vmatpush1.bf16.msra.mxu1 %v7518_v47 }
 0x5e3   : > { %5246 = vmatprep.subr.bf16.mxu1 %v7526_v42 }
 0x5e5   : > { %2613 = vxpose.xlu1.b32.cont [9/16] %v2542_v32, 128  ;;  %2584 = vxpose.xlu0.b32.cont [12/16] %v7123_v29, 128 }
 0x5e9   : > { %2614 = vxpose.xlu1.b32.cont [10/16] %v2545_v11, 128  ;;  %2585 = vxpose.xlu0.b32.cont [13/16] %v2461_v41, 128 }
 0x5ed   : > { %2615 = vxpose.xlu1.b32.cont [11/16] %v7154_v35, 128  ;;  %2586 = vxpose.xlu0.b32.cont [14/16] %v2464_v1, 128 }
 0x5f1   : > { %2616 = vxpose.xlu1.b32.cont [12/16] %v7155_v52, 128  ;;  %2587 = vxpose.xlu0.b32.cont [15/16] %v7126_v33, 128 }
 0x5f5   : > { %2617 = vxpose.xlu1.b32.cont [13/16] %v2558_v18, 128  ;;  %2588 = vxpose.xlu0.b32.end [16/16] %v7127_v16, 128 }
 0x5f9   : > { %2618 = vxpose.xlu1.b32.cont [14/16] %v2561_v59, 128  ;;  %v7524_v59 = vld [vmem:[#allocation13 + $0xa0] ss:$16 sps:$4 sm:$0xff]  }
 0x5fa   : > { %5247 = vmatpush1.bf16.msra.mxu1 %v7524_v59 }
 0x5fd   : > { %2619 = vxpose.xlu1.b32.cont [15/16] %v7158_v46, 128 }
 0x601   : > { %2620 = vxpose.xlu1.b32.end [16/16] %v7159_v37, 128 }
 0x635   : > { %v2589_v40 = vpop.trf.xlu0 }
 0x636   : > { %v2637_v34 = vcombine.high %v2589_v40, %v8301_v24  ;;  %v2644_v44 = vrot.slane %v2589_v40, %v9267_v10 }
 0x638   : > { %v2651_v3 = vrot.slane %v2637_v34, %v9267_v10 }
 0x639   : > { %v2590_v43 = vpop.trf.xlu0 }
 0x63a   : > { %v2703_v63 = vcombine.high %v2590_v43, %v8301_v24  ;;  %v2710_v17 = vrot.slane %v2590_v43, %v9267_v10  ;;  %v7532_v43 = vld [vmem:[#allocation13 + $0x84] ss:$16 sps:$4 sm:$0xff]  }
 0x63b   : > { %5248 = vmatprep.subr.bf16.mxu1 %v7532_v43 }
 0x63c   : > { %v2717_v62 = vrot.slane %v2703_v63, %v9267_v10 }
 0x63d   : > { %v2591_v56 = vpop.trf.xlu0 }
 0x63e   : > { %v2769_v4 = vcombine.high %v2591_v56, %v8301_v24  ;;  %v2776_v20 = vrot.slane %v2591_v56, %v9267_v10 }
 0x640   : > { %v9284_v7 = vrot.slane %v2769_v4, %v9267_v10 }
 0x641   : > { %v2621_v6 = vpop.trf.xlu1  ;;  %v2592_v14 = vpop.trf.xlu0 }
 0x642   : > { %v2652_v38 = vcombine.high %v2621_v6, %v8301_v24  ;;  %v2659_v58 = vrot.slane %v2621_v6, %v9267_v10  ;;  %v2835_v12 = vcombine.high %v2592_v14, %v8301_v24  ;;  %v9292_v48 = vrot.slane %v2592_v14, %v9267_v10 }
 0x644   : > { %v2666_v13 = vrot.slane %v2652_v38, %v9267_v10  ;;  %v2667_v57 = vcombine.low %v2644_v44, %v2659_v58  ;;  %v2668_v22 = vcombine.high %v2644_v44, %v2659_v58  ;;  %v9299_v32 = vrot.slane %v2835_v12, %v9267_v10  ;;  %v7530_v58 = vld [vmem:[#allocation13 + $0x80] ss:$16 sps:$4 sm:$0xff]  }
 0x645   : > { %v2622_v50 = vpop.trf.xlu1  ;;  %v2593_v0 = vpop.trf.xlu0  ;;  %5249 = vmatpush1.bf16.msra.mxu1 %v7530_v58 }
 0x646   : > { %v2675_v5 = vrot.slane %v2667_v57, %v9274_v54  ;;  %v2682_v27 = vrot.slane %v2668_v22, %v9274_v54  ;;  %v2683_v36 = vcombine.low %v2651_v3, %v2666_v13  ;;  %v2684_v49 = vcombine.high %v2651_v3, %v2666_v13  ;;  %v7538_v22 = vld [vmem:[#allocation13 + $0x64] ss:$16 sps:$4 sm:$0xff]  }
 0x647   : > { %v2718_v26 = vcombine.high %v2622_v50, %v8301_v24  ;;  %v2725_v21 = vrot.slane %v2622_v50, %v9267_v10  ;;  %v2901_v39 = vcombine.high %v2593_v0, %v8301_v24  ;;  %v9302_v16 = vrot.slane %v2593_v0, %v9267_v10  ;;  %5250 = vmatprep.subr.bf16.mxu1 %v7538_v22 }
 0x648   : > { %v2691_v2 = vrot.slane %v2683_v36, %v9274_v54  ;;  %v2698_v29 = vrot.slane %v2684_v49, %v9274_v54  ;;  %v3693_v55 = vcombine.low %v2675_v5, %v2682_v27  ;;  %v6768_v53 = vcombine.high %v2675_v5, %v2682_v27 }
 0x649   : > { %v2732_v60 = vrot.slane %v2718_v26, %v9267_v10  ;;  %v2733_v25 = vcombine.low %v2710_v17, %v2725_v21  ;;  %v2734_v35 = vcombine.high %v2710_v17, %v2725_v21  ;;  %v2623_v33 = vpop.trf.xlu1  ;;  %v9305_v11 = vrot.slane %v2901_v39, %v9267_v10  ;;  %v7536_v26 = vld [vmem:[#allocation13 + $0x60] ss:$16 sps:$4 sm:$0xff]  }
 0x64a   : > { %v3709_v41 = vcombine.low %v2691_v2, %v2698_v29  ;;  %v6769_v52 = vcombine.high %v2691_v2, %v2698_v29  ;;  %v9310_v15 = vrot.slane %v3693_v55, %v9267_v10  ;;  %v9313_v61 = vrot.slane %v6768_v53, %v9267_v10  ;;  %v2594_v29 = vpop.trf.xlu0  ;;  %v7544_v55 = vld [vmem:[#allocation13 + $0x44] ss:$16 sps:$4 sm:$0xff]   ;;  %5251 = vmatpush1.bf16.msra.mxu1 %v7536_v26 }
 0x64b   : > { %v2741_v1 = vrot.slane %v2733_v25, %v9274_v54  ;;  %v2748_v46 = vrot.slane %v2734_v35, %v9274_v54  ;;  %v2749_v18 = vcombine.low %v2717_v62, %v2732_v60  ;;  %v2750_v37 = vcombine.high %v2717_v62, %v2732_v60  ;;  %5252 = vmatprep.subr.bf16.mxu1 %v7544_v55 }
 0x64c   : > { %v2784_v40 = vcombine.high %v2623_v33, %v8301_v24  ;;  %v2791_v8 = vrot.slane %v2623_v33, %v9267_v10  ;;  %v9322_v4 = vrot.slane %v3709_v41, %v9267_v10  ;;  %v9325_v14 = vrot.slane %v6769_v52, %v9267_v10 }
 0x64d   : > { %v2757_v28 = vrot.slane %v2749_v18, %v9274_v54  ;;  %v2764_v19 = vrot.slane %v2750_v37, %v9274_v54  ;;  %v3743_v23 = vcombine.low %v2741_v1, %v2748_v46  ;;  %v6770_v56 = vcombine.high %v2741_v1, %v2748_v46  ;;  %v2624_v51 = vpop.trf.xlu1  ;;  %v7542_v18 = vld [vmem:[#allocation13 + $0x40] ss:$16 sps:$4 sm:$0xff]  }
 0x64e   : > { %v2798_v34 = vrot.slane %v2784_v40, %v9267_v10  ;;  %v2799_v44 = vcombine.low %v2776_v20, %v2791_v8  ;;  %v2800_v6 = vcombine.high %v2776_v20, %v2791_v8  ;;  %v2850_v63 = vcombine.high %v2624_v51, %v8301_v24  ;;  %5253 = vmatpush1.bf16.msra.mxu1 %v7542_v18 }
 0x64f   : > { %v3759_v3 = vcombine.low %v2757_v28, %v2764_v19  ;;  %v6771_v38 = vcombine.high %v2757_v28, %v2764_v19  ;;  %v9332_v17 = vrot.slane %v3743_v23, %v9267_v10  ;;  %v9335_v30 = vrot.slane %v6770_v56, %v9267_v10  ;;  %v7550_v28 = vld [vmem:[#allocation13 + $0x24] ss:$16 sps:$4 sm:$0xff]  }
 0x650   : > { %v2807_v31 = vrot.slane %v2799_v44, %v9274_v54  ;;  %v2814_v45 = vrot.slane %v2800_v6, %v9274_v54  ;;  %v2815_v13 = vcombine.low %v9284_v7, %v2798_v34  ;;  %v2816_v57 = vcombine.high %v9284_v7, %v2798_v34  ;;  %5254 = vmatprep.subr.bf16.mxu1 %v7550_v28 }
 0x651   : > { %v2857_v9 = vrot.slane %v2624_v51, %v9267_v10  ;;  %v2864_v62 = vrot.slane %v2850_v63, %v9267_v10  ;;  %v2625_v5 = vpop.trf.xlu1  ;;  %v9346_v21 = vrot.slane %v3759_v3, %v9267_v10  ;;  %v9349_v39 = vrot.slane %v6771_v38, %v9267_v10  ;;  %v2595_v63 = vpop.trf.xlu0 }
 0x652   : > { %v2823_v50 = vrot.slane %v2815_v13, %v9274_v54  ;;  %v2830_v20 = vrot.slane %v2816_v57, %v9274_v54  ;;  %v3793_v12 = vcombine.low %v2807_v31, %v2814_v45  ;;  %v6772_v0 = vcombine.high %v2807_v31, %v2814_v45  ;;  %v7548_v45 = vld [vmem:[#allocation13 + $0x20] ss:$16 sps:$4 sm:$0xff]  }
 0x653   : > { %v2865_v7 = vcombine.low %v9292_v48, %v2857_v9  ;;  %v2866_v27 = vcombine.high %v9292_v48, %v2857_v9  ;;  %v2881_v36 = vcombine.low %v9299_v32, %v2864_v62  ;;  %v2882_v49 = vcombine.high %v9299_v32, %v2864_v62  ;;  %v7556_v62 = vld [vmem:[#allocation13 + $0x4] ss:$16 sps:$4 sm:$0xff]   ;;  %5255 = vmatpush1.bf16.msra.mxu1 %v7548_v45 }
 0x654   : > { %v3809_v47 = vcombine.low %v2823_v50, %v2830_v20  ;;  %v6773_v2 = vcombine.high %v2823_v50, %v2830_v20  ;;  %v9356_v25 = vrot.slane %v3793_v12, %v9267_v10  ;;  %v9359_v35 = vrot.slane %v6772_v0, %v9267_v10  ;;  %5256 = vmatprep.subr.bf16.mxu1 %v7556_v62 }
 0x655   : > { %v2873_v53 = vrot.slane %v2865_v7, %v9274_v54  ;;  %v2880_v48 = vrot.slane %v2866_v27, %v9274_v54  ;;  %v2889_v42 = vrot.slane %v2881_v36, %v9274_v54  ;;  %v2896_v60 = vrot.slane %v2882_v49, %v9274_v54  ;;  %v2626_v43 = vpop.trf.xlu1 }
 0x656   : > { %v2916_v33 = vcombine.high %v2625_v5, %v8301_v24  ;;  %v2923_v32 = vrot.slane %v2625_v5, %v9267_v10  ;;  %v9364_v41 = vrot.slane %v3809_v47, %v9267_v10  ;;  %v9367_v52 = vrot.slane %v6773_v2, %v9267_v10 }
 0x657   : > { %v3843_v1 = vcombine.low %v2873_v53, %v2880_v48  ;;  %v6774_v46 = vcombine.high %v2873_v53, %v2880_v48  ;;  %v2967_v8 = vcombine.high %v2594_v29, %v8301_v24  ;;  %v3859_v56 = vcombine.low %v2889_v42, %v2896_v60 }
 0x658   : > { %v2930_v37 = vrot.slane %v2916_v33, %v9267_v10  ;;  %v2931_v59 = vcombine.low %v9302_v16, %v2923_v32  ;;  %v2932_v40 = vcombine.high %v9302_v16, %v2923_v32  ;;  %v6775_v51 = vcombine.high %v2889_v42, %v2896_v60 }
 0x659   : > { %v9374_v19 = vrot.slane %v3843_v1, %v9267_v10  ;;  %v9377_v23 = vrot.slane %v6774_v46, %v9267_v10  ;;  %v2974_v3 = vrot.slane %v2594_v29, %v9267_v10  ;;  %v2981_v38 = vrot.slane %v2967_v8, %v9267_v10  ;;  %v2627_v2 = vpop.trf.xlu1  ;;  %v7554_v29 = vld [vmem:[#allocation13] ss:$16 sps:$4 sm:$0xff]  }
 0x65a   : > { %v2939_v34 = vrot.slane %v2931_v59, %v9274_v54  ;;  %v2946_v44 = vrot.slane %v2932_v40, %v9274_v54  ;;  %v2947_v6 = vcombine.low %v9305_v11, %v2930_v37  ;;  %v2948_v16 = vcombine.high %v9305_v11, %v2930_v37  ;;  %5257 = vmatpush1.bf16.msra.mxu1 %v7554_v29 }
 0x65b   : > { %v2982_v58 = vcombine.high %v2626_v43, %v8301_v24  ;;  %v2989_v31 = vrot.slane %v2626_v43, %v9267_v10  ;;  %v3033_v12 = vcombine.high %v2595_v63, %v8301_v24  ;;  %v9392_v0 = vrot.slane %v3859_v56, %v9267_v10  ;;  %v2596_v56 = vpop.trf.xlu0 }
 0x65c   : > { %v2955_v13 = vrot.slane %v2947_v6, %v9274_v54  ;;  %v2962_v57 = vrot.slane %v2948_v16, %v9274_v54  ;;  %v3893_v22 = vcombine.low %v2939_v34, %v2946_v44  ;;  %v6776_v9 = vcombine.high %v2939_v34, %v2946_v44 }
 0x65d   : > { %v2996_v11 = vrot.slane %v2982_v58, %v9267_v10  ;;  %v2997_v50 = vcombine.low %v2974_v3, %v2989_v31  ;;  %v2998_v20 = vcombine.high %v2974_v3, %v2989_v31  ;;  %v9395_v5 = vrot.slane %v6775_v51, %v9267_v10  ;;  %v2628_v58 = vpop.trf.xlu1 }
 0x65e   : > { %v3909_v7 = vcombine.low %v2955_v13, %v2962_v57  ;;  %v6777_v27 = vcombine.high %v2955_v13, %v2962_v57  ;;  %v9400_v55 = vrot.slane %v3893_v22, %v9267_v10  ;;  %v9403_v53 = vrot.slane %v6776_v9, %v9267_v10 }
 0x65f   : > { %v3005_v36 = vrot.slane %v2997_v50, %v9274_v54  ;;  %v3012_v49 = vrot.slane %v2998_v20, %v9274_v54  ;;  %v3013_v26 = vcombine.low %v2981_v38, %v2996_v11  ;;  %v3014_v47 = vcombine.high %v2981_v38, %v2996_v11 }
 0x660   : > { %v3040_v48 = vrot.slane %v2595_v63, %v9267_v10  ;;  %v3047_v42 = vrot.slane %v3033_v12, %v9267_v10  ;;  %v3048_v46 = vcombine.high %v2627_v2, %v8301_v24  ;;  %v3055_v18 = vrot.slane %v2627_v2, %v9267_v10  ;;  %v2597_v12 = vpop.trf.xlu0 }
 0x661   : > { %v3021_v60 = vrot.slane %v3013_v26, %v9274_v54  ;;  %v3028_v33 = vrot.slane %v3014_v47, %v9274_v54  ;;  %v3943_v32 = vcombine.low %v3005_v36, %v3012_v49  ;;  %v6778_v1 = vcombine.high %v3005_v36, %v3012_v49 }
 0x662   : > { %v3725_v37 = vcombine.low %v9310_v15, %v9313_v61  ;;  %v3733_v59 = vcombine.low %v9322_v4, %v9325_v14  ;;  %v9416_v40 = vrot.slane %v3909_v7, %v9267_v10  ;;  %v9419_v8 = vrot.slane %v6777_v27, %v9267_v10 }
 0x663   : > { %v3959_v43 = vcombine.low %v3021_v60, %v3028_v33  ;;  %v6779_v28 = vcombine.high %v3021_v60, %v3028_v33  ;;  %v9422_v51 = vrot.slane %v3943_v32, %v9267_v10  ;;  %v3062_v34 = vrot.slane %v3048_v46, %v9267_v10  ;;  %v2629_v60 = vpop.trf.xlu1 }
 0x664   : > { %v3063_v44 = vcombine.low %v3040_v48, %v3055_v18  ;;  %v3064_v15 = vcombine.high %v3040_v48, %v3055_v18  ;;  %v9426_v61 = vrot.slane %v6778_v1, %v9267_v10  ;;  %v3732_v4 = vrot.slane %v3725_v37, %v9274_v54  ;;  %v7515_v18 = vld [vmem:[#allocation13 + $0xe8] ss:$16 sps:$4 sm:$0xff]  }
 0x665   : > { %v3740_v14 = vrot.slane %v3733_v59, %v9274_v54  ;;  %v3775_v6 = vcombine.low %v9332_v17, %v9335_v30  ;;  %v3079_v3 = vcombine.low %v3047_v42, %v3062_v34  ;;  %v3080_v38 = vcombine.high %v3047_v42, %v3062_v34 }
 0x666   : > { %v3071_v16 = vrot.slane %v3063_v44, %v9274_v54  ;;  %v3078_v63 = vrot.slane %v3064_v15, %v9274_v54  ;;  %v9435_v31 = vrot.slane %v3959_v43, %v9267_v10  ;;  %v9438_v45 = vrot.slane %v6779_v28, %v9267_v10 }
 0x667   : > { %v3782_v13 = vrot.slane %v3775_v6, %v9274_v54  ;;  %v3783_v57 = vcombine.low %v9346_v21, %v9349_v39  ;;  %v3087_v17 = vrot.slane %v3079_v3, %v9274_v54  ;;  %v3094_v30 = vrot.slane %v3080_v38, %v9274_v54 }
 0x668   : > { %v3993_v22 = vcombine.low %v3071_v16, %v3078_v63  ;;  %v6780_v9 = vcombine.high %v3071_v16, %v3078_v63  ;;  %v3099_v11 = vcombine.high %v2596_v56, %v8301_v24  ;;  %v3106_v50 = vrot.slane %v2596_v56, %v9267_v10  ;;  %v7523_v56 = vld [vmem:[#allocation13 + $0xcc] ss:$16 sps:$4 sm:$0xff]  }
 0x669   : > { %v3790_v62 = vrot.slane %v3783_v57, %v9274_v54  ;;  %v3114_v20 = vcombine.high %v2628_v58, %v8301_v24  ;;  %v3741_v39 = vcombine.low %v3732_v4, %v3740_v14  ;;  %v3742_v27 = vcombine.high %v3732_v4, %v3740_v14  ;;  %v7521_v57 = vld [vmem:[#allocation13 + $0xc8] ss:$16 sps:$4 sm:$0xff]  }
 0x66a   : > { %v9450_v7 = vrot.slane %v3993_v22, %v9267_v10  ;;  %v9453_v21 = vrot.slane %v6780_v9, %v9267_v10  ;;  %v3113_v26 = vrot.slane %v3099_v11, %v9267_v10  ;;  %v3121_v47 = vrot.slane %v2628_v58, %v9267_v10 }
 0x66b   : > { %v3791_v36 = vcombine.low %v3782_v13, %v3790_v62  ;;  %v3792_v49 = vcombine.high %v3782_v13, %v3790_v62  ;;  %v4009_v2 = vcombine.low %v3087_v17, %v3094_v30  ;;  %v6781_v29 = vcombine.high %v3087_v17, %v3094_v30  ;;  %v2598_v62 = vpop.trf.xlu0 }
 0x66c   : > { %v3128_v48 = vrot.slane %v3114_v20, %v9267_v10  ;;  %v3165_v42 = vcombine.high %v2597_v12, %v8301_v24  ;;  %v3129_v1 = vcombine.low %v3106_v50, %v3121_v47  ;;  %v3130_v46 = vcombine.high %v3106_v50, %v3121_v47  ;;  %v2630_v50 = vpop.trf.xlu1 }
 0x66d   : > { %v4494_v33 = vpack.c.bf16 %v3792_v49, %v3742_v27  ;;  %v4493_v32 = vpack.c.bf16 %v3791_v36, %v3741_v39  ;;  %v3172_v43 = vrot.slane %v2597_v12, %v9267_v10  ;;  %v3180_v15 = vcombine.high %v2629_v60, %v8301_v24 }
 0x66e   : > { %v3145_v37 = vcombine.low %v3113_v26, %v3128_v48  ;;  %v3146_v59 = vcombine.high %v3113_v26, %v3128_v48  ;;  %v3179_v28 = vrot.slane %v3165_v42, %v9267_v10  ;;  %v3137_v34 = vrot.slane %v3129_v1, %v9274_v54 }
 0x66f   : > { %4745 = vmatprep.mubr.bf16.mxu0 %v4494_v33  ;;  %v3144_v44 = vrot.slane %v3130_v46, %v9274_v54  ;;  %v3187_v4 = vrot.slane %v2629_v60, %v9267_v10  ;;  %v3825_v16 = vcombine.low %v9356_v25, %v9359_v35  ;;  %v3833_v63 = vcombine.low %v9364_v41, %v9367_v52  ;;  %v7529_v25 = vld [vmem:[#allocation13 + $0xac] ss:$16 sps:$4 sm:$0xff]  }
 0x670   : > { %4746 = vmatmul.mubr.bf16.vlgmr.msra.gmra.mxu0 %v4493_v32  ;;  %v3153_v14 = vrot.slane %v3145_v37, %v9274_v54  ;;  %v3160_v6 = vrot.slane %v3146_v59, %v9274_v54  ;;  %v3194_v58 = vrot.slane %v3180_v15, %v9267_v10  ;;  %v9473_v17 = vrot.slane %v4009_v2, %v9267_v10  ;;  %v7527_v2 = vld [vmem:[#allocation13 + $0xa8] ss:$16 sps:$4 sm:$0xff]   ;;  %v7535_v33 = vld [vmem:[#allocation13 + $0x8c] ss:$16 sps:$4 sm:$0xff]   ;;  %v2599_v37 = vpop.trf.xlu0 }
 0x671   : > { %v4043_v3 = vcombine.low %v3137_v34, %v3144_v44  ;;  %v6782_v38 = vcombine.high %v3137_v34, %v3144_v44  ;;  %v3195_v13 = vcombine.low %v3172_v43, %v3187_v4  ;;  %5645 = vmatpush1.bf16.msra.mxu0 %v7515_v18  ;;  %v9476_v30 = vrot.slane %v6781_v29, %v9267_v10  ;;  %v2631_v34 = vpop.trf.xlu1 }
 0x672   : > { %v4059_v22 = vcombine.low %v3153_v14, %v3160_v6  ;;  %v3196_v9 = vcombine.high %v3172_v43, %v3187_v4  ;;  %5646 = vmatprep.subr.bf16.mxu0 %v7523_v56  ;;  %v6783_v35 = vcombine.high %v3153_v14, %v3160_v6  ;;  %v3211_v52 = vcombine.low %v3179_v28, %v3194_v58 }
 0x673   : > { %v3203_v41 = vrot.slane %v3195_v13, %v9274_v54  ;;  %v3832_v11 = vrot.slane %v3825_v16, %v9274_v54  ;;  %v9481_v20 = vrot.slane %v4043_v3, %v9267_v10  ;;  %v9484_v12 = vrot.slane %v6782_v38, %v9267_v10  ;;  %v7533_v38 = vld [vmem:[#allocation13 + $0x88] ss:$16 sps:$4 sm:$0xff]  }
 0x674   : > { %v3210_v39 = vrot.slane %v3196_v9, %v9274_v54  ;;  %v3212_v27 = vcombine.high %v3179_v28, %v3194_v58  ;;  %v9488_v36 = vrot.slane %v3211_v52, %v9274_v54  ;;  %v3840_v49 = vrot.slane %v3833_v63, %v9274_v54  ;;  %v7541_v9 = vld [vmem:[#allocation13 + $0x6c] ss:$16 sps:$4 sm:$0xff]  }
 0x675   : > { %v3875_v26 = vcombine.low %v9374_v19, %v9377_v23  ;;  %v3883_v47 = vcombine.low %v9392_v0, %v9395_v5  ;;  %5647 = vmatpush1.bf16.msra.mxu0 %v7521_v57  ;;  %v3231_v60 = vcombine.high %v2598_v62, %v8301_v24  ;;  %v9500_v32 = vrot.slane %v4059_v22, %v9267_v10 }
 0x676   : > { %v9496_v29 = vrot.slane %v3212_v27, %v9274_v54  ;;  %v4093_v48 = vcombine.low %v3203_v41, %v3210_v39  ;;  %v6784_v42 = vcombine.high %v3203_v41, %v3210_v39  ;;  %5648 = vmatprep.subr.bf16.mxu0 %v7529_v25  ;;  %v9503_v1 = vrot.slane %v6783_v35, %v9267_v10 }
 0x677   : > { %v3882_v19 = vrot.slane %v3875_v26, %v9274_v54  ;;  %v3890_v23 = vrot.slane %v3883_v47, %v9274_v54  ;;  %v3842_v46 = vcombine.high %v3832_v11, %v3840_v49  ;;  %v3841_v18 = vcombine.low %v3832_v11, %v3840_v49  ;;  %v2600_v47 = vpop.trf.xlu0 }
 0x678   : > { %v9508_v0 = vrot.slane %v4093_v48, %v9267_v10  ;;  %v9511_v5 = vrot.slane %v6784_v42, %v9267_v10  ;;  %v4109_v59 = vcombine.low %v9488_v36, %v9496_v29  ;;  %v3238_v56 = vrot.slane %v2598_v62, %v9267_v10  ;;  %v2632_v42 = vpop.trf.xlu1 }
 0x679   : > { %v3892_v43 = vcombine.high %v3882_v19, %v3890_v23  ;;  %v3891_v28 = vcombine.low %v3882_v19, %v3890_v23  ;;  %5649 = vmatpush1.bf16.msra.mxu0 %v7527_v2  ;;  %v6785_v44 = vcombine.high %v9488_v36, %v9496_v29  ;;  %v3245_v15 = vrot.slane %v3231_v60, %v9267_v10  ;;  %v7539_v2 = vld [vmem:[#allocation13 + $0x68] ss:$16 sps:$4 sm:$0xff]   ;;  %v7547_v60 = vld [vmem:[#allocation13 + $0x4c] ss:$16 sps:$4 sm:$0xff]  }
 0x67a   : > { %v3246_v4 = vcombine.high %v2630_v50, %v8301_v24  ;;  %v3253_v14 = vrot.slane %v2630_v50, %v9267_v10  ;;  %5650 = vmatprep.subr.bf16.mxu0 %v7535_v33  ;;  %v3297_v63 = vcombine.high %v2599_v37, %v8301_v24  ;;  %v3304_v3 = vrot.slane %v2599_v37, %v9267_v10 }
 0x67b   : > { %v4496_v6 = vpack.c.bf16 %v3892_v43, %v3842_v46  ;;  %v4495_v16 = vpack.c.bf16 %v3891_v28, %v3841_v18  ;;  %v3312_v22 = vcombine.high %v2631_v34, %v8301_v24  ;;  %v9526_v62 = vrot.slane %v4109_v59, %v9267_v10 }
 0x67c   : > { %v3260_v58 = vrot.slane %v3246_v4, %v9267_v10  ;;  %v3261_v13 = vcombine.low %v3238_v56, %v3253_v14  ;;  %v3262_v57 = vcombine.high %v3238_v56, %v3253_v14  ;;  %v3311_v25 = vrot.slane %v3297_v63, %v9267_v10 }
 0x67d   : > { %4755 = vmatprep.mubr.bf16.mxu0 %v4496_v6  ;;  %v3319_v35 = vrot.slane %v2631_v34, %v9267_v10  ;;  %v3925_v41 = vcombine.low %v9400_v55, %v9403_v53  ;;  %v3326_v27 = vrot.slane %v3312_v22, %v9267_v10  ;;  %v3933_v26 = vcombine.low %v9416_v40, %v9419_v8  ;;  %v7545_v34 = vld [vmem:[#allocation13 + $0x48] ss:$16 sps:$4 sm:$0xff]   ;;  %v7553_v6 = vld [vmem:[#allocation13 + $0x2c] ss:$16 sps:$4 sm:$0xff]   ;;  %v2633_v22 = vpop.trf.xlu1 }
 0x67e   : > { %4756 = vmatmul.mubr.bf16.gmra.mxu0 %v4495_v16  ;;  %v3269_v52 = vrot.slane %v3261_v13, %v9274_v54  ;;  %v3276_v11 = vrot.slane %v3262_v57, %v9274_v54  ;;  %v3277_v50 = vcombine.low %v3245_v15, %v3260_v58  ;;  %v3278_v39 = vcombine.high %v3245_v15, %v3260_v58  ;;  %v2601_v58 = vpop.trf.xlu0 }
 0x67f   : > { %v3327_v36 = vcombine.low %v3304_v3, %v3319_v35  ;;  %v3328_v49 = vcombine.high %v3304_v3, %v3319_v35  ;;  %5651 = vmatpush1.bf16.msra.mxu0 %v7533_v38  ;;  %v3343_v23 = vcombine.low %v3311_v25, %v3326_v27  ;;  %v3344_v46 = vcombine.high %v3311_v25, %v3326_v27 }
 0x680   : > { %v3285_v29 = vrot.slane %v3277_v50, %v9274_v54  ;;  %v3292_v55 = vrot.slane %v3278_v39, %v9274_v54  ;;  %v4143_v53 = vcombine.low %v3269_v52, %v3276_v11  ;;  %v6786_v48 = vcombine.high %v3269_v52, %v3276_v11  ;;  %5652 = vmatprep.subr.bf16.mxu0 %v7541_v9  ;;  %v7551_v52 = vld [vmem:[#allocation13 + $0x28] ss:$16 sps:$4 sm:$0xff]  }
 0x681   : > { %v3335_v33 = vrot.slane %v3327_v36, %v9274_v54  ;;  %v3342_v19 = vrot.slane %v3328_v49, %v9274_v54  ;;  %v9542_v40 = vrot.slane %v6785_v44, %v9267_v10  ;;  %v3932_v37 = vrot.slane %v3925_v41, %v9274_v54 }
 0x682   : > { %v4159_v8 = vcombine.low %v3285_v29, %v3292_v55  ;;  %v6787_v18 = vcombine.high %v3285_v29, %v3292_v55  ;;  %v9546_v59 = vrot.slane %v3343_v23, %v9274_v54  ;;  %v9549_v43 = vrot.slane %v3344_v46, %v9274_v54 }
 0x683   : > { %v4193_v28 = vcombine.low %v3335_v33, %v3342_v19  ;;  %v6788_v56 = vcombine.high %v3335_v33, %v3342_v19  ;;  %5653 = vmatpush1.bf16.msra.mxu0 %v7539_v2  ;;  %v9552_v15 = vrot.slane %v4143_v53, %v9267_v10  ;;  %v9555_v44 = vrot.slane %v6786_v48, %v9267_v10 }
 0x684   : > { %v3940_v4 = vrot.slane %v3933_v26, %v9274_v54  ;;  %v3975_v14 = vcombine.low %v9422_v51, %v9426_v61  ;;  %5654 = vmatprep.subr.bf16.mxu0 %v7547_v60  ;;  %v9561_v16 = vrot.slane %v4159_v8, %v9267_v10  ;;  %v9564_v63 = vrot.slane %v6787_v18, %v9267_v10  ;;  %v7557_v8 = vld [vmem:[#allocation13 + $0x8] ss:$16 sps:$4 sm:$0xff]  }
 0x685   : > { %v9567_v3 = vrot.slane %v4193_v28, %v9267_v10  ;;  %v9570_v38 = vrot.slane %v6788_v56, %v9267_v10  ;;  %v4209_v13 = vcombine.low %v9546_v59, %v9549_v43  ;;  %v6789_v51 = vcombine.high %v9546_v59, %v9549_v43 }
 0x686   : > { %v3942_v61 = vcombine.high %v3932_v37, %v3940_v4  ;;  %v3983_v57 = vcombine.low %v9435_v31, %v9438_v45  ;;  %v3982_v9 = vrot.slane %v3975_v14, %v9274_v54  ;;  %v3941_v25 = vcombine.low %v3932_v37, %v3940_v4  ;;  %v7559_v31 = vld [vmem:[#allocation13 + $0xc] ss:$16 sps:$4 sm:$0xff]   ;;  %v2602_v14 = vpop.trf.xlu0 }
 0x687   : > { %v3363_v35 = vcombine.high %v2600_v47, %v8301_v24  ;;  %v3370_v41 = vrot.slane %v2600_v47, %v9267_v10  ;;  %5655 = vmatpush1.bf16.msra.mxu0 %v7545_v34  ;;  %v3378_v50 = vcombine.high %v2632_v42, %v8301_v24  ;;  %v3385_v39 = vrot.slane %v2632_v42, %v9267_v10 }
 0x688   : > { %v3990_v11 = vrot.slane %v3983_v57, %v9274_v54  ;;  %v3429_v27 = vcombine.high %v2601_v58, %v8301_v24  ;;  %5656 = vmatprep.subr.bf16.mxu0 %v7553_v6  ;;  %v3436_v36 = vrot.slane %v2601_v58, %v9267_v10  ;;  %v3444_v49 = vcombine.high %v2633_v22, %v8301_v24  ;;  %v2634_v6 = vpop.trf.xlu1 }
 0x689   : > { %v3377_v45 = vrot.slane %v3363_v35, %v9267_v10  ;;  %v3451_v26 = vrot.slane %v2633_v22, %v9267_v10  ;;  %v3392_v29 = vrot.slane %v3378_v50, %v9267_v10  ;;  %v3393_v55 = vcombine.low %v3370_v41, %v3385_v39 }
 0x68a   : > { %v3992_v47 = vcombine.high %v3982_v9, %v3990_v11  ;;  %v3991_v2 = vcombine.low %v3982_v9, %v3990_v11  ;;  %v3394_v53 = vcombine.high %v3370_v41, %v3385_v39  ;;  %v3443_v48 = vrot.slane %v3429_v27, %v9267_v10 }
 0x68b   : > { %v3458_v42 = vrot.slane %v3444_v49, %v9267_v10  ;;  %v3459_v60 = vcombine.low %v3436_v36, %v3451_v26  ;;  %5657 = vmatpush1.bf16.msra.mxu0 %v7551_v52  ;;  %v3401_v23 = vrot.slane %v3393_v55, %v9274_v54  ;;  %v3409_v46 = vcombine.low %v3377_v45, %v3392_v29 }
 0x68c   : > { %v4498_v33 = vpack.c.bf16 %v3992_v47, %v3942_v61  ;;  %v4497_v19 = vpack.c.bf16 %v3991_v2, %v3941_v25  ;;  %5658 = vmatprep.subr.bf16.mxu0 %v7559_v31  ;;  %v3408_v18 = vrot.slane %v3394_v53, %v9274_v54  ;;  %v3410_v37 = vcombine.high %v3377_v45, %v3392_v29  ;;  %v2603_v47 = vpop.trf.xlu0  ;;  %v2635_v2 = vpop.trf.xlu1 }
 0x68d   : > { %v3460_v59 = vcombine.high %v3436_v36, %v3451_v26  ;;  %v3467_v43 = vrot.slane %v3459_v60, %v9274_v54  ;;  %v3417_v28 = vrot.slane %v3409_v46, %v9274_v54  ;;  %v3475_v56 = vcombine.low %v3443_v48, %v3458_v42 }
 0x68e   : > { %4765 = vmatprep.mubr.bf16.mxu0 %v4498_v33  ;;  %v3476_v34 = vcombine.high %v3443_v48, %v3458_v42  ;;  %v4025_v4 = vcombine.low %v9450_v7, %v9453_v21  ;;  %v3424_v58 = vrot.slane %v3410_v37, %v9274_v54  ;;  %v4243_v61 = vcombine.low %v3401_v23, %v3408_v18 }
 0x68f   : > { %4766 = vmatmul.mubr.bf16.gmra.mxu0 %v4497_v19  ;;  %v6790_v57 = vcombine.high %v3401_v23, %v3408_v18  ;;  %v3474_v22 = vrot.slane %v3460_v59, %v9274_v54  ;;  %v9601_v9 = vrot.slane %v4209_v13, %v9267_v10  ;;  %v3483_v25 = vrot.slane %v3475_v56, %v9274_v54 }
 0x690   : > { %v3490_v35 = vrot.slane %v3476_v34, %v9274_v54  ;;  %v4033_v41 = vcombine.low %v9473_v17, %v9476_v30  ;;  %5659 = vmatpush1.bf16.msra.mxu0 %v7557_v8  ;;  %v9608_v7 = vrot.slane %v6789_v51, %v9267_v10  ;;  %v4259_v21 = vcombine.low %v3417_v28, %v3424_v58 }
 0x691   : > { %v6791_v52 = vcombine.high %v3417_v28, %v3424_v58  ;;  %v4032_v11 = vrot.slane %v4025_v4, %v9274_v54  ;;  %v9612_v50 = vrot.slane %v4243_v61, %v9267_v10  ;;  %v9615_v13 = vrot.slane %v6790_v57, %v9267_v10 }
 0x692   : > { %v4293_v39 = vcombine.low %v3467_v43, %v3474_v22  ;;  %v6792_v27 = vcombine.high %v3467_v43, %v3474_v22  ;;  %v4309_v31 = vcombine.low %v3483_v25, %v3490_v35  ;;  %v6793_v45 = vcombine.high %v3483_v25, %v3490_v35 }
 0x693   : > { %v4040_v17 = vrot.slane %v4033_v41, %v9274_v54  ;;  %v4075_v30 = vcombine.low %v9481_v20, %v9484_v12  ;;  %v9621_v51 = vrot.slane %v4259_v21, %v9267_v10  ;;  %v9624_v36 = vrot.slane %v6791_v52, %v9267_v10 }
 0x694   : > { %v9627_v49 = vrot.slane %v4293_v39, %v9267_v10  ;;  %v9630_v26 = vrot.slane %v6792_v27, %v9267_v10  ;;  %v4083_v20 = vcombine.low %v9500_v32, %v9503_v1  ;;  %v3495_v53 = vcombine.high %v2602_v14, %v8301_v24 }
 0x695   : > { %v4042_v29 = vcombine.high %v4032_v11, %v4040_v17  ;;  %v4082_v55 = vrot.slane %v4075_v30, %v9274_v54  ;;  %v4041_v12 = vcombine.low %v4032_v11, %v4040_v17  ;;  %v3502_v48 = vrot.slane %v2602_v14, %v9267_v10 }
 0x696   : > { %v3510_v42 = vcombine.high %v2634_v6, %v8301_v24  ;;  %v3517_v60 = vrot.slane %v2634_v6, %v9267_v10  ;;  %v4090_v33 = vrot.slane %v4083_v20, %v9274_v54  ;;  %v3561_v19 = vcombine.high %v2603_v47, %v8301_v24 }
 0x697   : > { %v3568_v23 = vrot.slane %v2603_v47, %v9267_v10  ;;  %v3576_v46 = vcombine.high %v2635_v2, %v8301_v24  ;;  %v3509_v8 = vrot.slane %v3495_v53, %v9267_v10  ;;  %v3583_v28 = vrot.slane %v2635_v2, %v9267_v10 }
 0x698   : > { %v3524_v32 = vrot.slane %v3510_v42, %v9267_v10  ;;  %v3525_v1 = vcombine.low %v3502_v48, %v3517_v60  ;;  %v3526_v18 = vcombine.high %v3502_v48, %v3517_v60  ;;  %v4092_v37 = vcombine.high %v4082_v55, %v4090_v33 }
 0x699   : > { %v4091_v59 = vcombine.low %v4082_v55, %v4090_v33  ;;  %v3575_v43 = vrot.slane %v3561_v19, %v9267_v10  ;;  %v3590_v61 = vrot.slane %v3576_v46, %v9267_v10  ;;  %v3591_v57 = vcombine.low %v3568_v23, %v3583_v28 }
 0x69a   : > { %v3533_v56 = vrot.slane %v3525_v1, %v9274_v54  ;;  %v3540_v34 = vrot.slane %v3526_v18, %v9274_v54  ;;  %v3541_v4 = vcombine.low %v3509_v8, %v3524_v32  ;;  %v3542_v14 = vcombine.high %v3509_v8, %v3524_v32 }
 0x69b   : > { %v4500_v6 = vpack.c.bf16 %v4092_v37, %v4042_v29  ;;  %v4499_v58 = vpack.c.bf16 %v4091_v59, %v4041_v12  ;;  %v3592_v21 = vcombine.high %v3568_v23, %v3583_v28  ;;  %v3599_v52 = vrot.slane %v3591_v57, %v9274_v54 }
 0x69c   : > { %v3549_v22 = vrot.slane %v3541_v4, %v9274_v54  ;;  %v3556_v25 = vrot.slane %v3542_v14, %v9274_v54  ;;  %v4343_v35 = vcombine.low %v3533_v56, %v3540_v34  ;;  %v6794_v41 = vcombine.high %v3533_v56, %v3540_v34 }
 0x69d   : > { %4775 = vmatprep.mubr.bf16.mxu0 %v4500_v6  ;;  %v3607_v11 = vcombine.low %v3575_v43, %v3590_v61  ;;  %v3608_v39 = vcombine.high %v3575_v43, %v3590_v61  ;;  %v9654_v27 = vrot.slane %v4309_v31, %v9267_v10  ;;  %v9657_v17 = vrot.slane %v6793_v45, %v9267_v10 }
 0x69e   : > { %4776 = vmatmul.mubr.bf16.gmra.mxu0 %v4499_v58  ;;  %v4359_v30 = vcombine.low %v3549_v22, %v3556_v25  ;;  %v6795_v47 = vcombine.high %v3549_v22, %v3556_v25  ;;  %v3606_v2 = vrot.slane %v3592_v21, %v9274_v54  ;;  %v4125_v20 = vcombine.low %v9508_v0, %v9511_v5  ;;  %v2604_v5 = vpop.trf.xlu0 }
 0x69f   : > { %v3615_v29 = vrot.slane %v3607_v11, %v9274_v54  ;;  %v3622_v55 = vrot.slane %v3608_v39, %v9274_v54  ;;  %v9665_v12 = vrot.slane %v4343_v35, %v9267_v10  ;;  %v9668_v31 = vrot.slane %v6794_v41, %v9267_v10 }
 0x6a0   : > { %v4133_v45 = vcombine.low %v9526_v62, %v9542_v40  ;;  %v4175_v53 = vcombine.low %v9552_v15, %v9555_v44  ;;  %v9675_v48 = vrot.slane %v4359_v30, %v9267_v10  ;;  %v9678_v42 = vrot.slane %v6795_v47, %v9267_v10  ;;  %v2636_v40 = vpop.trf.xlu1 }
 0x6a1   : > { %v4393_v60 = vcombine.low %v3599_v52, %v3606_v2  ;;  %v6796_v0 = vcombine.high %v3599_v52, %v3606_v2  ;;  %v4409_v33 = vcombine.low %v3615_v29, %v3622_v55  ;;  %v4132_v19 = vrot.slane %v4125_v20, %v9274_v54 }
 0x6a2   : > { %v4140_v23 = vrot.slane %v4133_v45, %v9274_v54  ;;  %v4183_v62 = vcombine.low %v9561_v16, %v9564_v63  ;;  %v6797_v46 = vcombine.high %v3615_v29, %v3622_v55  ;;  %v4182_v8 = vrot.slane %v4175_v53, %v9274_v54 }
 0x6a3   : > { %v9685_v15 = vrot.slane %v4393_v60, %v9267_v10  ;;  %v9688_v44 = vrot.slane %v6796_v0, %v9267_v10  ;;  %v3627_v37 = vcombine.high %v2604_v5, %v8301_v24  ;;  %v3634_v59 = vrot.slane %v2604_v5, %v9267_v10 }
 0x6a4   : > { %v4142_v32 = vcombine.high %v4132_v19, %v4140_v23  ;;  %v4190_v1 = vrot.slane %v4183_v62, %v9274_v54  ;;  %v4141_v18 = vcombine.low %v4132_v19, %v4140_v23  ;;  %v3642_v16 = vcombine.high %v2636_v40, %v8301_v24 }
 0x6a5   : > { %v3649_v63 = vrot.slane %v2636_v40, %v9267_v10  ;;  %v4225_v43 = vcombine.low %v9567_v3, %v9570_v38  ;;  %v3641_v34 = vrot.slane %v3627_v37, %v9267_v10  ;;  %v4233_v4 = vcombine.low %v9601_v9, %v9608_v7 }
 0x6a6   : > { %v4192_v28 = vcombine.high %v4182_v8, %v4190_v1  ;;  %v4191_v56 = vcombine.low %v4182_v8, %v4190_v1  ;;  %v4416_v14 = vrot.slane %v4409_v33, %v9267_v10  ;;  %v3656_v6 = vrot.slane %v3642_v16, %v9267_v10 }
 0x6a7   : > { %v3657_v58 = vcombine.low %v3634_v59, %v3649_v63  ;;  %v3658_v61 = vcombine.high %v3634_v59, %v3649_v63  ;;  %v4424_v24 = vrot.slane %v6797_v46, %v9267_v10  ;;  %v4275_v3 = vcombine.low %v9612_v50, %v9615_v13 }
 0x6a8   : > { %v4502_v57 = vpack.c.bf16 %v4192_v28, %v4142_v32  ;;  %v4501_v22 = vpack.c.bf16 %v4191_v56, %v4141_v18  ;;  %v3673_v35 = vcombine.low %v3641_v34, %v3656_v6  ;;  %v3674_v41 = vcombine.high %v3641_v34, %v3656_v6  ;;  %v7562_v28 = vld [vmem:[#allocation13 + $0x1e4] ss:$16 sps:$4 sm:$0xff]   ;;  %v7563_v56 = vld [vmem:[#allocation13 + $0x1e8] ss:$16 sps:$4 sm:$0xff]   ;;  %v7565_v34 = vld [vmem:[#allocation13 + $0x1ec] ss:$16 sps:$4 sm:$0xff]  }
 0x6a9   : > { %v3665_v38 = vrot.slane %v3657_v58, %v9274_v54  ;;  %v3672_v25 = vrot.slane %v3658_v61, %v9274_v54  ;;  %v4232_v9 = vrot.slane %v4225_v43, %v9274_v54  ;;  %v4240_v7 = vrot.slane %v4233_v4, %v9274_v54  ;;  %v7560_v43 = vld [vmem:[#allocation13 + $0x1e0] ss:$16 sps:$4 sm:$0xff]   ;;  %5258 = vmatprep.subr.bf16.mxu1 %v7562_v28  ;;  %v7568_v6 = vld [vmem:[#allocation13 + $0x1c4] ss:$16 sps:$4 sm:$0xff]   ;;  %v7569_v58 = vld [vmem:[#allocation13 + $0x1c8] ss:$16 sps:$4 sm:$0xff]  }
 0x6aa   : > { %4785 = vmatprep.mubr.bf16.mxu0 %v4502_v57  ;;  %v4282_v21 = vrot.slane %v4275_v3, %v9274_v54  ;;  %v4283_v52 = vcombine.low %v9621_v51, %v9624_v36  ;;  %v3681_v11 = vrot.slane %v3673_v35, %v9274_v54  ;;  %v3688_v50 = vrot.slane %v3674_v41, %v9274_v54  ;;  %v7571_v61 = vld [vmem:[#allocation13 + $0x1cc] ss:$16 sps:$4 sm:$0xff]   ;;  %v7572_v57 = vld [vmem:[#allocation13 + $0x1a0] ss:$16 sps:$4 sm:$0xff]   ;;  %v7575_v3 = vld [vmem:[#allocation13 + $0x1a8] ss:$16 sps:$4 sm:$0xff]  }
 0x6ab   : > { %4786 = vmatmul.mubr.bf16.gmra.mxu0 %v4501_v22  ;;  %v4443_v13 = vcombine.low %v3665_v38, %v3672_v25  ;;  %v6798_v39 = vcombine.high %v3665_v38, %v3672_v25  ;;  %v4325_v47 = vcombine.low %v9627_v49, %v9630_v26  ;;  %v4333_v2 = vcombine.low %v9654_v27, %v9657_v17  ;;  %v7574_v22 = vld [vmem:[#allocation13 + $0x1a4] ss:$16 sps:$4 sm:$0xff]   ;;  %v7577_v38 = vld [vmem:[#allocation13 + $0x1ac] ss:$16 sps:$4 sm:$0xff]   ;;  %v7578_v25 = vld [vmem:[#allocation13 + $0x180] ss:$16 sps:$4 sm:$0xff]  }
 0x6ac   : > { %v4290_v30 = vrot.slane %v4283_v52, %v9274_v54  ;;  %v4375_v29 = vcombine.low %v9665_v12, %v9668_v31  ;;  %v4459_v55 = vcombine.low %v3681_v11, %v3688_v50  ;;  %v6799_v20 = vcombine.high %v3681_v11, %v3688_v50  ;;  %5660 = vmatprep.subr.bf16.mxu0 %v7565_v34  ;;  %v7580_v35 = vld [vmem:[#allocation13 + $0x184] ss:$16 sps:$4 sm:$0xff]   ;;  %v7581_v41 = vld [vmem:[#allocation13 + $0x188] ss:$16 sps:$4 sm:$0xff]   ;;  %v7589_v11 = vld [vmem:[#allocation13 + $0x16c] ss:$16 sps:$4 sm:$0xff]  }
 0x6ad   : > { %v4450_v51 = vrot.slane %v4443_v13, %v9267_v10  ;;  %v4458_v36 = vrot.slane %v6798_v39, %v9267_v10  ;;  %v4242_v45 = vcombine.high %v4232_v9, %v4240_v7  ;;  %v4241_v60 = vcombine.low %v4232_v9, %v4240_v7  ;;  %5259 = vmatpush2.bf16.msra.mxu1 %v7560_v43  ;;  %v7583_v9 = vld [vmem:[#allocation13 + $0x18c] ss:$16 sps:$4 sm:$0xff]   ;;  %v7584_v7 = vld [vmem:[#allocation13 + $0x160] ss:$16 sps:$4 sm:$0xff]   ;;  %v7587_v52 = vld [vmem:[#allocation13 + $0x168] ss:$16 sps:$4 sm:$0xff]  }
 0x6ae   : > { %v4292_v53 = vcombine.high %v4282_v21, %v4290_v30  ;;  %v4291_v0 = vcombine.low %v4282_v21, %v4290_v30  ;;  %v4466_v5 = vrot.slane %v4459_v55, %v9267_v10  ;;  %v4474_v49 = vrot.slane %v6799_v20, %v9267_v10  ;;  %5661 = vmatpush2.bf16.msra.mxu0 %v7563_v56  ;;  %v7586_v21 = vld [vmem:[#allocation13 + $0x164] ss:$16 sps:$4 sm:$0xff]   ;;  %v7590_v50 = vld [vmem:[#allocation13 + $0x140] ss:$16 sps:$4 sm:$0xff]   ;;  %v7593_v39 = vld [vmem:[#allocation13 + $0x148] ss:$16 sps:$4 sm:$0xff]  }
 0x6af   : > { %v4340_v26 = vrot.slane %v4333_v2, %v9274_v54  ;;  %v4383_v27 = vcombine.low %v9675_v48, %v9678_v42  ;;  %v4332_v31 = vrot.slane %v4325_v47, %v9274_v54  ;;  %v4382_v33 = vrot.slane %v4375_v29, %v9274_v54  ;;  %5260 = vmatprep.subr.bf16.mxu1 %v7568_v6  ;;  %v7592_v13 = vld [vmem:[#allocation13 + $0x144] ss:$16 sps:$4 sm:$0xff]   ;;  %v7595_v30 = vld [vmem:[#allocation13 + $0x14c] ss:$16 sps:$4 sm:$0xff]   ;;  %v7596_v47 = vld [vmem:[#allocation13 + $0x120] ss:$16 sps:$4 sm:$0xff]  }
 0x6b0   : > { %v4504_v17 = vpack.c.bf16 %v4292_v53, %v4242_v45  ;;  %v4503_v12 = vpack.c.bf16 %v4291_v0, %v4241_v60  ;;  %v4425_v23 = vcombine.low %v9685_v15, %v9688_v44  ;;  %v4433_v62 = vcombine.low %v4416_v14, %v4424_v24  ;;  %5662 = vmatprep.subr.bf16.mxu0 %v7571_v61  ;;  %v7598_v2 = vld [vmem:[#allocation13 + $0x124] ss:$16 sps:$4 sm:$0xff]   ;;  %v7599_v29 = vld [vmem:[#allocation13 + $0x128] ss:$16 sps:$4 sm:$0xff]   ;;  %v7607_v45 = vld [vmem:[#allocation13 + $0x10c] ss:$16 sps:$4 sm:$0xff]  }
 0x6b1   : > { %v4390_v19 = vrot.slane %v4383_v27, %v9274_v54  ;;  %v4475_v40 = vcombine.low %v4450_v51, %v4458_v36  ;;  %v4483_v10 = vcombine.low %v4466_v5, %v4474_v49  ;;  %v4342_v46 = vcombine.high %v4332_v31, %v4340_v26  ;;  %v7601_v51 = vld [vmem:[#allocation13 + $0x12c] ss:$16 sps:$4 sm:$0xff]   ;;  %v7602_v36 = vld [vmem:[#allocation13 + $0x100] ss:$16 sps:$4 sm:$0xff]   ;;  %v7604_v55 = vld [vmem:[#allocation13 + $0x104] ss:$16 sps:$4 sm:$0xff]  }
 0x6b2   : > { %4795 = vmatprep.mubr.bf16.mxu0 %v4504_v17  ;;  %v4440_v48 = vrot.slane %v4433_v62, %v9274_v54  ;;  %v4432_v42 = vrot.slane %v4425_v23, %v9274_v54  ;;  %v4341_v59 = vcombine.low %v4332_v31, %v4340_v26  ;;  %5663 = vmatpush2.bf16.msra.mxu0 %v7569_v58  ;;  %v7605_v20 = vld [vmem:[#allocation13 + $0x108] ss:$16 sps:$4 sm:$0xff]   ;;  %v7610_v53 = vld [vmem:[#allocation14 + $0x174] ss:$8 sps:$4 sm:$0xff]  }
 0x6b3   : > { %4796 = vmatmul.mubr.bf16.gmra.mxu0 %v4503_v12  ;;  %v4392_v8 = vcombine.high %v4382_v33, %v4390_v19  ;;  %v4391_v32 = vcombine.low %v4382_v33, %v4390_v19  ;;  %v4482_v1 = vrot.slane %v4475_v40, %v9274_v54  ;;  %v4490_v18 = vrot.slane %v4483_v10, %v9274_v54  ;;  %v7566_v54 = vld [vmem:[#allocation13 + $0x1c0] ss:$16 sps:$4 sm:$0xff]   ;;  %v9738_v60 = vld [vmem:[#allocation14 + $0x74] ss:$8 sps:$4 sm:$0xff]   ;;  %v4541_v0 = vld [vmem:[%s10406_s7] sm:$0x3] }
 0x6b4   : > { %v4442_v16 = vcombine.high %v4432_v42, %v4440_v48  ;;  %v4441_v14 = vcombine.low %v4432_v42, %v4440_v48  ;;  %5261 = vmatpush2.bf16.msra.mxu1 %v7566_v54  ;;  %5664 = vmatprep.subr.bf16.mxu0 %v7577_v38  ;;  %v10520_v5 = vld [vmem:[#allocation25_spill] sm:$0xff]  ;;  %v4859_v26 = vld [vmem:[%s10407_s8] sm:$0x3]  ;;  %v10521_v27 = vld [vmem:[#allocation24_spill] sm:$0xff] }
 0x6b5   : > { %v4506_v37 = vpack.c.bf16 %v4392_v8, %v4342_v46  ;;  %v4492_v15 = vcombine.high %v4482_v1, %v4490_v18  ;;  %v4505_v44 = vpack.c.bf16 %v4391_v32, %v4341_v59  ;;  %v4491_v4 = vcombine.low %v4482_v1, %v4490_v18  ;;  %5262 = vmatprep.subr.bf16.mxu1 %v7574_v22  ;;  %v7961_v23 = vld [vmem:[%s8572_s30] sm:$0xff]  ;;  %v7962_v8 = vld [vmem:[%s8572_s30 + $0x8] sm:$0xff] }
 0x6b6   : > { %5665 = vmatpush2.bf16.msra.mxu0 %v7575_v3  ;;  %v9745_v49 = vrot.slane %v4541_v0, %v10520_v5  ;;  %v9751_v17 = vrot.slane %v4541_v0, %v10521_v27  ;;  %v9755_v33 = vrot.slane %v4859_v26, %v10520_v5  ;;  %v9762_v10 = vrot.slane %v4859_v26, %v10521_v27  ;;  %v7966_v58 = vld [vmem:[%s8572_s30 + $0x28] sm:$0xff] }
 0x6b7   : > { %4805 = vmatprep.mubr.bf16.mxu0 %v4506_v37  ;;  %v4508_v63 = vpack.c.bf16 %v4492_v15, %v4442_v16  ;;  %v4507_v24 = vpack.c.bf16 %v4491_v4, %v4441_v14  ;;  %5666 = vmatprep.subr.bf16.mxu0 %v7583_v9  ;;  %v7963_v37 = vld [vmem:[%s8572_s30 + $0x10] sm:$0xff]  ;;  %v7965_v4 = vld [vmem:[%s8572_s30 + $0x20] sm:$0xff] }
 0x6b8   : > { %5263 = vmatpush2.bf16.msra.mxu1 %v7572_v57  ;;  %v4858_v57 = vld [vmem:[%s10408_s9] sm:$0x3] }
 0x6b9   : > { %5264 = vmatprep.subr.bf16.mxu1 %v7580_v35  ;;  %v9804_v9 = vrot.slane %v4858_v57, %v10521_v27 }
 0x6ba   : > { %5667 = vmatpush2.bf16.msra.mxu0 %v7581_v41 }
 0x6bb   : > { %4806 = vmatmul.mubr.bf16.gmra.mxu0 %v4505_v44  ;;  %5668 = vmatprep.subr.bf16.mxu0 %v7589_v11  ;;  %v7964_v44 = vld [vmem:[%s8572_s30 + $0x18] sm:$0xff] }
 0x6bc   : > { %4815 = vmatprep.mubr.bf16.mxu0 %v4508_v63  ;;  %5265 = vmatpush2.bf16.msra.mxu1 %v7578_v25  ;;  %v7967_v25 = vld [vmem:[%s8572_s30 + $0x30] sm:$0xff] }
 0x6bd   : > { %5266 = vmatprep.subr.bf16.mxu1 %v7586_v21  ;;  %v9807_v21 = vrot.slane %v4858_v57, %v10520_v5 }
 0x6be   : > { %5669 = vmatpush2.bf16.msra.mxu0 %v7587_v52 }
 0x6bf   : > { %5670 = vmatprep.subr.bf16.mxu0 %v7595_v30 }
 0x6c0   : > { %5267 = vmatpush2.bf16.msra.mxu1 %v7584_v7 }
 0x6c1   : > { %5268 = vmatprep.subr.bf16.mxu1 %v7592_v13 }
 0x6c2   : > { %5671 = vmatpush2.bf16.msra.mxu0 %v7593_v39  ;;  %v4978_v39 = vld [vmem:[%s10409_s10] sm:$0x3] }
 0x6c3   : > { %4816 = vmatmul.mubr.bf16.gmra.mxu0 %v4507_v24  ;;  %5672 = vmatprep.subr.bf16.mxu0 %v7601_v51 }
 0x6c4   : > { %5269 = vmatpush2.bf16.msra.mxu1 %v7590_v50  ;;  %v7968_v50 = vld [vmem:[%s8572_s30 + $0x38] sm:$0xff] }
 0x6c5   : > { %5270 = vmatprep.subr.bf16.mxu1 %v7598_v2 }
 0x6c6   : > { %5673 = vmatpush2.bf16.msra.mxu0 %v7599_v29 }
 0x6c7   : > { %5674 = vmatprep.subr.bf16.mxu0 %v7607_v45 }
 0x6c8   : > { %5271 = vmatpush2.bf16.msra.mxu1 %v7596_v47  ;;  %v9818_v47 = vrot.slane %v4978_v39, %v10521_v27 }
 0x6c9   : > { %5272 = vmatprep.subr.bf16.mxu1 %v7604_v55  ;;  %v9825_v55 = vrot.slane %v4978_v39, %v10520_v5 }
 0x6ca   : > { %5675 = vmatpush2.bf16.msra.mxu0 %v7605_v20 }
 0x6cb   : > { %6273 = vmatprep.subr.bf16.mxu0 %v9738_v60 }
 0x6cc   : > { %5273 = vmatpush2.bf16.msra.mxu1 %v7602_v36 }
 0x6cd   : > { %6000 = vmatprep.subr.bf16.mxu1 %v7610_v53 }
 0x730   : > { %v4747_v12 = vpop.f32.mrf.mxu0 }
 0x731   : > { %v4748_v31 = vadd.f32 %v4747_v12, %v9745_v49 }
 0x732   : > { %v4749_v19 = vpop.f32.mrf.mxu0 }
 0x733   : > { %v9758_v62 = vadd.f32 %v7961_v23, %v4748_v31  ;;  %v4750_v40 = vadd.f32 %v4749_v19, %v9751_v17  ;;  %v7608_v23 = vld [vmem:[#allocation14 + $0x170] ss:$8 sps:$4 sm:$0xff]  }
 0x734   : > { %v4751_v46 = vpop.f32.mrf.mxu0 }
 0x735   : > { %v9765_v32 = vadd.f32 %v7962_v8, %v4750_v40  ;;  %v4752_v48 = vadd.f32 %v4751_v46, %v9745_v49  ;;  %v4871_v42 = vmul.f32 %v9755_v33, %v9758_v62  ;;  %v9833_v40 = vld [vmem:[#allocation14 + $0x70] ss:$8 sps:$4 sm:$0xff]  }
 0x736   : > { %v4753_v1 = vpop.f32.mrf.mxu0 }
 0x737   : > { %v4872_v18 = vmul.f32 %v9762_v10, %v9765_v32  ;;  %v9773_v59 = vadd.f32 %v7963_v37, %v4752_v48  ;;  %v4754_v16 = vadd.f32 %v4753_v1, %v9751_v17  ;;  %v7616_v48 = vld [vmem:[#allocation14 + $0x164] ss:$8 sps:$4 sm:$0xff]  }
 0x739   : > { %7896 = vtanh.f32 %v4872_v18  ;;  %v4873_v15 = vmul.f32 %v9755_v33, %v9773_v59  ;;  %v9779_v63 = vadd.f32 %v7964_v44, %v4754_v16  ;;  %v7969_v18 = vld [vmem:[%s8572_s30 + $0x40] sm:$0xff] }
 0x73a   : > { %7898 = vtanh.f32 %v4871_v42  ;;  %v9836_v42 = vld [vmem:[#allocation14 + $0x64] ss:$8 sps:$4 sm:$0xff]   ;;  %v7614_v44 = vld [vmem:[#allocation14 + $0x160] ss:$8 sps:$4 sm:$0xff]  }
 0x73b   : > { %10522 = vst [vmem:[#allocation26_spill] sm:$0xff] %v9779_v63  ;;  %7900 = vtanh.f32 %v4873_v15  ;;  %v4874_v43 = vmul.f32 %v9762_v10, %v9779_v63 }
 0x73d   : > { %7902 = vtanh.f32 %v4874_v43  ;;  %v9843_v43 = vld [vmem:[#allocation14 + $0x60] ss:$8 sps:$4 sm:$0xff]  }
 0x73e   : > { %v4757_v28 = vpop.f32.mrf.mxu0 }
 0x73f   : > { %v4758_v56 = vadd.f32 %v4757_v28, %v9745_v49 }
 0x740   : > { %v4759_v34 = vpop.f32.mrf.mxu0 }
 0x741   : > { %v9785_v14 = vadd.f32 %v7965_v4, %v4758_v56  ;;  %v4760_v54 = vadd.f32 %v4759_v34, %v9751_v17  ;;  %v7970_v56 = vld [vmem:[%s8572_s30 + $0x48] sm:$0xff] }
 0x742   : > { %v4761_v6 = vpop.f32.mrf.mxu0 }
 0x743   : > { %10523 = vst [vmem:[#allocation28_spill] sm:$0xff] %v9785_v14  ;;  %v9789_v61 = vadd.f32 %v7966_v58, %v4760_v54  ;;  %v4762_v24 = vadd.f32 %v4761_v6, %v9745_v49  ;;  %v4875_v22 = vmul.f32 %v9755_v33, %v9785_v14  ;;  %v7622_v54 = vld [vmem:[#allocation14 + $0x154] ss:$8 sps:$4 sm:$0xff]  }
 0x744   : > { %v4763_v3 = vpop.f32.mrf.mxu0  ;;  %v9850_v6 = vld [vmem:[#allocation14 + $0x54] ss:$8 sps:$4 sm:$0xff]  }
 0x745   : > { %10524 = vst [vmem:[#allocation31_spill] sm:$0xff] %v9789_v61  ;;  %v4876_v38 = vmul.f32 %v9762_v10, %v9789_v61  ;;  %v9800_v35 = vadd.f32 %v7967_v25, %v4762_v24  ;;  %v4764_v41 = vadd.f32 %v4763_v3, %v9751_v17 }
 0x746   : > { %v7897_v7 = vpop.eup %7896 }
 0x747   : > { %10525 = vst [vmem:[#allocation29_spill] sm:$0xff] %v9800_v35  ;;  %v7899_v52 = vpop.eup %7898  ;;  %7904 = vtanh.f32 %v4876_v38  ;;  %v4877_v11 = vmul.f32 %v9755_v33, %v9800_v35  ;;  %v9812_v13 = vadd.f32 %v7968_v50, %v4764_v41  ;;  %v4947_v29 = vmul.f32 %v7897_v7, %v9804_v9  ;;  %v7971_v38 = vld [vmem:[%s8572_s30 + $0x50] sm:$0xff] }
 0x748   : > { %v7901_v30 = vpop.eup %7900  ;;  %7906 = vtanh.f32 %v4875_v22  ;;  %v4946_v20 = vmul.f32 %v7899_v52, %v9807_v21  ;;  %v9863_v50 = vld [vmem:[#allocation14 + $0x50] ss:$8 sps:$4 sm:$0xff]  }
 0x749   : > { %10526 = vst [vmem:[#allocation27_spill] sm:$0xff] %v9812_v13  ;;  %7908 = vtanh.f32 %v4877_v11  ;;  %v4878_v2 = vmul.f32 %v9762_v10, %v9812_v13  ;;  %v4948_v51 = vmul.f32 %v7901_v30, %v9807_v21  ;;  %v4991_v0 = vadd.f32 %v9818_v47, %v4947_v29  ;;  %v7620_v11 = vld [vmem:[#allocation14 + $0x150] ss:$8 sps:$4 sm:$0xff]  }
 0x74a   : > { %v7903_v36 = vpop.eup %7902  ;;  %v4990_v12 = vadd.f32 %v9825_v55, %v4946_v20  ;;  %v9872_v20 = vld [vmem:[#allocation14 + $0x44] ss:$8 sps:$4 sm:$0xff]  }
 0x74b   : > { %7910 = vtanh.f32 %v4878_v2  ;;  %v4949_v45 = vmul.f32 %v7903_v36, %v9804_v9  ;;  %v4992_v53 = vadd.f32 %v9825_v55, %v4948_v51  ;;  %v7972_v2 = vld [vmem:[%s8572_s30 + $0x58] sm:$0xff]  ;;  %v7628_v36 = vld [vmem:[#allocation14 + $0x144] ss:$8 sps:$4 sm:$0xff]  }
 0x74d   : > { %v4993_v26 = vadd.f32 %v9818_v47, %v4949_v45  ;;  %v5022_v8 = vpack.c.bf16 %v4992_v53, %v4990_v12 }
 0x74f   : > { %v4767_v31 = vpop.f32.mrf.mxu0  ;;  %v5023_v19 = vpack.c.bf16 %v4993_v26, %v4991_v0 }
 0x750   : > { %v4768_v46 = vadd.f32 %v4767_v31, %v9745_v49 }
 0x751   : > { %v4769_v1 = vpop.f32.mrf.mxu0  ;;  %5274 = vmatprep.mubr.bf16.mxu1 %v5023_v19  ;;  %5676 = vmatprep.mubr.bf16.mxu0 %v5023_v19 }
 0x752   : > { %v9839_v37 = vadd.f32 %v7969_v18, %v4768_v46  ;;  %v4770_v16 = vadd.f32 %v4769_v1, %v9751_v17  ;;  %5275 = vmatmul.mubr.bf16.vlgmr.msra.gmra.mxu1 %v5022_v8  ;;  %5677 = vmatmul.mubr.bf16.vlgmr.msra.gmra.mxu0 %v5022_v8  ;;  %v9883_v46 = vld [vmem:[#allocation14 + $0x40] ss:$8 sps:$4 sm:$0xff]   ;;  %v7634_v1 = vld [vmem:[#allocation14 + $0x134] ss:$8 sps:$4 sm:$0xff]  }
 0x753   : > { %v4771_v15 = vpop.f32.mrf.mxu0  ;;  %6001 = vmatpush1.bf16.msra.mxu1 %v7608_v23  ;;  %6274 = vmatpush1.bf16.msra.mxu0 %v9833_v40  ;;  %v7626_v23 = vld [vmem:[#allocation14 + $0x140] ss:$8 sps:$4 sm:$0xff]   ;;  %v9885_v18 = vld [vmem:[#allocation14 + $0x34] ss:$8 sps:$4 sm:$0xff]  }
 0x754   : > { %10527 = vst [vmem:[#allocation32_spill] sm:$0xff] %v9839_v37  ;;  %v7905_v28 = vpop.eup %7904  ;;  %v9846_v34 = vadd.f32 %v7970_v56, %v4770_v16  ;;  %v4772_v4 = vadd.f32 %v4771_v15, %v9745_v49  ;;  %6002 = vmatprep.subr.bf16.mxu1 %v7616_v48  ;;  %6275 = vmatprep.subr.bf16.mxu0 %v9836_v42 }
 0x755   : > { %v7907_v58 = vpop.eup %7906  ;;  %v4879_v24 = vmul.f32 %v9755_v33, %v9839_v37  ;;  %v4773_v57 = vpop.f32.mrf.mxu0  ;;  %v4951_v7 = vmul.f32 %v7905_v28, %v9804_v9 }
 0x756   : > { %10528 = vst [vmem:[#allocation30_spill] sm:$0xff] %v9846_v34  ;;  %v7909_v22 = vpop.eup %7908  ;;  %v4880_v3 = vmul.f32 %v9762_v10, %v9846_v34  ;;  %v9857_v25 = vadd.f32 %v7971_v38, %v4772_v4  ;;  %v4774_v41 = vadd.f32 %v4773_v57, %v9751_v17  ;;  %v4950_v51 = vmul.f32 %v7907_v58, %v9807_v21  ;;  %v7632_v4 = vld [vmem:[#allocation14 + $0x130] ss:$8 sps:$4 sm:$0xff]   ;;  %v9896_v57 = vld [vmem:[#allocation14 + $0x24] ss:$8 sps:$4 sm:$0xff]  }
 0x757   : > { %v4952_v52 = vmul.f32 %v7909_v22, %v9807_v21  ;;  %6003 = vmatpush1.bf16.msra.mxu1 %v7614_v44  ;;  %6276 = vmatpush1.bf16.msra.mxu0 %v9843_v43  ;;  %v4995_v26 = vadd.f32 %v9818_v47, %v4951_v7  ;;  %v7973_v44 = vld [vmem:[%s8572_s30 + $0x60] sm:$0xff] }
 0x758   : > { %10529 = vst [vmem:[#allocation23_spill] sm:$0xff] %v9857_v25  ;;  %v7911_v39 = vpop.eup %7910  ;;  %7912 = vtanh.f32 %v4880_v3  ;;  %v4881_v30 = vmul.f32 %v9755_v33, %v9857_v25  ;;  %v9868_v29 = vadd.f32 %v7972_v2, %v4774_v41  ;;  %6004 = vmatprep.subr.bf16.mxu1 %v7622_v54  ;;  %6277 = vmatprep.subr.bf16.mxu0 %v9850_v6  ;;  %v9893_v54 = vld [vmem:[#allocation14 + $0x30] ss:$8 sps:$4 sm:$0xff]   ;;  %v7974_v3 = vld [vmem:[%s8572_s30 + $0x68] sm:$0xff] }
 0x759   : > { %7914 = vtanh.f32 %v4879_v24  ;;  %v4953_v45 = vmul.f32 %v7911_v39, %v9804_v9  ;;  %v4996_v0 = vadd.f32 %v9825_v55, %v4952_v52  ;;  %v4994_v31 = vadd.f32 %v9825_v55, %v4950_v51  ;;  %v7640_v24 = vld [vmem:[#allocation14 + $0x124] ss:$8 sps:$4 sm:$0xff]   ;;  %v7638_v51 = vld [vmem:[#allocation14 + $0x120] ss:$8 sps:$4 sm:$0xff]  }
 0x75a   : > { %10530 = vst [vmem:[#allocation25_spill] sm:$0xff] %v9868_v29  ;;  %7916 = vtanh.f32 %v4881_v30  ;;  %v4882_v53 = vmul.f32 %v9762_v10, %v9868_v29  ;;  %v7975_v39 = vld [vmem:[%s8572_s30 + $0x70] sm:$0xff] }
 0x75b   : > { %v4997_v12 = vadd.f32 %v9818_v47, %v4953_v45  ;;  %6005 = vmatpush1.bf16.msra.mxu1 %v7620_v11  ;;  %6278 = vmatpush1.bf16.msra.mxu0 %v9863_v50  ;;  %v5024_v48 = vpack.c.bf16 %v4996_v0, %v4994_v31  ;;  %v9914_v0 = vld [vmem:[#allocation14 + $0x14] ss:$8 sps:$4 sm:$0xff]   ;;  %v10014_v29 = vld [vmem:[#allocation14 + $0xc4] ss:$8 sps:$4 sm:$0xff]  }
 0x75c   : > { %7918 = vtanh.f32 %v4882_v53  ;;  %6006 = vmatprep.subr.bf16.mxu1 %v7628_v36  ;;  %6279 = vmatprep.subr.bf16.mxu0 %v9872_v20  ;;  %v9911_v36 = vld [vmem:[#allocation14 + $0x20] ss:$8 sps:$4 sm:$0xff]   ;;  %v7646_v53 = vld [vmem:[#allocation14 + $0x114] ss:$8 sps:$4 sm:$0xff]  }
 0x75d   : > { %v5025_v19 = vpack.c.bf16 %v4997_v12, %v4995_v26  ;;  %v7976_v31 = vld [vmem:[%s8572_s30 + $0x78] sm:$0xff] }
 0x75e   : > { %v4777_v8 = vpop.f32.mrf.mxu0 }
 0x75f   : > { %v4778_v16 = vadd.f32 %v4777_v8, %v9745_v49  ;;  %5284 = vmatprep.mubr.bf16.mxu1 %v5025_v19  ;;  %5686 = vmatprep.mubr.bf16.mxu0 %v5025_v19 }
 0x760   : > { %v4779_v15 = vpop.f32.mrf.mxu0  ;;  %5285 = vmatmul.mubr.bf16.gmra.mxu1 %v5024_v48  ;;  %5687 = vmatmul.mubr.bf16.gmra.mxu0 %v5024_v48 }
 0x761   : > { %v9889_v28 = vadd.f32 %v7973_v44, %v4778_v16  ;;  %v4780_v56 = vadd.f32 %v4779_v15, %v9751_v17  ;;  %6007 = vmatpush1.bf16.msra.mxu1 %v7626_v23  ;;  %6280 = vmatpush1.bf16.msra.mxu0 %v9883_v46  ;;  %v7644_v15 = vld [vmem:[#allocation14 + $0x110] ss:$8 sps:$4 sm:$0xff]  }
 0x762   : > { %v4781_v58 = vpop.f32.mrf.mxu0  ;;  %6008 = vmatprep.subr.bf16.mxu1 %v7634_v1  ;;  %6281 = vmatprep.subr.bf16.mxu0 %v9885_v18  ;;  %v9927_v44 = vld [vmem:[#allocation14 + $0x10] ss:$8 sps:$4 sm:$0xff]  }
 0x763   : > { %10531 = vst [vmem:[#allocation24_spill] sm:$0xff] %v9889_v28  ;;  %v4883_v22 = vmul.f32 %v9755_v33, %v9889_v28  ;;  %v9901_v38 = vadd.f32 %v7974_v3, %v4780_v56  ;;  %v4782_v41 = vadd.f32 %v4781_v58, %v9745_v49  ;;  %v9931_v58 = vld [vmem:[#allocation14 + $0x4] ss:$8 sps:$4 sm:$0xff]  }
 0x764   : > { %v4783_v7 = vpop.f32.mrf.mxu0 }
 0x765   : > { %10532 = vst [vmem:[#allocation33_spill] sm:$0xff] %v9901_v38  ;;  %v7913_v52 = vpop.eup %7912  ;;  %v4884_v11 = vmul.f32 %v9762_v10, %v9901_v38  ;;  %v9907_v30 = vadd.f32 %v7975_v39, %v4782_v41  ;;  %v4784_v2 = vadd.f32 %v4783_v7, %v9751_v17  ;;  %6009 = vmatpush1.bf16.msra.mxu1 %v7632_v4  ;;  %7920 = vtanh.f32 %v4883_v22  ;;  %v7652_v4 = vld [vmem:[#allocation14 + $0x104] ss:$8 sps:$4 sm:$0xff]   ;;  %v7977_v39 = vld [vmem:[%s8572_s30 + $0x80] sm:$0xff] }
 0x766   : > { %6282 = vmatpush1.bf16.msra.mxu0 %v9893_v54  ;;  %v7915_v45 = vpop.eup %7914  ;;  %6010 = vmatprep.subr.bf16.mxu1 %v7640_v24  ;;  %v4955_v23 = vmul.f32 %v7913_v52, %v9804_v9 }
 0x767   : > { %10533 = vst [vmem:[#allocation34_spill] sm:$0xff] %v9907_v30  ;;  %6283 = vmatprep.subr.bf16.mxu0 %v9896_v57  ;;  %v7917_v26 = vpop.eup %7916  ;;  %7922 = vtanh.f32 %v4884_v11  ;;  %v4885_v12 = vmul.f32 %v9755_v33, %v9907_v30  ;;  %v9919_v19 = vadd.f32 %v7976_v31, %v4784_v2  ;;  %v4954_v16 = vmul.f32 %v7915_v45, %v9807_v21  ;;  %v7983_v30 = vld [vmem:[%s8572_s30 + $0xb0] sm:$0xff] }
 0x768   : > { %v4956_v8 = vmul.f32 %v7917_v26, %v9807_v21  ;;  %v4999_v41 = vadd.f32 %v9818_v47, %v4955_v23  ;;  %v9943_v26 = vld [vmem:[#allocation14] ss:$8 sps:$4 sm:$0xff]   ;;  %v7658_v23 = vld [vmem:[#allocation14 + $0x1f4] ss:$8 sps:$4 sm:$0xff]  }
 0x769   : > { %10534 = vst [vmem:[#allocation35_spill] sm:$0xff] %v9919_v19  ;;  %v7919_v48 = vpop.eup %7918  ;;  %7924 = vtanh.f32 %v4885_v12  ;;  %v4886_v1 = vmul.f32 %v9762_v10, %v9919_v19  ;;  %6011 = vmatpush1.bf16.msra.mxu1 %v7638_v51  ;;  %v4998_v11 = vadd.f32 %v9825_v55, %v4954_v16 }
 0x76a   : > { %6284 = vmatpush1.bf16.msra.mxu0 %v9911_v36  ;;  %v4957_v56 = vmul.f32 %v7919_v48, %v9804_v9  ;;  %6012 = vmatprep.subr.bf16.mxu1 %v7646_v53  ;;  %v5000_v22 = vadd.f32 %v9825_v55, %v4956_v8  ;;  %v7650_v53 = vld [vmem:[#allocation14 + $0x100] ss:$8 sps:$4 sm:$0xff]   ;;  %v9946_v8 = vld [vmem:[#allocation14 + $0xf4] ss:$8 sps:$4 sm:$0xff]  }
 0x76b   : > { %6285 = vmatprep.subr.bf16.mxu0 %v9914_v0  ;;  %7926 = vtanh.f32 %v4886_v1  ;;  %v4787_v24 = vpop.f32.mrf.mxu0  ;;  %v7978_v1 = vld [vmem:[%s8572_s30 + $0x88] sm:$0xff] }
 0x76c   : > { %v4788_v3 = vadd.f32 %v4787_v24, %v9745_v49  ;;  %v5001_v7 = vadd.f32 %v9818_v47, %v4957_v56  ;;  %v5026_v31 = vpack.c.bf16 %v5000_v22, %v4998_v11  ;;  %v7979_v24 = vld [vmem:[%s8572_s30 + $0x90] sm:$0xff] }
 0x76d   : > { %v4789_v52 = vpop.f32.mrf.mxu0  ;;  %6013 = vmatpush1.bf16.msra.mxu1 %v7644_v15 }
 0x76e   : > { %6286 = vmatpush1.bf16.msra.mxu0 %v9927_v44  ;;  %v9940_v2 = vadd.f32 %v7977_v39, %v4788_v3  ;;  %v4790_v51 = vadd.f32 %v4789_v52, %v9751_v17  ;;  %v5027_v45 = vpack.c.bf16 %v5001_v7, %v4999_v41  ;;  %6014 = vmatprep.subr.bf16.mxu1 %v7652_v4  ;;  %v7656_v41 = vld [vmem:[#allocation14 + $0x1f0] ss:$8 sps:$4 sm:$0xff]   ;;  %v7664_v39 = vld [vmem:[#allocation14 + $0x1e4] ss:$8 sps:$4 sm:$0xff]  }
 0x76f   : > { %6287 = vmatprep.subr.bf16.mxu0 %v9931_v58  ;;  %v4791_v12 = vpop.f32.mrf.mxu0  ;;  %v9961_v7 = vld [vmem:[#allocation14 + $0xf0] ss:$8 sps:$4 sm:$0xff]  }
 0x770   : > { %10535 = vst [vmem:[#allocation36_spill] sm:$0xff] %v9940_v2  ;;  %v4887_v48 = vmul.f32 %v9755_v33, %v9940_v2  ;;  %v9951_v16 = vadd.f32 %v7978_v1, %v4790_v51  ;;  %v4792_v15 = vadd.f32 %v4791_v12, %v9745_v49  ;;  %5294 = vmatprep.mubr.bf16.mxu1 %v5027_v45  ;;  %v9964_v51 = vld [vmem:[#allocation14 + $0xe4] ss:$8 sps:$4 sm:$0xff]  }
 0x771   : > { %5696 = vmatprep.mubr.bf16.mxu0 %v5027_v45  ;;  %v4793_v56 = vpop.f32.mrf.mxu0  ;;  %5295 = vmatmul.mubr.bf16.gmra.mxu1 %v5026_v31 }
 0x772   : > { %10536 = vst [vmem:[#allocation37_spill] sm:$0xff] %v9951_v16  ;;  %5697 = vmatmul.mubr.bf16.gmra.mxu0 %v5026_v31  ;;  %v4888_v4 = vmul.f32 %v9762_v10, %v9951_v16  ;;  %v9957_v22 = vadd.f32 %v7979_v24, %v4792_v15  ;;  %v4794_v3 = vadd.f32 %v4793_v56, %v9751_v17  ;;  %v7921_v52 = vpop.eup %7920  ;;  %7928 = vtanh.f32 %v4887_v48  ;;  %v7981_v24 = vld [vmem:[%s8572_s30 + $0xa0] sm:$0xff] }
 0x773   : > { %6015 = vmatpush1.bf16.msra.mxu1 %v7650_v53  ;;  %6288 = vmatpush1.bf16.msra.mxu0 %v9943_v26  ;;  %v4797_v11 = vpop.f32.mrf.mxu0  ;;  %v7980_v53 = vld [vmem:[%s8572_s30 + $0x98] sm:$0xff] }
 0x774   : > { %10537 = vst [vmem:[#allocation38_spill] sm:$0xff] %v9957_v22  ;;  %6016 = vmatprep.subr.bf16.mxu1 %v7658_v23  ;;  %6289 = vmatprep.subr.bf16.mxu0 %v9946_v8  ;;  %v7923_v45 = vpop.eup %7922  ;;  %v4889_v12 = vmul.f32 %v9755_v33, %v9957_v22  ;;  %v9969_v31 = vadd.f32 %v7980_v53, %v4794_v3  ;;  %7930 = vtanh.f32 %v4888_v4  ;;  %v7662_v3 = vld [vmem:[#allocation14 + $0x1e0] ss:$8 sps:$4 sm:$0xff]  }
 0x775   : > { %v4798_v1 = vadd.f32 %v4797_v11, %v9745_v49  ;;  %v4799_v15 = vpop.f32.mrf.mxu0  ;;  %v9979_v53 = vld [vmem:[#allocation14 + $0xe0] ss:$8 sps:$4 sm:$0xff]   ;;  %v4959_v4 = vmul.f32 %v7923_v45, %v9804_v9 }
 0x776   : > { %10538 = vst [vmem:[#allocation39_spill] sm:$0xff] %v9969_v31  ;;  %v7925_v56 = vpop.eup %7924  ;;  %7932 = vtanh.f32 %v4889_v12  ;;  %v4890_v23 = vmul.f32 %v9762_v10, %v9969_v31  ;;  %v4800_v48 = vadd.f32 %v4799_v15, %v9751_v17  ;;  %v4958_v12 = vmul.f32 %v7921_v52, %v9807_v21  ;;  %v7982_v15 = vld [vmem:[%s8572_s30 + $0xa8] sm:$0xff] }
 0x777   : > { %v9975_v16 = vadd.f32 %v7981_v24, %v4798_v1  ;;  %6017 = vmatpush2.bf16.msra.mxu1 %v7656_v41  ;;  %6290 = vmatpush2.bf16.msra.mxu0 %v9961_v7  ;;  %v4801_v11 = vpop.f32.mrf.mxu0  ;;  %v4960_v31 = vmul.f32 %v7925_v56, %v9807_v21  ;;  %v7670_v1 = vld [vmem:[#allocation14 + $0x1d4] ss:$8 sps:$4 sm:$0xff]  }
 0x778   : > { %6018 = vmatprep.subr.bf16.mxu1 %v7664_v39  ;;  %6291 = vmatprep.subr.bf16.mxu0 %v9964_v51  ;;  %v9985_v24 = vld [vmem:[#allocation14 + $0xd4] ss:$8 sps:$4 sm:$0xff]   ;;  %v7927_v41 = vpop.eup %7926  ;;  %7934 = vtanh.f32 %v4890_v23  ;;  %v9988_v22 = vadd.f32 %v7982_v15, %v4800_v48  ;;  %v4802_v2 = vadd.f32 %v4801_v11, %v9745_v49  ;;  %v7668_v48 = vld [vmem:[#allocation14 + $0x1d0] ss:$8 sps:$4 sm:$0xff]  }
 0x779   : > { %10539 = vst [vmem:[#allocation40_spill] sm:$0xff] %v9975_v16  ;;  %v4891_v45 = vmul.f32 %v9755_v33, %v9975_v16  ;;  %v4803_v52 = vpop.f32.mrf.mxu0  ;;  %v4961_v19 = vmul.f32 %v7927_v41, %v9804_v9  ;;  %v5004_v39 = vadd.f32 %v9825_v55, %v4960_v31  ;;  %v10002_v11 = vld [vmem:[#allocation14 + $0xd0] ss:$8 sps:$4 sm:$0xff]   ;;  %v5003_v41 = vadd.f32 %v9818_v47, %v4959_v4 }
 0x77a   : > { %10540 = vst [vmem:[#allocation41_spill] sm:$0xff] %v9988_v22  ;;  %v4892_v56 = vmul.f32 %v9762_v10, %v9988_v22  ;;  %v9998_v38 = vadd.f32 %v7983_v30, %v4802_v2  ;;  %v4804_v23 = vadd.f32 %v4803_v52, %v9751_v17  ;;  %v5002_v16 = vadd.f32 %v9825_v55, %v4958_v12  ;;  %v7984_v2 = vld [vmem:[%s8572_s30 + $0xb8] sm:$0xff] }
 0x77b   : > { %6019 = vmatpush2.bf16.msra.mxu1 %v7662_v3  ;;  %6292 = vmatpush2.bf16.msra.mxu0 %v9979_v53  ;;  %v4807_v15 = vpop.f32.mrf.mxu0  ;;  %v5005_v31 = vadd.f32 %v9818_v47, %v4961_v19  ;;  %v7676_v19 = vld [vmem:[#allocation14 + $0x1c4] ss:$8 sps:$4 sm:$0xff]  }
 0x77c   : > { %10541 = vst [vmem:[#allocation42_spill] sm:$0xff] %v9998_v38  ;;  %6020 = vmatprep.subr.bf16.mxu1 %v7670_v1  ;;  %6293 = vmatprep.subr.bf16.mxu0 %v9985_v24  ;;  %7936 = vtanh.f32 %v4892_v56  ;;  %v4893_v30 = vmul.f32 %v9755_v33, %v9998_v38  ;;  %v10011_v3 = vadd.f32 %v7984_v2, %v4804_v23  ;;  %v7985_v1 = vld [vmem:[%s8572_s30 + $0xc0] sm:$0xff] }
 0x77d   : > { %v4808_v52 = vadd.f32 %v4807_v15, %v9745_v49  ;;  %7938 = vtanh.f32 %v4891_v45  ;;  %v4809_v22 = vpop.f32.mrf.mxu0  ;;  %v5029_v4 = vpack.c.bf16 %v5005_v31, %v5003_v41  ;;  %v5028_v28 = vpack.c.bf16 %v5004_v39, %v5002_v16  ;;  %v7674_v45 = vld [vmem:[#allocation14 + $0x1c0] ss:$8 sps:$4 sm:$0xff]   ;;  %v7682_v39 = vld [vmem:[#allocation14 + $0x1b4] ss:$8 sps:$4 sm:$0xff]  }
 0x77e   : > { %10542 = vst [vmem:[#allocation43_spill] sm:$0xff] %v10011_v3  ;;  %7940 = vtanh.f32 %v4893_v30  ;;  %v4894_v12 = vmul.f32 %v9762_v10, %v10011_v3  ;;  %v4810_v23 = vadd.f32 %v4809_v22, %v9751_v17  ;;  %v10023_v15 = vld [vmem:[#allocation14 + $0xc0] ss:$8 sps:$4 sm:$0xff]   ;;  %v10025_v41 = vld [vmem:[#allocation14 + $0xb4] ss:$8 sps:$4 sm:$0xff]  }
 0x77f   : > { %v10019_v56 = vadd.f32 %v7985_v1, %v4808_v52  ;;  %6021 = vmatpush2.bf16.msra.mxu1 %v7668_v48  ;;  %6294 = vmatpush2.bf16.msra.mxu0 %v10002_v11  ;;  %v4811_v16 = vpop.f32.mrf.mxu0  ;;  %v7986_v31 = vld [vmem:[%s8572_s30 + $0xc8] sm:$0xff]  ;;  %v7929_v22 = vpop.eup %7928  ;;  %v7987_v1 = vld [vmem:[%s8572_s30 + $0xd0] sm:$0xff] }
 0x780   : > { %5304 = vmatprep.mubr.bf16.mxu1 %v5029_v4  ;;  %5706 = vmatprep.mubr.bf16.mxu0 %v5029_v4  ;;  %7942 = vtanh.f32 %v4894_v12  ;;  %v10028_v30 = vadd.f32 %v7986_v31, %v4810_v23  ;;  %v4812_v2 = vadd.f32 %v4811_v16, %v9745_v49  ;;  %v10041_v31 = vld [vmem:[#allocation14 + $0xb0] ss:$8 sps:$4 sm:$0xff]   ;;  %v4962_v25 = vmul.f32 %v7929_v22, %v9807_v21 }
 0x781   : > { %10543 = vst [vmem:[#allocation44_spill] sm:$0xff] %v10019_v56  ;;  %5305 = vmatmul.mubr.bf16.gmra.mxu1 %v5028_v28  ;;  %5707 = vmatmul.mubr.bf16.gmra.mxu0 %v5028_v28  ;;  %v4895_v48 = vmul.f32 %v9755_v33, %v10019_v56  ;;  %v4813_v52 = vpop.f32.mrf.mxu0  ;;  %v7931_v4 = vpop.eup %7930  ;;  %v7680_v28 = vld [vmem:[#allocation14 + $0x1b0] ss:$8 sps:$4 sm:$0xff]  }
 0x782   : > { %10544 = vst [vmem:[#allocation45_spill] sm:$0xff] %v10028_v30  ;;  %6022 = vmatprep.subr.bf16.mxu1 %v7676_v19  ;;  %6295 = vmatprep.subr.bf16.mxu0 %v10014_v29  ;;  %v4896_v12 = vmul.f32 %v9762_v10, %v10028_v30  ;;  %v10037_v23 = vadd.f32 %v7987_v1, %v4812_v2  ;;  %v7988_v2 = vld [vmem:[%s8572_s30 + $0xd8] sm:$0xff] }
 0x783   : > { %v4814_v16 = vadd.f32 %v4813_v52, %v9751_v17  ;;  %6023 = vmatpush2.bf16.msra.mxu1 %v7674_v45  ;;  %6296 = vmatpush2.bf16.msra.mxu0 %v10023_v15  ;;  %v7933_v56 = vpop.eup %7932  ;;  %v4817_v19 = vpop.f32.mrf.mxu0  ;;  %v4963_v38 = vmul.f32 %v7931_v4, %v9804_v9 }
 0x784   : > { %10545 = vst [vmem:[#allocation46_spill] sm:$0xff] %v10037_v23  ;;  %6024 = vmatprep.subr.bf16.mxu1 %v7682_v39  ;;  %6297 = vmatprep.subr.bf16.mxu0 %v10025_v41  ;;  %7944 = vtanh.f32 %v4896_v12  ;;  %v4897_v30 = vmul.f32 %v9755_v33, %v10037_v23  ;;  %v4818_v45 = vadd.f32 %v4817_v19, %v9745_v49  ;;  %v7989_v23 = vld [vmem:[%s8572_s30 + $0xe0] sm:$0xff] }
 0x785   : > { %v10047_v1 = vadd.f32 %v7988_v2, %v4814_v16  ;;  %v7935_v52 = vpop.eup %7934  ;;  %7946 = vtanh.f32 %v4895_v48  ;;  %v4819_v3 = vpop.f32.mrf.mxu0  ;;  %v4964_v39 = vmul.f32 %v7933_v56, %v9807_v21  ;;  %v7990_v56 = vld [vmem:[%s8572_s30 + $0xe8] sm:$0xff] }
 0x786   : > { %7948 = vtanh.f32 %v4897_v30  ;;  %v10056_v34 = vadd.f32 %v7989_v23, %v4818_v45  ;;  %v4820_v16 = vadd.f32 %v4819_v3, %v9751_v17  ;;  %v4965_v4 = vmul.f32 %v7935_v52, %v9804_v9 }
 0x787   : > { %10546 = vst [vmem:[#allocation47_spill] sm:$0xff] %v10047_v1  ;;  %v4898_v12 = vmul.f32 %v9762_v10, %v10047_v1  ;;  %6025 = vmatpush2.bf16.msra.mxu1 %v7680_v28  ;;  %6298 = vmatpush2.bf16.msra.mxu0 %v10041_v31  ;;  %v4821_v48 = vpop.f32.mrf.mxu0  ;;  %v5008_v22 = vadd.f32 %v9825_v55, %v4964_v39 }
 0x788   : > { %10547 = vst [vmem:[#allocation48_spill] sm:$0xff] %v10056_v34  ;;  %v10063_v30 = vadd.f32 %v7990_v56, %v4820_v16  ;;  %v4822_v19 = vadd.f32 %v4821_v48, %v9745_v49  ;;  %v4899_v23 = vmul.f32 %v9755_v33, %v10056_v34  ;;  %v5007_v28 = vadd.f32 %v9818_v47, %v4963_v38 }
 0x789   : > { %7950 = vtanh.f32 %v4898_v12  ;;  %v7937_v2 = vpop.eup %7936  ;;  %v4823_v3 = vpop.f32.mrf.mxu0  ;;  %v5009_v45 = vadd.f32 %v9818_v47, %v4965_v4  ;;  %v5006_v52 = vadd.f32 %v9825_v55, %v4962_v25  ;;  %v7991_v12 = vld [vmem:[%s8572_s30 + $0xf0] sm:$0xff]  ;;  %v7992_v4 = vld [vmem:[%s8572_s30 + $0xf8] sm:$0xff]  ;;  %s8203_s30 = scalar_lea.vmem %s10353_s28, 4096 }
 0x78a   : > { %10548 = vst [vmem:[#allocation49_spill] sm:$0xff] %v10063_v30  ;;  %v7939_v1 = vpop.eup %7938  ;;  %v4900_v39 = vmul.f32 %v9762_v10, %v10063_v30  ;;  %v10074_v16 = vadd.f32 %v7991_v12, %v4822_v19  ;;  %v4824_v49 = vadd.f32 %v4823_v3, %v9751_v17  ;;  %v4967_v37 = vmul.f32 %v7937_v2, %v9804_v9  ;;  %v7686_v12 = vld [vmem:[#allocation14 + $0x1a0] ss:$8 sps:$4 sm:$0xff]   ;;  %p8204_p3 = scmp.ne.s32.totalorder %s10353_s28, %s8203_s30  ;;  %p8211_p4 = scmp.lt.s32.totalorder %s8209_s25, %s8203_s30 }
 0x78b   : > { %v7941_v48 = vpop.eup %7940  ;;  %v5031_v56 = vpack.c.bf16 %v5009_v45, %v5007_v28  ;;  %v5030_v34 = vpack.c.bf16 %v5008_v22, %v5006_v52  ;;  %v4966_v19 = vmul.f32 %v7939_v1, %v9807_v21 }
 0x78c   : > { %10549 = vst [vmem:[#allocation50_spill] sm:$0xff] %v10074_v16  ;;  %7952 = vtanh.f32 %v4900_v39  ;;  %v4901_v38 = vmul.f32 %v9755_v33, %v10074_v16  ;;  %v10081_v25 = vadd.f32 %v7992_v4, %v4824_v49  ;;  %v4968_v13 = vmul.f32 %v7941_v48, %v9807_v21  ;;  %v7688_v49 = vld [vmem:[#allocation14 + $0x1a4] ss:$8 sps:$4 sm:$0xff]   ;;  %v10096_v48 = vld [vmem:[#allocation14 + $0xa0] ss:$8 sps:$4 sm:$0xff]   ;;  %p8205_p8 = pnand %p8204_p3, %p10582_p0  ;;  %p8212_p6 = por %p8211_p4, %p8210_p7 }
 0x78d   : > { %v7943_v30 = vpop.eup %7942  ;;  %7954 = vtanh.f32 %v4899_v23  ;;  %5314 = vmatprep.mubr.bf16.mxu1 %v5031_v56  ;;  %5716 = vmatprep.mubr.bf16.mxu0 %v5031_v56  ;;  %v5011_v33 = vadd.f32 %v9818_v47, %v4967_v37  ;;  %v5010_v52 = vadd.f32 %v9825_v55, %v4966_v19 }
 0x78e   : > { %10550 = vst [vmem:[#allocation51_spill] sm:$0xff] %v10081_v25  ;;  %7956 = vtanh.f32 %v4901_v38  ;;  %v4902_v17 = vmul.f32 %v9762_v10, %v10081_v25  ;;  %5315 = vmatmul.mubr.bf16.gmra.mxu1 %v5030_v34  ;;  %5717 = vmatmul.mubr.bf16.gmra.mxu0 %v5030_v34  ;;  %v4969_v22 = vmul.f32 %v7943_v30, %v9804_v9  ;;  %p8206_p9 = pneg %p8205_p8 }
 0x78f   : > { %v5012_v3 = vadd.f32 %v9825_v55, %v4968_v13  ;;  %6026 = vmatprep.subr.bf16.mxu1 %v7688_v49 }
 0x790   : > { %7958 = vtanh.f32 %v4902_v17  ;;  %v5013_v2 = vadd.f32 %v9818_v47, %v4969_v22  ;;  %v10101_v17 = vld [vmem:[#allocation14 + $0xa4] ss:$8 sps:$4 sm:$0xff]   ;;  %6027 = vmatpush2.bf16.msra.mxu1 %v7686_v12  ;;  %p8213_p2 = pnand %p8212_p6, %p8206_p9 }
 0x791   : > { %v7945_v23 = vpop.eup %7944  ;;  %v5032_v10 = vpack.c.bf16 %v5012_v3, %v5010_v52  ;;  %6299 = vmatprep.subr.bf16.mxu0 %v10101_v17 }
 0x792   : > { %v7947_v28 = vpop.eup %7946  ;;  %v5033_v45 = vpack.c.bf16 %v5013_v2, %v5011_v33  ;;  %v4971_v34 = vmul.f32 %v7945_v23, %v9804_v9  ;;  %6300 = vmatpush2.bf16.msra.mxu0 %v10096_v48 }
 0x793   : > { %v7949_v39 = vpop.eup %7948  ;;  %v4970_v13 = vmul.f32 %v7947_v28, %v9807_v21 }
 0x794   : > { %5324 = vmatprep.mubr.bf16.mxu1 %v5033_v45  ;;  %5726 = vmatprep.mubr.bf16.mxu0 %v5033_v45  ;;  %v4972_v1 = vmul.f32 %v7949_v39, %v9807_v21  ;;  %v5015_v56 = vadd.f32 %v9818_v47, %v4971_v34  ;;  %v7692_v39 = vld [vmem:[#allocation14 + $0x190] ss:$8 sps:$4 sm:$0xff]  }
 0x795   : > { %v5014_v2 = vadd.f32 %v9825_v55, %v4970_v13  ;;  %v10108_v34 = vld [vmem:[#allocation14 + $0x90] ss:$8 sps:$4 sm:$0xff]  }
 0x796   : > { %v7951_v30 = vpop.eup %7950  ;;  %5325 = vmatmul.mubr.bf16.gmra.mxu1 %v5032_v10  ;;  %5727 = vmatmul.mubr.bf16.gmra.mxu0 %v5032_v10  ;;  %v5016_v4 = vadd.f32 %v9825_v55, %v4972_v1  ;;  %v7694_v10 = vld [vmem:[#allocation14 + $0x194] ss:$8 sps:$4 sm:$0xff]  }
 0x797   : > { %v4973_v37 = vmul.f32 %v7951_v30, %v9804_v9  ;;  %6028 = vmatprep.subr.bf16.mxu1 %v7694_v10 }
 0x798   : > { %v5034_v23 = vpack.c.bf16 %v5016_v4, %v5014_v2  ;;  %6029 = vmatpush2.bf16.msra.mxu1 %v7692_v39  ;;  %v7700_v4 = vld [vmem:[#allocation14 + $0x184] ss:$8 sps:$4 sm:$0xff]  }
 0x799   : > { %v5017_v38 = vadd.f32 %v9818_v47, %v4973_v37  ;;  %v7953_v22 = vpop.eup %7952  ;;  %v10112_v37 = vld [vmem:[#allocation14 + $0x94] ss:$8 sps:$4 sm:$0xff]   ;;  %6030 = vmatprep.subr.bf16.mxu1 %v7700_v4 }
 0x79a   : > { %v7955_v19 = vpop.eup %7954  ;;  %v4975_v28 = vmul.f32 %v7953_v22, %v9804_v9  ;;  %6301 = vmatprep.subr.bf16.mxu0 %v10112_v37  ;;  %v10120_v22 = vld [vmem:[#allocation14 + $0x80] ss:$8 sps:$4 sm:$0xff]  }
 0x79b   : > { %v5035_v33 = vpack.c.bf16 %v5017_v38, %v5015_v56  ;;  %v7957_v3 = vpop.eup %7956  ;;  %v4974_v30 = vmul.f32 %v7955_v19, %v9807_v21  ;;  %6302 = vmatpush2.bf16.msra.mxu0 %v10108_v34  ;;  %v7698_v38 = vld [vmem:[#allocation14 + $0x180] ss:$8 sps:$4 sm:$0xff]   ;;  %v6864_v19 = vld [vmem:[%s10411_s12 + $0x2] sm:$0x3] }
 0x79c   : > { %v4976_v45 = vmul.f32 %v7957_v3, %v9807_v21  ;;  %v5019_v13 = vadd.f32 %v9818_v47, %v4975_v28  ;;  %6031 = vmatpush2.bf16.msra.mxu1 %v7698_v38 }
 0x79d   : > { %5736 = vmatprep.mubr.bf16.mxu0 %v5035_v33  ;;  %5334 = vmatprep.mubr.bf16.mxu1 %v5035_v33  ;;  %v7959_v52 = vpop.eup %7958 }
 0x79e   : > { %5737 = vmatmul.mubr.bf16.gmra.mxu0 %v5034_v23  ;;  %v4977_v1 = vmul.f32 %v7959_v52, %v9804_v9  ;;  %5335 = vmatmul.mubr.bf16.gmra.mxu1 %v5034_v23  ;;  %v5020_v49 = vadd.f32 %v9825_v55, %v4976_v45  ;;  %v5018_v9 = vadd.f32 %v9825_v55, %v4974_v30  ;;  %v5070_v55 = vld [vmem:[%s10411_s12] sm:$0x3] }
 0x79f   : > { %7160 = vmatprep.subr.bf16.mxu1 %v9738_v60  ;;  %v10134_v3 = vrot.slane %v5070_v55, %v10521_v27  ;;  %v10137_v23 = vrot.slane %v6864_v19, %v10521_v27  ;;  %v10140_v28 = vrot.slane %v5070_v55, %v10520_v5  ;;  %v10143_v60 = vrot.slane %v6864_v19, %v10520_v5 }
 0x7a0   : > { %v5021_v12 = vadd.f32 %v9818_v47, %v4977_v1  ;;  %v5036_v21 = vpack.c.bf16 %v5020_v49, %v5018_v9  ;;  %v10122_v47 = vld [vmem:[#allocation14 + $0x84] ss:$8 sps:$4 sm:$0xff]  }
 0x7a1   : > { %6303 = vmatprep.subr.bf16.mxu0 %v10122_v47 }
 0x7a2   : > { %v5037_v56 = vpack.c.bf16 %v5021_v12, %v5019_v13  ;;  %6304 = vmatpush2.bf16.msra.mxu0 %v10120_v22 }
 0x7a4   : > { %5746 = vmatprep.mubr.bf16.mxu0 %v5037_v56  ;;  %5344 = vmatprep.mubr.bf16.mxu1 %v5037_v56 }
 0x7a6   : > { %5747 = vmatmul.mubr.bf16.gmra.mxu0 %v5036_v21  ;;  %5345 = vmatmul.mubr.bf16.gmra.mxu1 %v5036_v21 }
 0x812   : > { %v5276_v33 = vpop.f32.mrf.mxu1  ;;  %v5678_v2 = vpop.f32.mrf.mxu0 }
 0x813   : > { %v5277_v49 = vadd.f32 %v5276_v33, %v10140_v28  ;;  %v5679_v56 = vadd.f32 %v5678_v2, %v10143_v60 }
 0x814   : > { %v5278_v45 = vpop.f32.mrf.mxu1  ;;  %v5680_v52 = vpop.f32.mrf.mxu0 }
 0x815   : > { %v5279_v1 = vadd.f32 %v5278_v45, %v10134_v3  ;;  %v5681_v30 = vadd.f32 %v5680_v52, %v10137_v23  ;;  %v5355_v35 = vmax.f32 %v5277_v49, 0.0 }
 0x816   : > { %v5280_v39 = vpop.f32.mrf.mxu1  ;;  %v5682_v10 = vpop.f32.mrf.mxu0 }
 0x817   : > { %v5281_v13 = vadd.f32 %v5280_v39, %v10140_v28  ;;  %v5683_v12 = vadd.f32 %v5682_v10, %v10143_v60  ;;  %v5356_v25 = vmax.f32 %v5279_v1, 0.0  ;;  %v5758_v45 = vmax.f32 %v5681_v30, 0.0 }
 0x818   : > { %v5282_v9 = vpop.f32.mrf.mxu1  ;;  %v5684_v21 = vpop.f32.mrf.mxu0  ;;  %v5757_v39 = vmax.f32 %v5679_v56, 0.0 }
 0x819   : > { %v5283_v38 = vadd.f32 %v5282_v9, %v10134_v3  ;;  %v5685_v4 = vadd.f32 %v5684_v21, %v10137_v23  ;;  %v5357_v55 = vmax.f32 %v5281_v13, 0.0  ;;  %v5759_v19 = vmax.f32 %v5683_v12, 0.0 }
 0x81b   : > { %v5358_v16 = vmax.f32 %v5283_v38, 0.0  ;;  %v5760_v52 = vmax.f32 %v5685_v4, 0.0  ;;  %v5387_v14 = vpack.c.bf16 %v5357_v55, %v5355_v35  ;;  %v5789_v33 = vpack.c.bf16 %v5759_v19, %v5757_v39 }
 0x81d   : > { %v5388_v61 = vpack.c.bf16 %v5358_v16, %v5356_v25  ;;  %v5790_v10 = vpack.c.bf16 %v5760_v52, %v5758_v45 }
 0x81f   : > { %6032 = vmatprep.mubr.bf16.mxu1 %v5790_v10  ;;  %6305 = vmatprep.mubr.bf16.mxu0 %v5388_v61 }
 0x820   : > { %v5286_v2 = vpop.f32.mrf.mxu1  ;;  %v5688_v63 = vpop.f32.mrf.mxu0  ;;  %6033 = vmatmul.mubr.bf16.vlgmr.msra.gmra.mxu1 %v5789_v33  ;;  %6306 = vmatmul.mubr.bf16.vlgmr.msra.gmra.mxu0 %v5387_v14 }
 0x821   : > { %7176 = vmatpush1.bf16.msra.mxu1 %v9833_v40  ;;  %v5287_v14 = vadd.f32 %v5286_v2, %v10140_v28  ;;  %v5689_v40 = vadd.f32 %v5688_v63, %v10143_v60 }
 0x822   : > { %v5288_v13 = vpop.f32.mrf.mxu1  ;;  %v5690_v12 = vpop.f32.mrf.mxu0  ;;  %7161 = vmatprep.subr.bf16.mxu1 %v9836_v42 }
 0x823   : > { %v5289_v49 = vadd.f32 %v5288_v13, %v10134_v3  ;;  %v5691_v16 = vadd.f32 %v5690_v12, %v10137_v23  ;;  %v5761_v52 = vmax.f32 %v5689_v40, 0.0 }
 0x824   : > { %v5290_v1 = vpop.f32.mrf.mxu1  ;;  %v5692_v30 = vpop.f32.mrf.mxu0 }
 0x825   : > { %v5291_v35 = vadd.f32 %v5290_v1, %v10140_v28  ;;  %v5693_v61 = vadd.f32 %v5692_v30, %v10143_v60  ;;  %7177 = vmatpush1.bf16.msra.mxu1 %v9843_v43  ;;  %v5360_v4 = vmax.f32 %v5289_v49, 0.0  ;;  %v5762_v55 = vmax.f32 %v5691_v16, 0.0 }
 0x826   : > { %v5292_v25 = vpop.f32.mrf.mxu1  ;;  %v5694_v56 = vpop.f32.mrf.mxu0  ;;  %7162 = vmatprep.subr.bf16.mxu1 %v9850_v6  ;;  %v5359_v43 = vmax.f32 %v5287_v14, 0.0 }
 0x827   : > { %v5293_v42 = vadd.f32 %v5292_v25, %v10134_v3  ;;  %v5695_v9 = vadd.f32 %v5694_v56, %v10137_v23  ;;  %v5361_v21 = vmax.f32 %v5291_v35, 0.0  ;;  %v5763_v38 = vmax.f32 %v5693_v61, 0.0 }
 0x829   : > { %v5362_v19 = vmax.f32 %v5293_v42, 0.0  ;;  %v5764_v45 = vmax.f32 %v5695_v9, 0.0  ;;  %7178 = vmatpush1.bf16.msra.mxu1 %v9863_v50  ;;  %v5389_v10 = vpack.c.bf16 %v5361_v21, %v5359_v43  ;;  %v5791_v6 = vpack.c.bf16 %v5763_v38, %v5761_v52 }
 0x82a   : > { %7163 = vmatprep.subr.bf16.mxu1 %v9872_v20 }
 0x82b   : > { %v5390_v63 = vpack.c.bf16 %v5362_v19, %v5360_v4  ;;  %v5792_v39 = vpack.c.bf16 %v5764_v45, %v5762_v55 }
 0x82d   : > { %6042 = vmatprep.mubr.bf16.mxu1 %v5792_v39  ;;  %6315 = vmatprep.mubr.bf16.mxu0 %v5390_v63 }
 0x82e   : > { %6043 = vmatmul.mubr.bf16.gmra.mxu1 %v5791_v6  ;;  %6316 = vmatmul.mubr.bf16.gmra.mxu0 %v5389_v10 }
 0x82f   : > { %7179 = vmatpush1.bf16.msra.mxu1 %v9883_v46 }
 0x830   : > { %7164 = vmatprep.subr.bf16.mxu1 %v9885_v18 }
 0x831   : > { %v5296_v33 = vpop.f32.mrf.mxu1 }
 0x832   : > { %v5698_v2 = vpop.f32.mrf.mxu0  ;;  %v5297_v18 = vadd.f32 %v5296_v33, %v10140_v28 }
 0x833   : > { %v5298_v13 = vpop.f32.mrf.mxu1  ;;  %7180 = vmatpush1.bf16.msra.mxu1 %v9893_v54  ;;  %v5699_v16 = vadd.f32 %v5698_v2, %v10143_v60 }
 0x834   : > { %v5700_v50 = vpop.f32.mrf.mxu0  ;;  %7165 = vmatprep.subr.bf16.mxu1 %v9896_v57  ;;  %v5299_v1 = vadd.f32 %v5298_v13, %v10134_v3  ;;  %v5363_v21 = vmax.f32 %v5297_v18, 0.0 }
 0x835   : > { %v5300_v20 = vpop.f32.mrf.mxu1  ;;  %v5701_v30 = vadd.f32 %v5700_v50, %v10137_v23  ;;  %v5765_v38 = vmax.f32 %v5699_v16, 0.0 }
 0x836   : > { %v5702_v12 = vpop.f32.mrf.mxu0  ;;  %v5301_v49 = vadd.f32 %v5300_v20, %v10140_v28  ;;  %v5364_v25 = vmax.f32 %v5299_v1, 0.0 }
 0x837   : > { %v5703_v46 = vadd.f32 %v5702_v12, %v10143_v60  ;;  %v5302_v35 = vpop.f32.mrf.mxu1  ;;  %7181 = vmatpush1.bf16.msra.mxu1 %v9911_v36  ;;  %v5766_v56 = vmax.f32 %v5701_v30, 0.0 }
 0x838   : > { %v5704_v61 = vpop.f32.mrf.mxu0  ;;  %v5303_v54 = vadd.f32 %v5302_v35, %v10134_v3  ;;  %7166 = vmatprep.subr.bf16.mxu1 %v9914_v0  ;;  %v5365_v14 = vmax.f32 %v5301_v49, 0.0 }
 0x839   : > { %v5705_v57 = vadd.f32 %v5704_v61, %v10137_v23  ;;  %v5767_v40 = vmax.f32 %v5703_v46, 0.0 }
 0x83a   : > { %v5366_v42 = vmax.f32 %v5303_v54, 0.0  ;;  %v5391_v36 = vpack.c.bf16 %v5365_v14, %v5363_v21 }
 0x83b   : > { %v5768_v9 = vmax.f32 %v5705_v57, 0.0  ;;  %7182 = vmatpush1.bf16.msra.mxu1 %v9927_v44  ;;  %v5793_v19 = vpack.c.bf16 %v5767_v40, %v5765_v38 }
 0x83c   : > { %v5392_v4 = vpack.c.bf16 %v5366_v42, %v5364_v25  ;;  %7167 = vmatprep.subr.bf16.mxu1 %v9931_v58 }
 0x83d   : > { %v5794_v55 = vpack.c.bf16 %v5768_v9, %v5766_v56 }
 0x83e   : > { %6325 = vmatprep.mubr.bf16.mxu0 %v5392_v4 }
 0x83f   : > { %6052 = vmatprep.mubr.bf16.mxu1 %v5794_v55  ;;  %6326 = vmatmul.mubr.bf16.gmra.mxu0 %v5391_v36 }
 0x840   : > { %6053 = vmatmul.mubr.bf16.gmra.mxu1 %v5793_v19 }
 0x841   : > { %v5306_v0 = vpop.f32.mrf.mxu1  ;;  %v5708_v45 = vpop.f32.mrf.mxu0  ;;  %7183 = vmatpush1.bf16.msra.mxu1 %v9943_v26 }
 0x842   : > { %7168 = vmatprep.subr.bf16.mxu1 %v9946_v8  ;;  %v5307_v26 = vadd.f32 %v5306_v0, %v10140_v28  ;;  %v5709_v8 = vadd.f32 %v5708_v45, %v10143_v60 }
 0x843   : > { %v5308_v43 = vpop.f32.mrf.mxu1  ;;  %v5710_v52 = vpop.f32.mrf.mxu0 }
 0x844   : > { %v5309_v58 = vadd.f32 %v5308_v43, %v10134_v3  ;;  %v5711_v39 = vadd.f32 %v5710_v52, %v10137_v23  ;;  %v5769_v46 = vmax.f32 %v5709_v8, 0.0 }
 0x845   : > { %v5310_v63 = vpop.f32.mrf.mxu1  ;;  %v5712_v44 = vpop.f32.mrf.mxu0  ;;  %7184 = vmatpush2.bf16.msra.mxu1 %v9961_v7 }
 0x846   : > { %v5311_v10 = vadd.f32 %v5310_v63, %v10140_v28  ;;  %v5713_v6 = vadd.f32 %v5712_v44, %v10143_v60  ;;  %7169 = vmatprep.subr.bf16.mxu1 %v9964_v51  ;;  %v5368_v12 = vmax.f32 %v5309_v58, 0.0  ;;  %v5770_v1 = vmax.f32 %v5711_v39, 0.0 }
 0x847   : > { %v5312_v33 = vpop.f32.mrf.mxu1  ;;  %v5714_v2 = vpop.f32.mrf.mxu0  ;;  %v5367_v51 = vmax.f32 %v5307_v26, 0.0 }
 0x848   : > { %v5313_v13 = vadd.f32 %v5312_v33, %v10134_v3  ;;  %v5715_v7 = vadd.f32 %v5714_v2, %v10137_v23  ;;  %v5369_v50 = vmax.f32 %v5311_v10, 0.0  ;;  %v5771_v20 = vmax.f32 %v5713_v6, 0.0 }
 0x849   : > { %7185 = vmatpush2.bf16.msra.mxu1 %v9979_v53 }
 0x84a   : > { %v5370_v30 = vmax.f32 %v5313_v13, 0.0  ;;  %v5772_v49 = vmax.f32 %v5715_v7, 0.0  ;;  %7170 = vmatprep.subr.bf16.mxu1 %v9985_v24  ;;  %v5393_v35 = vpack.c.bf16 %v5369_v50, %v5367_v51  ;;  %v5795_v61 = vpack.c.bf16 %v5771_v20, %v5769_v46 }
 0x84c   : > { %v5394_v18 = vpack.c.bf16 %v5370_v30, %v5368_v12  ;;  %v5796_v16 = vpack.c.bf16 %v5772_v49, %v5770_v1 }
 0x84d   : > { %7186 = vmatpush2.bf16.msra.mxu1 %v10002_v11 }
 0x84e   : > { %6062 = vmatprep.mubr.bf16.mxu1 %v5796_v16  ;;  %6335 = vmatprep.mubr.bf16.mxu0 %v5394_v18  ;;  %v5316_v54 = vpop.f32.mrf.mxu1  ;;  %v5718_v57 = vpop.f32.mrf.mxu0 }
 0x84f   : > { %6063 = vmatmul.mubr.bf16.gmra.mxu1 %v5795_v61  ;;  %6336 = vmatmul.mubr.bf16.gmra.mxu0 %v5393_v35  ;;  %v5317_v9 = vadd.f32 %v5316_v54, %v10140_v28 }
 0x850   : > { %7171 = vmatprep.subr.bf16.mxu1 %v10014_v29  ;;  %v5318_v53 = vpop.f32.mrf.mxu1  ;;  %v5720_v14 = vpop.f32.mrf.mxu0  ;;  %v5719_v29 = vadd.f32 %v5718_v57, %v10143_v60 }
 0x851   : > { %7187 = vmatpush2.bf16.msra.mxu1 %v10023_v15  ;;  %v5319_v25 = vadd.f32 %v5318_v53, %v10134_v3  ;;  %v5721_v11 = vadd.f32 %v5720_v14, %v10137_v23  ;;  %v5371_v63 = vmax.f32 %v5317_v9, 0.0 }
 0x852   : > { %7172 = vmatprep.subr.bf16.mxu1 %v10025_v41  ;;  %v5320_v24 = vpop.f32.mrf.mxu1  ;;  %v5722_v40 = vpop.f32.mrf.mxu0  ;;  %v5773_v44 = vmax.f32 %v5719_v29, 0.0 }
 0x853   : > { %v5321_v56 = vadd.f32 %v5320_v24, %v10140_v28  ;;  %v5723_v42 = vadd.f32 %v5722_v40, %v10143_v60  ;;  %v5372_v0 = vmax.f32 %v5319_v25, 0.0  ;;  %v5774_v45 = vmax.f32 %v5721_v11, 0.0 }
 0x854   : > { %v5322_v21 = vpop.f32.mrf.mxu1  ;;  %v5724_v38 = vpop.f32.mrf.mxu0 }
 0x855   : > { %7188 = vmatpush2.bf16.msra.mxu1 %v10041_v31  ;;  %v5323_v15 = vadd.f32 %v5322_v21, %v10134_v3  ;;  %v5725_v41 = vadd.f32 %v5724_v38, %v10137_v23  ;;  %v5373_v4 = vmax.f32 %v5321_v56, 0.0  ;;  %v5775_v55 = vmax.f32 %v5723_v42, 0.0 }
 0x856   : > { %7173 = vmatprep.subr.bf16.mxu1 %v10101_v17  ;;  %v5326_v36 = vpop.f32.mrf.mxu1  ;;  %v5728_v19 = vpop.f32.mrf.mxu0 }
 0x857   : > { %v5374_v43 = vmax.f32 %v5323_v15, 0.0  ;;  %v5776_v52 = vmax.f32 %v5725_v41, 0.0  ;;  %v5395_v6 = vpack.c.bf16 %v5373_v4, %v5371_v63  ;;  %v5797_v17 = vpack.c.bf16 %v5775_v55, %v5773_v44 }
 0x858   : > { %v5328_v58 = vpop.f32.mrf.mxu1  ;;  %v5730_v39 = vpop.f32.mrf.mxu0  ;;  %v5729_v50 = vadd.f32 %v5728_v19, %v10143_v60 }
 0x859   : > { %7189 = vmatpush2.bf16.msra.mxu1 %v10096_v48  ;;  %v5396_v31 = vpack.c.bf16 %v5374_v43, %v5372_v0  ;;  %v5798_v10 = vpack.c.bf16 %v5776_v52, %v5774_v45  ;;  %v5329_v26 = vadd.f32 %v5328_v58, %v10134_v3  ;;  %v5731_v2 = vadd.f32 %v5730_v39, %v10137_v23 }
 0x85a   : > { %7174 = vmatprep.subr.bf16.mxu1 %v10112_v37  ;;  %v5330_v8 = vpop.f32.mrf.mxu1  ;;  %v5732_v33 = vpop.f32.mrf.mxu0  ;;  %v5327_v48 = vadd.f32 %v5326_v36, %v10140_v28  ;;  %v5777_v57 = vmax.f32 %v5729_v50, 0.0 }
 0x85b   : > { %v5331_v13 = vadd.f32 %v5330_v8, %v10140_v28  ;;  %v5733_v7 = vadd.f32 %v5732_v33, %v10143_v60  ;;  %6072 = vmatprep.mubr.bf16.mxu1 %v5798_v10  ;;  %6345 = vmatprep.mubr.bf16.mxu0 %v5396_v31  ;;  %v5376_v18 = vmax.f32 %v5329_v26, 0.0  ;;  %v5778_v16 = vmax.f32 %v5731_v2, 0.0 }
 0x85c   : > { %v5332_v20 = vpop.f32.mrf.mxu1  ;;  %v5734_v37 = vpop.f32.mrf.mxu0  ;;  %6073 = vmatmul.mubr.bf16.gmra.mxu1 %v5797_v17  ;;  %6346 = vmatmul.mubr.bf16.gmra.mxu0 %v5395_v6  ;;  %v5375_v54 = vmax.f32 %v5327_v48, 0.0 }
 0x85d   : > { %v5333_v12 = vadd.f32 %v5332_v20, %v10134_v3  ;;  %v5735_v1 = vadd.f32 %v5734_v37, %v10137_v23  ;;  %7190 = vmatpush2.bf16.msra.mxu1 %v10108_v34  ;;  %v5377_v30 = vmax.f32 %v5331_v13, 0.0  ;;  %v5779_v49 = vmax.f32 %v5733_v7, 0.0 }
 0x85e   : > { %v5738_v51 = vpop.f32.mrf.mxu0  ;;  %v5336_v46 = vpop.f32.mrf.mxu1  ;;  %7175 = vmatprep.subr.bf16.mxu1 %v10122_v47 }
 0x85f   : > { %v5378_v35 = vmax.f32 %v5333_v12, 0.0  ;;  %v5780_v61 = vmax.f32 %v5735_v1, 0.0  ;;  %v5397_v25 = vpack.c.bf16 %v5377_v30, %v5375_v54  ;;  %v5799_v34 = vpack.c.bf16 %v5779_v49, %v5777_v57 }
 0x860   : > { %v5740_v53 = vpop.f32.mrf.mxu0  ;;  %v5338_v14 = vpop.f32.mrf.mxu1  ;;  %v5739_v9 = vadd.f32 %v5738_v51, %v10143_v60  ;;  %v5337_v1 = vadd.f32 %v5336_v46, %v10140_v28 }
 0x861   : > { %v5398_v24 = vpack.c.bf16 %v5378_v35, %v5376_v18  ;;  %v5800_v40 = vpack.c.bf16 %v5780_v61, %v5778_v16  ;;  %7191 = vmatpush2.bf16.msra.mxu1 %v10120_v22  ;;  %v5741_v42 = vadd.f32 %v5740_v53, %v10137_v23  ;;  %v5339_v17 = vadd.f32 %v5338_v14, %v10134_v3 }
 0x862   : > { %v5742_v11 = vpop.f32.mrf.mxu0  ;;  %v5340_v56 = vpop.f32.mrf.mxu1  ;;  %v5781_v36 = vmax.f32 %v5739_v9, 0.0  ;;  %v5379_v51 = vmax.f32 %v5337_v1, 0.0 }
 0x863   : > { %v5743_v47 = vadd.f32 %v5742_v11, %v10143_v60  ;;  %6082 = vmatprep.mubr.bf16.mxu1 %v5800_v40  ;;  %6355 = vmatprep.mubr.bf16.mxu0 %v5398_v24  ;;  %v5782_v4 = vmax.f32 %v5741_v42, 0.0  ;;  %v5380_v50 = vmax.f32 %v5339_v17, 0.0  ;;  %v5341_v37 = vadd.f32 %v5340_v56, %v10140_v28 }
 0x864   : > { %v5744_v29 = vpop.f32.mrf.mxu0  ;;  %6083 = vmatmul.mubr.bf16.gmra.mxu1 %v5799_v34  ;;  %6356 = vmatmul.mubr.bf16.gmra.mxu0 %v5397_v25  ;;  %v5342_v21 = vpop.f32.mrf.mxu1 }
 0x865   : > { %v5745_v38 = vadd.f32 %v5744_v29, %v10137_v23  ;;  %v5783_v15 = vmax.f32 %v5743_v47, 0.0  ;;  %v5343_v58 = vadd.f32 %v5342_v21, %v10134_v3  ;;  %v5381_v30 = vmax.f32 %v5341_v37, 0.0 }
 0x866   : > { %v5748_v22 = vpop.f32.mrf.mxu0  ;;  %v5346_v41 = vpop.f32.mrf.mxu1 }
 0x867   : > { %v5784_v55 = vmax.f32 %v5745_v38, 0.0  ;;  %v5801_v43 = vpack.c.bf16 %v5783_v15, %v5781_v36  ;;  %v5749_v39 = vadd.f32 %v5748_v22, %v10143_v60  ;;  %v5382_v2 = vmax.f32 %v5343_v58, 0.0 }
 0x868   : > { %v5750_v19 = vpop.f32.mrf.mxu0  ;;  %v5348_v0 = vpop.f32.mrf.mxu1  ;;  %v5399_v16 = vpack.c.bf16 %v5381_v30, %v5379_v51  ;;  %v5347_v54 = vadd.f32 %v5346_v41, %v10140_v28  ;;  %v10557_v30 = vld [vmem:[#allocation32_spill] sm:$0xff] }
 0x869   : > { %v5802_v45 = vpack.c.bf16 %v5784_v55, %v5782_v4  ;;  %v5751_v63 = vadd.f32 %v5750_v19, %v10137_v23  ;;  %v5785_v13 = vmax.f32 %v5749_v39, 0.0  ;;  %v5400_v12 = vpack.c.bf16 %v5382_v2, %v5380_v50 }
 0x86a   : > { %v5752_v52 = vpop.f32.mrf.mxu0  ;;  %v5350_v10 = vpop.f32.mrf.mxu1  ;;  %v5383_v53 = vmax.f32 %v5347_v54, 0.0 }
 0x86b   : > { %v5753_v44 = vadd.f32 %v5752_v52, %v10143_v60  ;;  %6092 = vmatprep.mubr.bf16.mxu1 %v5802_v45  ;;  %v5786_v8 = vmax.f32 %v5751_v63, 0.0  ;;  %v5351_v35 = vadd.f32 %v5350_v10, %v10140_v28  ;;  %v10553_v52 = vld [vmem:[#allocation28_spill] sm:$0xff] }
 0x86c   : > { %v5754_v31 = vpop.f32.mrf.mxu0  ;;  %6093 = vmatmul.mubr.bf16.gmra.mxu1 %v5801_v43  ;;  %v5352_v7 = vpop.f32.mrf.mxu1 }
 0x86d   : > { %v5755_v6 = vadd.f32 %v5754_v31, %v10137_v23  ;;  %v5787_v26 = vmax.f32 %v5753_v44, 0.0  ;;  %v5353_v60 = vadd.f32 %v5352_v7, %v10134_v3  ;;  %v5349_v23 = vadd.f32 %v5348_v0, %v10134_v3  ;;  %v6418_v3 = vld [vmem:[%s10551_s22] sm:$0x3]  ;;  %v10554_v31 = vld [vmem:[#allocation31_spill] sm:$0xff] }
 0x86e   : > { %v5385_v57 = vmax.f32 %v5351_v35, 0.0  ;;  %v10244_v25 = vrot.slane %v6418_v3, %v10520_v5  ;;  %v10248_v42 = vrot.slane %v6418_v3, %v10521_v27 }
 0x86f   : > { %v5788_v33 = vmax.f32 %v5755_v6, 0.0  ;;  %v5803_v20 = vpack.c.bf16 %v5787_v26, %v5785_v13  ;;  %v5386_v49 = vmax.f32 %v5353_v60, 0.0  ;;  %v5384_v18 = vmax.f32 %v5349_v23, 0.0 }
 0x870   : > { %v5401_v14 = vpack.c.bf16 %v5385_v57, %v5383_v53 }
 0x871   : > { %v5804_v48 = vpack.c.bf16 %v5788_v33, %v5786_v8  ;;  %v5402_v61 = vpack.c.bf16 %v5386_v49, %v5384_v18  ;;  %v10555_v33 = vld [vmem:[#allocation29_spill] sm:$0xff] }
 0x873   : > { %6102 = vmatprep.mubr.bf16.mxu1 %v5804_v48  ;;  %v10556_v48 = vld [vmem:[#allocation27_spill] sm:$0xff] }
 0x874   : > { %6103 = vmatmul.mubr.bf16.gmra.mxu1 %v5803_v20 }
 0x875   : > { %6365 = vmatprep.mubr.bf16.mxu1 %v5400_v12 }
 0x87c   : > { %6366 = vmatmul.mubr.bf16.vlgmr.msra.gmra.mxu1 %v5399_v16 }
 0x87d   : > { %6375 = vmatprep.mubr.bf16.mxu1 %v5402_v61  ;;  %v10558_v61 = vld [vmem:[#allocation30_spill] sm:$0xff] }
 0x884   : > { %6376 = vmatmul.mubr.bf16.gmra.mxu1 %v5401_v14 }
 0x8e0   : > { %v6034_v46 = vpop.f32.mrf.mxu1  ;;  %v6307_v24 = vpop.f32.mrf.mxu0 }
 0x8e1   : > { %v6308_v40 = vadd.f32 %v6307_v24, %v6034_v46  ;;  %v10559_v46 = vld [vmem:[#allocation23_spill] sm:$0xff] }
 0x8e2   : > { %v6036_v34 = vpop.f32.mrf.mxu1  ;;  %v6309_v11 = vpop.f32.mrf.mxu0 }
 0x8e3   : > { %v6386_v28 = vadd.f32 %v6308_v40, %v9758_v62  ;;  %v6310_v56 = vadd.f32 %v6309_v11, %v6036_v34  ;;  %v10560_v11 = vld [vmem:[#allocation25_spill] sm:$0xff] }
 0x8e4   : > { %v6038_v47 = vpop.f32.mrf.mxu1  ;;  %v6311_v9 = vpop.f32.mrf.mxu0 }
 0x8e5   : > { %v6430_v29 = vadd.f32 %v10244_v25, %v6386_v28  ;;  %v6387_v21 = vadd.f32 %v6310_v56, %v9765_v32  ;;  %v6312_v38 = vadd.f32 %v6311_v9, %v6038_v47  ;;  %v10552_v32 = vld [vmem:[#allocation26_spill] sm:$0xff] }
 0x8e6   : > { %v6040_v15 = vpop.f32.mrf.mxu1  ;;  %v6313_v22 = vpop.f32.mrf.mxu0 }
 0x8e7   : > { %6462 = vst [vmem:[%s10254_s3] sm:$0xff] %v6430_v29  ;;  %v6431_v5 = vadd.f32 %v10248_v42, %v6387_v21  ;;  %v6388_v27 = vadd.f32 %v6312_v38, %v9773_v59  ;;  %v6314_v62 = vadd.f32 %v6313_v22, %v6040_v15  ;;  %v10561_v15 = vld [vmem:[#allocation24_spill] sm:$0xff] }
 0x8e9   : > { %6463 = vst [vmem:[%s10254_s3 + $0x8] sm:$0xff] %v6431_v5  ;;  %v6432_v41 = vadd.f32 %v10244_v25, %v6388_v27  ;;  %v6389_v4 = vadd.f32 %v6314_v62, %v10552_v32  ;;  %v10562_v32 = vld [vmem:[#allocation33_spill] sm:$0xff] }
 0x8eb   : > { %6464 = vst [vmem:[%s10254_s3 + $0x10] sm:$0xff] %v6432_v41  ;;  %v6433_v55 = vadd.f32 %v10248_v42, %v6389_v4 }
 0x8ed   : > { %6465 = vst [vmem:[%s10254_s3 + $0x18] sm:$0xff] %v6433_v55 }
 0x8ee   : > { %v6044_v36 = vpop.f32.mrf.mxu1  ;;  %v6317_v19 = vpop.f32.mrf.mxu0 }
 0x8ef   : > { %v6318_v0 = vadd.f32 %v6317_v19, %v6044_v36 }
 0x8f0   : > { %v6046_v45 = vpop.f32.mrf.mxu1  ;;  %v6319_v43 = vpop.f32.mrf.mxu0 }
 0x8f1   : > { %v6390_v63 = vadd.f32 %v6318_v0, %v10553_v52  ;;  %v6320_v59 = vadd.f32 %v6319_v43, %v6046_v45  ;;  %v10563_v45 = vld [vmem:[#allocation34_spill] sm:$0xff] }
 0x8f2   : > { %v6048_v44 = vpop.f32.mrf.mxu1  ;;  %v6321_v58 = vpop.f32.mrf.mxu0 }
 0x8f3   : > { %v6434_v39 = vadd.f32 %v10244_v25, %v6390_v63  ;;  %v6391_v10 = vadd.f32 %v6320_v59, %v10554_v31  ;;  %v6322_v6 = vadd.f32 %v6321_v58, %v6048_v44  ;;  %v10564_v59 = vld [vmem:[#allocation35_spill] sm:$0xff] }
 0x8f4   : > { %v6050_v17 = vpop.f32.mrf.mxu1  ;;  %v6323_v26 = vpop.f32.mrf.mxu0 }
 0x8f5   : > { %6466 = vst [vmem:[%s10254_s3 + $0x20] sm:$0xff] %v6434_v39  ;;  %v6435_v8 = vadd.f32 %v10248_v42, %v6391_v10  ;;  %v6392_v2 = vadd.f32 %v6322_v6, %v10555_v33  ;;  %v6324_v13 = vadd.f32 %v6323_v26, %v6050_v17  ;;  %v10565_v26 = vld [vmem:[#allocation36_spill] sm:$0xff] }
 0x8f7   : > { %6467 = vst [vmem:[%s10254_s3 + $0x28] sm:$0xff] %v6435_v8  ;;  %v6436_v7 = vadd.f32 %v10244_v25, %v6392_v2  ;;  %v6393_v50 = vadd.f32 %v6324_v13, %v10556_v48  ;;  %v10566_v48 = vld [vmem:[#allocation37_spill] sm:$0xff] }
 0x8f9   : > { %6468 = vst [vmem:[%s10254_s3 + $0x30] sm:$0xff] %v6436_v7  ;;  %v6437_v20 = vadd.f32 %v10248_v42, %v6393_v50 }
 0x8fb   : > { %6469 = vst [vmem:[%s10254_s3 + $0x38] sm:$0xff] %v6437_v20 }
 0x8ff   : > { %v6327_v12 = vpop.f32.mrf.mxu0 }
 0x900   : > { %v6054_v37 = vpop.f32.mrf.mxu1 }
 0x901   : > { %v6328_v60 = vadd.f32 %v6327_v12, %v6054_v37  ;;  %v6329_v23 = vpop.f32.mrf.mxu0 }
 0x902   : > { %v6056_v1 = vpop.f32.mrf.mxu1 }
 0x903   : > { %v6394_v49 = vadd.f32 %v6328_v60, %v10557_v30  ;;  %v6330_v51 = vadd.f32 %v6329_v23, %v6056_v1  ;;  %v6331_v16 = vpop.f32.mrf.mxu0  ;;  %v10567_v1 = vld [vmem:[#allocation38_spill] sm:$0xff] }
 0x904   : > { %v6058_v18 = vpop.f32.mrf.mxu1 }
 0x905   : > { %v6438_v35 = vadd.f32 %v10244_v25, %v6394_v49  ;;  %v6395_v54 = vadd.f32 %v6330_v51, %v10558_v61  ;;  %v6332_v57 = vadd.f32 %v6331_v16, %v6058_v18  ;;  %v6333_v14 = vpop.f32.mrf.mxu0  ;;  %v10568_v16 = vld [vmem:[#allocation39_spill] sm:$0xff] }
 0x906   : > { %v6060_v53 = vpop.f32.mrf.mxu1 }
 0x907   : > { %6470 = vst [vmem:[%s10254_s3 + $0x40] sm:$0xff] %v6438_v35  ;;  %v6439_v3 = vadd.f32 %v10248_v42, %v6395_v54  ;;  %v6396_v24 = vadd.f32 %v6332_v57, %v10559_v46  ;;  %v6334_v40 = vadd.f32 %v6333_v14, %v6060_v53  ;;  %v10569_v14 = vld [vmem:[#allocation40_spill] sm:$0xff] }
 0x909   : > { %6471 = vst [vmem:[%s10254_s3 + $0x48] sm:$0xff] %v6439_v3  ;;  %v6440_v34 = vadd.f32 %v10244_v25, %v6396_v24  ;;  %v6397_v28 = vadd.f32 %v6334_v40, %v10560_v11  ;;  %v10570_v11 = vld [vmem:[#allocation41_spill] sm:$0xff] }
 0x90b   : > { %6472 = vst [vmem:[%s10254_s3 + $0x50] sm:$0xff] %v6440_v34  ;;  %v6441_v56 = vadd.f32 %v10248_v42, %v6397_v28 }
 0x90d   : > { %6473 = vst [vmem:[%s10254_s3 + $0x58] sm:$0xff] %v6441_v56 }
 0x90f   : > { %v6064_v47 = vpop.f32.mrf.mxu1  ;;  %v6337_v9 = vpop.f32.mrf.mxu0 }
 0x910   : > { %v6338_v29 = vadd.f32 %v6337_v9, %v6064_v47 }
 0x911   : > { %v6066_v21 = vpop.f32.mrf.mxu1  ;;  %v6339_v38 = vpop.f32.mrf.mxu0 }
 0x912   : > { %v6398_v22 = vadd.f32 %v6338_v29, %v10561_v15  ;;  %v6340_v5 = vadd.f32 %v6339_v38, %v6066_v21  ;;  %v10571_v21 = vld [vmem:[#allocation42_spill] sm:$0xff] }
 0x913   : > { %v6068_v27 = vpop.f32.mrf.mxu1  ;;  %v6341_v62 = vpop.f32.mrf.mxu0 }
 0x914   : > { %v6442_v41 = vadd.f32 %v10244_v25, %v6398_v22  ;;  %v6399_v4 = vadd.f32 %v6340_v5, %v10562_v32  ;;  %v6342_v55 = vadd.f32 %v6341_v62, %v6068_v27  ;;  %v10572_v27 = vld [vmem:[#allocation43_spill] sm:$0xff] }
 0x915   : > { %v6070_v36 = vpop.f32.mrf.mxu1  ;;  %v6343_v19 = vpop.f32.mrf.mxu0 }
 0x916   : > { %6474 = vst [vmem:[%s10254_s3 + $0x60] sm:$0xff] %v6442_v41  ;;  %v6443_v0 = vadd.f32 %v10248_v42, %v6399_v4  ;;  %v6400_v43 = vadd.f32 %v6342_v55, %v10563_v45  ;;  %v6344_v52 = vadd.f32 %v6343_v19, %v6070_v36 }
 0x918   : > { %6475 = vst [vmem:[%s10254_s3 + $0x68] sm:$0xff] %v6443_v0  ;;  %v6444_v63 = vadd.f32 %v10244_v25, %v6400_v43  ;;  %v6401_v44 = vadd.f32 %v6344_v52, %v10564_v59  ;;  %v10573_v59 = vld [vmem:[#allocation44_spill] sm:$0xff] }
 0x91a   : > { %6476 = vst [vmem:[%s10254_s3 + $0x70] sm:$0xff] %v6444_v63  ;;  %v6445_v58 = vadd.f32 %v10248_v42, %v6401_v44 }
 0x91c   : > { %6477 = vst [vmem:[%s10254_s3 + $0x78] sm:$0xff] %v6445_v58  ;;  %v6074_v39 = vpop.f32.mrf.mxu1  ;;  %v6347_v31 = vpop.f32.mrf.mxu0 }
 0x91d   : > { %v6348_v10 = vadd.f32 %v6347_v31, %v6074_v39 }
 0x91e   : > { %v6076_v6 = vpop.f32.mrf.mxu1  ;;  %v6349_v17 = vpop.f32.mrf.mxu0 }
 0x91f   : > { %v6402_v8 = vadd.f32 %v6348_v10, %v10565_v26  ;;  %v6350_v33 = vadd.f32 %v6349_v17, %v6076_v6  ;;  %v10574_v10 = vld [vmem:[#allocation45_spill] sm:$0xff] }
 0x920   : > { %v6078_v2 = vpop.f32.mrf.mxu1  ;;  %v6351_v13 = vpop.f32.mrf.mxu0 }
 0x921   : > { %v6446_v7 = vadd.f32 %v10244_v25, %v6402_v8  ;;  %v6403_v50 = vadd.f32 %v6350_v33, %v10566_v48  ;;  %v6352_v20 = vadd.f32 %v6351_v13, %v6078_v2  ;;  %v10575_v33 = vld [vmem:[#allocation46_spill] sm:$0xff] }
 0x922   : > { %v6080_v37 = vpop.f32.mrf.mxu1  ;;  %v6353_v12 = vpop.f32.mrf.mxu0 }
 0x923   : > { %6478 = vst [vmem:[%s10254_s3 + $0x80] sm:$0xff] %v6446_v7  ;;  %v6447_v60 = vadd.f32 %v10248_v42, %v6403_v50  ;;  %v6404_v23 = vadd.f32 %v6352_v20, %v10567_v1  ;;  %v6354_v30 = vadd.f32 %v6353_v12, %v6080_v37  ;;  %v10576_v50 = vld [vmem:[#allocation47_spill] sm:$0xff]  ;;  %v10577_v1 = vld [vmem:[#allocation48_spill] sm:$0xff] }
 0x924   : > { %v6084_v49 = vpop.f32.mrf.mxu1  ;;  %v6357_v51 = vpop.f32.mrf.mxu0 }
 0x925   : > { %6479 = vst [vmem:[%s10254_s3 + $0x88] sm:$0xff] %v6447_v60  ;;  %v6448_v18 = vadd.f32 %v10244_v25, %v6404_v23  ;;  %v6405_v35 = vadd.f32 %v6354_v30, %v10568_v16  ;;  %v6358_v61 = vadd.f32 %v6357_v51, %v6084_v49 }
 0x926   : > { %v6086_v54 = vpop.f32.mrf.mxu1  ;;  %v6359_v57 = vpop.f32.mrf.mxu0 }
 0x927   : > { %6480 = vst [vmem:[%s10254_s3 + $0x90] sm:$0xff] %v6448_v18  ;;  %v6449_v53 = vadd.f32 %v10248_v42, %v6405_v35  ;;  %v6406_v3 = vadd.f32 %v6358_v61, %v10569_v14  ;;  %v6360_v46 = vadd.f32 %v6359_v57, %v6086_v54  ;;  %v10578_v18 = vld [vmem:[#allocation49_spill] sm:$0xff]  ;;  %v10579_v57 = vld [vmem:[#allocation50_spill] sm:$0xff] }
 0x928   : > { %v6088_v24 = vpop.f32.mrf.mxu1  ;;  %v6361_v40 = vpop.f32.mrf.mxu0 }
 0x929   : > { %6481 = vst [vmem:[%s10254_s3 + $0x98] sm:$0xff] %v6449_v53  ;;  %v6450_v34 = vadd.f32 %v10244_v25, %v6406_v3  ;;  %v6407_v28 = vadd.f32 %v6360_v46, %v10570_v11  ;;  %v6362_v56 = vadd.f32 %v6361_v40, %v6088_v24  ;;  %v10580_v46 = vld [vmem:[#allocation51_spill] sm:$0xff] }
 0x92a   : > { %v6090_v47 = vpop.f32.mrf.mxu1  ;;  %v6363_v9 = vpop.f32.mrf.mxu0 }
 0x92b   : > { %6482 = vst [vmem:[%s10254_s3 + $0xa0] sm:$0xff] %v6450_v34  ;;  %v6451_v29 = vadd.f32 %v10248_v42, %v6407_v28  ;;  %v6408_v38 = vadd.f32 %v6362_v56, %v10571_v21  ;;  %v6364_v15 = vadd.f32 %v6363_v9, %v6090_v47 }
 0x92c   : > { %v6094_v22 = vpop.f32.mrf.mxu1 }
 0x92d   : > { %6483 = vst [vmem:[%s10254_s3 + $0xa8] sm:$0xff] %v6451_v29  ;;  %v6452_v5 = vadd.f32 %v10244_v25, %v6408_v38  ;;  %v6409_v62 = vadd.f32 %v6364_v15, %v10572_v27 }
 0x92e   : > { %v6096_v41 = vpop.f32.mrf.mxu1 }
 0x92f   : > { %6484 = vst [vmem:[%s10254_s3 + $0xb0] sm:$0xff] %v6452_v5  ;;  %v6453_v32 = vadd.f32 %v10248_v42, %v6409_v62 }
 0x930   : > { %v6098_v4 = vpop.f32.mrf.mxu1 }
 0x931   : > { %6485 = vst [vmem:[%s10254_s3 + $0xb8] sm:$0xff] %v6453_v32 }
 0x932   : > { %v6100_v55 = vpop.f32.mrf.mxu1 }
 0x934   : > { %v6104_v36 = vpop.f32.mrf.mxu1 }
 0x936   : > { %v6106_v19 = vpop.f32.mrf.mxu1 }
 0x938   : > { %v6108_v0 = vpop.f32.mrf.mxu1 }
 0x93a   : > { %v6110_v45 = vpop.f32.mrf.mxu1 }
 0x93c   : > { %v6367_v43 = vpop.f32.mrf.mxu1 }
 0x93d   : > { %v6368_v52 = vadd.f32 %v6367_v43, %v6094_v22 }
 0x93e   : > { %v6369_v63 = vpop.f32.mrf.mxu1 }
 0x93f   : > { %v6410_v44 = vadd.f32 %v6368_v52, %v10573_v59  ;;  %v6370_v58 = vadd.f32 %v6369_v63, %v6096_v41 }
 0x940   : > { %v6371_v39 = vpop.f32.mrf.mxu1 }
 0x941   : > { %v6454_v31 = vadd.f32 %v10244_v25, %v6410_v44  ;;  %v6411_v6 = vadd.f32 %v6370_v58, %v10574_v10  ;;  %v6372_v17 = vadd.f32 %v6371_v39, %v6098_v4 }
 0x942   : > { %v6373_v26 = vpop.f32.mrf.mxu1 }
 0x943   : > { %6486 = vst [vmem:[%s10254_s3 + $0xc0] sm:$0xff] %v6454_v31  ;;  %v6455_v8 = vadd.f32 %v10248_v42, %v6411_v6  ;;  %v6412_v2 = vadd.f32 %v6372_v17, %v10575_v33  ;;  %v6374_v13 = vadd.f32 %v6373_v26, %v6100_v55 }
 0x944   : > { %v6377_v7 = vpop.f32.mrf.mxu1 }
 0x945   : > { %6487 = vst [vmem:[%s10254_s3 + $0xc8] sm:$0xff] %v6455_v8  ;;  %v6456_v48 = vadd.f32 %v10244_v25, %v6412_v2  ;;  %v6413_v20 = vadd.f32 %v6374_v13, %v10576_v50  ;;  %v6378_v37 = vadd.f32 %v6377_v7, %v6104_v36 }
 0x946   : > { %v6379_v12 = vpop.f32.mrf.mxu1 }
 0x947   : > { %6488 = vst [vmem:[%s10254_s3 + $0xd0] sm:$0xff] %v6456_v48  ;;  %v6457_v60 = vadd.f32 %v10248_v42, %v6413_v20  ;;  %v6414_v23 = vadd.f32 %v6378_v37, %v10577_v1  ;;  %v6380_v30 = vadd.f32 %v6379_v12, %v6106_v19 }
 0x948   : > { %v6381_v49 = vpop.f32.mrf.mxu1 }
 0x949   : > { %6489 = vst [vmem:[%s10254_s3 + $0xd8] sm:$0xff] %v6457_v60  ;;  %v6458_v51 = vadd.f32 %v10244_v25, %v6414_v23  ;;  %v6415_v16 = vadd.f32 %v6380_v30, %v10578_v18  ;;  %v6382_v35 = vadd.f32 %v6381_v49, %v6108_v0 }
 0x94a   : > { %v6383_v61 = vpop.f32.mrf.mxu1 }
 0x94b   : > { %6490 = vst [vmem:[%s10254_s3 + $0xe0] sm:$0xff] %v6458_v51  ;;  %v6459_v54 = vadd.f32 %v10248_v42, %v6415_v16  ;;  %v6416_v53 = vadd.f32 %v6382_v35, %v10579_v57  ;;  %v6384_v14 = vadd.f32 %v6383_v61, %v6110_v45 }
 0x94d   : > { %6491 = vst [vmem:[%s10254_s3 + $0xe8] sm:$0xff] %v6459_v54  ;;  %v6460_v3 = vadd.f32 %v10244_v25, %v6416_v53  ;;  %v6417_v24 = vadd.f32 %v6384_v14, %v10580_v46 }
 0x94f   : > { %6492 = vst [vmem:[%s10254_s3 + $0xf0] sm:$0xff] %v6460_v3  ;;  %v6461_v40 = vadd.f32 %v10248_v42, %v6417_v24 }
 0x951   : > { %6493 = vst [vmem:[%s10254_s3 + $0xf8] sm:$0xff] %v6461_v40 }
 0x952   : > { %8216 = shalt.err (!%p8213_p2)
}
 0x953   : > { %s8217_s29 = scalar_lea.hbm %s10351_s27, 4096  ;;  %s8221_s3 = scalar_lea.hbm %s10581_s1, 8192 }
 0x954   : > { %p8218_p5 = scmp.ne.s32.totalorder %s10351_s27, %s8217_s29  ;;  %p8222_p12 = scmp.lt.s32.totalorder %s10351_s27, %s10581_s1 }
 0x955   : > { %p8223_p13 = scmp.lt.s32.totalorder %s8221_s3, %s8217_s29 }
 0x956   : > { %p8219_p10 = pnand %p8218_p5, %p10582_p0 }
 0x957   : > { %p8224_p1 = por %p8223_p13, %p8222_p12 }
 0x958   : > { %p8220_p11 = pneg %p8219_p10 }
 0x95a   : > { %p8225_p3 = pnand %p8224_p1, %p8220_p11 }
 0x95c   : > { %8228 = shalt.err (!%p8225_p3)
}
 0x95d   : > { %s8303_s6 = smov 256   ;;  %s8304_s30 = smov 16  }
 0x95e   : > { %7222 = dma.vmem_to_hbm [thread:$0]  (%p10582_p0), %s10353_s28, 4096, %s10351_s27, %s6495_s24, %s8303_s6, %s8303_s6, %s8304_s30  }
 0x95f PF: > { %s6523_s2 = sand.u32 1, %s8271_s18   ;;  %p10583_p8 = scmp.ne.s32.totalorder %s10488_s17, 0 }
 0x960   : > { %p10584_p9 = scmp.ge.s32.totalorder %s8283_s21, 2  ;;  %s6524_s4 = scalar_lea.sflag [#allocation4], %s6523_s2 }
 0x962   : > { %p7251_p7 = pnand %p10584_p9, %p10583_p8 }
 0x964   : > { %p7252_p4 = pneg %p7251_p7 }
 0x966   : > { %8266 = dma.done.wait (%p7252_p4), %s6524_s4, 4096  }
 0x967   : > { %8268 = vsyncadd (%p7252_p4), %s6524_s4, 4294963200  ;;  %p32_p6 = scmp.ge.s32.totalorder %s8497_s16, 4   ;;  %s10585_s18 = smov %s8275_s19 }
 0x968   : > { %s10586_s19 = smov %s8279_s20  ;;  %s10587_s20 = smov %s8509_s26 }
 0x969   : > { %s10588_s21 = smov %s8497_s16  ;;  %34 = sbr.rel (!%p32_p6) target bundleno = 19 (0x13), region = 157 }
 0x96e   :  { %6529 = vsyncpa [#allocation3], 1 }
 0x96f   :  { %6531 = vsyncpa [#allocation3 + $0x1], 1 }
 0x970   :  { %6532 = vsyncpa [#allocation6], 1 }
 0x971   :  { %6533 = vsyncpa [#allocation9], 1 }
 0x972   :  { %6534 = vsyncpa [#allocation12], 1 }
 0x973   :  { %6535 = vsyncpa [#allocation15], 1 }
 0x974   :  { %6536 = vsyncpa [#allocation4], 1 }
 0x975   :  { %6538 = vsyncpa [#allocation4 + $0x1], 1 }

</bundles_post_ra>
